<compile_context>
chip_gen: v7x
topology: tpu7x:2x2x1
jax: 0.10.0
libtpu: 0.0.40
codegen_flags: <defaults>
</compile_context>

<pallas_src>
import jax
import jax.numpy as jnp
from jax import lax
from jax.experimental import pallas as pl
from jax.experimental.pallas import tpu as pltpu


# ------------------------------ small helpers -------------------------------

def _round_up(x, m):
    return ((x + m - 1) // m) * m


def _choose_tm(m, row_bytes, cap=1024, budget=4 << 20):
    """Row tile for M-tiled kernels: as large as fits a ~4MB/block budget."""
    t = min(cap, max(8, budget // max(row_bytes, 1)))
    t = max(8, (t // 8) * 8)
    if m <= t:
        return _round_up(m, 8)
    return t


def _choose_tn(m, cap=1024):
    """Lane tile for the transposed final GEMM (M sits on the lane axis)."""
    return min(cap, _round_up(m, 128))


def _pad_rows(a, m_pad):
    return a if a.shape[0] == m_pad else jnp.pad(a, ((0, m_pad - a.shape[0]), (0, 0)))


def _pad_cols(a, n_pad):
    return a if a.shape[1] == n_pad else jnp.pad(a, ((0, 0), (0, n_pad - a.shape[1])))


# ------------------------------ Pallas kernels -------------------------------

def _gemm_bn_stats_kernel(a_ref, w_ref, o_ref, sum_ref, sq_ref):
    """(tm,K) @ (K,N) GEMM with fused per-column sum / sum-of-squares (f32)."""
    @pl.when(pl.program_id(0) == 0)
    def _():
        sum_ref[...] = jnp.zeros_like(sum_ref)
        sq_ref[...] = jnp.zeros_like(sq_ref)

    acc = jnp.dot(a_ref[...], w_ref[...], preferred_element_type=jnp.float32)
    o_ref[...] = acc
    sum_ref[...] += jnp.sum(acc, axis=0, keepdims=True)
    sq_ref[...] += jnp.sum(acc * acc, axis=0, keepdims=True)


def pallas_gemm_bn_stats(a, w, tm):
    m_pad, k = a.shape
    n = w.shape[1]
    return pl.pallas_call(
        _gemm_bn_stats_kernel,
        out_shape=(jax.ShapeDtypeStruct((m_pad, n), jnp.float32),
                   jax.ShapeDtypeStruct((1, n), jnp.float32),
                   jax.ShapeDtypeStruct((1, n), jnp.float32)),
        grid=(m_pad // tm,),
        in_specs=[pl.BlockSpec((tm, k), lambda i: (i, 0)),
                  pl.BlockSpec((k, n), lambda i: (0, 0))],
        out_specs=(pl.BlockSpec((tm, n), lambda i: (i, 0)),
                   pl.BlockSpec((1, n), lambda i: (0, 0)),
                   pl.BlockSpec((1, n), lambda i: (0, 0))),
        compiler_params=pltpu.CompilerParams(
            dimension_semantics=("arbitrary",)),   # stats accumulate across M steps
    )(a, w)


def _scale_shift_relu_kernel(x_ref, scale_ref, shift_ref, o_ref):
    y = x_ref[...] * scale_ref[...] + shift_ref[...]
    o_ref[...] = jnp.maximum(y, 0.0).astype(o_ref.dtype)


def pallas_scale_shift_relu(x, scale, shift, tm, out_dtype):
    m_pad, n = x.shape
    return pl.pallas_call(
        _scale_shift_relu_kernel,
        out_shape=jax.ShapeDtypeStruct((m_pad, n), out_dtype),
        grid=(m_pad // tm,),
        in_specs=[pl.BlockSpec((tm, n), lambda i: (i, 0)),
                  pl.BlockSpec((1, n), lambda i: (0, 0)),
                  pl.BlockSpec((1, n), lambda i: (0, 0))],
        out_specs=pl.BlockSpec((tm, n), lambda i: (i, 0)),
        compiler_params=pltpu.CompilerParams(
            dimension_semantics=("parallel",)),
    )(x, scale, shift)


def _gemm_bias_tanh_t_kernel(wt_ref, at_ref, bias_ref, o_ref):
    """Transposed GEMM: (Cpad,K) @ (K,tn) + bias, tanh. M sits on lanes."""
    acc = jnp.dot(wt_ref[...], at_ref[...], preferred_element_type=jnp.float32)
    o_ref[...] = jnp.tanh(acc + bias_ref[...])


def pallas_gemm_bias_tanh_t(w_t, a_t, bias_col, tn):
    c_pad, k = w_t.shape
    m_pad = a_t.shape[1]
    return pl.pallas_call(
        _gemm_bias_tanh_t_kernel,
        out_shape=jax.ShapeDtypeStruct((c_pad, m_pad), jnp.float32),
        grid=(m_pad // tn,),
        in_specs=[pl.BlockSpec((c_pad, k), lambda i: (0, 0)),
                  pl.BlockSpec((k, tn), lambda i: (0, i)),
                  pl.BlockSpec((c_pad, 1), lambda i: (0, 0))],
        out_specs=pl.BlockSpec((c_pad, tn), lambda i: (0, i)),
        compiler_params=pltpu.CompilerParams(
            dimension_semantics=("parallel",)),
    )(w_t, a_t, bias_col)


# ------------------------------ JAX-side glue --------------------------------

def _extract_patches3(x_pad):
    """3x3 stride-1 im2col on an already spatially-padded NHWC input.
    Column order is (dh, dw, ci); rows are (n, i, j)."""
    n, hp, wp, c = x_pad.shape
    h, w = hp - 2, wp - 2
    pats = []
    for kh in range(3):
        for kw in range(3):
            pats.append(x_pad[:, kh:kh + h, kw:kw + w, :])
    return jnp.concatenate(pats, axis=-1).reshape(n * h * w, 9 * c)


def _subpixel_weight(w):
    """PyTorch ConvTranspose2d weight (Cin, Cout, 4, 4) with stride=2, padding=1
    -> equivalent stride-1 3x3-window conv producing the 4 output-pixel parities,
    flattened to a (9*Cin, 4*Cout) GEMM matrix (rows (dh,dw,ci), cols (py,px,co))."""
    cin, cout = w.shape[0], w.shape[1]
    # kernel tap used for (output parity, window offset d in {-1,0,+1}); mask = valid
    kidx = jnp.array([[3, 1, 0], [0, 2, 0]], dtype=jnp.int32)
    kmsk = jnp.array([[1.0, 1.0, 0.0], [0.0, 1.0, 1.0]], dtype=w.dtype)
    wt = jnp.transpose(w, (2, 3, 0, 1))             # (kh, kw, cin, cout)
    g = wt[kidx][:, :, kidx]                        # (py, dh, px, dw, cin, cout)
    g = g * kmsk[:, :, None, None, None, None] * kmsk[None, None, :, :, None, None]
    g = jnp.transpose(g, (1, 3, 4, 0, 2, 5))        # (dh, dw, cin, py, px, cout)
    return g.reshape(9 * cin, 4 * cout)


def _depth_to_space(y, n, h, w, cout):
    """(n*h*w, 4*cout) with columns (py, px, co) -> NHWC (n, 2h, 2w, cout)."""
    y = y.reshape(n, h, w, 2, 2, cout)
    y = jnp.transpose(y, (0, 1, 3, 2, 4, 5))
    return y.reshape(n, 2 * h, 2 * w, cout)


def _bn_scale_shift_cols(colsum, colsq, count, groups, cout, gamma, beta, eps):
    """Fold per-column sums into per-channel (biased) batch stats, then expand
    the affine scale/shift back to the GEMM column layout (group-major, co inner)."""
    s = colsum.reshape(groups, cout).sum(axis=0)
    sq = colsq.reshape(groups, cout).sum(axis=0)
    mean = s / count
    var = jnp.maximum(sq / count - mean * mean, 0.0)
    scale = gamma * lax.rsqrt(var + eps)
    shift = beta - mean * scale
    return (jnp.tile(scale, groups).reshape(1, groups * cout),
            jnp.tile(shift, groups).reshape(1, groups * cout))


def generator_forward(z_nchw, params, eps=1e-5):
    cdt = jnp.bfloat16
    n = z_nchw.shape[0]

    # ---- block 0: ConvTranspose(noise, C0, 4, 1, 0) on a 1x1 input == dense matmul
    w0 = params["w0"]
    cin0, cout0 = w0.shape[0], w0.shape[1]
    a = z_nchw.reshape(n, cin0).astype(cdt)
    w0_mat = jnp.transpose(w0, (0, 2, 3, 1)).reshape(cin0, 16 * cout0).astype(cdt)
    tm = _choose_tm(n, 16 * cout0 * 4 + cin0 * 2)
    a = _pad_rows(a, _round_up(n, tm))
    y, csum, csq = pallas_gemm_bn_stats(a, w0_mat, tm)
    scale_c, shift_c = _bn_scale_shift_cols(
        csum, csq, n * 16, 16, cout0, params["gamma0"], params["beta0"], eps)
    y = pallas_scale_shift_relu(y, scale_c, shift_c, tm, cdt)
    x = y[:n].reshape(n, 4, 4, cout0)            # NHWC bf16, columns were (kh, kw, co)
    h = w = 4

    # ---- blocks 1..3: sub-pixel ConvTranspose(4, 2, 1) + BatchNorm + ReLU
    for idx in range(1, 4):
        wgt = params[f"w{idx}"]
        cin, cout = wgt.shape[0], wgt.shape[1]
        w_mat = _subpixel_weight(wgt).astype(cdt)                      # (9*cin, 4*cout)
        a = _extract_patches3(jnp.pad(x, ((0, 0), (1, 1), (1, 1), (0, 0))))
        m = n * h * w
        ncols = 4 * cout
        tm = _choose_tm(m, ncols * 4 + 9 * cin * 2)
        a = _pad_rows(a, _round_up(m, tm))
        y, csum, csq = pallas_gemm_bn_stats(a, w_mat, tm)
        scale_c, shift_c = _bn_scale_shift_cols(
            csum, csq, m * 4, 4, cout, params[f"gamma{idx}"], params[f"beta{idx}"], eps)
        y = pallas_scale_shift_relu(y, scale_c, shift_c, tm, cdt)
        x = _depth_to_space(y[:m], n, h, w, cout)
        h, w = 2 * h, 2 * w

    # ---- final: sub-pixel ConvTranspose(4, 2, 1) + bias + tanh, fused & transposed
    w4 = params["w4"]
    cout4 = w4.shape[1]
    m = n * h * w
    a_t = _extract_patches3(jnp.pad(x, ((0, 0), (1, 1), (1, 1), (0, 0)))).T  # (K, M)
    tn = _choose_tn(m)
    a_t = _pad_cols(a_t.astype(cdt), _round_up(m, tn))
    c4 = 4 * cout4
    c_pad = _round_up(c4, 16)
    w_t = jnp.pad(_subpixel_weight(w4).T, ((0, c_pad - c4), (0, 0))).astype(cdt)
    bias_col = jnp.pad(jnp.tile(params["b4"], 4), (0, c_pad - c4))
    bias_col = bias_col.reshape(c_pad, 1).astype(jnp.float32)
    y_t = pallas_gemm_bias_tanh_t(w_t, a_t, bias_col, tn)        # (c_pad, m_pad) f32
    y = y_t[:c4, :m].T                                           # (M, 4*cout4)
    out = _depth_to_space(y, n, h, w, cout4)                     # (n, 2h, 2w, cout4)
    return jnp.transpose(out, (0, 3, 1, 2))                      # NCHW


# --------------------- pure-JAX reference (for validation) -------------------

def _ref_conv_transpose(x, w, stride, pad):
    k = w.shape[-1]
    wr = jnp.transpose(w[:, :, ::-1, ::-1], (1, 0, 2, 3))   # (Cout, Cin, kh, kw)
    return lax.conv_general_dilated(
        x, wr, window_strides=(1, 1),
        padding=[(k - 1 - pad, k - 1 - pad)] * 2,
        lhs_dilation=(stride, stride),
        dimension_numbers=("NCHW", "OIHW", "NCHW"),
        precision=lax.Precision.HIGHEST)


def _ref_bn_relu(x, gamma, beta, eps=1e-5):
    mean = x.mean(axis=(0, 2, 3), keepdims=True)
    var = ((x - mean) ** 2).mean(axis=(0, 2, 3), keepdims=True)
    y = (x - mean) * lax.rsqrt(var + eps)
    y = y * gamma.reshape(1, -1, 1, 1) + beta.reshape(1, -1, 1, 1)
    return jnp.maximum(y, 0.0)


def reference_forward(z, params, eps=1e-5):
    x = z
    for i, (s, p) in enumerate([(1, 0), (2, 1), (2, 1), (2, 1)]):
        x = _ref_conv_transpose(x, params[f"w{i}"], s, p)
        x = _ref_bn_relu(x, params[f"gamma{i}"], params[f"beta{i}"], eps)
    x = _ref_conv_transpose(x, params["w4"], 2, 1) + params["b4"].reshape(1, -1, 1, 1)
    return jnp.tanh(x)


# ------------------------------ params / main --------------------------------

def init_params(key, noise_dim, channels_img, features_gen):
    chans = [noise_dim, features_gen * 16, features_gen * 8,
             features_gen * 4, features_gen * 2, channels_img]
    params = {}
    keys = jax.random.split(key, 6)
    for i in range(5):
        cin, cout = chans[i], chans[i + 1]
        params[f"w{i}"] = 0.02 * jax.random.normal(keys[i], (cin, cout, 4, 4), jnp.float32)
        if i < 4:
            params[f"gamma{i}"] = jnp.ones((cout,), jnp.float32)
            params[f"beta{i}"] = jnp.zeros((cout,), jnp.float32)
    params["b4"] = 0.02 * jax.random.normal(keys[5], (channels_img,), jnp.float32)
    return params


if __name__ == "__main__":
    key = jax.random.PRNGKey(0)
    noise_dim, channels_img, features_gen = 64, 3, 8
    batch = 2

    kp, kz = jax.random.split(key)
    params = init_params(kp, noise_dim, channels_img, features_gen)
    z = jax.random.normal(kz, (batch, noise_dim, 1, 1), jnp.float32)

    fwd = jax.jit(generator_forward)
    out = jax.block_until_ready(fwd(z, params))

    assert out.shape == (batch, channels_img, 64, 64), out.shape
    assert bool(jnp.all(jnp.isfinite(out)))
    assert bool(jnp.all(jnp.abs(out) <= 1.0))   # tanh range

    # numerical check against a pure-JAX/XLA reference of the same module
    # (loose tolerance: Pallas path uses bf16 GEMM operands)
    ref = jax.block_until_ready(reference_forward(z, params))
    max_err = float(jnp.max(jnp.abs(out - ref)))
    assert max_err < 0.1, max_err

    print("KERNEL_OK")
</pallas_src>

<mosaic_0001>
module attributes {stable_mosaic.version = 11 : i64} {
  func.func @_scale_shift_relu_kernel(%arg0: i32, %arg1: memref<8x2048xf32, #tpu.memory_space<vmem>>, %arg2: memref<1x2048xf32, #tpu.memory_space<vmem>>, %arg3: memref<1x2048xf32, #tpu.memory_space<vmem>>, %arg4: memref<8x2048xbf16, #tpu.memory_space<vmem>>) attributes {dimension_semantics = [#tpu.dimension_semantics<parallel>], iteration_bounds = array<i64: 1>, scalar_prefetch = 0 : i64, scratch_operands = 0 : i64, tpu.core_type = #tpu.core_type<tc>, window_params = [{transform_indices = @transform_0, window_bounds = array<i64: 8, 2048>}, {pipeline_mode = #tpu.pipeline_mode<synchronous>, transform_indices = @transform_1, window_bounds = array<i64: 1, 2048>}, {pipeline_mode = #tpu.pipeline_mode<synchronous>, transform_indices = @transform_2, window_bounds = array<i64: 1, 2048>}, {transform_indices = @transform_3, window_bounds = array<i64: 8, 2048>}]} {
    %c0 = arith.constant 0 : index
    %c0_0 = arith.constant 0 : index
    %0 = vector.load %arg1[%c0, %c0_0] : memref<8x2048xf32, #tpu.memory_space<vmem>>, vector<8x2048xf32>
    %c0_1 = arith.constant 0 : index
    %c0_2 = arith.constant 0 : index
    %1 = vector.load %arg2[%c0_1, %c0_2] : memref<1x2048xf32, #tpu.memory_space<vmem>>, vector<1x2048xf32>
    %2 = vector.broadcast %1 : vector<1x2048xf32> to vector<8x2048xf32>
    %3 = arith.mulf %0, %2 : vector<8x2048xf32>
    %c0_3 = arith.constant 0 : index
    %c0_4 = arith.constant 0 : index
    %4 = vector.load %arg3[%c0_3, %c0_4] : memref<1x2048xf32, #tpu.memory_space<vmem>>, vector<1x2048xf32>
    %5 = vector.broadcast %4 : vector<1x2048xf32> to vector<8x2048xf32>
    %6 = arith.addf %3, %5 : vector<8x2048xf32>
    %cst = arith.constant 0.000000e+00 : f32
    %7 = vector.broadcast %cst : f32 to vector<8x2048xf32>
    %8 = arith.maximumf %6, %7 : vector<8x2048xf32>
    %9 = arith.truncf %8 : vector<8x2048xf32> to vector<8x2048xbf16>
    %c0_5 = arith.constant 0 : index
    %c0_6 = arith.constant 0 : index
    %10 = vector.load %arg4[%c0_5, %c0_6] : memref<8x2048xbf16, #tpu.memory_space<vmem>>, vector<8x2048xbf16>
    tpu.vector_store %arg4[%c0_5, %c0_6], %9 {strides = array<i32>} : memref<8x2048xbf16, #tpu.memory_space<vmem>>, vector<8x2048xbf16>,
    return
  }
  func.func @transform_0(%arg0: i32) -> (i32, i32) {
    %c0_i32 = arith.constant 0 : i32
    %c0_i32_0 = arith.constant 0 : i32
    return %arg0, %c0_i32 : i32, i32
  }
  func.func @transform_1(%arg0: i32) -> (i32, i32) {
    %c0_i32 = arith.constant 0 : i32
    %c0_i32_0 = arith.constant 0 : i32
    %c0_i32_1 = arith.constant 0 : i32
    return %c0_i32, %c0_i32_0 : i32, i32
  }
  func.func @transform_2(%arg0: i32) -> (i32, i32) {
    %c0_i32 = arith.constant 0 : i32
    %c0_i32_0 = arith.constant 0 : i32
    %c0_i32_1 = arith.constant 0 : i32
    return %c0_i32, %c0_i32_0 : i32, i32
  }
  func.func @transform_3(%arg0: i32) -> (i32, i32) {
    %c0_i32 = arith.constant 0 : i32
    %c0_i32_0 = arith.constant 0 : i32
    return %arg0, %c0_i32 : i32, i32
  }
}

module attributes {stable_mosaic.version = 11 : i64} {
  func.func @_gemm_bn_stats_kernel(%arg0: i32, %arg1: memref<8x64xbf16, #tpu.memory_space<vmem>>, %arg2: memref<64x2048xbf16, #tpu.memory_space<vmem>>, %arg3: memref<8x2048xf32, #tpu.memory_space<vmem>>, %arg4: memref<1x2048xf32, #tpu.memory_space<vmem>>, %arg5: memref<1x2048xf32, #tpu.memory_space<vmem>>) attributes {dimension_semantics = [#tpu.dimension_semantics<arbitrary>], iteration_bounds = array<i64: 1>, scalar_prefetch = 0 : i64, scratch_operands = 0 : i64, tpu.core_type = #tpu.core_type<tc>, window_params = [{transform_indices = @transform_0, window_bounds = array<i64: 8, 64>}, {pipeline_mode = #tpu.pipeline_mode<synchronous>, transform_indices = @transform_1, window_bounds = array<i64: 64, 2048>}, {transform_indices = @transform_2, window_bounds = array<i64: 8, 2048>}, {pipeline_mode = #tpu.pipeline_mode<synchronous>, transform_indices = @transform_3, window_bounds = array<i64: 1, 2048>}, {pipeline_mode = #tpu.pipeline_mode<synchronous>, transform_indices = @transform_4, window_bounds = array<i64: 1, 2048>}]} {
    %c0_i32 = arith.constant 0 : i32
    %0 = arith.cmpi eq, %arg0, %c0_i32 : i32
    %1 = arith.extui %0 : i1 to i32
    %c0_i32_0 = arith.constant 0 : i32
    %2 = arith.cmpi ne, %1, %c0_i32_0 : i32
    scf.if %2 {
      %cst_16 = arith.constant 0.000000e+00 : f32
      %18 = vector.broadcast %cst_16 : f32 to vector<1x2048xf32>
      %c0_17 = arith.constant 0 : index
      %c0_18 = arith.constant 0 : index
      %19 = vector.load %arg4[%c0_17, %c0_18] : memref<1x2048xf32, #tpu.memory_space<vmem>>, vector<1x2048xf32>
      tpu.vector_store %arg4[%c0_17, %c0_18], %18 {strides = array<i32>} : memref<1x2048xf32, #tpu.memory_space<vmem>>, vector<1x2048xf32>,
      %cst_19 = arith.constant 0.000000e+00 : f32
      %20 = vector.broadcast %cst_19 : f32 to vector<1x2048xf32>
      %c0_20 = arith.constant 0 : index
      %c0_21 = arith.constant 0 : index
      %21 = vector.load %arg5[%c0_20, %c0_21] : memref<1x2048xf32, #tpu.memory_space<vmem>>, vector<1x2048xf32>
      tpu.vector_store %arg5[%c0_20, %c0_21], %20 {strides = array<i32>} : memref<1x2048xf32, #tpu.memory_space<vmem>>, vector<1x2048xf32>,
    } else {
    }
    %c0 = arith.constant 0 : index
    %c0_1 = arith.constant 0 : index
    %3 = vector.load %arg1[%c0, %c0_1] : memref<8x64xbf16, #tpu.memory_space<vmem>>, vector<8x64xbf16>
    %c0_2 = arith.constant 0 : index
    %c0_3 = arith.constant 0 : index
    %4 = vector.load %arg2[%c0_2, %c0_3] : memref<64x2048xbf16, #tpu.memory_space<vmem>>, vector<64x2048xbf16>
    %cst = arith.constant dense<0.000000e+00> : vector<8x2048xf32>
    %5 = tpu.matmul %3, %4, %cst {dimension_numbers = #tpu.dot_dimension_numbers<[1], [0], [0], [1], [0, 0, 1, 1], [], []>} : vector<8x64xbf16>, vector<64x2048xbf16>, vector<8x2048xf32> -> vector<8x2048xf32>
    %c0_4 = arith.constant 0 : index
    %c0_5 = arith.constant 0 : index
    %6 = vector.load %arg3[%c0_4, %c0_5] : memref<8x2048xf32, #tpu.memory_space<vmem>>, vector<8x2048xf32>
    tpu.vector_store %arg3[%c0_4, %c0_5], %5 {strides = array<i32>} : memref<8x2048xf32, #tpu.memory_space<vmem>>, vector<8x2048xf32>,
    %c0_6 = arith.constant 0 : index
    %c0_7 = arith.constant 0 : index
    %7 = vector.load %arg4[%c0_6, %c0_7] : memref<1x2048xf32, #tpu.memory_space<vmem>>, vector<1x2048xf32>
    %cst_8 = arith.constant dense<0.000000e+00> : vector<2048xf32>
    %8 = vector.multi_reduction <add>, %5, %cst_8 [0] : vector<8x2048xf32> to vector<2048xf32>
    %9 = vector.shape_cast %8 : vector<2048xf32> to vector<1x2048xf32>
    %10 = arith.addf %7, %9 : vector<1x2048xf32>
    %c0_9 = arith.constant 0 : index
    %c0_10 = arith.constant 0 : index
    %11 = vector.load %arg4[%c0_9, %c0_10] : memref<1x2048xf32, #tpu.memory_space<vmem>>, vector<1x2048xf32>
    tpu.vector_store %arg4[%c0_9, %c0_10], %10 {strides = array<i32>} : memref<1x2048xf32, #tpu.memory_space<vmem>>, vector<1x2048xf32>,
    %c0_11 = arith.constant 0 : index
    %c0_12 = arith.constant 0 : index
    %12 = vector.load %arg5[%c0_11, %c0_12] : memref<1x2048xf32, #tpu.memory_space<vmem>>, vector<1x2048xf32>
    %13 = arith.mulf %5, %5 : vector<8x2048xf32>
    %cst_13 = arith.constant dense<0.000000e+00> : vector<2048xf32>
    %14 = vector.multi_reduction <add>, %13, %cst_13 [0] : vector<8x2048xf32> to vector<2048xf32>
    %15 = vector.shape_cast %14 : vector<2048xf32> to vector<1x2048xf32>
    %16 = arith.addf %12, %15 : vector<1x2048xf32>
    %c0_14 = arith.constant 0 : index
    %c0_15 = arith.constant 0 : index
    %17 = vector.load %arg5[%c0_14, %c0_15] : memref<1x2048xf32, #tpu.memory_space<vmem>>, vector<1x2048xf32>
    tpu.vector_store %arg5[%c0_14, %c0_15], %16 {strides = array<i32>} : memref<1x2048xf32, #tpu.memory_space<vmem>>, vector<1x2048xf32>,
    return
  }
  func.func @transform_0(%arg0: i32) -> (i32, i32) {
    %c0_i32 = arith.constant 0 : i32
    %c0_i32_0 = arith.constant 0 : i32
    return %arg0, %c0_i32 : i32, i32
  }
  func.func @transform_1(%arg0: i32) -> (i32, i32) {
    %c0_i32 = arith.constant 0 : i32
    %c0_i32_0 = arith.constant 0 : i32
    %c0_i32_1 = arith.constant 0 : i32
    return %c0_i32, %c0_i32_0 : i32, i32
  }
  func.func @transform_2(%arg0: i32) -> (i32, i32) {
    %c0_i32 = arith.constant 0 : i32
    %c0_i32_0 = arith.constant 0 : i32
    return %arg0, %c0_i32 : i32, i32
  }
  func.func @transform_3(%arg0: i32) -> (i32, i32) {
    %c0_i32 = arith.constant 0 : i32
    %c0_i32_0 = arith.constant 0 : i32
    %c0_i32_1 = arith.constant 0 : i32
    return %c0_i32, %c0_i32_0 : i32, i32
  }
  func.func @transform_4(%arg0: i32) -> (i32, i32) {
    %c0_i32 = arith.constant 0 : i32
    %c0_i32_0 = arith.constant 0 : i32
    %c0_i32_1 = arith.constant 0 : i32
    return %c0_i32, %c0_i32_0 : i32, i32
  }
}

module attributes {stable_mosaic.version = 11 : i64} {
  func.func @_gemm_bn_stats_kernel(%arg0: i32, %arg1: memref<32x1152xbf16, #tpu.memory_space<vmem>>, %arg2: memref<1152x256xbf16, #tpu.memory_space<vmem>>, %arg3: memref<32x256xf32, #tpu.memory_space<vmem>>, %arg4: memref<1x256xf32, #tpu.memory_space<vmem>>, %arg5: memref<1x256xf32, #tpu.memory_space<vmem>>) attributes {dimension_semantics = [#tpu.dimension_semantics<arbitrary>], iteration_bounds = array<i64: 1>, scalar_prefetch = 0 : i64, scratch_operands = 0 : i64, tpu.core_type = #tpu.core_type<tc>, window_params = [{transform_indices = @transform_0, window_bounds = array<i64: 32, 1152>}, {pipeline_mode = #tpu.pipeline_mode<synchronous>, transform_indices = @transform_1, window_bounds = array<i64: 1152, 256>}, {transform_indices = @transform_2, window_bounds = array<i64: 32, 256>}, {pipeline_mode = #tpu.pipeline_mode<synchronous>, transform_indices = @transform_3, window_bounds = array<i64: 1, 256>}, {pipeline_mode = #tpu.pipeline_mode<synchronous>, transform_indices = @transform_4, window_bounds = array<i64: 1, 256>}]} {
    %c0_i32 = arith.constant 0 : i32
    %0 = arith.cmpi eq, %arg0, %c0_i32 : i32
    %1 = arith.extui %0 : i1 to i32
    %c0_i32_0 = arith.constant 0 : i32
    %2 = arith.cmpi ne, %1, %c0_i32_0 : i32
    scf.if %2 {
      %cst_16 = arith.constant 0.000000e+00 : f32
      %18 = vector.broadcast %cst_16 : f32 to vector<1x256xf32>
      %c0_17 = arith.constant 0 : index
      %c0_18 = arith.constant 0 : index
      %19 = vector.load %arg4[%c0_17, %c0_18] : memref<1x256xf32, #tpu.memory_space<vmem>>, vector<1x256xf32>
      tpu.vector_store %arg4[%c0_17, %c0_18], %18 {strides = array<i32>} : memref<1x256xf32, #tpu.memory_space<vmem>>, vector<1x256xf32>,
      %cst_19 = arith.constant 0.000000e+00 : f32
      %20 = vector.broadcast %cst_19 : f32 to vector<1x256xf32>
      %c0_20 = arith.constant 0 : index
      %c0_21 = arith.constant 0 : index
      %21 = vector.load %arg5[%c0_20, %c0_21] : memref<1x256xf32, #tpu.memory_space<vmem>>, vector<1x256xf32>
      tpu.vector_store %arg5[%c0_20, %c0_21], %20 {strides = array<i32>} : memref<1x256xf32, #tpu.memory_space<vmem>>, vector<1x256xf32>,
    } else {
    }
    %c0 = arith.constant 0 : index
    %c0_1 = arith.constant 0 : index
    %3 = vector.load %arg1[%c0, %c0_1] : memref<32x1152xbf16, #tpu.memory_space<vmem>>, vector<32x1152xbf16>
    %c0_2 = arith.constant 0 : index
    %c0_3 = arith.constant 0 : index
    %4 = vector.load %arg2[%c0_2, %c0_3] : memref<1152x256xbf16, #tpu.memory_space<vmem>>, vector<1152x256xbf16>
    %cst = arith.constant dense<0.000000e+00> : vector<32x256xf32>
    %5 = tpu.matmul %3, %4, %cst {dimension_numbers = #tpu.dot_dimension_numbers<[1], [0], [0], [1], [0, 0, 1, 1], [], []>} : vector<32x1152xbf16>, vector<1152x256xbf16>, vector<32x256xf32> -> vector<32x256xf32>
    %c0_4 = arith.constant 0 : index
    %c0_5 = arith.constant 0 : index
    %6 = vector.load %arg3[%c0_4, %c0_5] : memref<32x256xf32, #tpu.memory_space<vmem>>, vector<32x256xf32>
    tpu.vector_store %arg3[%c0_4, %c0_5], %5 {strides = array<i32>} : memref<32x256xf32, #tpu.memory_space<vmem>>, vector<32x256xf32>,
    %c0_6 = arith.constant 0 : index
    %c0_7 = arith.constant 0 : index
    %7 = vector.load %arg4[%c0_6, %c0_7] : memref<1x256xf32, #tpu.memory_space<vmem>>, vector<1x256xf32>
    %cst_8 = arith.constant dense<0.000000e+00> : vector<256xf32>
    %8 = vector.multi_reduction <add>, %5, %cst_8 [0] : vector<32x256xf32> to vector<256xf32>
    %9 = vector.shape_cast %8 : vector<256xf32> to vector<1x256xf32>
    %10 = arith.addf %7, %9 : vector<1x256xf32>
    %c0_9 = arith.constant 0 : index
    %c0_10 = arith.constant 0 : index
    %11 = vector.load %arg4[%c0_9, %c0_10] : memref<1x256xf32, #tpu.memory_space<vmem>>, vector<1x256xf32>
    tpu.vector_store %arg4[%c0_9, %c0_10], %10 {strides = array<i32>} : memref<1x256xf32, #tpu.memory_space<vmem>>, vector<1x256xf32>,
    %c0_11 = arith.constant 0 : index
    %c0_12 = arith.constant 0 : index
    %12 = vector.load %arg5[%c0_11, %c0_12] : memref<1x256xf32, #tpu.memory_space<vmem>>, vector<1x256xf32>
    %13 = arith.mulf %5, %5 : vector<32x256xf32>
    %cst_13 = arith.constant dense<0.000000e+00> : vector<256xf32>
    %14 = vector.multi_reduction <add>, %13, %cst_13 [0] : vector<32x256xf32> to vector<256xf32>
    %15 = vector.shape_cast %14 : vector<256xf32> to vector<1x256xf32>
    %16 = arith.addf %12, %15 : vector<1x256xf32>
    %c0_14 = arith.constant 0 : index
    %c0_15 = arith.constant 0 : index
    %17 = vector.load %arg5[%c0_14, %c0_15] : memref<1x256xf32, #tpu.memory_space<vmem>>, vector<1x256xf32>
    tpu.vector_store %arg5[%c0_14, %c0_15], %16 {strides = array<i32>} : memref<1x256xf32, #tpu.memory_space<vmem>>, vector<1x256xf32>,
    return
  }
  func.func @transform_0(%arg0: i32) -> (i32, i32) {
    %c0_i32 = arith.constant 0 : i32
    %c0_i32_0 = arith.constant 0 : i32
    return %arg0, %c0_i32 : i32, i32
  }
  func.func @transform_1(%arg0: i32) -> (i32, i32) {
    %c0_i32 = arith.constant 0 : i32
    %c0_i32_0 = arith.constant 0 : i32
    %c0_i32_1 = arith.constant 0 : i32
    return %c0_i32, %c0_i32_0 : i32, i32
  }
  func.func @transform_2(%arg0: i32) -> (i32, i32) {
    %c0_i32 = arith.constant 0 : i32
    %c0_i32_0 = arith.constant 0 : i32
    return %arg0, %c0_i32 : i32, i32
  }
  func.func @transform_3(%arg0: i32) -> (i32, i32) {
    %c0_i32 = arith.constant 0 : i32
    %c0_i32_0 = arith.constant 0 : i32
    %c0_i32_1 = arith.constant 0 : i32
    return %c0_i32, %c0_i32_0 : i32, i32
  }
  func.func @transform_4(%arg0: i32) -> (i32, i32) {
    %c0_i32 = arith.constant 0 : i32
    %c0_i32_0 = arith.constant 0 : i32
    %c0_i32_1 = arith.constant 0 : i32
    return %c0_i32, %c0_i32_0 : i32, i32
  }
}

module attributes {stable_mosaic.version = 11 : i64} {
  func.func @_scale_shift_relu_kernel(%arg0: i32, %arg1: memref<32x256xf32, #tpu.memory_space<vmem>>, %arg2: memref<1x256xf32, #tpu.memory_space<vmem>>, %arg3: memref<1x256xf32, #tpu.memory_space<vmem>>, %arg4: memref<32x256xbf16, #tpu.memory_space<vmem>>) attributes {dimension_semantics = [#tpu.dimension_semantics<parallel>], iteration_bounds = array<i64: 1>, scalar_prefetch = 0 : i64, scratch_operands = 0 : i64, tpu.core_type = #tpu.core_type<tc>, window_params = [{transform_indices = @transform_0, window_bounds = array<i64: 32, 256>}, {pipeline_mode = #tpu.pipeline_mode<synchronous>, transform_indices = @transform_1, window_bounds = array<i64: 1, 256>}, {pipeline_mode = #tpu.pipeline_mode<synchronous>, transform_indices = @transform_2, window_bounds = array<i64: 1, 256>}, {transform_indices = @transform_3, window_bounds = array<i64: 32, 256>}]} {
    %c0 = arith.constant 0 : index
    %c0_0 = arith.constant 0 : index
    %0 = vector.load %arg1[%c0, %c0_0] : memref<32x256xf32, #tpu.memory_space<vmem>>, vector<32x256xf32>
    %c0_1 = arith.constant 0 : index
    %c0_2 = arith.constant 0 : index
    %1 = vector.load %arg2[%c0_1, %c0_2] : memref<1x256xf32, #tpu.memory_space<vmem>>, vector<1x256xf32>
    %2 = vector.broadcast %1 : vector<1x256xf32> to vector<32x256xf32>
    %3 = arith.mulf %0, %2 : vector<32x256xf32>
    %c0_3 = arith.constant 0 : index
    %c0_4 = arith.constant 0 : index
    %4 = vector.load %arg3[%c0_3, %c0_4] : memref<1x256xf32, #tpu.memory_space<vmem>>, vector<1x256xf32>
    %5 = vector.broadcast %4 : vector<1x256xf32> to vector<32x256xf32>
    %6 = arith.addf %3, %5 : vector<32x256xf32>
    %cst = arith.constant 0.000000e+00 : f32
    %7 = vector.broadcast %cst : f32 to vector<32x256xf32>
    %8 = arith.maximumf %6, %7 : vector<32x256xf32>
    %9 = arith.truncf %8 : vector<32x256xf32> to vector<32x256xbf16>
    %c0_5 = arith.constant 0 : index
    %c0_6 = arith.constant 0 : index
    %10 = vector.load %arg4[%c0_5, %c0_6] : memref<32x256xbf16, #tpu.memory_space<vmem>>, vector<32x256xbf16>
    tpu.vector_store %arg4[%c0_5, %c0_6], %9 {strides = array<i32>} : memref<32x256xbf16, #tpu.memory_space<vmem>>, vector<32x256xbf16>,
    return
  }
  func.func @transform_0(%arg0: i32) -> (i32, i32) {
    %c0_i32 = arith.constant 0 : i32
    %c0_i32_0 = arith.constant 0 : i32
    return %arg0, %c0_i32 : i32, i32
  }
  func.func @transform_1(%arg0: i32) -> (i32, i32) {
    %c0_i32 = arith.constant 0 : i32
    %c0_i32_0 = arith.constant 0 : i32
    %c0_i32_1 = arith.constant 0 : i32
    return %c0_i32, %c0_i32_0 : i32, i32
  }
  func.func @transform_2(%arg0: i32) -> (i32, i32) {
    %c0_i32 = arith.constant 0 : i32
    %c0_i32_0 = arith.constant 0 : i32
    %c0_i32_1 = arith.constant 0 : i32
    return %c0_i32, %c0_i32_0 : i32, i32
  }
  func.func @transform_3(%arg0: i32) -> (i32, i32) {
    %c0_i32 = arith.constant 0 : i32
    %c0_i32_0 = arith.constant 0 : i32
    return %arg0, %c0_i32 : i32, i32
  }
}

module attributes {stable_mosaic.version = 11 : i64} {
  func.func @_gemm_bn_stats_kernel(%arg0: i32, %arg1: memref<128x576xbf16, #tpu.memory_space<vmem>>, %arg2: memref<576x128xbf16, #tpu.memory_space<vmem>>, %arg3: memref<128x128xf32, #tpu.memory_space<vmem>>, %arg4: memref<1x128xf32, #tpu.memory_space<vmem>>, %arg5: memref<1x128xf32, #tpu.memory_space<vmem>>) attributes {dimension_semantics = [#tpu.dimension_semantics<arbitrary>], iteration_bounds = array<i64: 1>, scalar_prefetch = 0 : i64, scratch_operands = 0 : i64, tpu.core_type = #tpu.core_type<tc>, window_params = [{transform_indices = @transform_0, window_bounds = array<i64: 128, 576>}, {pipeline_mode = #tpu.pipeline_mode<synchronous>, transform_indices = @transform_1, window_bounds = array<i64: 576, 128>}, {transform_indices = @transform_2, window_bounds = array<i64: 128, 128>}, {pipeline_mode = #tpu.pipeline_mode<synchronous>, transform_indices = @transform_3, window_bounds = array<i64: 1, 128>}, {pipeline_mode = #tpu.pipeline_mode<synchronous>, transform_indices = @transform_4, window_bounds = array<i64: 1, 128>}]} {
    %c0_i32 = arith.constant 0 : i32
    %0 = arith.cmpi eq, %arg0, %c0_i32 : i32
    %1 = arith.extui %0 : i1 to i32
    %c0_i32_0 = arith.constant 0 : i32
    %2 = arith.cmpi ne, %1, %c0_i32_0 : i32
    scf.if %2 {
      %cst_16 = arith.constant 0.000000e+00 : f32
      %18 = vector.broadcast %cst_16 : f32 to vector<1x128xf32>
      %c0_17 = arith.constant 0 : index
      %c0_18 = arith.constant 0 : index
      %19 = vector.load %arg4[%c0_17, %c0_18] : memref<1x128xf32, #tpu.memory_space<vmem>>, vector<1x128xf32>
      tpu.vector_store %arg4[%c0_17, %c0_18], %18 {strides = array<i32>} : memref<1x128xf32, #tpu.memory_space<vmem>>, vector<1x128xf32>,
      %cst_19 = arith.constant 0.000000e+00 : f32
      %20 = vector.broadcast %cst_19 : f32 to vector<1x128xf32>
      %c0_20 = arith.constant 0 : index
      %c0_21 = arith.constant 0 : index
      %21 = vector.load %arg5[%c0_20, %c0_21] : memref<1x128xf32, #tpu.memory_space<vmem>>, vector<1x128xf32>
      tpu.vector_store %arg5[%c0_20, %c0_21], %20 {strides = array<i32>} : memref<1x128xf32, #tpu.memory_space<vmem>>, vector<1x128xf32>,
    } else {
    }
    %c0 = arith.constant 0 : index
    %c0_1 = arith.constant 0 : index
    %3 = vector.load %arg1[%c0, %c0_1] : memref<128x576xbf16, #tpu.memory_space<vmem>>, vector<128x576xbf16>
    %c0_2 = arith.constant 0 : index
    %c0_3 = arith.constant 0 : index
    %4 = vector.load %arg2[%c0_2, %c0_3] : memref<576x128xbf16, #tpu.memory_space<vmem>>, vector<576x128xbf16>
    %cst = arith.constant dense<0.000000e+00> : vector<128x128xf32>
    %5 = tpu.matmul %3, %4, %cst {dimension_numbers = #tpu.dot_dimension_numbers<[1], [0], [0], [1], [0, 0, 1, 1], [], []>} : vector<128x576xbf16>, vector<576x128xbf16>, vector<128x128xf32> -> vector<128x128xf32>
    %c0_4 = arith.constant 0 : index
    %c0_5 = arith.constant 0 : index
    %6 = vector.load %arg3[%c0_4, %c0_5] : memref<128x128xf32, #tpu.memory_space<vmem>>, vector<128x128xf32>
    tpu.vector_store %arg3[%c0_4, %c0_5], %5 {strides = array<i32>} : memref<128x128xf32, #tpu.memory_space<vmem>>, vector<128x128xf32>,
    %c0_6 = arith.constant 0 : index
    %c0_7 = arith.constant 0 : index
    %7 = vector.load %arg4[%c0_6, %c0_7] : memref<1x128xf32, #tpu.memory_space<vmem>>, vector<1x128xf32>
    %cst_8 = arith.constant dense<0.000000e+00> : vector<128xf32>
    %8 = vector.multi_reduction <add>, %5, %cst_8 [0] : vector<128x128xf32> to vector<128xf32>
    %9 = vector.shape_cast %8 : vector<128xf32> to vector<1x128xf32>
    %10 = arith.addf %7, %9 : vector<1x128xf32>
    %c0_9 = arith.constant 0 : index
    %c0_10 = arith.constant 0 : index
    %11 = vector.load %arg4[%c0_9, %c0_10] : memref<1x128xf32, #tpu.memory_space<vmem>>, vector<1x128xf32>
    tpu.vector_store %arg4[%c0_9, %c0_10], %10 {strides = array<i32>} : memref<1x128xf32, #tpu.memory_space<vmem>>, vector<1x128xf32>,
    %c0_11 = arith.constant 0 : index
    %c0_12 = arith.constant 0 : index
    %12 = vector.load %arg5[%c0_11, %c0_12] : memref<1x128xf32, #tpu.memory_space<vmem>>, vector<1x128xf32>
    %13 = arith.mulf %5, %5 : vector<128x128xf32>
    %cst_13 = arith.constant dense<0.000000e+00> : vector<128xf32>
    %14 = vector.multi_reduction <add>, %13, %cst_13 [0] : vector<128x128xf32> to vector<128xf32>
    %15 = vector.shape_cast %14 : vector<128xf32> to vector<1x128xf32>
    %16 = arith.addf %12, %15 : vector<1x128xf32>
    %c0_14 = arith.constant 0 : index
    %c0_15 = arith.constant 0 : index
    %17 = vector.load %arg5[%c0_14, %c0_15] : memref<1x128xf32, #tpu.memory_space<vmem>>, vector<1x128xf32>
    tpu.vector_store %arg5[%c0_14, %c0_15], %16 {strides = array<i32>} : memref<1x128xf32, #tpu.memory_space<vmem>>, vector<1x128xf32>,
    return
  }
  func.func @transform_0(%arg0: i32) -> (i32, i32) {
    %c0_i32 = arith.constant 0 : i32
    %c0_i32_0 = arith.constant 0 : i32
    return %arg0, %c0_i32 : i32, i32
  }
  func.func @transform_1(%arg0: i32) -> (i32, i32) {
    %c0_i32 = arith.constant 0 : i32
    %c0_i32_0 = arith.constant 0 : i32
    %c0_i32_1 = arith.constant 0 : i32
    return %c0_i32, %c0_i32_0 : i32, i32
  }
  func.func @transform_2(%arg0: i32) -> (i32, i32) {
    %c0_i32 = arith.constant 0 : i32
    %c0_i32_0 = arith.constant 0 : i32
    return %arg0, %c0_i32 : i32, i32
  }
  func.func @transform_3(%arg0: i32) -> (i32, i32) {
    %c0_i32 = arith.constant 0 : i32
    %c0_i32_0 = arith.constant 0 : i32
    %c0_i32_1 = arith.constant 0 : i32
    return %c0_i32, %c0_i32_0 : i32, i32
  }
  func.func @transform_4(%arg0: i32) -> (i32, i32) {
    %c0_i32 = arith.constant 0 : i32
    %c0_i32_0 = arith.constant 0 : i32
    %c0_i32_1 = arith.constant 0 : i32
    return %c0_i32, %c0_i32_0 : i32, i32
  }
}

module attributes {stable_mosaic.version = 11 : i64} {
  func.func @_scale_shift_relu_kernel(%arg0: i32, %arg1: memref<128x128xf32, #tpu.memory_space<vmem>>, %arg2: memref<1x128xf32, #tpu.memory_space<vmem>>, %arg3: memref<1x128xf32, #tpu.memory_space<vmem>>, %arg4: memref<128x128xbf16, #tpu.memory_space<vmem>>) attributes {dimension_semantics = [#tpu.dimension_semantics<parallel>], iteration_bounds = array<i64: 1>, scalar_prefetch = 0 : i64, scratch_operands = 0 : i64, tpu.core_type = #tpu.core_type<tc>, window_params = [{transform_indices = @transform_0, window_bounds = array<i64: 128, 128>}, {pipeline_mode = #tpu.pipeline_mode<synchronous>, transform_indices = @transform_1, window_bounds = array<i64: 1, 128>}, {pipeline_mode = #tpu.pipeline_mode<synchronous>, transform_indices = @transform_2, window_bounds = array<i64: 1, 128>}, {transform_indices = @transform_3, window_bounds = array<i64: 128, 128>}]} {
    %c0 = arith.constant 0 : index
    %c0_0 = arith.constant 0 : index
    %0 = vector.load %arg1[%c0, %c0_0] : memref<128x128xf32, #tpu.memory_space<vmem>>, vector<128x128xf32>
    %c0_1 = arith.constant 0 : index
    %c0_2 = arith.constant 0 : index
    %1 = vector.load %arg2[%c0_1, %c0_2] : memref<1x128xf32, #tpu.memory_space<vmem>>, vector<1x128xf32>
    %2 = vector.broadcast %1 : vector<1x128xf32> to vector<128x128xf32>
    %3 = arith.mulf %0, %2 : vector<128x128xf32>
    %c0_3 = arith.constant 0 : index
    %c0_4 = arith.constant 0 : index
    %4 = vector.load %arg3[%c0_3, %c0_4] : memref<1x128xf32, #tpu.memory_space<vmem>>, vector<1x128xf32>
    %5 = vector.broadcast %4 : vector<1x128xf32> to vector<128x128xf32>
    %6 = arith.addf %3, %5 : vector<128x128xf32>
    %cst = arith.constant 0.000000e+00 : f32
    %7 = vector.broadcast %cst : f32 to vector<128x128xf32>
    %8 = arith.maximumf %6, %7 : vector<128x128xf32>
    %9 = arith.truncf %8 : vector<128x128xf32> to vector<128x128xbf16>
    %c0_5 = arith.constant 0 : index
    %c0_6 = arith.constant 0 : index
    %10 = vector.load %arg4[%c0_5, %c0_6] : memref<128x128xbf16, #tpu.memory_space<vmem>>, vector<128x128xbf16>
    tpu.vector_store %arg4[%c0_5, %c0_6], %9 {strides = array<i32>} : memref<128x128xbf16, #tpu.memory_space<vmem>>, vector<128x128xbf16>,
    return
  }
  func.func @transform_0(%arg0: i32) -> (i32, i32) {
    %c0_i32 = arith.constant 0 : i32
    %c0_i32_0 = arith.constant 0 : i32
    return %arg0, %c0_i32 : i32, i32
  }
  func.func @transform_1(%arg0: i32) -> (i32, i32) {
    %c0_i32 = arith.constant 0 : i32
    %c0_i32_0 = arith.constant 0 : i32
    %c0_i32_1 = arith.constant 0 : i32
    return %c0_i32, %c0_i32_0 : i32, i32
  }
  func.func @transform_2(%arg0: i32) -> (i32, i32) {
    %c0_i32 = arith.constant 0 : i32
    %c0_i32_0 = arith.constant 0 : i32
    %c0_i32_1 = arith.constant 0 : i32
    return %c0_i32, %c0_i32_0 : i32, i32
  }
  func.func @transform_3(%arg0: i32) -> (i32, i32) {
    %c0_i32 = arith.constant 0 : i32
    %c0_i32_0 = arith.constant 0 : i32
    return %arg0, %c0_i32 : i32, i32
  }
}

module attributes {stable_mosaic.version = 11 : i64} {
  func.func @_gemm_bn_stats_kernel(%arg0: i32, %arg1: memref<512x288xbf16, #tpu.memory_space<vmem>>, %arg2: memref<288x64xbf16, #tpu.memory_space<vmem>>, %arg3: memref<512x64xf32, #tpu.memory_space<vmem>>, %arg4: memref<1x64xf32, #tpu.memory_space<vmem>>, %arg5: memref<1x64xf32, #tpu.memory_space<vmem>>) attributes {dimension_semantics = [#tpu.dimension_semantics<arbitrary>], iteration_bounds = array<i64: 1>, scalar_prefetch = 0 : i64, scratch_operands = 0 : i64, tpu.core_type = #tpu.core_type<tc>, window_params = [{transform_indices = @transform_0, window_bounds = array<i64: 512, 288>}, {pipeline_mode = #tpu.pipeline_mode<synchronous>, transform_indices = @transform_1, window_bounds = array<i64: 288, 64>}, {transform_indices = @transform_2, window_bounds = array<i64: 512, 64>}, {pipeline_mode = #tpu.pipeline_mode<synchronous>, transform_indices = @transform_3, window_bounds = array<i64: 1, 64>}, {pipeline_mode = #tpu.pipeline_mode<synchronous>, transform_indices = @transform_4, window_bounds = array<i64: 1, 64>}]} {
    %c0_i32 = arith.constant 0 : i32
    %0 = arith.cmpi eq, %arg0, %c0_i32 : i32
    %1 = arith.extui %0 : i1 to i32
    %c0_i32_0 = arith.constant 0 : i32
    %2 = arith.cmpi ne, %1, %c0_i32_0 : i32
    scf.if %2 {
      %cst_16 = arith.constant 0.000000e+00 : f32
      %18 = vector.broadcast %cst_16 : f32 to vector<1x64xf32>
      %c0_17 = arith.constant 0 : index
      %c0_18 = arith.constant 0 : index
      %19 = vector.load %arg4[%c0_17, %c0_18] : memref<1x64xf32, #tpu.memory_space<vmem>>, vector<1x64xf32>
      tpu.vector_store %arg4[%c0_17, %c0_18], %18 {strides = array<i32>} : memref<1x64xf32, #tpu.memory_space<vmem>>, vector<1x64xf32>,
      %cst_19 = arith.constant 0.000000e+00 : f32
      %20 = vector.broadcast %cst_19 : f32 to vector<1x64xf32>
      %c0_20 = arith.constant 0 : index
      %c0_21 = arith.constant 0 : index
      %21 = vector.load %arg5[%c0_20, %c0_21] : memref<1x64xf32, #tpu.memory_space<vmem>>, vector<1x64xf32>
      tpu.vector_store %arg5[%c0_20, %c0_21], %20 {strides = array<i32>} : memref<1x64xf32, #tpu.memory_space<vmem>>, vector<1x64xf32>,
    } else {
    }
    %c0 = arith.constant 0 : index
    %c0_1 = arith.constant 0 : index
    %3 = vector.load %arg1[%c0, %c0_1] : memref<512x288xbf16, #tpu.memory_space<vmem>>, vector<512x288xbf16>
    %c0_2 = arith.constant 0 : index
    %c0_3 = arith.constant 0 : index
    %4 = vector.load %arg2[%c0_2, %c0_3] : memref<288x64xbf16, #tpu.memory_space<vmem>>, vector<288x64xbf16>
    %cst = arith.constant dense<0.000000e+00> : vector<512x64xf32>
    %5 = tpu.matmul %3, %4, %cst {dimension_numbers = #tpu.dot_dimension_numbers<[1], [0], [0], [1], [0, 0, 1, 1], [], []>} : vector<512x288xbf16>, vector<288x64xbf16>, vector<512x64xf32> -> vector<512x64xf32>
    %c0_4 = arith.constant 0 : index
    %c0_5 = arith.constant 0 : index
    %6 = vector.load %arg3[%c0_4, %c0_5] : memref<512x64xf32, #tpu.memory_space<vmem>>, vector<512x64xf32>
    tpu.vector_store %arg3[%c0_4, %c0_5], %5 {strides = array<i32>} : memref<512x64xf32, #tpu.memory_space<vmem>>, vector<512x64xf32>,
    %c0_6 = arith.constant 0 : index
    %c0_7 = arith.constant 0 : index
    %7 = vector.load %arg4[%c0_6, %c0_7] : memref<1x64xf32, #tpu.memory_space<vmem>>, vector<1x64xf32>
    %cst_8 = arith.constant dense<0.000000e+00> : vector<64xf32>
    %8 = vector.multi_reduction <add>, %5, %cst_8 [0] : vector<512x64xf32> to vector<64xf32>
    %9 = vector.shape_cast %8 : vector<64xf32> to vector<1x64xf32>
    %10 = arith.addf %7, %9 : vector<1x64xf32>
    %c0_9 = arith.constant 0 : index
    %c0_10 = arith.constant 0 : index
    %11 = vector.load %arg4[%c0_9, %c0_10] : memref<1x64xf32, #tpu.memory_space<vmem>>, vector<1x64xf32>
    tpu.vector_store %arg4[%c0_9, %c0_10], %10 {strides = array<i32>} : memref<1x64xf32, #tpu.memory_space<vmem>>, vector<1x64xf32>,
    %c0_11 = arith.constant 0 : index
    %c0_12 = arith.constant 0 : index
    %12 = vector.load %arg5[%c0_11, %c0_12] : memref<1x64xf32, #tpu.memory_space<vmem>>, vector<1x64xf32>
    %13 = arith.mulf %5, %5 : vector<512x64xf32>
    %cst_13 = arith.constant dense<0.000000e+00> : vector<64xf32>
    %14 = vector.multi_reduction <add>, %13, %cst_13 [0] : vector<512x64xf32> to vector<64xf32>
    %15 = vector.shape_cast %14 : vector<64xf32> to vector<1x64xf32>
    %16 = arith.addf %12, %15 : vector<1x64xf32>
    %c0_14 = arith.constant 0 : index
    %c0_15 = arith.constant 0 : index
    %17 = vector.load %arg5[%c0_14, %c0_15] : memref<1x64xf32, #tpu.memory_space<vmem>>, vector<1x64xf32>
    tpu.vector_store %arg5[%c0_14, %c0_15], %16 {strides = array<i32>} : memref<1x64xf32, #tpu.memory_space<vmem>>, vector<1x64xf32>,
    return
  }
  func.func @transform_0(%arg0: i32) -> (i32, i32) {
    %c0_i32 = arith.constant 0 : i32
    %c0_i32_0 = arith.constant 0 : i32
    return %arg0, %c0_i32 : i32, i32
  }
  func.func @transform_1(%arg0: i32) -> (i32, i32) {
    %c0_i32 = arith.constant 0 : i32
    %c0_i32_0 = arith.constant 0 : i32
    %c0_i32_1 = arith.constant 0 : i32
    return %c0_i32, %c0_i32_0 : i32, i32
  }
  func.func @transform_2(%arg0: i32) -> (i32, i32) {
    %c0_i32 = arith.constant 0 : i32
    %c0_i32_0 = arith.constant 0 : i32
    return %arg0, %c0_i32 : i32, i32
  }
  func.func @transform_3(%arg0: i32) -> (i32, i32) {
    %c0_i32 = arith.constant 0 : i32
    %c0_i32_0 = arith.constant 0 : i32
    %c0_i32_1 = arith.constant 0 : i32
    return %c0_i32, %c0_i32_0 : i32, i32
  }
  func.func @transform_4(%arg0: i32) -> (i32, i32) {
    %c0_i32 = arith.constant 0 : i32
    %c0_i32_0 = arith.constant 0 : i32
    %c0_i32_1 = arith.constant 0 : i32
    return %c0_i32, %c0_i32_0 : i32, i32
  }
}

module attributes {stable_mosaic.version = 11 : i64} {
  func.func @_scale_shift_relu_kernel(%arg0: i32, %arg1: memref<512x64xf32, #tpu.memory_space<vmem>>, %arg2: memref<1x64xf32, #tpu.memory_space<vmem>>, %arg3: memref<1x64xf32, #tpu.memory_space<vmem>>, %arg4: memref<512x64xbf16, #tpu.memory_space<vmem>>) attributes {dimension_semantics = [#tpu.dimension_semantics<parallel>], iteration_bounds = array<i64: 1>, scalar_prefetch = 0 : i64, scratch_operands = 0 : i64, tpu.core_type = #tpu.core_type<tc>, window_params = [{transform_indices = @transform_0, window_bounds = array<i64: 512, 64>}, {pipeline_mode = #tpu.pipeline_mode<synchronous>, transform_indices = @transform_1, window_bounds = array<i64: 1, 64>}, {pipeline_mode = #tpu.pipeline_mode<synchronous>, transform_indices = @transform_2, window_bounds = array<i64: 1, 64>}, {transform_indices = @transform_3, window_bounds = array<i64: 512, 64>}]} {
    %c0 = arith.constant 0 : index
    %c0_0 = arith.constant 0 : index
    %0 = vector.load %arg1[%c0, %c0_0] : memref<512x64xf32, #tpu.memory_space<vmem>>, vector<512x64xf32>
    %c0_1 = arith.constant 0 : index
    %c0_2 = arith.constant 0 : index
    %1 = vector.load %arg2[%c0_1, %c0_2] : memref<1x64xf32, #tpu.memory_space<vmem>>, vector<1x64xf32>
    %2 = vector.broadcast %1 : vector<1x64xf32> to vector<512x64xf32>
    %3 = arith.mulf %0, %2 : vector<512x64xf32>
    %c0_3 = arith.constant 0 : index
    %c0_4 = arith.constant 0 : index
    %4 = vector.load %arg3[%c0_3, %c0_4] : memref<1x64xf32, #tpu.memory_space<vmem>>, vector<1x64xf32>
    %5 = vector.broadcast %4 : vector<1x64xf32> to vector<512x64xf32>
    %6 = arith.addf %3, %5 : vector<512x64xf32>
    %cst = arith.constant 0.000000e+00 : f32
    %7 = vector.broadcast %cst : f32 to vector<512x64xf32>
    %8 = arith.maximumf %6, %7 : vector<512x64xf32>
    %9 = arith.truncf %8 : vector<512x64xf32> to vector<512x64xbf16>
    %c0_5 = arith.constant 0 : index
    %c0_6 = arith.constant 0 : index
    %10 = vector.load %arg4[%c0_5, %c0_6] : memref<512x64xbf16, #tpu.memory_space<vmem>>, vector<512x64xbf16>
    tpu.vector_store %arg4[%c0_5, %c0_6], %9 {strides = array<i32>} : memref<512x64xbf16, #tpu.memory_space<vmem>>, vector<512x64xbf16>,
    return
  }
  func.func @transform_0(%arg0: i32) -> (i32, i32) {
    %c0_i32 = arith.constant 0 : i32
    %c0_i32_0 = arith.constant 0 : i32
    return %arg0, %c0_i32 : i32, i32
  }
  func.func @transform_1(%arg0: i32) -> (i32, i32) {
    %c0_i32 = arith.constant 0 : i32
    %c0_i32_0 = arith.constant 0 : i32
    %c0_i32_1 = arith.constant 0 : i32
    return %c0_i32, %c0_i32_0 : i32, i32
  }
  func.func @transform_2(%arg0: i32) -> (i32, i32) {
    %c0_i32 = arith.constant 0 : i32
    %c0_i32_0 = arith.constant 0 : i32
    %c0_i32_1 = arith.constant 0 : i32
    return %c0_i32, %c0_i32_0 : i32, i32
  }
  func.func @transform_3(%arg0: i32) -> (i32, i32) {
    %c0_i32 = arith.constant 0 : i32
    %c0_i32_0 = arith.constant 0 : i32
    return %arg0, %c0_i32 : i32, i32
  }
}

module attributes {stable_mosaic.version = 11 : i64} {
  func.func @_gemm_bias_tanh_t_kernel(%arg0: i32, %arg1: memref<16x144xbf16, #tpu.memory_space<vmem>>, %arg2: memref<144x1024xbf16, #tpu.memory_space<vmem>>, %arg3: memref<16x1xf32, #tpu.memory_space<vmem>>, %arg4: memref<16x1024xf32, #tpu.memory_space<vmem>>) attributes {dimension_semantics = [#tpu.dimension_semantics<parallel>], iteration_bounds = array<i64: 2>, scalar_prefetch = 0 : i64, scratch_operands = 0 : i64, tpu.core_type = #tpu.core_type<tc>, window_params = [{pipeline_mode = #tpu.pipeline_mode<synchronous>, transform_indices = @transform_0, window_bounds = array<i64: 16, 144>}, {transform_indices = @transform_1, window_bounds = array<i64: 144, 1024>}, {pipeline_mode = #tpu.pipeline_mode<synchronous>, transform_indices = @transform_2, window_bounds = array<i64: 16, 1>}, {transform_indices = @transform_3, window_bounds = array<i64: 16, 1024>}]} {
    %c0 = arith.constant 0 : index
    %c0_0 = arith.constant 0 : index
    %0 = vector.load %arg1[%c0, %c0_0] : memref<16x144xbf16, #tpu.memory_space<vmem>>, vector<16x144xbf16>
    %c0_1 = arith.constant 0 : index
    %c0_2 = arith.constant 0 : index
    %1 = vector.load %arg2[%c0_1, %c0_2] : memref<144x1024xbf16, #tpu.memory_space<vmem>>, vector<144x1024xbf16>
    %cst = arith.constant dense<0.000000e+00> : vector<16x1024xf32>
    %2 = tpu.matmul %0, %1, %cst {dimension_numbers = #tpu.dot_dimension_numbers<[1], [0], [0], [1], [0, 0, 1, 1], [], []>} : vector<16x144xbf16>, vector<144x1024xbf16>, vector<16x1024xf32> -> vector<16x1024xf32>
    %c0_3 = arith.constant 0 : index
    %c0_4 = arith.constant 0 : index
    %3 = vector.load %arg3[%c0_3, %c0_4] : memref<16x1xf32, #tpu.memory_space<vmem>>, vector<16x1xf32>
    %4 = vector.broadcast %3 : vector<16x1xf32> to vector<16x1024xf32>
    %5 = arith.addf %2, %4 : vector<16x1024xf32>
    %6 = math.tanh %5 : vector<16x1024xf32>
    %c0_5 = arith.constant 0 : index
    %c0_6 = arith.constant 0 : index
    %7 = vector.load %arg4[%c0_5, %c0_6] : memref<16x1024xf32, #tpu.memory_space<vmem>>, vector<16x1024xf32>
    tpu.vector_store %arg4[%c0_5, %c0_6], %6 {strides = array<i32>} : memref<16x1024xf32, #tpu.memory_space<vmem>>, vector<16x1024xf32>,
    return
  }
  func.func @transform_0(%arg0: i32) -> (i32, i32) {
    %c0_i32 = arith.constant 0 : i32
    %c0_i32_0 = arith.constant 0 : i32
    %c0_i32_1 = arith.constant 0 : i32
    return %c0_i32, %c0_i32_0 : i32, i32
  }
  func.func @transform_1(%arg0: i32) -> (i32, i32) {
    %c0_i32 = arith.constant 0 : i32
    %c0_i32_0 = arith.constant 0 : i32
    return %c0_i32, %arg0 : i32, i32
  }
  func.func @transform_2(%arg0: i32) -> (i32, i32) {
    %c0_i32 = arith.constant 0 : i32
    %c0_i32_0 = arith.constant 0 : i32
    %c0_i32_1 = arith.constant 0 : i32
    return %c0_i32, %c0_i32_0 : i32, i32
  }
  func.func @transform_3(%arg0: i32) -> (i32, i32) {
    %c0_i32 = arith.constant 0 : i32
    %c0_i32_0 = arith.constant 0 : i32
    return %c0_i32, %arg0 : i32, i32
  }
}

</mosaic_0001>

<bundles_post_ra>
// kernel: tile.88
= control target key start
LH: loop header
LB: loop body
LE: loop exit
PB: predicated region body
PF: predicated region fallthrough
CT: control target
= control target key end

     0   :  { %2 = vsyncpa [#allocation1], 0  ;;  %s44_s6 = smov [#allocation0]   ;;  %s70_s0 = inlined_call_operand.hbm [shape: f32[3], index: 0, kind: input, shape index: {}]   ;;  %s71_s1 = inlined_call_operand.vmem [shape: f32[4,3], index: 1, kind: output, shape index: {}]  }
   0x1   :  { %s9_s7 = sshll.u32 %s44_s6, 4  ;;  %s20_s10 = scalar_lea.hbm %s70_s0, 16  ;;  %s10_s7 = int_to_ptr.vmem [resolvable:$true] %s9_s7 }
   0x2   :  { %p21_p0 = scmp.ne.s32.totalorder %s70_s0, %s20_s10  ;;  %p24_p1 = scmp.lt.u32.totalorder %s20_s10, %s70_s0 }
   0x4   :  { %p26_p2 = pnand %p24_p1, %p21_p0 }
   0x6   :  { %29 = shalt.err (!%p26_p2)
}
   0x7   :  { %s30_s15 = scalar_lea.vmem %s10_s7, 16  ;;  %s34_s16 = scalar_lea.vmem %s10_s7, 32 }
   0x8   :  { %p31_p3 = scmp.ne.s32.totalorder %s10_s7, %s30_s15  ;;  %p35_p4 = scmp.lt.s32.totalorder %s10_s7, %s10_s7 }
   0x9   :  { %p36_p5 = scmp.lt.s32.totalorder %s34_s16, %s30_s15 }
   0xb   :  { %p37_p6 = por %p36_p5, %p35_p4 }
   0xd   :  { %p38_p7 = pnand %p37_p6, %p31_p3 }
   0xf   :  { %41 = shalt.err (!%p38_p7)
}
  0x10   :  { %12 = dma.hbm_to_vmem [thread:$0]  %s70_s0, 16, %s10_s7, [#allocation1]  }
  0x11   :  { %42 = dma.done.wait [#allocation1], 16  }
  0x12   :  { %43 = vsyncadd [#allocation1], 4294967280  ;;  %v16_v0 = vld [vmem:[#allocation0] ss:$0 sm:$0xff] }
  0x13   :  { %17 = vst [vmem:[%s71_s1] sm:$0xf] %v16_v0 }
  0x14   :  { %18 = vsyncpa [#allocation1], 1 }

// kernel: tile.89
= control target key start
LH: loop header
LB: loop body
LE: loop exit
PB: predicated region body
PF: predicated region fallthrough
CT: control target
= control target key end

     0   :  { %vm7_vm0 = vcmask 23552   ;;  %s37_s8 = smov 3   ;;  %s38_s9 = smov 6   ;;  %vm13_vm1 = vcmask 97352   ;;  %vm19_vm2 = vcmask 72752   ;;  %vm25_vm3 = vcmask 48152   ;;  %s55_s0 = inlined_call_operand.vmem [shape: f32[4,3], index: 0, kind: input, shape index: {}]   ;;  %s56_s1 = inlined_call_operand.vmem [shape: f32[12], index: 1, kind: output, shape index: {}]  }
   0x1   :  { %v4_v0 = vld [vmem:[%s55_s0] sm:$0xf]  ;;  %s36_s0 = smov 9  }
   0x2   :  { %5 = vst [vmem:[#allocation1] sm:$0xf] %v4_v0 }
   0x9   :  { %v10_v1 = vld [vmem:[#allocation1 + $0x3] sm:$0x1]   ;;  %v22_v2 = vld [vmem:[#allocation1 + $0x1] sm:$0x1]   ;;  %v6_v3 = vld [vmem:[#allocation1] sm:$0x1]  }
   0xa   :  { %11 = vrot.lane.b32.xlu0 %v10_v1, %s36_s0  ;;  %23 = vrot.lane.b32.xlu1 %v22_v2, %s37_s8  ;;  %v16_v4 = vld [vmem:[#allocation1 + $0x2] sm:$0x1]   ;;  %8 = vst.msk [vmem:[#allocation0] sm:$0x1] %vm7_vm0, %v6_v3  }
   0xe   :  { %17 = vrot.lane.b32.xlu0 %v16_v4, %s38_s9 }
  0x7c   :  { %v12_v5 = vpop.permute.xlu0 %11   ;;  %v24_v6 = vpop.permute.xlu1 %23  }
  0x7d   :  { %14 = vst.msk [vmem:[#allocation0] sm:$0x1] %vm13_vm1, %v12_v5  }
  0x80   :  { %v18_v7 = vpop.permute.xlu0 %17  }
  0x81   :  { %20 = vst.msk [vmem:[#allocation0] sm:$0x1] %vm19_vm2, %v18_v7  }
  0x82   :  { %26 = vst.msk [vmem:[#allocation0] sm:$0x1] %vm25_vm3, %v24_v6  }
  0x89   :  { %v30_v8 = vld [vmem:[#allocation0] sm:$0x1] }
  0x8a   :  { %32 = vst [vmem:[%s56_s1] sm:$0x1] %v30_v8 }

// kernel: tile.53
= control target key start
LH: loop header
LB: loop body
LE: loop exit
PB: predicated region body
PF: predicated region fallthrough
CT: control target
= control target key end

     0   :  { %s28_s0 = inlined_call_operand.vmem [shape: f32[128], index: 0, kind: input, shape index: {}]   ;;  %s29_s1 = inlined_call_operand.vmem [shape: f32[16,128], index: 1, kind: output, shape index: {}]  }
   0x1   :  { %v4_v0 = vld [vmem:[%s28_s0] ss:$0 sm:$0xff] }
   0x2   :  { %5 = vst [vmem:[%s29_s1] sm:$0xff] %v4_v0  ;;  %8 = vst [vmem:[%s29_s1 + $0x8] sm:$0xff] %v4_v0 }

// kernel: generator_forward.10
= control target key start
LH: loop header
LB: loop body
LE: loop exit
PB: predicated region body
PF: predicated region fallthrough
CT: control target
= control target key end

     0   :  { %v34_v0 = vlaneseq  ;;  %s520_s1 = inlined_call_operand.vmem [shape: f32[1,2048], index: 1, kind: input, shape index: {}]   ;;  %s521_s2 = inlined_call_operand.vmem [shape: f32[1,2048], index: 2, kind: input, shape index: {}]   ;;  %s522_s0 = inlined_call_operand.vmem [shape: f32[8,2048], index: 0, kind: input, shape index: {}]   ;;  %s523_s3 = inlined_call_operand.vmem [shape: bf16[8,2048], index: 3, kind: output, shape index: {}]  }
   0x1   :  { %v30_v2 = vld [vmem:[%s520_s1] sm:$0xff]  ;;  %v15_v9 = vld [vmem:[%s522_s0 + $0x8] sm:$0xff]  ;;  %v16_v18 = vld [vmem:[%s522_s0 + $0x10] sm:$0xff] }
   0x2   :  { %v35_v1 = vshrl.u32 %v34_v0, 7  ;;  %v364_v3 = vld [vmem:[%s521_s2] sm:$0xff]  ;;  %v17_v19 = vld [vmem:[%s522_s0 + $0x18] sm:$0xff]  ;;  %v19_v25 = vld [vmem:[%s522_s0 + $0x28] sm:$0xff] }
   0x3   :  { %v14_v8 = vld [vmem:[%s522_s0] sm:$0xff]  ;;  %v20_v38 = vld [vmem:[%s522_s0 + $0x30] sm:$0xff]  ;;  %v21_v39 = vld [vmem:[%s522_s0 + $0x38] sm:$0xff] }
   0x4   :  { %v366_v4 = vsub.s32 0, %v35_v1  ;;  %v368_v5 = vsub.s32 1, %v35_v1  ;;  %v370_v6 = vsub.s32 2, %v35_v1  ;;  %v372_v7 = vsub.s32 3, %v35_v1  ;;  %v18_v24 = vld [vmem:[%s522_s0 + $0x20] sm:$0xff]  ;;  %v429_v48 = vld [vmem:[%s520_s1 + $0x8] sm:$0xff] }
   0x5   :  { %v380_v10 = vsub.s32 4, %v35_v1  ;;  %v382_v11 = vsub.s32 5, %v35_v1  ;;  %v384_v12 = vsub.s32 6, %v35_v1  ;;  %v386_v13 = vsub.s32 7, %v35_v1  ;;  %v434_v53 = vld [vmem:[%s521_s2 + $0x8] sm:$0xff]  ;;  %v22_v58 = vld [vmem:[%s522_s0 + $0x40] sm:$0xff] }
   0x6   :  { %v37_v14 = vrot.slane %v30_v2, %v366_v4  ;;  %v41_v15 = vrot.slane %v30_v2, %v368_v5  ;;  %v137_v16 = vrot.slane %v364_v3, %v366_v4  ;;  %v141_v17 = vrot.slane %v364_v3, %v368_v5  ;;  %v23_v59 = vld [vmem:[%s522_s0 + $0x48] sm:$0xff] }
   0x7   :  { %v45_v20 = vrot.slane %v30_v2, %v370_v6  ;;  %v49_v21 = vrot.slane %v30_v2, %v372_v7  ;;  %v145_v22 = vrot.slane %v364_v3, %v370_v6  ;;  %v149_v23 = vrot.slane %v364_v3, %v372_v7 }
   0x8   :  { %v114_v26 = vmul.f32 %v37_v14, %v14_v8  ;;  %v115_v27 = vmul.f32 %v41_v15, %v15_v9  ;;  %v53_v28 = vrot.slane %v30_v2, %v380_v10  ;;  %v57_v29 = vrot.slane %v30_v2, %v382_v11 }
   0x9   :  { %v116_v30 = vmul.f32 %v45_v20, %v16_v18  ;;  %v117_v31 = vmul.f32 %v49_v21, %v17_v19  ;;  %v153_v32 = vrot.slane %v364_v3, %v380_v10  ;;  %v157_v33 = vrot.slane %v364_v3, %v382_v11 }
   0xa   :  { %v214_v34 = vadd.f32 %v137_v16, %v114_v26  ;;  %v215_v35 = vadd.f32 %v141_v17, %v115_v27  ;;  %v118_v36 = vmul.f32 %v53_v28, %v18_v24  ;;  %v119_v37 = vmul.f32 %v57_v29, %v19_v25  ;;  %v25_v16 = vld [vmem:[%s522_s0 + $0x58] sm:$0xff]  ;;  %v26_v24 = vld [vmem:[%s522_s0 + $0x60] sm:$0xff]  ;;  %v27_v25 = vld [vmem:[%s522_s0 + $0x68] sm:$0xff] }
   0xb   :  { %v216_v40 = vadd.f32 %v145_v22, %v116_v30  ;;  %v217_v41 = vadd.f32 %v149_v23, %v117_v31  ;;  %v61_v42 = vrot.slane %v30_v2, %v384_v12  ;;  %v65_v43 = vrot.slane %v30_v2, %v386_v13 }
   0xc   :  { %v230_v44 = vmax.f32 %v214_v34, 0.0  ;;  %v231_v45 = vmax.f32 %v215_v35, 0.0  ;;  %v218_v46 = vadd.f32 %v153_v32, %v118_v36  ;;  %v219_v47 = vadd.f32 %v157_v33, %v119_v37  ;;  %v28_v36 = vld [vmem:[%s522_s0 + $0x70] sm:$0xff]  ;;  %v29_v37 = vld [vmem:[%s522_s0 + $0x78] sm:$0xff] }
   0xd   :  { %v232_v49 = vmax.f32 %v216_v40, 0.0  ;;  %v233_v50 = vmax.f32 %v217_v41, 0.0  ;;  %v120_v51 = vmul.f32 %v61_v42, %v20_v38  ;;  %v121_v52 = vmul.f32 %v65_v43, %v21_v39 }
   0xe   :  { %v330_v54 = vpack.c.bf16 %v231_v45, %v230_v44  ;;  %v234_v55 = vmax.f32 %v218_v46, 0.0  ;;  %v235_v56 = vmax.f32 %v219_v47, 0.0  ;;  %v161_v57 = vrot.slane %v364_v3, %v384_v12 }
   0xf   :  { %v331_v60 = vpack.c.bf16 %v233_v50, %v232_v49  ;;  %v165_v61 = vrot.slane %v364_v3, %v386_v13  ;;  %v69_v62 = vrot.slane %v429_v48, %v366_v4  ;;  %v73_v63 = vrot.slane %v429_v48, %v368_v5  ;;  %v24_v3 = vld [vmem:[%s522_s0 + $0x50] sm:$0xff] }
  0x10   :  { %310 = vst [vmem:[%s523_s3] sm:$0xff] %v330_v54  ;;  %v332_v0 = vpack.c.bf16 %v235_v56, %v234_v55  ;;  %v220_v1 = vadd.f32 %v161_v57, %v120_v51  ;;  %v169_v2 = vrot.slane %v434_v53, %v366_v4  ;;  %v173_v8 = vrot.slane %v434_v53, %v368_v5 }
  0x11   :  { %311 = vst [vmem:[%s523_s3 + $0x8] sm:$0xff] %v331_v60  ;;  %v221_v9 = vadd.f32 %v165_v61, %v121_v52  ;;  %v122_v14 = vmul.f32 %v69_v62, %v22_v58  ;;  %v123_v15 = vmul.f32 %v73_v63, %v23_v59  ;;  %v77_v4 = vrot.slane %v429_v48, %v370_v6 }
  0x12   :  { %312 = vst [vmem:[%s523_s3 + $0x10] sm:$0xff] %v332_v0  ;;  %v236_v5 = vmax.f32 %v220_v1, 0.0  ;;  %v81_v17 = vrot.slane %v429_v48, %v372_v7  ;;  %v177_v18 = vrot.slane %v434_v53, %v370_v6  ;;  %v181_v19 = vrot.slane %v434_v53, %v372_v7 }
  0x13   :  { %v237_v20 = vmax.f32 %v221_v9, 0.0  ;;  %v222_v21 = vadd.f32 %v169_v2, %v122_v14  ;;  %v223_v22 = vadd.f32 %v173_v8, %v123_v15  ;;  %v124_v23 = vmul.f32 %v77_v4, %v24_v3 }
  0x14   :  { %v125_v26 = vmul.f32 %v81_v17, %v25_v16  ;;  %v85_v27 = vrot.slane %v429_v48, %v380_v10  ;;  %v89_v6 = vrot.slane %v429_v48, %v382_v11  ;;  %v185_v7 = vrot.slane %v434_v53, %v380_v10 }
  0x15   :  { %v333_v28 = vpack.c.bf16 %v237_v20, %v236_v5  ;;  %v238_v29 = vmax.f32 %v222_v21, 0.0  ;;  %v239_v30 = vmax.f32 %v223_v22, 0.0  ;;  %v224_v31 = vadd.f32 %v177_v18, %v124_v23 }
  0x16   :  { %v225_v32 = vadd.f32 %v181_v19, %v125_v26  ;;  %v126_v33 = vmul.f32 %v85_v27, %v26_v24  ;;  %v127_v34 = vmul.f32 %v89_v6, %v27_v25  ;;  %v189_v35 = vrot.slane %v434_v53, %v382_v11 }
  0x17   :  { %313 = vst [vmem:[%s523_s3 + $0x18] sm:$0xff] %v333_v28  ;;  %v334_v10 = vpack.c.bf16 %v239_v30, %v238_v29  ;;  %v240_v38 = vmax.f32 %v224_v31, 0.0  ;;  %v93_v39 = vrot.slane %v429_v48, %v384_v12  ;;  %v97_v11 = vrot.slane %v429_v48, %v386_v13 }
  0x18   :  { %v241_v40 = vmax.f32 %v225_v32, 0.0  ;;  %v226_v41 = vadd.f32 %v185_v7, %v126_v33  ;;  %v227_v42 = vadd.f32 %v189_v35, %v127_v34  ;;  %v193_v43 = vrot.slane %v434_v53, %v384_v12 }
  0x19   :  { %314 = vst [vmem:[%s523_s3 + $0x20] sm:$0xff] %v334_v10  ;;  %v128_v44 = vmul.f32 %v93_v39, %v28_v36  ;;  %v129_v45 = vmul.f32 %v97_v11, %v29_v37  ;;  %v197_v46 = vrot.slane %v434_v53, %v386_v13 }
  0x1a   :  { %v335_v47 = vpack.c.bf16 %v241_v40, %v240_v38  ;;  %v242_v49 = vmax.f32 %v226_v41, 0.0  ;;  %v243_v50 = vmax.f32 %v227_v42, 0.0 }
  0x1b   :  { %v228_v51 = vadd.f32 %v193_v43, %v128_v44  ;;  %v229_v48 = vadd.f32 %v197_v46, %v129_v45 }
  0x1c   :  { %315 = vst [vmem:[%s523_s3 + $0x28] sm:$0xff] %v335_v47  ;;  %v336_v52 = vpack.c.bf16 %v243_v50, %v242_v49 }
  0x1d   :  { %v244_v12 = vmax.f32 %v228_v51, 0.0  ;;  %v245_v54 = vmax.f32 %v229_v48, 0.0 }
  0x1e   :  { %316 = vst [vmem:[%s523_s3 + $0x30] sm:$0xff] %v336_v52 }
  0x1f   :  { %v337_v55 = vpack.c.bf16 %v245_v54, %v244_v12 }
  0x21   :  { %317 = vst [vmem:[%s523_s3 + $0x38] sm:$0xff] %v337_v55 }

// kernel: generator_forward.9
= control target key start
LH: loop header
LB: loop body
LE: loop exit
PB: predicated region body
PF: predicated region fallthrough
CT: control target
= control target key end

     0   :  { %v1295_v3 = vmov 0   ;;  %vm408_vm0 = vcmask 523264   ;;  %s1647_s1 = inlined_call_operand.vmem [shape: bf16[64,2048], index: 1, kind: input, shape index: {}]   ;;  %s1648_s0 = inlined_call_operand.vmem [shape: bf16[8,64], index: 0, kind: input, shape index: {}]   ;;  %s1649_s2 = inlined_call_operand.vmem [shape: f32[8,2048], index: 2, kind: output, shape index: {0}]   ;;  %s1650_s3 = inlined_call_operand.vmem [shape: f32[1,2048], index: 3, kind: output, shape index: {1}]   ;;  %s1651_s4 = inlined_call_operand.vmem [shape: f32[1,2048], index: 4, kind: output, shape index: {2}]  }
   0x1   :  { %v24_v0 = vld [vmem:[%s1647_s1] sm:$0xff]  ;;  %v25_v2 = vld [vmem:[%s1647_s1 + $0x8] sm:$0xff]  ;;  %444 = vmatprep.mubr.bf16.mxu0 %v1295_v3  ;;  %485 = vmatprep.mubr.bf16.mxu1 %v1295_v3  ;;  %v26_v31 = vld [vmem:[%s1647_s1 + $0x10] sm:$0xff] }
   0x2   :  { %v32_v1 = vld [vmem:[%s1647_s1 + $0x40] sm:$0xff]  ;;  %v33_v5 = vld [vmem:[%s1647_s1 + $0x48] sm:$0xff]  ;;  %v34_v32 = vld [vmem:[%s1647_s1 + $0x50] sm:$0xff] }
   0x3   :  { %v1221_v4 = vcombine.high %v24_v0, %v32_v1  ;;  %v1220_v6 = vcombine.low %v24_v0, %v32_v1  ;;  %v40_v7 = vld [vmem:[%s1647_s1 + $0x80] sm:$0xff]  ;;  %v1223_v9 = vcombine.high %v25_v2, %v33_v5  ;;  %v1222_v10 = vcombine.low %v25_v2, %v33_v5  ;;  %v41_v12 = vld [vmem:[%s1647_s1 + $0x88] sm:$0xff]  ;;  %v27_v33 = vld [vmem:[%s1647_s1 + $0x18] sm:$0xff] }
   0x4   :  { %v48_v8 = vld [vmem:[%s1647_s1 + $0xc0] sm:$0xff]  ;;  %v49_v13 = vld [vmem:[%s1647_s1 + $0xc8] sm:$0xff]  ;;  %v35_v34 = vld [vmem:[%s1647_s1 + $0x58] sm:$0xff]  ;;  %v1225_v37 = vcombine.high %v26_v31, %v34_v32  ;;  %v1224_v44 = vcombine.low %v26_v31, %v34_v32 }
   0x5   :  { %v1237_v11 = vcombine.high %v40_v7, %v48_v8  ;;  %v56_v14 = vld [vmem:[%s1647_s1 + $0x100] sm:$0xff]  ;;  %412 = vmatprep.subr.bf16.mxu0 %v1221_v4  ;;  %v1239_v15 = vcombine.high %v41_v12, %v49_v13  ;;  %v57_v17 = vld [vmem:[%s1647_s1 + $0x108] sm:$0xff]  ;;  %453 = vmatprep.subr.bf16.mxu1 %v1223_v9  ;;  %v1236_v19 = vcombine.low %v40_v7, %v48_v8  ;;  %v42_v39 = vld [vmem:[%s1647_s1 + $0x90] sm:$0xff] }
   0x6   :  { %v64_v16 = vld [vmem:[%s1647_s1 + $0x140] sm:$0xff]  ;;  %v65_v18 = vld [vmem:[%s1647_s1 + $0x148] sm:$0xff]  ;;  %413 = vmatpush1.bf16.msra.mxu0 %v1220_v6  ;;  %454 = vmatpush1.bf16.msra.mxu1 %v1222_v10  ;;  %v1238_v20 = vcombine.low %v41_v12, %v49_v13  ;;  %v1227_v38 = vcombine.high %v27_v33, %v35_v34  ;;  %v50_v40 = vld [vmem:[%s1647_s1 + $0xd0] sm:$0xff]  ;;  %v1226_v45 = vcombine.low %v27_v33, %v35_v34 }
   0x7   :  { %414 = vmatprep.subr.bf16.mxu0 %v1237_v11  ;;  %v1253_v21 = vcombine.high %v56_v14, %v64_v16  ;;  %455 = vmatprep.subr.bf16.mxu1 %v1239_v15  ;;  %v1255_v22 = vcombine.high %v57_v17, %v65_v18  ;;  %v72_v23 = vld [vmem:[%s1647_s1 + $0x180] sm:$0xff]  ;;  %v73_v25 = vld [vmem:[%s1647_s1 + $0x188] sm:$0xff]  ;;  %v1252_v27 = vcombine.low %v56_v14, %v64_v16  ;;  %v43_v41 = vld [vmem:[%s1647_s1 + $0x98] sm:$0xff] }
   0x8   :  { %v80_v24 = vld [vmem:[%s1647_s1 + $0x1c0] sm:$0xff]  ;;  %v81_v26 = vld [vmem:[%s1647_s1 + $0x1c8] sm:$0xff]  ;;  %v1254_v28 = vcombine.low %v57_v17, %v65_v18  ;;  %v51_v42 = vld [vmem:[%s1647_s1 + $0xd8] sm:$0xff]  ;;  %v1241_v46 = vcombine.high %v42_v39, %v50_v40  ;;  %v1240_v52 = vcombine.low %v42_v39, %v50_v40 }
   0x9   :  { %v1269_v29 = vcombine.high %v72_v23, %v80_v24  ;;  %v1271_v30 = vcombine.high %v73_v25, %v81_v26  ;;  %v1268_v35 = vcombine.low %v72_v23, %v80_v24  ;;  %v1270_v36 = vcombine.low %v73_v25, %v81_v26  ;;  %v1399_v43 = vld [vmem:[%s1648_s0] sm:$0xf]  ;;  %v58_v48 = vld [vmem:[%s1647_s1 + $0x110] sm:$0xff]  ;;  %v59_v50 = vld [vmem:[%s1647_s1 + $0x118] sm:$0xff] }
   0xa   :  { %415 = vmatpush1.bf16.msra.mxu0 %v1236_v19  ;;  %456 = vmatpush1.bf16.msra.mxu1 %v1238_v20  ;;  %v1243_v47 = vcombine.high %v43_v41, %v51_v42  ;;  %v66_v49 = vld [vmem:[%s1647_s1 + $0x150] sm:$0xff]  ;;  %v67_v51 = vld [vmem:[%s1647_s1 + $0x158] sm:$0xff]  ;;  %v1242_v53 = vcombine.low %v43_v41, %v51_v42  ;;  %v28_v0 = vld [vmem:[%s1647_s1 + $0x20] sm:$0xff] }
   0xb   :  { %416 = vmatprep.subr.bf16.mxu0 %v1253_v21  ;;  %457 = vmatprep.subr.bf16.mxu1 %v1255_v22  ;;  %v1257_v54 = vcombine.high %v58_v48, %v66_v49  ;;  %v1259_v55 = vcombine.high %v59_v50, %v67_v51  ;;  %v74_v56 = vld [vmem:[%s1647_s1 + $0x190] sm:$0xff]  ;;  %v75_v58 = vld [vmem:[%s1647_s1 + $0x198] sm:$0xff]  ;;  %v1256_v60 = vcombine.low %v58_v48, %v66_v49  ;;  %v36_v1 = vld [vmem:[%s1647_s1 + $0x60] sm:$0xff] }
   0xc   :  { %v82_v57 = vld [vmem:[%s1647_s1 + $0x1d0] sm:$0xff]  ;;  %v83_v59 = vld [vmem:[%s1647_s1 + $0x1d8] sm:$0xff]  ;;  %v1258_v61 = vcombine.low %v59_v50, %v67_v51  ;;  %v29_v2 = vld [vmem:[%s1647_s1 + $0x28] sm:$0xff]  ;;  %v1229_v7 = vcombine.high %v28_v0, %v36_v1  ;;  %v1228_v13 = vcombine.low %v28_v0, %v36_v1 }
   0xd   :  { %v1273_v62 = vcombine.high %v74_v56, %v82_v57  ;;  %v1275_v63 = vcombine.high %v75_v58, %v83_v59  ;;  %v37_v4 = vld [vmem:[%s1647_s1 + $0x68] sm:$0xff]  ;;  %v1272_v5 = vcombine.low %v74_v56, %v82_v57  ;;  %v1274_v6 = vcombine.low %v75_v58, %v83_v59  ;;  %v44_v9 = vld [vmem:[%s1647_s1 + $0xa0] sm:$0xff]  ;;  %v30_v33 = vld [vmem:[%s1647_s1 + $0x30] sm:$0xff] }
   0xe   :  { %417 = vmatpush1.bf16.msra.mxu0 %v1252_v27  ;;  %458 = vmatpush1.bf16.msra.mxu1 %v1254_v28  ;;  %v1231_v8 = vcombine.high %v29_v2, %v37_v4  ;;  %v52_v10 = vld [vmem:[%s1647_s1 + $0xe0] sm:$0xff]  ;;  %v45_v11 = vld [vmem:[%s1647_s1 + $0xa8] sm:$0xff]  ;;  %v1230_v14 = vcombine.low %v29_v2, %v37_v4  ;;  %v38_v34 = vld [vmem:[%s1647_s1 + $0x70] sm:$0xff] }
   0xf   :  { %418 = vmatprep.subr.bf16.mxu0 %v1269_v29  ;;  %459 = vmatprep.subr.bf16.mxu1 %v1271_v30  ;;  %v53_v12 = vld [vmem:[%s1647_s1 + $0xe8] sm:$0xff]  ;;  %v1245_v15 = vcombine.high %v44_v9, %v52_v10  ;;  %v60_v17 = vld [vmem:[%s1647_s1 + $0x120] sm:$0xff]  ;;  %v1244_v21 = vcombine.low %v44_v9, %v52_v10  ;;  %v1233_v39 = vcombine.high %v30_v33, %v38_v34  ;;  %v46_v41 = vld [vmem:[%s1647_s1 + $0xb0] sm:$0xff] }
  0x10   :  { %v1247_v16 = vcombine.high %v45_v11, %v53_v12  ;;  %v68_v18 = vld [vmem:[%s1647_s1 + $0x160] sm:$0xff]  ;;  %v61_v19 = vld [vmem:[%s1647_s1 + $0x128] sm:$0xff]  ;;  %v1246_v22 = vcombine.low %v45_v11, %v53_v12  ;;  %v54_v42 = vld [vmem:[%s1647_s1 + $0xf0] sm:$0xff] }
  0x11   :  { %v69_v20 = vld [vmem:[%s1647_s1 + $0x168] sm:$0xff]  ;;  %v1261_v23 = vcombine.high %v60_v17, %v68_v18  ;;  %v76_v25 = vld [vmem:[%s1647_s1 + $0x1a0] sm:$0xff]  ;;  %v1260_v29 = vcombine.low %v60_v17, %v68_v18  ;;  %v1249_v48 = vcombine.high %v46_v41, %v54_v42  ;;  %v62_v50 = vld [vmem:[%s1647_s1 + $0x130] sm:$0xff] }
  0x12   :  { %419 = vmatpush1.bf16.msra.mxu0 %v1268_v35  ;;  %460 = vmatpush1.bf16.msra.mxu1 %v1270_v36  ;;  %v1263_v24 = vcombine.high %v61_v19, %v69_v20  ;;  %v84_v26 = vld [vmem:[%s1647_s1 + $0x1e0] sm:$0xff]  ;;  %v77_v27 = vld [vmem:[%s1647_s1 + $0x1a8] sm:$0xff]  ;;  %v1262_v30 = vcombine.low %v61_v19, %v69_v20  ;;  %v31_v35 = vld [vmem:[%s1647_s1 + $0x38] sm:$0xff] }
  0x13   :  { %494 = vmatprep.subr.bf16.mxu0 %v1225_v37  ;;  %535 = vmatprep.subr.bf16.mxu1 %v1227_v38  ;;  %v85_v28 = vld [vmem:[%s1647_s1 + $0x1e8] sm:$0xff]  ;;  %v1277_v31 = vcombine.high %v76_v25, %v84_v26  ;;  %v39_v36 = vld [vmem:[%s1647_s1 + $0x78] sm:$0xff]  ;;  %v1276_v37 = vcombine.low %v76_v25, %v84_v26  ;;  %v70_v51 = vld [vmem:[%s1647_s1 + $0x170] sm:$0xff] }
  0x14   :  { %v1279_v32 = vcombine.high %v77_v27, %v85_v28  ;;  %v1278_v38 = vcombine.low %v77_v27, %v85_v28  ;;  %v1235_v40 = vcombine.high %v31_v35, %v39_v36  ;;  %v1265_v56 = vcombine.high %v62_v50, %v70_v51  ;;  %v78_v58 = vld [vmem:[%s1647_s1 + $0x1b0] sm:$0xff] }
  0x15   :  { %1284 = vmatmul.mubr.msk.bf16.vlgmr.msra.gmra.mrb[0].mxu0 %vm408_vm0, %v1399_v43  ;;  %1285 = vmatmul.mubr.msk.bf16.vlgmr.msra.gmra.mrb[0].mxu1 %vm408_vm0, %v1399_v43  ;;  %v86_v59 = vld [vmem:[%s1647_s1 + $0x1f0] sm:$0xff] }
  0x16   :  { %495 = vmatpush1.bf16.msra.mxu0 %v1224_v44  ;;  %536 = vmatpush1.bf16.msra.mxu1 %v1226_v45  ;;  %v47_v44 = vld [vmem:[%s1647_s1 + $0xb8] sm:$0xff]  ;;  %v1281_v0 = vcombine.high %v78_v58, %v86_v59  ;;  %v1280_v2 = vcombine.low %v78_v58, %v86_v59 }
  0x17   :  { %496 = vmatprep.subr.bf16.mxu0 %v1241_v46  ;;  %537 = vmatprep.subr.bf16.mxu1 %v1243_v47  ;;  %v55_v45 = vld [vmem:[%s1647_s1 + $0xf8] sm:$0xff]  ;;  %v1232_v46 = vcombine.low %v30_v33, %v38_v34  ;;  %v1234_v47 = vcombine.low %v31_v35, %v39_v36 }
  0x18   :  { %526 = vmatprep.mubr.bf16.mxu0 %v1295_v3  ;;  %567 = vmatprep.mubr.bf16.mxu1 %v1295_v3  ;;  %v1251_v49 = vcombine.high %v47_v44, %v55_v45 }
  0x1a   :  { %497 = vmatpush1.bf16.msra.mxu0 %v1240_v52  ;;  %538 = vmatpush1.bf16.msra.mxu1 %v1242_v53  ;;  %v63_v52 = vld [vmem:[%s1647_s1 + $0x138] sm:$0xff] }
  0x1b   :  { %498 = vmatprep.subr.bf16.mxu0 %v1257_v54  ;;  %539 = vmatprep.subr.bf16.mxu1 %v1259_v55  ;;  %v71_v53 = vld [vmem:[%s1647_s1 + $0x178] sm:$0xff]  ;;  %v1248_v54 = vcombine.low %v46_v41, %v54_v42  ;;  %v1250_v55 = vcombine.low %v47_v44, %v55_v45 }
  0x1c   :  { %v1267_v57 = vcombine.high %v63_v52, %v71_v53 }
  0x1e   :  { %499 = vmatpush1.bf16.msra.mxu0 %v1256_v60  ;;  %540 = vmatpush1.bf16.msra.mxu1 %v1258_v61  ;;  %v79_v60 = vld [vmem:[%s1647_s1 + $0x1b8] sm:$0xff] }
  0x1f   :  { %500 = vmatprep.subr.bf16.mxu0 %v1273_v62  ;;  %541 = vmatprep.subr.bf16.mxu1 %v1275_v63  ;;  %v87_v61 = vld [vmem:[%s1647_s1 + $0x1f8] sm:$0xff]  ;;  %v1264_v62 = vcombine.low %v62_v50, %v70_v51  ;;  %v1266_v63 = vcombine.low %v63_v52, %v71_v53 }
  0x20   :  { %v1283_v1 = vcombine.high %v79_v60, %v87_v61  ;;  %v1282_v4 = vcombine.low %v79_v60, %v87_v61 }
  0x22   :  { %501 = vmatpush1.bf16.msra.mxu0 %v1272_v5  ;;  %542 = vmatpush1.bf16.msra.mxu1 %v1274_v6  ;;  %v877_v6 = vlaneseq }
  0x23   :  { %576 = vmatprep.subr.bf16.mxu0 %v1229_v7  ;;  %617 = vmatprep.subr.bf16.mxu1 %v1231_v8 }
  0x24   :  { %v878_v8 = vshrl.u32 %v877_v6, 7 }
  0x25   :  { %1286 = vmatmul.mubr.msk.bf16.vlgmr.msra.gmra.mrb[4].mxu0 %vm408_vm0, %v1399_v43  ;;  %1287 = vmatmul.mubr.msk.bf16.vlgmr.msra.gmra.mrb[4].mxu1 %vm408_vm0, %v1399_v43 }
  0x26   :  { %577 = vmatpush1.bf16.msra.mxu0 %v1228_v13  ;;  %618 = vmatpush1.bf16.msra.mxu1 %v1230_v14 }
  0x27   :  { %578 = vmatprep.subr.bf16.mxu0 %v1245_v15  ;;  %619 = vmatprep.subr.bf16.mxu1 %v1247_v16 }
  0x28   :  { %608 = vmatprep.mubr.bf16.mxu0 %v1295_v3  ;;  %649 = vmatprep.mubr.bf16.mxu1 %v1295_v3 }
  0x2a   :  { %579 = vmatpush1.bf16.msra.mxu0 %v1244_v21  ;;  %620 = vmatpush1.bf16.msra.mxu1 %v1246_v22 }
  0x2b   :  { %580 = vmatprep.subr.bf16.mxu0 %v1261_v23  ;;  %621 = vmatprep.subr.bf16.mxu1 %v1263_v24 }
  0x2e   :  { %581 = vmatpush1.bf16.msra.mxu0 %v1260_v29  ;;  %622 = vmatpush1.bf16.msra.mxu1 %v1262_v30 }
  0x2f   :  { %582 = vmatprep.subr.bf16.mxu0 %v1277_v31  ;;  %623 = vmatprep.subr.bf16.mxu1 %v1279_v32 }
  0x32   :  { %583 = vmatpush1.bf16.msra.mxu0 %v1276_v37  ;;  %624 = vmatpush1.bf16.msra.mxu1 %v1278_v38 }
  0x33   :  { %658 = vmatprep.subr.bf16.mxu0 %v1233_v39  ;;  %699 = vmatprep.subr.bf16.mxu1 %v1235_v40 }
  0x35   :  { %1288 = vmatmul.mubr.msk.bf16.vlgmr.msra.gmra.mrb[8].mxu0 %vm408_vm0, %v1399_v43  ;;  %1289 = vmatmul.mubr.msk.bf16.vlgmr.msra.gmra.mrb[8].mxu1 %vm408_vm0, %v1399_v43 }
  0x36   :  { %659 = vmatpush1.bf16.msra.mxu0 %v1232_v46  ;;  %700 = vmatpush1.bf16.msra.mxu1 %v1234_v47 }
  0x37   :  { %660 = vmatprep.subr.bf16.mxu0 %v1249_v48  ;;  %701 = vmatprep.subr.bf16.mxu1 %v1251_v49 }
  0x38   :  { %690 = vmatprep.mubr.bf16.mxu0 %v1295_v3  ;;  %731 = vmatprep.mubr.bf16.mxu1 %v1295_v3  ;;  %v1296_v3 = vmov 1966171168  }
  0x39   :  { %v875_v5 = vunpack.c.l.s4 %v1296_v3 }
  0x3a   :  { %661 = vmatpush1.bf16.msra.mxu0 %v1248_v54  ;;  %702 = vmatpush1.bf16.msra.mxu1 %v1250_v55 }
  0x3b   :  { %662 = vmatprep.subr.bf16.mxu0 %v1265_v56  ;;  %703 = vmatprep.subr.bf16.mxu1 %v1267_v57  ;;  %v876_v7 = vunpack.c.0.s8 %v875_v5 }
  0x3d   :  { %v1546_v14 = vsub.s32 %v876_v7, %v878_v8 }
  0x3e   :  { %663 = vmatpush1.bf16.msra.mxu0 %v1264_v62  ;;  %704 = vmatpush1.bf16.msra.mxu1 %v1266_v63 }
  0x3f   :  { %664 = vmatprep.subr.bf16.mxu0 %v1281_v0  ;;  %705 = vmatprep.subr.bf16.mxu1 %v1283_v1 }
  0x42   :  { %665 = vmatpush1.bf16.msra.mxu0 %v1280_v2  ;;  %706 = vmatpush1.bf16.msra.mxu1 %v1282_v4 }
  0x45   :  { %1290 = vmatmul.mubr.msk.bf16.vlgmr.msra.gmra.mrb[12].mxu0 %vm408_vm0, %v1399_v43  ;;  %1291 = vmatmul.mubr.msk.bf16.vlgmr.msra.gmra.mrb[12].mxu1 %vm408_vm0, %v1399_v43 }
  0xe8   :  { %v446_v9 = vpop.f32.mrb[0].mxu0  ;;  %v487_v12 = vpop.f32.mrb[0].mxu1 }
  0xe9   :  { %740 = vst [vmem:[%s1649_s2] sm:$0xff] %v446_v9  ;;  %v758_v10 = vrot.slane %v446_v9, 4  ;;  %v976_v11 = vmul.f32 %v446_v9, %v446_v9  ;;  %v448_v13 = vpop.f32.mrb[1].mxu0  ;;  %742 = vst [vmem:[%s1649_s2 + $0x10] sm:$0xff] %v487_v12  ;;  %v770_v43 = vrot.slane %v487_v12, 4  ;;  %v978_v15 = vmul.f32 %v487_v12, %v487_v12  ;;  %v489_v18 = vpop.f32.mrb[1].mxu1 }
  0xea   :  { %741 = vst [vmem:[%s1649_s2 + $0x8] sm:$0xff] %v448_v13  ;;  %v764_v16 = vrot.slane %v448_v13, 4  ;;  %v977_v17 = vmul.f32 %v448_v13, %v448_v13  ;;  %v450_v19 = vpop.f32.mrb[2].mxu0  ;;  %743 = vst [vmem:[%s1649_s2 + $0x18] sm:$0xff] %v489_v18  ;;  %v776_v22 = vrot.slane %v489_v18, 4  ;;  %v979_v23 = vmul.f32 %v489_v18, %v489_v18  ;;  %v491_v24 = vpop.f32.mrb[2].mxu1 }
  0xeb   :  { %v759_v20 = vadd.f32 %v758_v10, %v446_v9  ;;  %v992_v21 = vrot.slane %v976_v11, 4  ;;  %v451_v25 = vpop.f32.mrb[3].mxu0  ;;  %v771_v26 = vadd.f32 %v770_v43, %v487_v12  ;;  %v1004_v27 = vrot.slane %v978_v15, 4  ;;  %v492_v30 = vpop.f32.mrb[3].mxu1 }
  0xec   :  { %v765_v28 = vadd.f32 %v764_v16, %v448_v13  ;;  %v998_v29 = vrot.slane %v977_v17, 4  ;;  %v777_v33 = vadd.f32 %v776_v22, %v489_v18  ;;  %v1010_v34 = vrot.slane %v979_v23, 4 }
  0xed   :  { %v760_v31 = vrot.slane %v759_v20, 2  ;;  %v993_v32 = vadd.f32 %v992_v21, %v976_v11  ;;  %v772_v35 = vrot.slane %v771_v26, 2  ;;  %v1005_v36 = vadd.f32 %v1004_v27, %v978_v15 }
  0xee   :  { %v766_v37 = vrot.slane %v765_v28, 2  ;;  %v999_v38 = vadd.f32 %v998_v29, %v977_v17  ;;  %v778_v41 = vrot.slane %v777_v33, 2  ;;  %v1011_v42 = vadd.f32 %v1010_v34, %v979_v23 }
  0xef   :  { %v761_v39 = vadd.f32 %v760_v31, %v759_v20  ;;  %v994_v40 = vrot.slane %v993_v32, 2  ;;  %v773_v44 = vadd.f32 %v772_v35, %v771_v26  ;;  %v1006_v45 = vrot.slane %v1005_v36, 2 }
  0xf0   :  { %v767_v46 = vadd.f32 %v766_v37, %v765_v28  ;;  %v1000_v47 = vrot.slane %v999_v38, 2  ;;  %v779_v50 = vadd.f32 %v778_v41, %v777_v33  ;;  %v1012_v51 = vrot.slane %v1011_v42, 2 }
  0xf1   :  { %v762_v48 = vrot.slane %v761_v39, 1  ;;  %v995_v49 = vadd.f32 %v994_v40, %v993_v32  ;;  %v774_v52 = vrot.slane %v773_v44, 1  ;;  %v1007_v53 = vadd.f32 %v1006_v45, %v1005_v36 }
  0xf2   :  { %v768_v54 = vrot.slane %v767_v46, 1  ;;  %v1001_v55 = vadd.f32 %v1000_v47, %v999_v38  ;;  %v780_v58 = vrot.slane %v779_v50, 1  ;;  %v1013_v59 = vadd.f32 %v1012_v51, %v1011_v42 }
  0xf3   :  { %v763_v56 = vadd.f32 %v762_v48, %v761_v39  ;;  %v996_v57 = vrot.slane %v995_v49, 1  ;;  %v775_v60 = vadd.f32 %v774_v52, %v773_v44  ;;  %v1008_v61 = vrot.slane %v1007_v53, 1 }
  0xf4   :  { %v769_v62 = vadd.f32 %v768_v54, %v767_v46  ;;  %v1002_v63 = vrot.slane %v1001_v55, 1  ;;  %v781_v1 = vadd.f32 %v780_v58, %v779_v50  ;;  %v1014_v2 = vrot.slane %v1013_v59, 1 }
  0xf5   :  { %v997_v0 = vadd.f32 %v996_v57, %v995_v49  ;;  %v1009_v4 = vadd.f32 %v1008_v61, %v1007_v53 }
  0xf6   :  { %v870_v3 = vcombine.low %v763_v56, %v769_v62  ;;  %v1003_v5 = vadd.f32 %v1002_v63, %v1001_v55  ;;  %v871_v6 = vcombine.low %v775_v60, %v781_v1  ;;  %v1015_v7 = vadd.f32 %v1014_v2, %v1013_v59 }
  0xf8   :  { %v1558_v8 = vrot.slane %v870_v3, %v1546_v14  ;;  %v1104_v9 = vcombine.low %v997_v0, %v1003_v5  ;;  %v528_v10 = vpop.f32.mrb[4].mxu0  ;;  %v1561_v11 = vrot.slane %v871_v6, %v1546_v14  ;;  %v1105_v12 = vcombine.low %v1009_v4, %v1015_v7  ;;  %v569_v15 = vpop.f32.mrb[4].mxu1 }
  0xf9   :  { %744 = vst [vmem:[%s1649_s2 + $0x20] sm:$0xff] %v528_v10  ;;  %v782_v13 = vrot.slane %v528_v10, 4  ;;  %v980_v43 = vmul.f32 %v528_v10, %v528_v10  ;;  %v530_v16 = vpop.f32.mrb[5].mxu0  ;;  %746 = vst [vmem:[%s1649_s2 + $0x30] sm:$0xff] %v569_v15  ;;  %v794_v18 = vrot.slane %v569_v15, 4  ;;  %v982_v19 = vmul.f32 %v569_v15, %v569_v15  ;;  %v571_v21 = vpop.f32.mrb[5].mxu1 }
  0xfa   :  { %v1567_v17 = vrot.slane %v1104_v9, %v1546_v14  ;;  %745 = vst [vmem:[%s1649_s2 + $0x28] sm:$0xff] %v530_v16  ;;  %v788_v20 = vrot.slane %v530_v16, 4  ;;  %v532_v22 = vpop.f32.mrb[6].mxu0  ;;  %v902_v23 = vcombine.low %v1558_v8, %v1561_v11  ;;  %v1578_v24 = vrot.slane %v1105_v12, %v1546_v14  ;;  %747 = vst [vmem:[%s1649_s2 + $0x38] sm:$0xff] %v571_v21  ;;  %v573_v27 = vpop.f32.mrb[6].mxu1 }
  0xfb   :  { %v783_v25 = vadd.f32 %v782_v13, %v528_v10  ;;  %v1016_v26 = vrot.slane %v980_v43, 4  ;;  %v533_v28 = vpop.f32.mrb[7].mxu0  ;;  %v795_v29 = vadd.f32 %v794_v18, %v569_v15  ;;  %v1028_v30 = vrot.slane %v982_v19, 4  ;;  %v574_v33 = vpop.f32.mrb[7].mxu1 }
  0xfc   :  { %v789_v31 = vadd.f32 %v788_v20, %v530_v16  ;;  %v981_v32 = vmul.f32 %v530_v16, %v530_v16  ;;  %v1136_v34 = vcombine.low %v1567_v17, %v1578_v24  ;;  %v800_v44 = vrot.slane %v571_v21, 4 }
  0xfd   :  { %v784_v35 = vrot.slane %v783_v25, 2  ;;  %v1017_v36 = vadd.f32 %v1016_v26, %v980_v43  ;;  %v796_v37 = vrot.slane %v795_v29, 2  ;;  %v1029_v38 = vadd.f32 %v1028_v30, %v982_v19 }
  0xfe   :  { %v790_v39 = vrot.slane %v789_v31, 2  ;;  %v1022_v40 = vrot.slane %v981_v32, 4  ;;  %v801_v51 = vadd.f32 %v800_v44, %v571_v21  ;;  %v983_v52 = vmul.f32 %v571_v21, %v571_v21 }
  0xff   :  { %v785_v41 = vadd.f32 %v784_v35, %v783_v25  ;;  %v1018_v42 = vrot.slane %v1017_v36, 2  ;;  %v797_v45 = vadd.f32 %v796_v37, %v795_v29  ;;  %v1030_v46 = vrot.slane %v1029_v38, 2 }
 0x100   :  { %v791_v47 = vadd.f32 %v790_v39, %v789_v31  ;;  %v1023_v48 = vadd.f32 %v1022_v40, %v981_v32  ;;  %v802_v59 = vrot.slane %v801_v51, 2  ;;  %v1034_v60 = vrot.slane %v983_v52, 4 }
 0x101   :  { %v786_v49 = vrot.slane %v785_v41, 1  ;;  %v1019_v50 = vadd.f32 %v1018_v42, %v1017_v36  ;;  %v798_v53 = vrot.slane %v797_v45, 1  ;;  %v1031_v54 = vadd.f32 %v1030_v46, %v1029_v38 }
 0x102   :  { %v792_v55 = vrot.slane %v791_v47, 1  ;;  %v1024_v56 = vrot.slane %v1023_v48, 2  ;;  %v803_v0 = vadd.f32 %v802_v59, %v801_v51  ;;  %v1035_v1 = vadd.f32 %v1034_v60, %v983_v52 }
 0x103   :  { %v787_v57 = vadd.f32 %v786_v49, %v785_v41  ;;  %v1020_v58 = vrot.slane %v1019_v50, 1  ;;  %v1032_v61 = vrot.slane %v1031_v54, 1  ;;  %v799_v5 = vadd.f32 %v798_v53, %v797_v45 }
 0x104   :  { %v793_v62 = vadd.f32 %v792_v55, %v791_v47  ;;  %v1025_v63 = vadd.f32 %v1024_v56, %v1023_v48  ;;  %v804_v6 = vrot.slane %v803_v0, 1  ;;  %v1036_v7 = vrot.slane %v1035_v1, 2 }
 0x105   :  { %v1021_v2 = vadd.f32 %v1020_v58, %v1019_v50  ;;  %v1586_v8 = vrot.slane %v902_v23, %v1546_v14  ;;  %v1033_v9 = vadd.f32 %v1032_v61, %v1031_v54 }
 0x106   :  { %v872_v4 = vcombine.low %v787_v57, %v793_v62  ;;  %v1026_v3 = vrot.slane %v1025_v63, 1  ;;  %v805_v13 = vadd.f32 %v804_v6, %v803_v0  ;;  %v1037_v43 = vadd.f32 %v1036_v7, %v1035_v1 }
 0x107   :  { %v1144_v6 = vrot.slane %v1136_v34, %v1546_v14 }
 0x108   :  { %v894_v10 = vrot.slane %v872_v4, %v1546_v14  ;;  %v1027_v11 = vadd.f32 %v1026_v3, %v1025_v63  ;;  %v610_v12 = vpop.f32.mrb[8].mxu0  ;;  %v651_v18 = vpop.f32.mrb[8].mxu1  ;;  %v873_v27 = vcombine.low %v799_v5, %v805_v13  ;;  %v1038_v28 = vrot.slane %v1037_v43, 1 }
 0x109   :  { %748 = vst [vmem:[%s1649_s2 + $0x40] sm:$0xff] %v610_v12  ;;  %v806_v15 = vrot.slane %v610_v12, 4  ;;  %v984_v16 = vmul.f32 %v610_v12, %v610_v12  ;;  %v612_v19 = vpop.f32.mrb[9].mxu0  ;;  %750 = vst [vmem:[%s1649_s2 + $0x50] sm:$0xff] %v651_v18  ;;  %v818_v21 = vrot.slane %v651_v18, 4  ;;  %v986_v22 = vmul.f32 %v651_v18, %v651_v18  ;;  %v653_v25 = vpop.f32.mrb[9].mxu1 }
 0x10a   :  { %v1106_v20 = vcombine.low %v1021_v2, %v1027_v11  ;;  %749 = vst [vmem:[%s1649_s2 + $0x48] sm:$0xff] %v612_v19  ;;  %v812_v23 = vrot.slane %v612_v19, 4  ;;  %v614_v26 = vpop.f32.mrb[10].mxu0  ;;  %751 = vst [vmem:[%s1649_s2 + $0x58] sm:$0xff] %v653_v25  ;;  %v655_v31 = vpop.f32.mrb[10].mxu1  ;;  %v901_v39 = vrot.slane %v873_v27, %v1546_v14  ;;  %v1039_v40 = vadd.f32 %v1038_v28, %v1037_v43 }
 0x10b   :  { %v807_v29 = vadd.f32 %v806_v15, %v610_v12  ;;  %v1040_v30 = vrot.slane %v984_v16, 4  ;;  %v615_v32 = vpop.f32.mrb[11].mxu0  ;;  %v819_v35 = vadd.f32 %v818_v21, %v651_v18  ;;  %v1052_v36 = vrot.slane %v986_v22, 4  ;;  %v656_v38 = vpop.f32.mrb[11].mxu1 }
 0x10c   :  { %v1128_v33 = vrot.slane %v1106_v20, %v1546_v14  ;;  %v813_v37 = vadd.f32 %v812_v23, %v612_v19  ;;  %v985_v47 = vmul.f32 %v612_v19, %v612_v19  ;;  %v903_v48 = vcombine.low %v894_v10, %v901_v39 }
 0x10d   :  { %v808_v41 = vrot.slane %v807_v29, 2  ;;  %v1041_v42 = vadd.f32 %v1040_v30, %v984_v16  ;;  %v820_v44 = vrot.slane %v819_v35, 2  ;;  %v1053_v45 = vadd.f32 %v1052_v36, %v986_v22 }
 0x10e   :  { %v814_v46 = vrot.slane %v813_v37, 2  ;;  %v1107_v49 = vcombine.low %v1033_v9, %v1039_v40  ;;  %v1046_v55 = vrot.slane %v985_v47, 4  ;;  %v917_v56 = vrot.slane %v903_v48, %v1546_v14 }
 0x10f   :  { %v809_v50 = vadd.f32 %v808_v41, %v807_v29  ;;  %v1042_v51 = vrot.slane %v1041_v42, 2  ;;  %v821_v52 = vadd.f32 %v820_v44, %v819_v35  ;;  %v1054_v53 = vrot.slane %v1053_v45, 2 }
 0x110   :  { %v815_v54 = vadd.f32 %v814_v46, %v813_v37  ;;  %v1135_v57 = vrot.slane %v1107_v49, %v1546_v14  ;;  %v1047_v61 = vadd.f32 %v1046_v55, %v985_v47  ;;  %v918_v62 = vcombine.low %v1586_v8, %v917_v56 }
 0x111   :  { %v810_v58 = vrot.slane %v809_v50, 1  ;;  %v1043_v59 = vadd.f32 %v1042_v51, %v1041_v42  ;;  %v822_v1 = vrot.slane %v821_v52, 1  ;;  %v1055_v4 = vadd.f32 %v1054_v53, %v1053_v45 }
 0x112   :  { %v816_v60 = vrot.slane %v815_v54, 1  ;;  %v1137_v63 = vcombine.low %v1128_v33, %v1135_v57  ;;  %v1048_v5 = vrot.slane %v1047_v61, 2  ;;  %v824_v9 = vrot.slane %v653_v25, 4  ;;  %972 = vst [vmem:[%s1650_s3] sm:$0xff] %v918_v62 }
 0x113   :  { %v811_v0 = vadd.f32 %v810_v58, %v809_v50  ;;  %v1044_v2 = vrot.slane %v1043_v59, 1  ;;  %v987_v12 = vmul.f32 %v653_v25, %v653_v25  ;;  %v823_v13 = vadd.f32 %v822_v1, %v821_v52 }
 0x114   :  { %v817_v3 = vadd.f32 %v816_v60, %v815_v54  ;;  %v1151_v7 = vrot.slane %v1137_v63, %v1546_v14  ;;  %v1049_v11 = vadd.f32 %v1048_v5, %v1047_v61  ;;  %v825_v43 = vadd.f32 %v824_v9, %v653_v25 }
 0x115   :  { %v1045_v15 = vadd.f32 %v1044_v2, %v1043_v59  ;;  %v1056_v16 = vrot.slane %v1055_v4, 1  ;;  %v1058_v19 = vrot.slane %v987_v12, 4 }
 0x116   :  { %v919_v10 = vcombine.low %v811_v0, %v817_v3  ;;  %v1152_v8 = vcombine.low %v1144_v6, %v1151_v7  ;;  %v1050_v18 = vrot.slane %v1049_v11, 1  ;;  %v826_v17 = vrot.slane %v825_v43, 2 }
 0x117   :  { %v1059_v26 = vadd.f32 %v1058_v19, %v987_v12  ;;  %v1057_v47 = vadd.f32 %v1056_v16, %v1055_v4 }
 0x118   :  { %v692_v20 = vpop.f32.mrb[12].mxu0  ;;  %v733_v21 = vpop.f32.mrb[12].mxu1  ;;  %v1051_v23 = vadd.f32 %v1050_v18, %v1049_v11  ;;  %1206 = vst [vmem:[%s1651_s4] sm:$0xff] %v1152_v8  ;;  %v827_v30 = vadd.f32 %v826_v17, %v825_v43  ;;  %v929_v53 = vrot.slane %v919_v10, %v1546_v14 }
 0x119   :  { %752 = vst [vmem:[%s1649_s2 + $0x60] sm:$0xff] %v692_v20  ;;  %v830_v24 = vrot.slane %v692_v20, 4  ;;  %v988_v34 = vmul.f32 %v692_v20, %v692_v20  ;;  %v694_v22 = vpop.f32.mrb[13].mxu0  ;;  %754 = vst [vmem:[%s1649_s2 + $0x70] sm:$0xff] %v733_v21  ;;  %v842_v25 = vrot.slane %v733_v21, 4  ;;  %v990_v27 = vmul.f32 %v733_v21, %v733_v21  ;;  %v735_v28 = vpop.f32.mrb[13].mxu1 }
 0x11a   :  { %753 = vst [vmem:[%s1649_s2 + $0x68] sm:$0xff] %v694_v22  ;;  %v696_v29 = vpop.f32.mrb[14].mxu0  ;;  %v836_v33 = vrot.slane %v694_v22, 4  ;;  %755 = vst [vmem:[%s1649_s2 + $0x78] sm:$0xff] %v735_v28  ;;  %v737_v35 = vpop.f32.mrb[14].mxu1  ;;  %v1153_v37 = vcombine.low %v1045_v15, %v1051_v23  ;;  %v1060_v38 = vrot.slane %v1059_v26, 2  ;;  %v989_v56 = vmul.f32 %v694_v22, %v694_v22 }
 0x11b   :  { %v831_v31 = vadd.f32 %v830_v24, %v692_v20  ;;  %v1064_v32 = vrot.slane %v988_v34, 4  ;;  %v697_v36 = vpop.f32.mrb[15].mxu0  ;;  %v843_v39 = vadd.f32 %v842_v25, %v733_v21  ;;  %v1076_v40 = vrot.slane %v990_v27, 4  ;;  %v738_v41 = vpop.f32.mrb[15].mxu1 }
 0x11c   :  { %v828_v42 = vrot.slane %v827_v30, 1  ;;  %v837_v46 = vadd.f32 %v836_v33, %v694_v22  ;;  %v1061_v48 = vadd.f32 %v1060_v38, %v1059_v26  ;;  %v1070_v63 = vrot.slane %v989_v56, 4 }
 0x11d   :  { %v832_v44 = vrot.slane %v831_v31, 2  ;;  %v1065_v45 = vadd.f32 %v1064_v32, %v988_v34  ;;  %v1077_v55 = vadd.f32 %v1076_v40, %v990_v27  ;;  %v844_v59 = vrot.slane %v843_v39, 2 }
 0x11e   :  { %v829_v49 = vadd.f32 %v828_v42, %v827_v30  ;;  %v838_v52 = vrot.slane %v837_v46, 2  ;;  %v1062_v54 = vrot.slane %v1061_v48, 1  ;;  %v1163_v4 = vrot.slane %v1153_v37, %v1546_v14 }
 0x11f   :  { %v833_v50 = vadd.f32 %v832_v44, %v831_v31  ;;  %v1066_v51 = vrot.slane %v1065_v45, 2  ;;  %v1078_v5 = vrot.slane %v1077_v55, 2  ;;  %v1071_v6 = vadd.f32 %v1070_v63, %v989_v56 }
 0x120   :  { %v920_v57 = vcombine.low %v823_v13, %v829_v49  ;;  %v839_v60 = vadd.f32 %v838_v52, %v837_v46  ;;  %v1063_v61 = vadd.f32 %v1062_v54, %v1061_v48  ;;  %v845_v9 = vadd.f32 %v844_v59, %v843_v39 }
 0x121   :  { %v834_v58 = vrot.slane %v833_v50, 1  ;;  %v1067_v62 = vadd.f32 %v1066_v51, %v1065_v45  ;;  %v848_v11 = vrot.slane %v735_v28, 4  ;;  %v1072_v13 = vrot.slane %v1071_v6, 2 }
 0x122   :  { %v936_v0 = vrot.slane %v920_v57, %v1546_v14  ;;  %v840_v2 = vrot.slane %v839_v60, 1  ;;  %v1154_v3 = vcombine.low %v1057_v47, %v1063_v61  ;;  %v991_v43 = vmul.f32 %v735_v28, %v735_v28 }
 0x123   :  { %v835_v1 = vadd.f32 %v834_v58, %v833_v50  ;;  %v1068_v8 = vrot.slane %v1067_v62, 1  ;;  %v849_v16 = vadd.f32 %v848_v11, %v735_v28  ;;  %v1079_v19 = vadd.f32 %v1078_v5, %v1077_v55 }
 0x124   :  { %v951_v7 = vcombine.low %v929_v53, %v936_v0  ;;  %v841_v10 = vadd.f32 %v840_v2, %v839_v60  ;;  %v1170_v12 = vrot.slane %v1154_v3, %v1546_v14  ;;  %v1073_v20 = vadd.f32 %v1072_v13, %v1071_v6 }
 0x125   :  { %v1082_v17 = vrot.slane %v991_v43, 4  ;;  %v846_v24 = vrot.slane %v845_v9, 1  ;;  %v850_v34 = vrot.slane %v849_v16, 2  ;;  %v1069_v21 = vadd.f32 %v1068_v8, %v1067_v62 }
 0x126   :  { %v921_v15 = vcombine.low %v835_v1, %v841_v10  ;;  %v1185_v18 = vcombine.low %v1163_v4, %v1170_v12  ;;  %v1074_v22 = vrot.slane %v1073_v20, 1  ;;  %v1080_v25 = vrot.slane %v1079_v19, 1 }
 0x127   :  { %v1083_v23 = vadd.f32 %v1082_v17, %v991_v43  ;;  %v851_v26 = vadd.f32 %v850_v34, %v849_v16  ;;  %v847_v30 = vadd.f32 %v846_v24, %v845_v9  ;;  %v959_v46 = vrot.slane %v951_v7, %v1546_v14 }
 0x128   :  { %v1075_v27 = vadd.f32 %v1074_v22, %v1073_v20  ;;  %v1081_v36 = vadd.f32 %v1080_v25, %v1079_v19  ;;  %v943_v37 = vrot.slane %v921_v15, %v1546_v14  ;;  %v1193_v50 = vrot.slane %v1185_v18, %v1546_v14 }
 0x129   :  { %v1084_v29 = vrot.slane %v1083_v23, 2  ;;  %v852_v31 = vrot.slane %v851_v26, 1 }
 0x12a   :  { %v1155_v32 = vcombine.low %v1069_v21, %v1075_v27 }
 0x12b   :  { %v1085_v33 = vadd.f32 %v1084_v29, %v1083_v23  ;;  %v853_v35 = vadd.f32 %v852_v31, %v851_v26 }
 0x12c   :  { %v1177_v41 = vrot.slane %v1155_v32, %v1546_v14 }
 0x12d   :  { %v1086_v28 = vrot.slane %v1085_v33, 1  ;;  %v922_v38 = vcombine.low %v847_v30, %v853_v35 }
 0x12f   :  { %v1087_v39 = vadd.f32 %v1086_v28, %v1085_v33  ;;  %v950_v40 = vrot.slane %v922_v38, %v1546_v14 }
 0x131   :  { %v1156_v42 = vcombine.low %v1081_v36, %v1087_v39  ;;  %v952_v44 = vcombine.low %v943_v37, %v950_v40 }
 0x133   :  { %v1184_v45 = vrot.slane %v1156_v42, %v1546_v14  ;;  %v966_v47 = vrot.slane %v952_v44, %v1546_v14 }
 0x135   :  { %v1186_v48 = vcombine.low %v1177_v41, %v1184_v45  ;;  %v967_v49 = vcombine.low %v959_v46, %v966_v47 }
 0x137   :  { %v1200_v51 = vrot.slane %v1186_v48, %v1546_v14  ;;  %973 = vst [vmem:[%s1650_s3 + $0x8] sm:$0xff] %v967_v49 }
 0x139   :  { %v1201_v52 = vcombine.low %v1193_v50, %v1200_v51 }
 0x13b   :  { %1207 = vst [vmem:[%s1651_s4 + $0x8] sm:$0xff] %v1201_v52 }

// kernel: tile.63
= control target key start
LH: loop header
LB: loop body
LE: loop exit
PB: predicated region body
PF: predicated region fallthrough
CT: control target
= control target key end

     0   :  { %s22_s0 = inlined_call_operand.vmem [shape: f32[64], index: 0, kind: input, shape index: {}]   ;;  %s23_s1 = inlined_call_operand.vmem [shape: f32[4,64], index: 1, kind: output, shape index: {}]  }
   0x1   :  { %v4_v0 = vld [vmem:[%s22_s0] ss:$0 sm:$0xff] }
   0x2   :  { %5 = vst [vmem:[%s23_s1] sm:$0xf] %v4_v0 }

// kernel: tile.64
= control target key start
LH: loop header
LB: loop body
LE: loop exit
PB: predicated region body
PF: predicated region fallthrough
CT: control target
= control target key end

     0   :  { %s6_s8 = smov 3  ;;  %vm8_vm0 = vcmask 523264   ;;  %s30_s9 = smov 64   ;;  %vm15_vm1 = vcmask 1048064   ;;  %s50_s0 = inlined_call_operand.vmem [shape: f32[4,64], index: 0, kind: input, shape index: {}]   ;;  %s51_s1 = inlined_call_operand.vmem [shape: f32[1,256], index: 1, kind: output, shape index: {}]  }
   0x1   :  { %v4_v0 = vld [vmem:[%s50_s0] sm:$0xf]  ;;  %s11_s0 = smov 3 }
   0x2   :  { %5 = vst [vmem:[#allocation1] sm:$0xf] %v4_v0 }
   0x9   :  { %v12_v1 = vld [vmem:[#allocation1 + $0x1] ss:$2 sm:%s11_s0]   ;;  %v7_v2 = vld [vmem:[#allocation1] ss:$2 sm:%s6_s8]  }
   0xa   :  { %13 = vrot.lane.b32.xlu0 %v12_v1, %s30_s9  ;;  %9 = vst.msk [vmem:[#allocation0] ss:$8 sm:$0x3] %vm8_vm0, %v7_v2  }
  0x7c   :  { %v14_v3 = vpop.permute.xlu0 %13  }
  0x7d   :  { %16 = vst.msk [vmem:[#allocation0] ss:$8 sm:$0x3] %vm15_vm1, %v14_v3  }
  0x84   :  { %v20_v4 = vld [vmem:[#allocation0] sm:$0x1]  ;;  %v24_v5 = vld [vmem:[#allocation0 + $0x8] sm:$0x1] }
  0x85   :  { %22 = vst [vmem:[%s51_s1] sm:$0x1] %v20_v4  ;;  %28 = vst [vmem:[%s51_s1 + $0x1] sm:$0x1] %v24_v5 }

// kernel: generator_forward.11
= control target key start
LH: loop header
LB: loop body
LE: loop exit
PB: predicated region body
PF: predicated region fallthrough
CT: control target
= control target key end

     0   :  { %s2401_s1 = inlined_call_operand.vmem [shape: bf16[1152,256], index: 1, kind: input, shape index: {}]   ;;  %s2402_s0 = inlined_call_operand.vmem [shape: bf16[32,1152], index: 0, kind: input, shape index: {}]   ;;  %s2403_s3 = inlined_call_operand.vmem [shape: f32[1,256], index: 3, kind: output, shape index: {1}]   ;;  %s2404_s4 = inlined_call_operand.vmem [shape: f32[1,256], index: 4, kind: output, shape index: {2}]   ;;  %s2405_s2 = inlined_call_operand.vmem [shape: f32[32,256], index: 2, kind: output, shape index: {0}]  }
   0x1   :  { %v1589_v0 = vld [vmem:[%s2401_s1 + $0x4] ss:$8 sps:$4 sm:$0xff]   ;;  %v1593_v2 = vld [vmem:[%s2401_s1] ss:$8 sps:$4 sm:$0xff]   ;;  %v1595_v4 = vld [vmem:[%s2401_s1 + $0x14] ss:$8 sps:$4 sm:$0xff]  }
   0x2   :  { %v1591_v1 = vld [vmem:[%s2401_s1 + $0x204] ss:$8 sps:$4 sm:$0xff]   ;;  %1001 = vmatprep.subr.bf16.mxu1 %v1589_v0  ;;  %v1594_v3 = vld [vmem:[%s2401_s1 + $0x200] ss:$8 sps:$4 sm:$0xff]   ;;  %v1597_v5 = vld [vmem:[%s2401_s1 + $0x214] ss:$8 sps:$4 sm:$0xff]  }
   0x3   :  { %1107 = vmatprep.subr.bf16.mxu0 %v1591_v1  ;;  %1002 = vmatpush1.bf16.msra.mxu1 %v1593_v2  ;;  %v1599_v6 = vld [vmem:[%s2401_s1 + $0x10] ss:$8 sps:$4 sm:$0xff]   ;;  %v1601_v8 = vld [vmem:[%s2401_s1 + $0x24] ss:$8 sps:$4 sm:$0xff]   ;;  %v1605_v10 = vld [vmem:[%s2401_s1 + $0x20] ss:$8 sps:$4 sm:$0xff]  }
   0x4   :  { %1108 = vmatpush1.bf16.msra.mxu0 %v1594_v3  ;;  %1003 = vmatprep.subr.bf16.mxu1 %v1595_v4  ;;  %v1600_v7 = vld [vmem:[%s2401_s1 + $0x210] ss:$8 sps:$4 sm:$0xff]   ;;  %v1603_v9 = vld [vmem:[%s2401_s1 + $0x224] ss:$8 sps:$4 sm:$0xff]   ;;  %v1606_v11 = vld [vmem:[%s2401_s1 + $0x220] ss:$8 sps:$4 sm:$0xff]  }
   0x5   :  { %1109 = vmatprep.subr.bf16.mxu0 %v1597_v5  ;;  %v1607_v12 = vld [vmem:[%s2401_s1 + $0x34] ss:$8 sps:$4 sm:$0xff]   ;;  %v1611_v14 = vld [vmem:[%s2401_s1 + $0x30] ss:$8 sps:$4 sm:$0xff]   ;;  %v1613_v16 = vld [vmem:[%s2401_s1 + $0x44] ss:$8 sps:$4 sm:$0xff]  }
   0x6   :  { %v1609_v13 = vld [vmem:[%s2401_s1 + $0x234] ss:$8 sps:$4 sm:$0xff]   ;;  %v1612_v15 = vld [vmem:[%s2401_s1 + $0x230] ss:$8 sps:$4 sm:$0xff]   ;;  %v1615_v17 = vld [vmem:[%s2401_s1 + $0x244] ss:$8 sps:$4 sm:$0xff]  }
   0x7   :  { %1004 = vmatpush1.bf16.msra.mxu1 %v1599_v6  ;;  %v1617_v18 = vld [vmem:[%s2401_s1 + $0x40] ss:$8 sps:$4 sm:$0xff]   ;;  %v1619_v20 = vld [vmem:[%s2401_s1 + $0x54] ss:$8 sps:$4 sm:$0xff]   ;;  %v1623_v22 = vld [vmem:[%s2401_s1 + $0x50] ss:$8 sps:$4 sm:$0xff]  }
   0x8   :  { %1110 = vmatpush1.bf16.msra.mxu0 %v1600_v7  ;;  %1005 = vmatprep.subr.bf16.mxu1 %v1601_v8  ;;  %v1618_v19 = vld [vmem:[%s2401_s1 + $0x240] ss:$8 sps:$4 sm:$0xff]   ;;  %v1621_v21 = vld [vmem:[%s2401_s1 + $0x254] ss:$8 sps:$4 sm:$0xff]   ;;  %v1624_v23 = vld [vmem:[%s2401_s1 + $0x250] ss:$8 sps:$4 sm:$0xff]  }
   0x9   :  { %1111 = vmatprep.subr.bf16.mxu0 %v1603_v9  ;;  %v1625_v24 = vld [vmem:[%s2401_s1 + $0x64] ss:$8 sps:$4 sm:$0xff]   ;;  %v1629_v26 = vld [vmem:[%s2401_s1 + $0x60] ss:$8 sps:$4 sm:$0xff]   ;;  %v1631_v28 = vld [vmem:[%s2401_s1 + $0x74] ss:$8 sps:$4 sm:$0xff]  }
   0xa   :  { %v1627_v25 = vld [vmem:[%s2401_s1 + $0x264] ss:$8 sps:$4 sm:$0xff]   ;;  %v1630_v27 = vld [vmem:[%s2401_s1 + $0x260] ss:$8 sps:$4 sm:$0xff]   ;;  %v1633_v29 = vld [vmem:[%s2401_s1 + $0x274] ss:$8 sps:$4 sm:$0xff]  }
   0xb   :  { %1006 = vmatpush1.bf16.msra.mxu1 %v1605_v10  ;;  %v1635_v30 = vld [vmem:[%s2401_s1 + $0x70] ss:$8 sps:$4 sm:$0xff]   ;;  %v1637_v32 = vld [vmem:[%s2401_s1 + $0x84] ss:$8 sps:$4 sm:$0xff]   ;;  %v1641_v34 = vld [vmem:[%s2401_s1 + $0x80] ss:$8 sps:$4 sm:$0xff]  }
   0xc   :  { %1112 = vmatpush1.bf16.msra.mxu0 %v1606_v11  ;;  %1007 = vmatprep.subr.bf16.mxu1 %v1607_v12  ;;  %v1636_v31 = vld [vmem:[%s2401_s1 + $0x270] ss:$8 sps:$4 sm:$0xff]   ;;  %v1639_v33 = vld [vmem:[%s2401_s1 + $0x284] ss:$8 sps:$4 sm:$0xff]   ;;  %v1642_v35 = vld [vmem:[%s2401_s1 + $0x280] ss:$8 sps:$4 sm:$0xff]  }
   0xd   :  { %1113 = vmatprep.subr.bf16.mxu0 %v1609_v13  ;;  %v1643_v36 = vld [vmem:[%s2401_s1 + $0x94] ss:$8 sps:$4 sm:$0xff]   ;;  %v1647_v38 = vld [vmem:[%s2401_s1 + $0x90] ss:$8 sps:$4 sm:$0xff]   ;;  %v1649_v40 = vld [vmem:[%s2401_s1 + $0xa4] ss:$8 sps:$4 sm:$0xff]  }
   0xe   :  { %v1645_v37 = vld [vmem:[%s2401_s1 + $0x294] ss:$8 sps:$4 sm:$0xff]   ;;  %v1648_v39 = vld [vmem:[%s2401_s1 + $0x290] ss:$8 sps:$4 sm:$0xff]   ;;  %v1651_v41 = vld [vmem:[%s2401_s1 + $0x2a4] ss:$8 sps:$4 sm:$0xff]  }
   0xf   :  { %1008 = vmatpush1.bf16.msra.mxu1 %v1611_v14  ;;  %v1653_v42 = vld [vmem:[%s2401_s1 + $0xa0] ss:$8 sps:$4 sm:$0xff]   ;;  %v1655_v44 = vld [vmem:[%s2401_s1 + $0xb4] ss:$8 sps:$4 sm:$0xff]   ;;  %v1659_v46 = vld [vmem:[%s2401_s1 + $0xb0] ss:$8 sps:$4 sm:$0xff]  }
  0x10   :  { %1114 = vmatpush1.bf16.msra.mxu0 %v1612_v15  ;;  %1009 = vmatprep.subr.bf16.mxu1 %v1613_v16  ;;  %v1654_v43 = vld [vmem:[%s2401_s1 + $0x2a0] ss:$8 sps:$4 sm:$0xff]   ;;  %v1657_v45 = vld [vmem:[%s2401_s1 + $0x2b4] ss:$8 sps:$4 sm:$0xff]   ;;  %v1660_v47 = vld [vmem:[%s2401_s1 + $0x2b0] ss:$8 sps:$4 sm:$0xff]  }
  0x11   :  { %1115 = vmatprep.subr.bf16.mxu0 %v1615_v17  ;;  %v1687_v48 = vld [vmem:[%s2402_s0 + $0x4] ss:$36 sps:$4 sm:$0xff]   ;;  %v1693_v51 = vld [vmem:[%s2402_s0 + $0x14] ss:$36 sps:$4 sm:$0xff]  }
  0x12   :  { %v1661_v49 = vld [vmem:[%s2401_s1 + $0xc4] ss:$8 sps:$4 sm:$0xff]   ;;  %1033 = vmatprep.mubr.bf16.mxu1 %v1687_v48  ;;  %v1665_v52 = vld [vmem:[%s2401_s1 + $0xc0] ss:$8 sps:$4 sm:$0xff]   ;;  %v1667_v54 = vld [vmem:[%s2401_s1 + $0xd4] ss:$8 sps:$4 sm:$0xff]   ;;  %1139 = vmatprep.mubr.bf16.mxu0 %v1693_v51 }
  0x13   :  { %1010 = vmatpush1.bf16.msra.mxu1 %v1617_v18  ;;  %v1663_v50 = vld [vmem:[%s2401_s1 + $0x2c4] ss:$8 sps:$4 sm:$0xff]   ;;  %v1666_v53 = vld [vmem:[%s2401_s1 + $0x2c0] ss:$8 sps:$4 sm:$0xff]   ;;  %v1669_v55 = vld [vmem:[%s2401_s1 + $0x2d4] ss:$8 sps:$4 sm:$0xff]  }
  0x14   :  { %1116 = vmatpush1.bf16.msra.mxu0 %v1618_v19  ;;  %1011 = vmatprep.subr.bf16.mxu1 %v1619_v20  ;;  %v1671_v56 = vld [vmem:[%s2401_s1 + $0xd0] ss:$8 sps:$4 sm:$0xff]   ;;  %v1673_v58 = vld [vmem:[%s2401_s1 + $0xe4] ss:$8 sps:$4 sm:$0xff]   ;;  %v1677_v60 = vld [vmem:[%s2401_s1 + $0xe0] ss:$8 sps:$4 sm:$0xff]  }
  0x15   :  { %1117 = vmatprep.subr.bf16.mxu0 %v1621_v21  ;;  %v1672_v57 = vld [vmem:[%s2401_s1 + $0x2d0] ss:$8 sps:$4 sm:$0xff]   ;;  %v1675_v59 = vld [vmem:[%s2401_s1 + $0x2e4] ss:$8 sps:$4 sm:$0xff]   ;;  %v1678_v61 = vld [vmem:[%s2401_s1 + $0x2e0] ss:$8 sps:$4 sm:$0xff]  }
  0x16   :  { %v1679_v62 = vld [vmem:[%s2401_s1 + $0xf4] ss:$8 sps:$4 sm:$0xff]   ;;  %v1683_v0 = vld [vmem:[%s2401_s1 + $0xf0] ss:$8 sps:$4 sm:$0xff]   ;;  %v1690_v2 = vld [vmem:[%s2401_s1 + $0x104] ss:$8 sps:$4 sm:$0xff]  }
  0x17   :  { %1012 = vmatpush1.bf16.msra.mxu1 %v1623_v22  ;;  %v1681_v63 = vld [vmem:[%s2401_s1 + $0x2f4] ss:$8 sps:$4 sm:$0xff]   ;;  %v1684_v1 = vld [vmem:[%s2401_s1 + $0x2f0] ss:$8 sps:$4 sm:$0xff]   ;;  %v1696_v3 = vld [vmem:[%s2401_s1 + $0x304] ss:$8 sps:$4 sm:$0xff]  }
  0x18   :  { %1118 = vmatpush1.bf16.msra.mxu0 %v1624_v23  ;;  %1013 = vmatprep.subr.bf16.mxu1 %v1625_v24  ;;  %v1685_v4 = vld [vmem:[%s2402_s0] ss:$36 sps:$4 sm:$0xff]   ;;  %v1691_v6 = vld [vmem:[%s2402_s0 + $0x10] ss:$36 sps:$4 sm:$0xff]  }
  0x19   :  { %1119 = vmatprep.subr.bf16.mxu0 %v1627_v25  ;;  %v1688_v5 = vld [vmem:[%s2401_s1 + $0x100] ss:$8 sps:$4 sm:$0xff]   ;;  %v1699_v8 = vld [vmem:[%s2401_s1 + $0x114] ss:$8 sps:$4 sm:$0xff]   ;;  %v1697_v10 = vld [vmem:[%s2401_s1 + $0x110] ss:$8 sps:$4 sm:$0xff]  }
  0x1a   :  { %v1694_v7 = vld [vmem:[%s2401_s1 + $0x300] ss:$8 sps:$4 sm:$0xff]   ;;  %v1702_v9 = vld [vmem:[%s2401_s1 + $0x314] ss:$8 sps:$4 sm:$0xff]   ;;  %v1700_v11 = vld [vmem:[%s2401_s1 + $0x310] ss:$8 sps:$4 sm:$0xff]  }
  0x1b   :  { %1014 = vmatpush1.bf16.msra.mxu1 %v1629_v26  ;;  %v1705_v12 = vld [vmem:[%s2401_s1 + $0x124] ss:$8 sps:$4 sm:$0xff]   ;;  %v1703_v14 = vld [vmem:[%s2401_s1 + $0x120] ss:$8 sps:$4 sm:$0xff]   ;;  %v1711_v16 = vld [vmem:[%s2401_s1 + $0x134] ss:$8 sps:$4 sm:$0xff]  }
  0x1c   :  { %1120 = vmatpush1.bf16.msra.mxu0 %v1630_v27  ;;  %1015 = vmatprep.subr.bf16.mxu1 %v1631_v28  ;;  %v1708_v13 = vld [vmem:[%s2401_s1 + $0x324] ss:$8 sps:$4 sm:$0xff]   ;;  %v1706_v15 = vld [vmem:[%s2401_s1 + $0x320] ss:$8 sps:$4 sm:$0xff]   ;;  %v1714_v17 = vld [vmem:[%s2401_s1 + $0x334] ss:$8 sps:$4 sm:$0xff]  }
  0x1d   :  { %1121 = vmatprep.subr.bf16.mxu0 %v1633_v29  ;;  %v1709_v18 = vld [vmem:[%s2401_s1 + $0x130] ss:$8 sps:$4 sm:$0xff]   ;;  %v1717_v20 = vld [vmem:[%s2401_s1 + $0x144] ss:$8 sps:$4 sm:$0xff]   ;;  %v1715_v22 = vld [vmem:[%s2401_s1 + $0x140] ss:$8 sps:$4 sm:$0xff]  }
  0x1e   :  { %v1712_v19 = vld [vmem:[%s2401_s1 + $0x330] ss:$8 sps:$4 sm:$0xff]   ;;  %v1720_v21 = vld [vmem:[%s2401_s1 + $0x344] ss:$8 sps:$4 sm:$0xff]   ;;  %v1718_v23 = vld [vmem:[%s2401_s1 + $0x340] ss:$8 sps:$4 sm:$0xff]  }
  0x1f   :  { %1016 = vmatpush1.bf16.msra.mxu1 %v1635_v30  ;;  %v1723_v24 = vld [vmem:[%s2401_s1 + $0x154] ss:$8 sps:$4 sm:$0xff]   ;;  %v1721_v26 = vld [vmem:[%s2401_s1 + $0x150] ss:$8 sps:$4 sm:$0xff]   ;;  %v1729_v28 = vld [vmem:[%s2401_s1 + $0x164] ss:$8 sps:$4 sm:$0xff]  }
  0x20   :  { %1122 = vmatpush1.bf16.msra.mxu0 %v1636_v31  ;;  %1017 = vmatprep.subr.bf16.mxu1 %v1637_v32  ;;  %v1726_v25 = vld [vmem:[%s2401_s1 + $0x354] ss:$8 sps:$4 sm:$0xff]   ;;  %v1724_v27 = vld [vmem:[%s2401_s1 + $0x350] ss:$8 sps:$4 sm:$0xff]   ;;  %v1779_v31 = vld [vmem:[%s2402_s0 + $0x48] ss:$36 sps:$4 sm:$0xff]  }
  0x21   :  { %1123 = vmatprep.subr.bf16.mxu0 %v1639_v33  ;;  %v1775_v29 = vld [vmem:[%s2402_s0 + $0x4c] ss:$36 sps:$4 sm:$0xff]   ;;  %v1777_v30 = vld [vmem:[%s2402_s0 + $0x5c] ss:$36 sps:$4 sm:$0xff]  }
  0x22   :  { %v1732_v32 = vld [vmem:[%s2401_s1 + $0x364] ss:$8 sps:$4 sm:$0xff]   ;;  %v1783_v33 = vld [vmem:[%s2402_s0 + $0x58] ss:$36 sps:$4 sm:$0xff]  }
  0x23   :  { %1018 = vmatpush1.bf16.msra.mxu1 %v1641_v34  ;;  %v1727_v34 = vld [vmem:[%s2401_s1 + $0x160] ss:$8 sps:$4 sm:$0xff]   ;;  %v1745_v48 = vld [vmem:[%s2401_s1 + $0x190] ss:$8 sps:$4 sm:$0xff]   ;;  %v1756_v51 = vld [vmem:[%s2401_s1 + $0x3a4] ss:$8 sps:$4 sm:$0xff]  }
  0x24   :  { %1124 = vmatpush1.bf16.msra.mxu0 %v1642_v35  ;;  %1019 = vmatprep.subr.bf16.mxu1 %v1643_v36  ;;  %v1730_v35 = vld [vmem:[%s2401_s1 + $0x360] ss:$8 sps:$4 sm:$0xff]   ;;  %v1735_v36 = vld [vmem:[%s2401_s1 + $0x174] ss:$8 sps:$4 sm:$0xff]  }
  0x25   :  { %1125 = vmatprep.subr.bf16.mxu0 %v1645_v37  ;;  %v1738_v37 = vld [vmem:[%s2401_s1 + $0x374] ss:$8 sps:$4 sm:$0xff]  }
  0x27   :  { %1020 = vmatpush1.bf16.msra.mxu1 %v1647_v38  ;;  %v1733_v38 = vld [vmem:[%s2401_s1 + $0x170] ss:$8 sps:$4 sm:$0xff]  }
  0x28   :  { %1126 = vmatpush1.bf16.msra.mxu0 %v1648_v39  ;;  %1021 = vmatprep.subr.bf16.mxu1 %v1649_v40  ;;  %v1736_v39 = vld [vmem:[%s2401_s1 + $0x370] ss:$8 sps:$4 sm:$0xff]   ;;  %v1741_v40 = vld [vmem:[%s2401_s1 + $0x184] ss:$8 sps:$4 sm:$0xff]  }
  0x29   :  { %1127 = vmatprep.subr.bf16.mxu0 %v1651_v41  ;;  %v1795_v41 = vld [vmem:[%s2402_s0 + $0xc] ss:$36 sps:$4 sm:$0xff]  }
  0x2b   :  { %1022 = vmatpush1.bf16.msra.mxu1 %v1653_v42  ;;  %v1744_v42 = vld [vmem:[%s2401_s1 + $0x384] ss:$8 sps:$4 sm:$0xff]  }
  0x2c   :  { %1128 = vmatpush1.bf16.msra.mxu0 %v1654_v43  ;;  %1023 = vmatprep.subr.bf16.mxu1 %v1655_v44  ;;  %v1798_v43 = vld [vmem:[%s2402_s0 + $0x1c] ss:$36 sps:$4 sm:$0xff]  }
  0x2d   :  { %1129 = vmatprep.subr.bf16.mxu0 %v1657_v45  ;;  %v1739_v44 = vld [vmem:[%s2401_s1 + $0x180] ss:$8 sps:$4 sm:$0xff]  }
  0x2e   :  { %v1742_v45 = vld [vmem:[%s2401_s1 + $0x380] ss:$8 sps:$4 sm:$0xff]  }
  0x2f   :  { %1024 = vmatpush1.bf16.msra.mxu1 %v1659_v46  ;;  %v1747_v46 = vld [vmem:[%s2401_s1 + $0x194] ss:$8 sps:$4 sm:$0xff]  }
  0x30   :  { %1130 = vmatpush1.bf16.msra.mxu0 %v1660_v47  ;;  %1025 = vmatprep.subr.bf16.mxu1 %v1661_v49  ;;  %v1750_v47 = vld [vmem:[%s2401_s1 + $0x394] ss:$8 sps:$4 sm:$0xff]   ;;  %v1748_v49 = vld [vmem:[%s2401_s1 + $0x390] ss:$8 sps:$4 sm:$0xff]  }
  0x31   :  { %1131 = vmatprep.subr.bf16.mxu0 %v1663_v50  ;;  %v1753_v50 = vld [vmem:[%s2401_s1 + $0x1a4] ss:$8 sps:$4 sm:$0xff]  }
  0x33   :  { %1026 = vmatpush1.bf16.msra.mxu1 %v1665_v52  ;;  %v1751_v52 = vld [vmem:[%s2401_s1 + $0x1a0] ss:$8 sps:$4 sm:$0xff]  }
  0x34   :  { %1132 = vmatpush1.bf16.msra.mxu0 %v1666_v53  ;;  %1027 = vmatprep.subr.bf16.mxu1 %v1667_v54  ;;  %v1754_v53 = vld [vmem:[%s2401_s1 + $0x3a0] ss:$8 sps:$4 sm:$0xff]   ;;  %v1759_v54 = vld [vmem:[%s2401_s1 + $0x1b4] ss:$8 sps:$4 sm:$0xff]  }
  0x35   :  { %1133 = vmatprep.subr.bf16.mxu0 %v1669_v55  ;;  %v1762_v55 = vld [vmem:[%s2401_s1 + $0x3b4] ss:$8 sps:$4 sm:$0xff]  }
  0x37   :  { %1028 = vmatpush1.bf16.msra.mxu1 %v1671_v56  ;;  %v1757_v56 = vld [vmem:[%s2401_s1 + $0x1b0] ss:$8 sps:$4 sm:$0xff]  }
  0x38   :  { %1134 = vmatpush1.bf16.msra.mxu0 %v1672_v57  ;;  %1029 = vmatprep.subr.bf16.mxu1 %v1673_v58  ;;  %v1760_v57 = vld [vmem:[%s2401_s1 + $0x3b0] ss:$8 sps:$4 sm:$0xff]   ;;  %v1765_v58 = vld [vmem:[%s2401_s1 + $0x1c4] ss:$8 sps:$4 sm:$0xff]  }
  0x39   :  { %1135 = vmatprep.subr.bf16.mxu0 %v1675_v59  ;;  %v1768_v59 = vld [vmem:[%s2401_s1 + $0x3c4] ss:$8 sps:$4 sm:$0xff]  }
  0x3b   :  { %1030 = vmatpush1.bf16.msra.mxu1 %v1677_v60  ;;  %v1763_v60 = vld [vmem:[%s2401_s1 + $0x1c0] ss:$8 sps:$4 sm:$0xff]  }
  0x3c   :  { %1136 = vmatpush1.bf16.msra.mxu0 %v1678_v61  ;;  %1031 = vmatprep.subr.bf16.mxu1 %v1679_v62  ;;  %v1766_v61 = vld [vmem:[%s2401_s1 + $0x3c0] ss:$8 sps:$4 sm:$0xff]   ;;  %v1771_v62 = vld [vmem:[%s2401_s1 + $0x1d4] ss:$8 sps:$4 sm:$0xff]  }
  0x3d   :  { %1137 = vmatprep.subr.bf16.mxu0 %v1681_v63  ;;  %v1774_v63 = vld [vmem:[%s2401_s1 + $0x3d4] ss:$8 sps:$4 sm:$0xff]  }
  0x3f   :  { %1032 = vmatpush1.bf16.msra.mxu1 %v1683_v0  ;;  %v1769_v0 = vld [vmem:[%s2401_s1 + $0x1d0] ss:$8 sps:$4 sm:$0xff]  }
  0x40   :  { %1138 = vmatpush1.bf16.msra.mxu0 %v1684_v1  ;;  %1054 = vmatprep.subr.bf16.mxu1 %v1690_v2  ;;  %v1772_v1 = vld [vmem:[%s2401_s1 + $0x3d0] ss:$8 sps:$4 sm:$0xff]   ;;  %v1782_v2 = vld [vmem:[%s2401_s1 + $0x1e4] ss:$8 sps:$4 sm:$0xff]  }
  0x41   :  { %1160 = vmatprep.subr.bf16.mxu0 %v1696_v3  ;;  %v1786_v3 = vld [vmem:[%s2401_s1 + $0x3e4] ss:$8 sps:$4 sm:$0xff]  }
  0x42   :  { %1034 = vmatmul.mubr.bf16.vlgmr.msra.gmra.mrb[0].mxu1 %v1685_v4  ;;  %v1780_v4 = vld [vmem:[%s2401_s1 + $0x1e0] ss:$8 sps:$4 sm:$0xff]  }
  0x43   :  { %1140 = vmatmul.mubr.bf16.vlgmr.msra.gmra.mrb[0].mxu0 %v1691_v6  ;;  %1055 = vmatpush1.bf16.msra.mxu1 %v1688_v5  ;;  %v1784_v5 = vld [vmem:[%s2401_s1 + $0x3e0] ss:$8 sps:$4 sm:$0xff]   ;;  %v1789_v6 = vld [vmem:[%s2401_s1 + $0x1f4] ss:$8 sps:$4 sm:$0xff]  }
  0x44   :  { %1161 = vmatpush1.bf16.msra.mxu0 %v1694_v7  ;;  %1056 = vmatprep.subr.bf16.mxu1 %v1699_v8  ;;  %v1792_v7 = vld [vmem:[%s2401_s1 + $0x3f4] ss:$8 sps:$4 sm:$0xff]   ;;  %v1787_v8 = vld [vmem:[%s2401_s1 + $0x1f0] ss:$8 sps:$4 sm:$0xff]  }
  0x45   :  { %1162 = vmatprep.subr.bf16.mxu0 %v1702_v9  ;;  %1043 = vmatprep.mubr.bf16.mxu1 %v1775_v29  ;;  %v1790_v9 = vld [vmem:[%s2401_s1 + $0x3f0] ss:$8 sps:$4 sm:$0xff]   ;;  %v1825_v29 = vld [vmem:[%s2401_s1 + $0x464] ss:$8 sps:$4 sm:$0xff]  }
  0x46   :  { %1149 = vmatprep.mubr.bf16.mxu0 %v1777_v30  ;;  %v1823_v30 = vld [vmem:[%s2401_s1 + $0x460] ss:$8 sps:$4 sm:$0xff]  }
  0x47   :  { %1057 = vmatpush1.bf16.msra.mxu1 %v1697_v10  ;;  %v1801_v10 = vld [vmem:[%s2401_s1 + $0x404] ss:$8 sps:$4 sm:$0xff]  }
  0x48   :  { %1163 = vmatpush1.bf16.msra.mxu0 %v1700_v11  ;;  %1058 = vmatprep.subr.bf16.mxu1 %v1705_v12  ;;  %v1793_v11 = vld [vmem:[%s2402_s0 + $0x8] ss:$36 sps:$4 sm:$0xff]   ;;  %v1796_v12 = vld [vmem:[%s2402_s0 + $0x18] ss:$36 sps:$4 sm:$0xff]  }
  0x49   :  { %1164 = vmatprep.subr.bf16.mxu0 %v1708_v13  ;;  %v1799_v13 = vld [vmem:[%s2401_s1 + $0x400] ss:$8 sps:$4 sm:$0xff]  }
  0x4a   :  { %1044 = vmatmul.mubr.bf16.gmra.mrb[4].mxu1 %v1779_v31  ;;  %v1828_v31 = vld [vmem:[%s2401_s1 + $0x474] ss:$8 sps:$4 sm:$0xff]  }
  0x4b   :  { %1059 = vmatpush1.bf16.msra.mxu1 %v1703_v14  ;;  %1150 = vmatmul.mubr.bf16.gmra.mrb[4].mxu0 %v1783_v33  ;;  %v1804_v14 = vld [vmem:[%s2401_s1 + $0x414] ss:$8 sps:$4 sm:$0xff]   ;;  %v1829_v33 = vld [vmem:[%s2402_s0 + $0x20] ss:$36 sps:$4 sm:$0xff]  }
  0x4c   :  { %1165 = vmatpush1.bf16.msra.mxu0 %v1706_v15  ;;  %1060 = vmatprep.subr.bf16.mxu1 %v1711_v16  ;;  %v1805_v15 = vld [vmem:[%s2402_s0 + $0x54] ss:$36 sps:$4 sm:$0xff]   ;;  %v1807_v16 = vld [vmem:[%s2402_s0 + $0x64] ss:$36 sps:$4 sm:$0xff]  }
  0x4d   :  { %1166 = vmatprep.subr.bf16.mxu0 %v1714_v17  ;;  %1086 = vmatprep.mubr.bf16.mxu1 %v1795_v41  ;;  %v1802_v17 = vld [vmem:[%s2401_s1 + $0x410] ss:$8 sps:$4 sm:$0xff]  }
  0x4e   :  { %1192 = vmatprep.mubr.bf16.mxu0 %v1798_v43 }
  0x4f   :  { %1061 = vmatpush1.bf16.msra.mxu1 %v1709_v18  ;;  %v1813_v18 = vld [vmem:[%s2401_s1 + $0x424] ss:$8 sps:$4 sm:$0xff]  }
  0x50   :  { %1167 = vmatpush1.bf16.msra.mxu0 %v1712_v19  ;;  %1062 = vmatprep.subr.bf16.mxu1 %v1717_v20  ;;  %v1809_v19 = vld [vmem:[%s2402_s0 + $0x50] ss:$36 sps:$4 sm:$0xff]   ;;  %v1810_v20 = vld [vmem:[%s2402_s0 + $0x60] ss:$36 sps:$4 sm:$0xff]  }
  0x51   :  { %1168 = vmatprep.subr.bf16.mxu0 %v1720_v21  ;;  %v1811_v21 = vld [vmem:[%s2401_s1 + $0x420] ss:$8 sps:$4 sm:$0xff]  }
  0x53   :  { %1063 = vmatpush1.bf16.msra.mxu1 %v1715_v22  ;;  %v1816_v22 = vld [vmem:[%s2401_s1 + $0x434] ss:$8 sps:$4 sm:$0xff]  }
  0x54   :  { %1169 = vmatpush1.bf16.msra.mxu0 %v1718_v23  ;;  %1064 = vmatprep.subr.bf16.mxu1 %v1723_v24  ;;  %v1814_v23 = vld [vmem:[%s2401_s1 + $0x430] ss:$8 sps:$4 sm:$0xff]   ;;  %v1819_v24 = vld [vmem:[%s2401_s1 + $0x444] ss:$8 sps:$4 sm:$0xff]  }
  0x55   :  { %1170 = vmatprep.subr.bf16.mxu0 %v1726_v25  ;;  %v1831_v25 = vmov 0  }
  0x57   :  { %1065 = vmatpush1.bf16.msra.mxu1 %v1721_v26  ;;  %v1817_v26 = vld [vmem:[%s2401_s1 + $0x440] ss:$8 sps:$4 sm:$0xff]  }
  0x58   :  { %1171 = vmatpush1.bf16.msra.mxu0 %v1724_v27  ;;  %1066 = vmatprep.subr.bf16.mxu1 %v1729_v28  ;;  %v1822_v27 = vld [vmem:[%s2401_s1 + $0x454] ss:$8 sps:$4 sm:$0xff]   ;;  %v1820_v28 = vld [vmem:[%s2401_s1 + $0x450] ss:$8 sps:$4 sm:$0xff]  }
  0x59   :  { %1172 = vmatprep.subr.bf16.mxu0 %v1732_v32  ;;  %v1826_v32 = vld [vmem:[%s2401_s1 + $0x470] ss:$8 sps:$4 sm:$0xff]  }
  0x5b   :  { %1067 = vmatpush1.bf16.msra.mxu1 %v1727_v34  ;;  %v1830_v34 = vld [vmem:[%s2402_s0 + $0x68] ss:$36 sps:$4 sm:$0xff]  }
  0x5c   :  { %1173 = vmatpush1.bf16.msra.mxu0 %v1730_v35  ;;  %1068 = vmatprep.subr.bf16.mxu1 %v1735_v36  ;;  %v19_v35 = vlaneseq }
  0x5d   :  { %1174 = vmatprep.subr.bf16.mxu0 %v1738_v37  ;;  %v1832_v37 = vmov 0.0  }
  0x5e   :  { %vm2346_vm0 = vcmp.lt.s32.totalorder %v19_v35, 256 }
  0x5f   :  { %1069 = vmatpush1.bf16.msra.mxu1 %v1733_v38  ;;  %23 = vst.msk [vmem:[%s2403_s3] sm:$0x3] %vm2346_vm0, %v1832_v37  ;;  %24 = vst.msk [vmem:[%s2404_s4] sm:$0x3] %vm2346_vm0, %v1832_v37 }
  0x60   :  { %1175 = vmatpush1.bf16.msra.mxu0 %v1736_v39  ;;  %1070 = vmatprep.subr.bf16.mxu1 %v1741_v40 }
  0x61   :  { %1176 = vmatprep.subr.bf16.mxu0 %v1744_v42 }
  0x63   :  { %1071 = vmatpush1.bf16.msra.mxu1 %v1739_v44 }
  0x64   :  { %1177 = vmatpush1.bf16.msra.mxu0 %v1742_v45  ;;  %1072 = vmatprep.subr.bf16.mxu1 %v1747_v46 }
  0x65   :  { %1178 = vmatprep.subr.bf16.mxu0 %v1750_v47 }
  0x67   :  { %1073 = vmatpush1.bf16.msra.mxu1 %v1745_v48 }
  0x68   :  { %1179 = vmatpush1.bf16.msra.mxu0 %v1748_v49  ;;  %1074 = vmatprep.subr.bf16.mxu1 %v1753_v50 }
  0x69   :  { %1180 = vmatprep.subr.bf16.mxu0 %v1756_v51 }
  0x6b   :  { %1075 = vmatpush1.bf16.msra.mxu1 %v1751_v52 }
  0x6c   :  { %1181 = vmatpush1.bf16.msra.mxu0 %v1754_v53  ;;  %1076 = vmatprep.subr.bf16.mxu1 %v1759_v54 }
  0x6d   :  { %1182 = vmatprep.subr.bf16.mxu0 %v1762_v55 }
  0x6f   :  { %1077 = vmatpush1.bf16.msra.mxu1 %v1757_v56 }
  0x70   :  { %1183 = vmatpush1.bf16.msra.mxu0 %v1760_v57  ;;  %1078 = vmatprep.subr.bf16.mxu1 %v1765_v58 }
  0x71   :  { %1184 = vmatprep.subr.bf16.mxu0 %v1768_v59 }
  0x73   :  { %1079 = vmatpush1.bf16.msra.mxu1 %v1763_v60 }
  0x74   :  { %1185 = vmatpush1.bf16.msra.mxu0 %v1766_v61  ;;  %1080 = vmatprep.subr.bf16.mxu1 %v1771_v62 }
  0x75   :  { %1186 = vmatprep.subr.bf16.mxu0 %v1774_v63 }
  0x77   :  { %1081 = vmatpush1.bf16.msra.mxu1 %v1769_v0 }
  0x78   :  { %1187 = vmatpush1.bf16.msra.mxu0 %v1772_v1  ;;  %1082 = vmatprep.subr.bf16.mxu1 %v1782_v2 }
  0x79   :  { %1188 = vmatprep.subr.bf16.mxu0 %v1786_v3 }
  0x7b   :  { %1083 = vmatpush1.bf16.msra.mxu1 %v1780_v4 }
  0x7c   :  { %1189 = vmatpush1.bf16.msra.mxu0 %v1784_v5  ;;  %1084 = vmatprep.subr.bf16.mxu1 %v1789_v6 }
  0x7d   :  { %1190 = vmatprep.subr.bf16.mxu0 %v1792_v7 }
  0x7f   :  { %1085 = vmatpush1.bf16.msra.mxu1 %v1787_v8 }
  0x80   :  { %1191 = vmatpush1.bf16.msra.mxu0 %v1790_v9  ;;  %1538 = vmatprep.subr.bf16.mxu1 %v1801_v10 }
  0x81   :  { %1213 = vmatprep.subr.bf16.mxu0 %v1801_v10 }
  0x82   :  { %1087 = vmatmul.mubr.bf16.vlgmr.msra.gmra.mrb[0].mxu1 %v1793_v11 }
  0x83   :  { %1193 = vmatmul.mubr.bf16.vlgmr.msra.gmra.mrb[0].mxu0 %v1796_v12  ;;  %1546 = vmatpush1.bf16.msra.mxu1 %v1799_v13 }
  0x84   :  { %1214 = vmatpush1.bf16.msra.mxu0 %v1799_v13  ;;  %1539 = vmatprep.subr.bf16.mxu1 %v1804_v14 }
  0x85   :  { %1215 = vmatprep.subr.bf16.mxu0 %v1804_v14  ;;  %1096 = vmatprep.mubr.bf16.mxu1 %v1805_v15 }
  0x86   :  { %1202 = vmatprep.mubr.bf16.mxu0 %v1807_v16 }
  0x87   :  { %1547 = vmatpush1.bf16.msra.mxu1 %v1802_v17 }
  0x88   :  { %1216 = vmatpush1.bf16.msra.mxu0 %v1802_v17  ;;  %1540 = vmatprep.subr.bf16.mxu1 %v1813_v18 }
  0x89   :  { %1217 = vmatprep.subr.bf16.mxu0 %v1813_v18 }
  0x8a   :  { %1097 = vmatmul.mubr.bf16.gmra.mrb[4].mxu1 %v1809_v19 }
  0x8b   :  { %1203 = vmatmul.mubr.bf16.gmra.mrb[4].mxu0 %v1810_v20  ;;  %1548 = vmatpush1.bf16.msra.mxu1 %v1811_v21 }
  0x8c   :  { %1218 = vmatpush1.bf16.msra.mxu0 %v1811_v21  ;;  %1541 = vmatprep.subr.bf16.mxu1 %v1816_v22 }
  0x8d   :  { %1219 = vmatprep.subr.bf16.mxu0 %v1816_v22  ;;  %1245 = vmatprep.mubr.bf16.mxu0 %v1831_v25 }
  0x8e   :  { %1255 = vmatprep.mubr.bf16.mxu1 %v1831_v25 }
  0x8f   :  { %1549 = vmatpush1.bf16.msra.mxu1 %v1814_v23 }
  0x90   :  { %1220 = vmatpush1.bf16.msra.mxu0 %v1814_v23  ;;  %1542 = vmatprep.subr.bf16.mxu1 %v1819_v24 }
  0x91   :  { %1221 = vmatprep.subr.bf16.mxu0 %v1819_v24 }
  0x93   :  { %1550 = vmatpush1.bf16.msra.mxu1 %v1817_v26 }
  0x94   :  { %1222 = vmatpush1.bf16.msra.mxu0 %v1817_v26  ;;  %1543 = vmatprep.subr.bf16.mxu1 %v1822_v27 }
  0x95   :  { %1223 = vmatprep.subr.bf16.mxu0 %v1822_v27 }
  0x97   :  { %1551 = vmatpush1.bf16.msra.mxu1 %v1820_v28 }
  0x98   :  { %1224 = vmatpush1.bf16.msra.mxu0 %v1820_v28  ;;  %1544 = vmatprep.subr.bf16.mxu1 %v1825_v29 }
  0x99   :  { %1225 = vmatprep.subr.bf16.mxu0 %v1825_v29 }
  0x9b   :  { %1552 = vmatpush1.bf16.msra.mxu1 %v1823_v30 }
  0x9c   :  { %1226 = vmatpush1.bf16.msra.mxu0 %v1823_v30  ;;  %1545 = vmatprep.subr.bf16.mxu1 %v1828_v31 }
  0x9d   :  { %1227 = vmatprep.subr.bf16.mxu0 %v1828_v31  ;;  %v1833_v31 = vmov 1966171168  }
  0x9f   :  { %1553 = vmatpush1.bf16.msra.mxu1 %v1826_v32 }
  0xa0   :  { %1228 = vmatpush1.bf16.msra.mxu0 %v1826_v32  ;;  %v1297_v32 = vunpack.c.l.s4 %v1833_v31 }
  0xa2   :  { %1256 = vmatmul.mubr.bf16.vlgmr.msra.gmra.mrb[8].mxu1 %v1830_v34 }
  0xa3   :  { %1246 = vmatmul.mubr.bf16.vlgmr.msra.gmra.mrb[0].mxu0 %v1829_v33 }
 0x155   :  { %v1088_v38 = vpop.f32.mrb[0].mxu1 }
 0x156   :  { %v1090_v39 = vpop.f32.mrb[1].mxu1 }
 0x157   :  { %v1092_v40 = vpop.f32.mrb[2].mxu1 }
 0x158   :  { %v1094_v41 = vpop.f32.mrb[3].mxu1 }
 0x15d   :  { %v1098_v42 = vpop.f32.mrb[4].mxu1 }
 0x15e   :  { %v1204_v43 = vpop.f32.mrb[4].mxu0  ;;  %v1100_v45 = vpop.f32.mrb[5].mxu1 }
 0x15f   :  { %v1558_v44 = vadd.f32 %v1204_v43, %v1098_v42  ;;  %v1206_v46 = vpop.f32.mrb[5].mxu0  ;;  %v1102_v48 = vpop.f32.mrb[6].mxu1  ;;  %v1298_v43 = vunpack.c.0.s8 %v1297_v32 }
 0x160   :  { %v1560_v47 = vadd.f32 %v1206_v46, %v1100_v45  ;;  %v1208_v49 = vpop.f32.mrb[6].mxu0  ;;  %v1104_v51 = vpop.f32.mrb[7].mxu1 }
 0x161   :  { %v1562_v50 = vadd.f32 %v1208_v49, %v1102_v48  ;;  %v1210_v52 = vpop.f32.mrb[7].mxu0 }
 0x162   :  { %v1564_v53 = vadd.f32 %v1210_v52, %v1104_v51 }
 0x175   :  { %v1257_v55 = vpop.f32.mrb[8].mxu1 }
 0x176   :  { %v1247_v54 = vpop.f32.mrb[0].mxu0  ;;  %v1559_v57 = vadd.f32 %v1558_v44, %v1257_v55  ;;  %v1259_v59 = vpop.f32.mrb[9].mxu1  ;;  %v1300_v44 = vshrl.u32 %v19_v35, 7 }
 0x177   :  { %v1554_v56 = vadd.f32 %v1247_v54, %v1088_v38  ;;  %v1249_v58 = vpop.f32.mrb[1].mxu0  ;;  %v1561_v61 = vadd.f32 %v1560_v47, %v1259_v59  ;;  %v1261_v63 = vpop.f32.mrb[10].mxu1 }
 0x178   :  { %v1555_v60 = vadd.f32 %v1249_v58, %v1090_v39  ;;  %v1251_v62 = vpop.f32.mrb[2].mxu0  ;;  %1270 = vst [vmem:[%s2405_s2 + $0x20] sm:$0xff] %v1559_v57  ;;  %v1563_v1 = vadd.f32 %v1562_v50, %v1261_v63  ;;  %v1263_v3 = vpop.f32.mrb[11].mxu1  ;;  %v1322_v12 = vmul.f32 %v1559_v57, %v1559_v57 }
 0x179   :  { %1266 = vst [vmem:[%s2405_s2] sm:$0xff] %v1554_v56  ;;  %v1556_v0 = vadd.f32 %v1251_v62, %v1092_v40  ;;  %v1253_v2 = vpop.f32.mrb[3].mxu0  ;;  %1271 = vst [vmem:[%s2405_s2 + $0x28] sm:$0xff] %v1561_v61  ;;  %v1565_v5 = vadd.f32 %v1564_v53, %v1263_v3  ;;  %v1318_v6 = vmul.f32 %v1554_v56, %v1554_v56  ;;  %v1317_v62 = vld [vmem:[%s2404_s4] sm:$0x3] }
 0x17a   :  { %1267 = vst [vmem:[%s2405_s2 + $0x8] sm:$0xff] %v1555_v60  ;;  %v1557_v4 = vadd.f32 %v1253_v2, %v1094_v41  ;;  %1272 = vst [vmem:[%s2405_s2 + $0x30] sm:$0xff] %v1563_v1  ;;  %v1319_v9 = vmul.f32 %v1555_v60, %v1555_v60  ;;  %v1323_v15 = vmul.f32 %v1561_v61, %v1561_v61 }
 0x17b   :  { %1268 = vst [vmem:[%s2405_s2 + $0x10] sm:$0xff] %v1556_v0  ;;  %v1275_v7 = vadd.f32 %v1556_v0, %v1554_v56  ;;  %v1320_v8 = vmul.f32 %v1556_v0, %v1556_v0  ;;  %1273 = vst [vmem:[%s2405_s2 + $0x38] sm:$0xff] %v1565_v5  ;;  %v1324_v19 = vmul.f32 %v1563_v1, %v1563_v1 }
 0x17c   :  { %1269 = vst [vmem:[%s2405_s2 + $0x18] sm:$0xff] %v1557_v4  ;;  %v1284_v10 = vadd.f32 %v1557_v4, %v1555_v60  ;;  %v1321_v11 = vmul.f32 %v1557_v4, %v1557_v4  ;;  %v1325_v22 = vmul.f32 %v1565_v5, %v1565_v5  ;;  %v1301_v53 = vsub.s32 %v1298_v43, %v1300_v44  ;;  %v1274_v60 = vld [vmem:[%s2403_s3] sm:$0x3] }
 0x17d   :  { %v1326_v13 = vadd.f32 %v1320_v8, %v1318_v6  ;;  %v1276_v14 = vadd.f32 %v1559_v57, %v1275_v7 }
 0x17e   :  { %v1335_v16 = vadd.f32 %v1321_v11, %v1319_v9  ;;  %v1285_v17 = vadd.f32 %v1561_v61, %v1284_v10 }
 0x17f   :  { %v1277_v18 = vadd.f32 %v1563_v1, %v1276_v14  ;;  %v1327_v20 = vadd.f32 %v1326_v13, %v1322_v12 }
 0x180   :  { %v1286_v21 = vadd.f32 %v1565_v5, %v1285_v17  ;;  %v1336_v23 = vadd.f32 %v1335_v16, %v1323_v15 }
 0x181   :  { %v1278_v24 = vrot.slane %v1277_v18, 4  ;;  %v1328_v25 = vadd.f32 %v1327_v20, %v1324_v19 }
 0x182   :  { %v1287_v26 = vrot.slane %v1286_v21, 4  ;;  %v1337_v27 = vadd.f32 %v1336_v23, %v1325_v22 }
 0x183   :  { %v1279_v28 = vadd.f32 %v1278_v24, %v1277_v18  ;;  %v1329_v29 = vrot.slane %v1328_v25, 4 }
 0x184   :  { %v1288_v30 = vadd.f32 %v1287_v26, %v1286_v21  ;;  %v1338_v33 = vrot.slane %v1337_v27, 4 }
 0x185   :  { %v1280_v34 = vrot.slane %v1279_v28, 2  ;;  %v1330_v37 = vadd.f32 %v1329_v29, %v1328_v25 }
 0x186   :  { %v1289_v38 = vrot.slane %v1288_v30, 2  ;;  %v1339_v39 = vadd.f32 %v1338_v33, %v1337_v27 }
 0x187   :  { %v1281_v40 = vadd.f32 %v1280_v34, %v1279_v28  ;;  %v1331_v41 = vrot.slane %v1330_v37, 2 }
 0x188   :  { %v1290_v42 = vadd.f32 %v1289_v38, %v1288_v30  ;;  %v1340_v45 = vrot.slane %v1339_v39, 2 }
 0x189   :  { %v1282_v46 = vrot.slane %v1281_v40, 1  ;;  %v1332_v47 = vadd.f32 %v1331_v41, %v1330_v37 }
 0x18a   :  { %v1291_v48 = vrot.slane %v1290_v42, 1  ;;  %v1341_v49 = vadd.f32 %v1340_v45, %v1339_v39 }
 0x18b   :  { %v1283_v50 = vadd.f32 %v1282_v46, %v1281_v40  ;;  %v1333_v51 = vrot.slane %v1332_v47, 1 }
 0x18c   :  { %v1292_v52 = vadd.f32 %v1291_v48, %v1290_v42  ;;  %v1342_v54 = vrot.slane %v1341_v49, 1 }
 0x18d   :  { %v1334_v55 = vadd.f32 %v1333_v51, %v1332_v47 }
 0x18e   :  { %v1295_v56 = vcombine.low %v1283_v50, %v1292_v52  ;;  %v1343_v57 = vadd.f32 %v1342_v54, %v1341_v49 }
 0x190   :  { %v1302_v58 = vrot.slane %v1295_v56, %v1301_v53  ;;  %v1346_v59 = vcombine.low %v1334_v55, %v1343_v57 }
 0x192   :  { %v1309_v35 = vrot.slane %v1302_v58, %v1301_v53  ;;  %v1353_v61 = vrot.slane %v1346_v59, %v1301_v53 }
 0x194   :  { %v1311_v63 = vadd.f32 %v1309_v35, %v1274_v60  ;;  %v1360_v0 = vrot.slane %v1353_v61, %v1301_v53 }
 0x196   :  { %1316 = vst.msk [vmem:[%s2403_s3] sm:$0x3] %vm2346_vm0, %v1311_v63  ;;  %v1362_v1 = vadd.f32 %v1360_v0, %v1317_v62 }
 0x198   :  { %1363 = vst.msk [vmem:[%s2404_s4] sm:$0x3] %vm2346_vm0, %v1362_v1 }

// kernel: generator_forward.12
= control target key start
LH: loop header
LB: loop body
LE: loop exit
PB: predicated region body
PF: predicated region fallthrough
CT: control target
= control target key end

     0   :  { %v24_v0 = vlaneseq  ;;  %s172_s1 = inlined_call_operand.vmem [shape: f32[1,256], index: 1, kind: input, shape index: {}]   ;;  %s173_s2 = inlined_call_operand.vmem [shape: f32[1,256], index: 2, kind: input, shape index: {}]   ;;  %s174_s0 = inlined_call_operand.vmem [shape: f32[32,256], index: 0, kind: input, shape index: {}]   ;;  %s175_s3 = inlined_call_operand.vmem [shape: bf16[32,256], index: 3, kind: output, shape index: {}]  }
   0x1   :  { %v22_v2 = vld [vmem:[%s172_s1] sm:$0x3]  ;;  %v15_v5 = vld [vmem:[%s174_s0 + $0x8] sm:$0xff]  ;;  %v16_v8 = vld [vmem:[%s174_s0 + $0x10] sm:$0xff] }
   0x2   :  { %v25_v1 = vshrl.u32 %v24_v0, 7  ;;  %v42_v3 = vld [vmem:[%s173_s2] sm:$0x3]  ;;  %v17_v9 = vld [vmem:[%s174_s0 + $0x18] sm:$0xff]  ;;  %v19_v15 = vld [vmem:[%s174_s0 + $0x28] sm:$0xff] }
   0x3   :  { %v14_v4 = vld [vmem:[%s174_s0] sm:$0xff]  ;;  %v20_v16 = vld [vmem:[%s174_s0 + $0x30] sm:$0xff]  ;;  %v21_v17 = vld [vmem:[%s174_s0 + $0x38] sm:$0xff] }
   0x4   :  { %v26_v6 = vsub.s32 0, %v25_v1  ;;  %v30_v7 = vsub.s32 1, %v25_v1  ;;  %v18_v10 = vld [vmem:[%s174_s0 + $0x20] sm:$0xff] }
   0x6   :  { %v27_v11 = vrot.slane %v22_v2, %v26_v6  ;;  %v31_v12 = vrot.slane %v22_v2, %v30_v7  ;;  %v47_v13 = vrot.slane %v42_v3, %v26_v6  ;;  %v51_v14 = vrot.slane %v42_v3, %v30_v7 }
   0x8   :  { %v34_v18 = vmul.f32 %v27_v11, %v14_v4  ;;  %v35_v19 = vmul.f32 %v31_v12, %v15_v5  ;;  %v36_v20 = vmul.f32 %v27_v11, %v16_v8  ;;  %v37_v21 = vmul.f32 %v31_v12, %v17_v9 }
   0x9   :  { %v38_v22 = vmul.f32 %v27_v11, %v18_v10  ;;  %v39_v23 = vmul.f32 %v31_v12, %v19_v15  ;;  %v40_v24 = vmul.f32 %v27_v11, %v20_v16  ;;  %v41_v25 = vmul.f32 %v31_v12, %v21_v17 }
   0xa   :  { %v54_v26 = vadd.f32 %v47_v13, %v34_v18  ;;  %v55_v27 = vadd.f32 %v51_v14, %v35_v19  ;;  %v56_v28 = vadd.f32 %v47_v13, %v36_v20  ;;  %v57_v29 = vadd.f32 %v51_v14, %v37_v21 }
   0xb   :  { %v58_v30 = vadd.f32 %v47_v13, %v38_v22  ;;  %v59_v31 = vadd.f32 %v51_v14, %v39_v23  ;;  %v60_v32 = vadd.f32 %v47_v13, %v40_v24  ;;  %v61_v33 = vadd.f32 %v51_v14, %v41_v25 }
   0xc   :  { %v62_v34 = vmax.f32 %v54_v26, 0.0  ;;  %v63_v35 = vmax.f32 %v55_v27, 0.0  ;;  %v64_v36 = vmax.f32 %v56_v28, 0.0  ;;  %v65_v37 = vmax.f32 %v57_v29, 0.0 }
   0xd   :  { %v66_v38 = vmax.f32 %v58_v30, 0.0  ;;  %v67_v39 = vmax.f32 %v59_v31, 0.0  ;;  %v68_v40 = vmax.f32 %v60_v32, 0.0  ;;  %v69_v41 = vmax.f32 %v61_v33, 0.0 }
   0xe   :  { %v106_v42 = vpack.c.bf16 %v63_v35, %v62_v34  ;;  %v107_v43 = vpack.c.bf16 %v65_v37, %v64_v36 }
   0xf   :  { %v108_v44 = vpack.c.bf16 %v67_v39, %v66_v38  ;;  %v109_v45 = vpack.c.bf16 %v69_v41, %v68_v40 }
  0x10   :  { %94 = vst [vmem:[%s175_s3] sm:$0xff] %v106_v42  ;;  %95 = vst [vmem:[%s175_s3 + $0x8] sm:$0xff] %v107_v43 }
  0x11   :  { %96 = vst [vmem:[%s175_s3 + $0x10] sm:$0xff] %v108_v44  ;;  %97 = vst [vmem:[%s175_s3 + $0x18] sm:$0xff] %v109_v45 }

// kernel: tile.73
= control target key start
LH: loop header
LB: loop body
LE: loop exit
PB: predicated region body
PF: predicated region fallthrough
CT: control target
= control target key end

     0   :  { %s22_s0 = inlined_call_operand.vmem [shape: f32[32], index: 0, kind: input, shape index: {}]   ;;  %s23_s1 = inlined_call_operand.vmem [shape: f32[4,32], index: 1, kind: output, shape index: {}]  }
   0x1   :  { %v4_v0 = vld [vmem:[%s22_s0] ss:$0 sm:$0xff] }
   0x2   :  { %5 = vst [vmem:[%s23_s1] sm:$0xf] %v4_v0 }

// kernel: tile.74
= control target key start
LH: loop header
LB: loop body
LE: loop exit
PB: predicated region body
PF: predicated region fallthrough
CT: control target
= control target key end

     0   :  { %vm7_vm0 = vcmask 261120   ;;  %s37_s8 = smov 32   ;;  %s38_s9 = smov 64   ;;  %vm13_vm1 = vcmask 1048320   ;;  %vm19_vm2 = vcmask 785920   ;;  %vm25_vm3 = vcmask 523520   ;;  %s55_s0 = inlined_call_operand.vmem [shape: f32[4,32], index: 0, kind: input, shape index: {}]   ;;  %s56_s1 = inlined_call_operand.vmem [shape: f32[1,128], index: 1, kind: output, shape index: {}]  }
   0x1   :  { %v4_v0 = vld [vmem:[%s55_s0] sm:$0xf]  ;;  %s36_s0 = smov 96  }
   0x2   :  { %5 = vst [vmem:[#allocation1] sm:$0xf] %v4_v0 }
   0x9   :  { %v10_v1 = vld [vmem:[#allocation1 + $0x3] sm:$0x1]   ;;  %v22_v2 = vld [vmem:[#allocation1 + $0x1] sm:$0x1]   ;;  %v6_v3 = vld [vmem:[#allocation1] sm:$0x1]  }
   0xa   :  { %11 = vrot.lane.b32.xlu0 %v10_v1, %s36_s0  ;;  %23 = vrot.lane.b32.xlu1 %v22_v2, %s37_s8  ;;  %v16_v4 = vld [vmem:[#allocation1 + $0x2] sm:$0x1]   ;;  %8 = vst.msk [vmem:[#allocation0] sm:$0x1] %vm7_vm0, %v6_v3  }
   0xe   :  { %17 = vrot.lane.b32.xlu0 %v16_v4, %s38_s9 }
  0x7c   :  { %v12_v5 = vpop.permute.xlu0 %11   ;;  %v24_v6 = vpop.permute.xlu1 %23  }
  0x7d   :  { %14 = vst.msk [vmem:[#allocation0] sm:$0x1] %vm13_vm1, %v12_v5  }
  0x80   :  { %v18_v7 = vpop.permute.xlu0 %17  }
  0x81   :  { %20 = vst.msk [vmem:[#allocation0] sm:$0x1] %vm19_vm2, %v18_v7  }
  0x82   :  { %26 = vst.msk [vmem:[#allocation0] sm:$0x1] %vm25_vm3, %v24_v6  }
  0x89   :  { %v30_v8 = vld [vmem:[#allocation0] sm:$0x1] }
  0x8a   :  { %32 = vst [vmem:[%s56_s1] sm:$0x1] %v30_v8 }

// kernel: generator_forward.13
= control target key start
LH: loop header
LB: loop body
LE: loop exit
PB: predicated region body
PF: predicated region fallthrough
CT: control target
= control target key end

     0   :  { %vm557_vm0 = vcmask 523264   ;;  %s1684_s1 = inlined_call_operand.vmem [shape: bf16[576,128], index: 1, kind: input, shape index: {}]   ;;  %s1685_s0 = inlined_call_operand.vmem [shape: bf16[128,576], index: 0, kind: input, shape index: {}]   ;;  %s1686_s3 = inlined_call_operand.vmem [shape: f32[1,128], index: 3, kind: output, shape index: {1}]   ;;  %s1687_s4 = inlined_call_operand.vmem [shape: f32[1,128], index: 4, kind: output, shape index: {2}]   ;;  %s1688_s2 = inlined_call_operand.vmem [shape: f32[128,128], index: 2, kind: output, shape index: {0}]  }
   0x1   :  { %v1222_v0 = vld [vmem:[%s1684_s1 + $0x40] sm:$0xff]   ;;  %v1226_v4 = vld [vmem:[%s1684_s1 + $0x48] sm:$0xff]   ;;  %v1230_v8 = vld [vmem:[%s1684_s1 + $0x50] sm:$0xff]  }
   0x2   :  { %v1223_v1 = vld [vmem:[%s1684_s1 + $0xc0] sm:$0xff]   ;;  %1049 = vmatprep.subr.bf16.mxu0 %v1222_v0  ;;  %v1227_v5 = vld [vmem:[%s1684_s1 + $0xc8] sm:$0xff]   ;;  %v1231_v9 = vld [vmem:[%s1684_s1 + $0xd0] sm:$0xff]  }
   0x3   :  { %v1224_v2 = vld [vmem:[%s1684_s1] sm:$0xff]   ;;  %1113 = vmatprep.subr.bf16.mxu1 %v1223_v1  ;;  %v1228_v6 = vld [vmem:[%s1684_s1 + $0x8] sm:$0xff]   ;;  %v1232_v10 = vld [vmem:[%s1684_s1 + $0x10] sm:$0xff]  }
   0x4   :  { %v1225_v3 = vld [vmem:[%s1684_s1 + $0x80] sm:$0xff]   ;;  %1050 = vmatpush3.bf16.msra.mxu0 %v1224_v2  ;;  %v1229_v7 = vld [vmem:[%s1684_s1 + $0x88] sm:$0xff]   ;;  %v1233_v11 = vld [vmem:[%s1684_s1 + $0x90] sm:$0xff]  }
   0x5   :  { %1114 = vmatpush3.bf16.msra.mxu1 %v1225_v3  ;;  %1051 = vmatprep.subr.bf16.mxu0 %v1226_v4  ;;  %v1234_v12 = vld [vmem:[%s1684_s1 + $0x58] sm:$0xff]   ;;  %v1238_v16 = vld [vmem:[%s1684_s1 + $0x60] sm:$0xff]   ;;  %v1242_v20 = vld [vmem:[%s1684_s1 + $0x68] sm:$0xff]  }
   0x6   :  { %1115 = vmatprep.subr.bf16.mxu1 %v1227_v5  ;;  %v1235_v13 = vld [vmem:[%s1684_s1 + $0xd8] sm:$0xff]   ;;  %v1239_v17 = vld [vmem:[%s1684_s1 + $0xe0] sm:$0xff]   ;;  %v1243_v21 = vld [vmem:[%s1684_s1 + $0xe8] sm:$0xff]  }
   0x7   :  { %v1236_v14 = vld [vmem:[%s1684_s1 + $0x18] sm:$0xff]   ;;  %v1240_v18 = vld [vmem:[%s1684_s1 + $0x20] sm:$0xff]   ;;  %v1244_v22 = vld [vmem:[%s1684_s1 + $0x28] sm:$0xff]  }
   0x8   :  { %1052 = vmatpush3.bf16.msra.mxu0 %v1228_v6  ;;  %v1237_v15 = vld [vmem:[%s1684_s1 + $0x98] sm:$0xff]   ;;  %v1241_v19 = vld [vmem:[%s1684_s1 + $0xa0] sm:$0xff]   ;;  %v1245_v23 = vld [vmem:[%s1684_s1 + $0xa8] sm:$0xff]  }
   0x9   :  { %1116 = vmatpush3.bf16.msra.mxu1 %v1229_v7  ;;  %1053 = vmatprep.subr.bf16.mxu0 %v1230_v8  ;;  %v1246_v24 = vld [vmem:[%s1684_s1 + $0x70] sm:$0xff]   ;;  %v1250_v28 = vld [vmem:[%s1684_s1 + $0x78] sm:$0xff]   ;;  %v1259_v35 = vld [vmem:[%s1685_s0 + $0xc] ss:$20 sps:$4 sm:$0xff]  }
   0xa   :  { %1117 = vmatprep.subr.bf16.mxu1 %v1231_v9  ;;  %v1247_v25 = vld [vmem:[%s1684_s1 + $0xf0] sm:$0xff]   ;;  %v1251_v29 = vld [vmem:[%s1684_s1 + $0xf8] sm:$0xff]   ;;  %v1260_v36 = vld [vmem:[%s1684_s1 + $0x100] sm:$0xff]   ;;  %711 = vmatprep.mubr.bf16.mxu1 %v1259_v35 }
   0xb   :  { %v1248_v26 = vld [vmem:[%s1684_s1 + $0x30] sm:$0xff]   ;;  %v1252_v30 = vld [vmem:[%s1684_s1 + $0x38] sm:$0xff]   ;;  %v1261_v37 = vld [vmem:[%s1685_s0 + $0x2c] ss:$20 sps:$4 sm:$0xff]  }
   0xc   :  { %1054 = vmatpush3.bf16.msra.mxu0 %v1232_v10  ;;  %v1249_v27 = vld [vmem:[%s1684_s1 + $0xb0] sm:$0xff]   ;;  %v1253_v31 = vld [vmem:[%s1684_s1 + $0xb8] sm:$0xff]   ;;  %v1273_v42 = vld [vmem:[%s1684_s1 + $0x108] sm:$0xff]  }
   0xd   :  { %1118 = vmatpush3.bf16.msra.mxu1 %v1233_v11  ;;  %1055 = vmatprep.subr.bf16.mxu0 %v1234_v12  ;;  %v1254_v32 = vld [vmem:[%s1685_s0] ss:$20 sps:$4 sm:$0xff]   ;;  %v1256_v33 = vld [vmem:[%s1685_s0 + $0x4] ss:$20 sps:$4 sm:$0xff]   ;;  %v1257_v34 = vld [vmem:[%s1685_s0 + $0x8] ss:$20 sps:$4 sm:$0xff]  }
   0xe   :  { %1119 = vmatprep.subr.bf16.mxu1 %v1235_v13  ;;  %614 = vmatprep.mubr.bf16.mxu0 %v1256_v33  ;;  %v1263_v38 = vld [vmem:[%s1685_s0 + $0x34] ss:$20 sps:$4 sm:$0xff]   ;;  %v1266_v40 = vld [vmem:[%s1685_s0 + $0x30] ss:$20 sps:$4 sm:$0xff]   ;;  %v1272_v45 = vld [vmem:[%s1685_s0 + $0x58] ss:$20 sps:$4 sm:$0xff]  }
   0xf   :  { %v1265_v39 = vld [vmem:[%s1685_s0 + $0x28] ss:$20 sps:$4 sm:$0xff]   ;;  %v1271_v44 = vld [vmem:[%s1685_s0 + $0x50] ss:$20 sps:$4 sm:$0xff]   ;;  %v1278_v50 = vld [vmem:[%s1685_s0 + $0x78] ss:$20 sps:$4 sm:$0xff]  }
  0x10   :  { %1056 = vmatpush3.bf16.msra.mxu0 %v1236_v14  ;;  %v1267_v41 = vld [vmem:[%s1685_s0 + $0x54] ss:$20 sps:$4 sm:$0xff]   ;;  %v1269_v43 = vld [vmem:[%s1685_s0 + $0x5c] ss:$20 sps:$4 sm:$0xff]   ;;  %v1276_v48 = vld [vmem:[%s1685_s0 + $0x84] ss:$20 sps:$4 sm:$0xff]  }
  0x11   :  { %1120 = vmatpush3.bf16.msra.mxu1 %v1237_v15  ;;  %1057 = vmatprep.subr.bf16.mxu0 %v1238_v16  ;;  %v1286_v46 = vld [vmem:[%s1684_s1 + $0x110] sm:$0xff]   ;;  %v1299_v49 = vld [vmem:[%s1684_s1 + $0x118] sm:$0xff]   ;;  %v1282_v53 = vld [vmem:[%s1685_s0 + $0xac] ss:$20 sps:$4 sm:$0xff]   ;;  %v1314_v12 = vmov 0.0  }
  0x12   :  { %1121 = vmatprep.subr.bf16.mxu1 %v1239_v17  ;;  %v1274_v47 = vld [vmem:[%s1685_s0 + $0x7c] ss:$20 sps:$4 sm:$0xff]   ;;  %v1279_v51 = vld [vmem:[%s1685_s0 + $0x80] ss:$20 sps:$4 sm:$0xff]   ;;  %v1280_v52 = vld [vmem:[%s1685_s0 + $0xa4] ss:$20 sps:$4 sm:$0xff]  }
  0x13   :  { %v1284_v54 = vld [vmem:[%s1685_s0 + $0xa0] ss:$20 sps:$4 sm:$0xff]   ;;  %v1285_v55 = vld [vmem:[%s1685_s0 + $0xa8] ss:$20 sps:$4 sm:$0xff]   ;;  %v1292_v59 = vld [vmem:[%s1685_s0 + $0xd0] ss:$20 sps:$4 sm:$0xff]  }
  0x14   :  { %1058 = vmatpush3.bf16.msra.mxu0 %v1240_v18  ;;  %v1287_v56 = vld [vmem:[%s1685_s0 + $0xcc] ss:$20 sps:$4 sm:$0xff]   ;;  %v1289_v57 = vld [vmem:[%s1685_s0 + $0xd4] ss:$20 sps:$4 sm:$0xff]   ;;  %v1295_v61 = vld [vmem:[%s1685_s0 + $0xfc] ss:$20 sps:$4 sm:$0xff]  }
  0x15   :  { %1122 = vmatpush3.bf16.msra.mxu1 %v1241_v19  ;;  %1059 = vmatprep.subr.bf16.mxu0 %v1242_v20  ;;  %v1291_v58 = vld [vmem:[%s1685_s0 + $0xc8] ss:$20 sps:$4 sm:$0xff]   ;;  %v1297_v62 = vld [vmem:[%s1685_s0 + $0xf0] ss:$20 sps:$4 sm:$0xff]   ;;  %v1298_v63 = vld [vmem:[%s1685_s0 + $0xf8] ss:$20 sps:$4 sm:$0xff]  }
  0x16   :  { %1123 = vmatprep.subr.bf16.mxu1 %v1243_v21  ;;  %v1293_v60 = vld [vmem:[%s1685_s0 + $0xf4] ss:$20 sps:$4 sm:$0xff]   ;;  %v1300_v0 = vld [vmem:[%s1685_s0 + $0x11c] ss:$20 sps:$4 sm:$0xff]   ;;  %v1302_v1 = vld [vmem:[%s1685_s0 + $0x124] ss:$20 sps:$4 sm:$0xff]  }
  0x17   :  { %v1304_v2 = vld [vmem:[%s1685_s0 + $0x118] ss:$20 sps:$4 sm:$0xff]   ;;  %v1305_v3 = vld [vmem:[%s1685_s0 + $0x120] ss:$20 sps:$4 sm:$0xff]   ;;  %v1306_v4 = vld [vmem:[%s1685_s0 + $0x10] ss:$20 sps:$4 sm:$0xff]  }
  0x18   :  { %1060 = vmatpush3.bf16.msra.mxu0 %v1244_v22  ;;  %v1307_v5 = vld [vmem:[%s1685_s0 + $0xb0] ss:$20 sps:$4 sm:$0xff]   ;;  %v1308_v6 = vld [vmem:[%s1685_s0 + $0x38] ss:$20 sps:$4 sm:$0xff]   ;;  %v1310_v8 = vld [vmem:[%s1685_s0 + $0x60] ss:$20 sps:$4 sm:$0xff]  }
  0x19   :  { %1124 = vmatpush3.bf16.msra.mxu1 %v1245_v23  ;;  %1061 = vmatprep.subr.bf16.mxu0 %v1246_v24  ;;  %v1309_v7 = vld [vmem:[%s1685_s0 + $0xd8] ss:$20 sps:$4 sm:$0xff]   ;;  %v1311_v9 = vld [vmem:[%s1685_s0 + $0x100] ss:$20 sps:$4 sm:$0xff]   ;;  %v1312_v10 = vld [vmem:[%s1685_s0 + $0x88] ss:$20 sps:$4 sm:$0xff]  }
  0x1a   :  { %1125 = vmatprep.subr.bf16.mxu1 %v1247_v25  ;;  %v1313_v11 = vld [vmem:[%s1685_s0 + $0x128] ss:$20 sps:$4 sm:$0xff]   ;;  %19 = vst [vmem:[%s1686_s3] sm:$0x1] %v1314_v12  ;;  %20 = vst [vmem:[%s1687_s4] sm:$0x1] %v1314_v12 }
  0x1c   :  { %1062 = vmatpush3.bf16.msra.mxu0 %v1248_v26 }
  0x1d   :  { %1126 = vmatpush3.bf16.msra.mxu1 %v1249_v27  ;;  %1063 = vmatprep.subr.bf16.mxu0 %v1250_v28 }
  0x1e   :  { %1127 = vmatprep.subr.bf16.mxu1 %v1251_v29 }
  0x20   :  { %1064 = vmatpush3.bf16.msra.mxu0 %v1252_v30 }
  0x21   :  { %1128 = vmatpush3.bf16.msra.mxu1 %v1253_v31  ;;  %1189 = vmatprep.subr.bf16.mxu0 %v1260_v36 }
  0x22   :  { %1213 = vmatprep.subr.bf16.mxu1 %v1260_v36 }
  0x23   :  { %615 = vmatmul.mubr.bf16.vlgmr.msra.gmra.mrb[0].mxu0 %v1254_v32 }
  0x24   :  { %712 = vmatmul.mubr.bf16.vlgmr.msra.gmra.mrb[0].mxu1 %v1257_v34  ;;  %1190 = vmatpush3.bf16.msra.mxu0 %v1260_v36 }
  0x25   :  { %622 = vmatprep.mubr.bf16.mxu0 %v1261_v37  ;;  %719 = vmatprep.mubr.bf16.mxu1 %v1263_v38 }
  0x26   :  { %1217 = vmatpush3.bf16.msra.mxu1 %v1260_v36  ;;  %1191 = vmatprep.subr.bf16.mxu0 %v1273_v42 }
  0x27   :  { %1214 = vmatprep.subr.bf16.mxu1 %v1273_v42 }
  0x28   :  { %1192 = vmatpush3.bf16.msra.mxu0 %v1273_v42 }
  0x29   :  { %1193 = vmatprep.subr.bf16.mxu0 %v1286_v46 }
  0x2a   :  { %1218 = vmatpush3.bf16.msra.mxu1 %v1273_v42 }
  0x2b   :  { %623 = vmatmul.mubr.bf16.gmra.mrb[4].mxu0 %v1265_v39  ;;  %1215 = vmatprep.subr.bf16.mxu1 %v1286_v46 }
  0x2c   :  { %720 = vmatmul.mubr.bf16.gmra.mrb[4].mxu1 %v1266_v40  ;;  %630 = vmatprep.mubr.bf16.mxu0 %v1267_v41 }
  0x2d   :  { %727 = vmatprep.mubr.bf16.mxu1 %v1269_v43  ;;  %1194 = vmatpush3.bf16.msra.mxu0 %v1286_v46 }
  0x2e   :  { %1219 = vmatpush3.bf16.msra.mxu1 %v1286_v46  ;;  %1195 = vmatprep.subr.bf16.mxu0 %v1299_v49 }
  0x2f   :  { %1216 = vmatprep.subr.bf16.mxu1 %v1299_v49 }
  0x31   :  { %1196 = vmatpush3.bf16.msra.mxu0 %v1299_v49 }
  0x32   :  { %1220 = vmatpush3.bf16.msra.mxu1 %v1299_v49 }
  0x33   :  { %631 = vmatmul.mubr.bf16.gmra.mrb[8].mxu0 %v1271_v44 }
  0x34   :  { %728 = vmatmul.mubr.bf16.gmra.mrb[8].mxu1 %v1272_v45  ;;  %638 = vmatprep.mubr.bf16.mxu0 %v1274_v47 }
  0x35   :  { %735 = vmatprep.mubr.bf16.mxu1 %v1276_v48 }
  0x3b   :  { %639 = vmatmul.mubr.bf16.gmra.mrb[12].mxu0 %v1278_v50 }
  0x3c   :  { %736 = vmatmul.mubr.bf16.gmra.mrb[12].mxu1 %v1279_v51  ;;  %646 = vmatprep.mubr.bf16.mxu0 %v1280_v52 }
  0x3d   :  { %743 = vmatprep.mubr.bf16.mxu1 %v1282_v53 }
  0x43   :  { %647 = vmatmul.mubr.bf16.gmra.mrb[16].mxu0 %v1284_v54 }
  0x44   :  { %744 = vmatmul.mubr.bf16.gmra.mrb[16].mxu1 %v1285_v55  ;;  %654 = vmatprep.mubr.bf16.mxu0 %v1287_v56 }
  0x45   :  { %751 = vmatprep.mubr.bf16.mxu1 %v1289_v57 }
  0x4b   :  { %655 = vmatmul.mubr.bf16.gmra.mrb[20].mxu0 %v1291_v58 }
  0x4c   :  { %752 = vmatmul.mubr.bf16.gmra.mrb[20].mxu1 %v1292_v59  ;;  %662 = vmatprep.mubr.bf16.mxu0 %v1293_v60 }
  0x4d   :  { %759 = vmatprep.mubr.bf16.mxu1 %v1295_v61 }
  0x53   :  { %663 = vmatmul.mubr.bf16.gmra.mrb[24].mxu0 %v1297_v62 }
  0x54   :  { %760 = vmatmul.mubr.bf16.gmra.mrb[24].mxu1 %v1298_v63  ;;  %670 = vmatprep.mubr.bf16.mxu0 %v1300_v0 }
  0x55   :  { %767 = vmatprep.mubr.bf16.mxu1 %v1302_v1 }
  0x5b   :  { %671 = vmatmul.mubr.bf16.gmra.mrb[28].mxu0 %v1304_v2 }
  0x5c   :  { %768 = vmatmul.mubr.bf16.gmra.mrb[28].mxu1 %v1305_v3  ;;  %1197 = vmatprep.mubr.msk.bf16.mxu0 %vm557_vm0, %v1306_v4 }
  0x5d   :  { %1205 = vmatprep.mubr.msk.bf16.mxu1 %vm557_vm0, %v1307_v5 }
  0x63   :  { %1198 = vmatmul.mubr.msk.bf16.vlgmr.msra.gmra.mrb[32].mxu0 %vm557_vm0, %v1308_v6 }
  0x64   :  { %1206 = vmatmul.mubr.msk.bf16.vlgmr.msra.gmra.mrb[32].mxu1 %vm557_vm0, %v1309_v7  ;;  %1201 = vmatprep.mubr.msk.bf16.mxu0 %vm557_vm0, %v1310_v8 }
  0x65   :  { %1209 = vmatprep.mubr.msk.bf16.mxu1 %vm557_vm0, %v1311_v9 }
  0x6b   :  { %1202 = vmatmul.mubr.msk.bf16.gmra.mrb[36].mxu0 %vm557_vm0, %v1312_v10 }
  0x6c   :  { %1210 = vmatmul.mubr.msk.bf16.gmra.mrb[36].mxu1 %vm557_vm0, %v1313_v11 }
  0xf6   :  { %v1065_v13 = vpop.f32.mrb[0].mxu0 }
  0xf7   :  { %v1129_v14 = vpop.f32.mrb[0].mxu1  ;;  %v1066_v15 = vpop.f32.mrb[1].mxu0 }
  0xf8   :  { %v1067_v16 = vadd.f32 %v1066_v15, %v1065_v13  ;;  %v1130_v17 = vpop.f32.mrb[1].mxu1  ;;  %v1068_v18 = vpop.f32.mrb[2].mxu0 }
  0xf9   :  { %v1131_v19 = vadd.f32 %v1130_v17, %v1129_v14  ;;  %v1132_v20 = vpop.f32.mrb[2].mxu1  ;;  %v1069_v21 = vpop.f32.mrb[3].mxu0 }
  0xfa   :  { %v1070_v22 = vadd.f32 %v1069_v21, %v1068_v18  ;;  %v1133_v23 = vpop.f32.mrb[3].mxu1 }
  0xfb   :  { %v1134_v24 = vadd.f32 %v1133_v23, %v1132_v20  ;;  %v1582_v25 = vadd.f32 %v1131_v19, %v1067_v16 }
  0xfd   :  { %v1584_v26 = vadd.f32 %v1134_v24, %v1070_v22 }
  0xfe   :  { %v1071_v27 = vpop.f32.mrb[4].mxu0 }
  0xff   :  { %v1135_v28 = vpop.f32.mrb[4].mxu1  ;;  %v1072_v29 = vpop.f32.mrb[5].mxu0 }
 0x100   :  { %v1073_v30 = vadd.f32 %v1072_v29, %v1071_v27  ;;  %v1136_v31 = vpop.f32.mrb[5].mxu1  ;;  %v1074_v32 = vpop.f32.mrb[6].mxu0 }
 0x101   :  { %v1137_v33 = vadd.f32 %v1136_v31, %v1135_v28  ;;  %v1138_v34 = vpop.f32.mrb[6].mxu1  ;;  %v1075_v35 = vpop.f32.mrb[7].mxu0 }
 0x102   :  { %v1076_v36 = vadd.f32 %v1075_v35, %v1074_v32  ;;  %v1139_v37 = vpop.f32.mrb[7].mxu1 }
 0x103   :  { %v1140_v38 = vadd.f32 %v1139_v37, %v1138_v34  ;;  %v1586_v39 = vadd.f32 %v1137_v33, %v1073_v30 }
 0x105   :  { %v1588_v40 = vadd.f32 %v1140_v38, %v1076_v36 }
 0x106   :  { %v1077_v41 = vpop.f32.mrb[8].mxu0 }
 0x107   :  { %v1141_v42 = vpop.f32.mrb[8].mxu1  ;;  %v1078_v43 = vpop.f32.mrb[9].mxu0 }
 0x108   :  { %v1079_v44 = vadd.f32 %v1078_v43, %v1077_v41  ;;  %v1142_v45 = vpop.f32.mrb[9].mxu1  ;;  %v1080_v46 = vpop.f32.mrb[10].mxu0 }
 0x109   :  { %v1143_v47 = vadd.f32 %v1142_v45, %v1141_v42  ;;  %v1144_v48 = vpop.f32.mrb[10].mxu1  ;;  %v1081_v49 = vpop.f32.mrb[11].mxu0 }
 0x10a   :  { %v1082_v50 = vadd.f32 %v1081_v49, %v1080_v46  ;;  %v1145_v51 = vpop.f32.mrb[11].mxu1 }
 0x10b   :  { %v1146_v52 = vadd.f32 %v1145_v51, %v1144_v48  ;;  %v1590_v53 = vadd.f32 %v1143_v47, %v1079_v44 }
 0x10d   :  { %v1592_v54 = vadd.f32 %v1146_v52, %v1082_v50 }
 0x10e   :  { %v1083_v55 = vpop.f32.mrb[12].mxu0 }
 0x10f   :  { %v1147_v56 = vpop.f32.mrb[12].mxu1  ;;  %v1084_v57 = vpop.f32.mrb[13].mxu0 }
 0x110   :  { %v1085_v58 = vadd.f32 %v1084_v57, %v1083_v55  ;;  %v1148_v59 = vpop.f32.mrb[13].mxu1  ;;  %v1086_v60 = vpop.f32.mrb[14].mxu0 }
 0x111   :  { %v1149_v61 = vadd.f32 %v1148_v59, %v1147_v56  ;;  %v1150_v62 = vpop.f32.mrb[14].mxu1  ;;  %v1087_v63 = vpop.f32.mrb[15].mxu0 }
 0x112   :  { %v1088_v0 = vadd.f32 %v1087_v63, %v1086_v60  ;;  %v1151_v1 = vpop.f32.mrb[15].mxu1 }
 0x113   :  { %v1152_v2 = vadd.f32 %v1151_v1, %v1150_v62  ;;  %v1594_v3 = vadd.f32 %v1149_v61, %v1085_v58 }
 0x115   :  { %v1596_v4 = vadd.f32 %v1152_v2, %v1088_v0 }
 0x116   :  { %v1089_v5 = vpop.f32.mrb[16].mxu0 }
 0x117   :  { %v1153_v6 = vpop.f32.mrb[16].mxu1  ;;  %v1090_v7 = vpop.f32.mrb[17].mxu0 }
 0x118   :  { %v1091_v8 = vadd.f32 %v1090_v7, %v1089_v5  ;;  %v1154_v9 = vpop.f32.mrb[17].mxu1  ;;  %v1092_v10 = vpop.f32.mrb[18].mxu0 }
 0x119   :  { %v1155_v11 = vadd.f32 %v1154_v9, %v1153_v6  ;;  %v1156_v12 = vpop.f32.mrb[18].mxu1  ;;  %v1093_v13 = vpop.f32.mrb[19].mxu0 }
 0x11a   :  { %v1094_v14 = vadd.f32 %v1093_v13, %v1092_v10  ;;  %v1157_v15 = vpop.f32.mrb[19].mxu1 }
 0x11b   :  { %v1158_v16 = vadd.f32 %v1157_v15, %v1156_v12  ;;  %v746_v17 = vadd.f32 %v1155_v11, %v1091_v8 }
 0x11d   :  { %v1598_v18 = vadd.f32 %v1158_v16, %v1094_v14 }
 0x11e   :  { %v1095_v19 = vpop.f32.mrb[20].mxu0 }
 0x11f   :  { %v1159_v20 = vpop.f32.mrb[20].mxu1  ;;  %v1096_v21 = vpop.f32.mrb[21].mxu0 }
 0x120   :  { %v1097_v22 = vadd.f32 %v1096_v21, %v1095_v19  ;;  %v1160_v23 = vpop.f32.mrb[21].mxu1  ;;  %v1098_v24 = vpop.f32.mrb[22].mxu0 }
 0x121   :  { %v1161_v27 = vadd.f32 %v1160_v23, %v1159_v20  ;;  %v1162_v28 = vpop.f32.mrb[22].mxu1  ;;  %v1099_v29 = vpop.f32.mrb[23].mxu0 }
 0x122   :  { %v1100_v30 = vadd.f32 %v1099_v29, %v1098_v24  ;;  %v1163_v31 = vpop.f32.mrb[23].mxu1 }
 0x123   :  { %v1164_v32 = vadd.f32 %v1163_v31, %v1162_v28  ;;  %v754_v33 = vadd.f32 %v1161_v27, %v1097_v22 }
 0x125   :  { %v757_v34 = vadd.f32 %v1164_v32, %v1100_v30 }
 0x126   :  { %v1101_v35 = vpop.f32.mrb[24].mxu0 }
 0x127   :  { %v1165_v36 = vpop.f32.mrb[24].mxu1  ;;  %v1102_v37 = vpop.f32.mrb[25].mxu0 }
 0x128   :  { %v1103_v38 = vadd.f32 %v1102_v37, %v1101_v35  ;;  %v1166_v41 = vpop.f32.mrb[25].mxu1  ;;  %v1104_v42 = vpop.f32.mrb[26].mxu0 }
 0x129   :  { %v1167_v43 = vadd.f32 %v1166_v41, %v1165_v36  ;;  %v1168_v44 = vpop.f32.mrb[26].mxu1  ;;  %v1105_v45 = vpop.f32.mrb[27].mxu0 }
 0x12a   :  { %v1106_v46 = vadd.f32 %v1105_v45, %v1104_v42  ;;  %v1169_v47 = vpop.f32.mrb[27].mxu1 }
 0x12b   :  { %v1170_v48 = vadd.f32 %v1169_v47, %v1168_v44  ;;  %v762_v49 = vadd.f32 %v1167_v43, %v1103_v38 }
 0x12d   :  { %v1600_v50 = vadd.f32 %v1170_v48, %v1106_v46 }
 0x12e   :  { %v1107_v51 = vpop.f32.mrb[28].mxu0 }
 0x12f   :  { %v1171_v52 = vpop.f32.mrb[28].mxu1  ;;  %v1108_v55 = vpop.f32.mrb[29].mxu0 }
 0x130   :  { %v1109_v56 = vadd.f32 %v1108_v55, %v1107_v51  ;;  %v1172_v57 = vpop.f32.mrb[29].mxu1  ;;  %v1110_v58 = vpop.f32.mrb[30].mxu0 }
 0x131   :  { %v1173_v59 = vadd.f32 %v1172_v57, %v1171_v52  ;;  %v1174_v60 = vpop.f32.mrb[30].mxu1  ;;  %v1111_v61 = vpop.f32.mrb[31].mxu0 }
 0x132   :  { %v1112_v62 = vadd.f32 %v1111_v61, %v1110_v58  ;;  %v1175_v63 = vpop.f32.mrb[31].mxu1 }
 0x133   :  { %v1176_v0 = vadd.f32 %v1175_v63, %v1174_v60  ;;  %v770_v1 = vadd.f32 %v1173_v59, %v1109_v56 }
 0x135   :  { %v773_v2 = vadd.f32 %v1176_v0, %v1112_v62 }
 0x136   :  { %v1199_v5 = vpop.f32.mrb[32].mxu0 }
 0x137   :  { %v819_v6 = vadd.f32 %v1199_v5, %v1586_v39  ;;  %v1207_v7 = vpop.f32.mrb[32].mxu1  ;;  %v810_v8 = vpop.f32.mrb[33].mxu0 }
 0x138   :  { %v1603_v9 = vadd.f32 %v1207_v7, %v754_v33  ;;  %v811_v10 = vadd.f32 %v810_v8, %v1582_v25  ;;  %v842_v11 = vpop.f32.mrb[33].mxu1  ;;  %v1200_v12 = vpop.f32.mrb[34].mxu0 }
 0x139   :  { %875 = vst [vmem:[%s1688_s2 + $0x10] sm:$0xff] %v819_v6  ;;  %v843_v13 = vadd.f32 %v842_v11, %v746_v17  ;;  %v822_v14 = vadd.f32 %v1200_v12, %v1588_v40  ;;  %v1208_v15 = vpop.f32.mrb[34].mxu1  ;;  %v813_v16 = vpop.f32.mrb[35].mxu0  ;;  %v916_v21 = vmul.f32 %v819_v6, %v819_v6 }
 0x13a   :  { %883 = vst [vmem:[%s1688_s2 + $0x50] sm:$0xff] %v1603_v9  ;;  %873 = vst [vmem:[%s1688_s2] sm:$0xff] %v811_v10  ;;  %v1617_v25 = vadd.f32 %v1208_v15, %v757_v34  ;;  %v814_v39 = vadd.f32 %v813_v16, %v1584_v26  ;;  %v845_v19 = vpop.f32.mrb[35].mxu1  ;;  %v914_v17 = vmul.f32 %v811_v10, %v811_v10 }
 0x13b   :  { %881 = vst [vmem:[%s1688_s2 + $0x40] sm:$0xff] %v843_v13  ;;  %876 = vst [vmem:[%s1688_s2 + $0x18] sm:$0xff] %v822_v14  ;;  %v846_v40 = vadd.f32 %v845_v19, %v1598_v18  ;;  %v917_v24 = vmul.f32 %v822_v14, %v822_v14  ;;  %v922_v56 = vmul.f32 %v843_v13, %v843_v13 }
 0x13c   :  { %884 = vst [vmem:[%s1688_s2 + $0x58] sm:$0xff] %v1617_v25  ;;  %874 = vst [vmem:[%s1688_s2 + $0x8] sm:$0xff] %v814_v39  ;;  %v890_v26 = vadd.f32 %v814_v39, %v811_v10  ;;  %v915_v20 = vmul.f32 %v814_v39, %v814_v39  ;;  %v924_v62 = vmul.f32 %v1603_v9, %v1603_v9 }
 0x13d   :  { %882 = vst [vmem:[%s1688_s2 + $0x48] sm:$0xff] %v846_v40  ;;  %v923_v59 = vmul.f32 %v846_v40, %v846_v40 }
 0x13e   :  { %v891_v22 = vadd.f32 %v890_v26, %v819_v6  ;;  %v930_v23 = vadd.f32 %v915_v20, %v914_v17  ;;  %v1203_v18 = vpop.f32.mrb[36].mxu0 }
 0x13f   :  { %v835_v27 = vadd.f32 %v1203_v18, %v1594_v3  ;;  %v1211_v28 = vpop.f32.mrb[36].mxu1  ;;  %v826_v29 = vpop.f32.mrb[37].mxu0 }
 0x140   :  { %v931_v30 = vadd.f32 %v930_v23, %v916_v21  ;;  %v867_v31 = vadd.f32 %v1211_v28, %v770_v1  ;;  %v827_v32 = vadd.f32 %v826_v29, %v1590_v53  ;;  %v892_v33 = vadd.f32 %v891_v22, %v822_v14  ;;  %v858_v34 = vpop.f32.mrb[37].mxu1  ;;  %v1204_v35 = vpop.f32.mrb[38].mxu0  ;;  %v913_v29 = vld [vmem:[%s1687_s4] sm:$0x1] }
 0x141   :  { %879 = vst [vmem:[%s1688_s2 + $0x30] sm:$0xff] %v835_v27  ;;  %v859_v36 = vadd.f32 %v858_v34, %v762_v49  ;;  %v838_v37 = vadd.f32 %v1204_v35, %v1596_v4  ;;  %v1212_v38 = vpop.f32.mrb[38].mxu1  ;;  %v829_v41 = vpop.f32.mrb[39].mxu0  ;;  %v920_v49 = vmul.f32 %v835_v27, %v835_v27  ;;  %v925_v1 = vmul.f32 %v1617_v25, %v1617_v25 }
 0x142   :  { %887 = vst [vmem:[%s1688_s2 + $0x70] sm:$0xff] %v867_v31  ;;  %877 = vst [vmem:[%s1688_s2 + $0x20] sm:$0xff] %v827_v32  ;;  %v893_v53 = vadd.f32 %v892_v33, %v827_v32  ;;  %v918_v3 = vmul.f32 %v827_v32, %v827_v32  ;;  %v932_v42 = vadd.f32 %v931_v30, %v917_v24  ;;  %v861_v43 = vpop.f32.mrb[39].mxu1  ;;  %v889_v24 = vld [vmem:[%s1686_s3] sm:$0x1] }
 0x143   :  { %885 = vst [vmem:[%s1688_s2 + $0x60] sm:$0xff] %v859_v36  ;;  %880 = vst [vmem:[%s1688_s2 + $0x38] sm:$0xff] %v838_v37  ;;  %v870_v4 = vadd.f32 %v1212_v38, %v773_v2  ;;  %v830_v44 = vadd.f32 %v829_v41, %v1592_v54  ;;  %v862_v46 = vadd.f32 %v861_v43, %v1600_v50 }
 0x144   :  { %v933_v45 = vadd.f32 %v932_v42, %v918_v3  ;;  %v921_v52 = vmul.f32 %v838_v37, %v838_v37  ;;  %v926_v6 = vmul.f32 %v859_v36, %v859_v36 }
 0x145   :  { %888 = vst [vmem:[%s1688_s2 + $0x78] sm:$0xff] %v870_v4  ;;  %878 = vst [vmem:[%s1688_s2 + $0x28] sm:$0xff] %v830_v44  ;;  %v894_v47 = vadd.f32 %v893_v53, %v830_v44  ;;  %v919_v48 = vmul.f32 %v830_v44, %v830_v44  ;;  %v927_v11 = vmul.f32 %v862_v46, %v862_v46 }
 0x146   :  { %886 = vst [vmem:[%s1688_s2 + $0x68] sm:$0xff] %v862_v46  ;;  %v929_v16 = vmul.f32 %v870_v4, %v870_v4 }
 0x147   :  { %v895_v51 = vadd.f32 %v894_v47, %v835_v27  ;;  %v934_v54 = vadd.f32 %v933_v45, %v919_v48 }
 0x149   :  { %v896_v55 = vadd.f32 %v895_v51, %v838_v37  ;;  %v935_v50 = vadd.f32 %v934_v54, %v920_v49 }
 0x14b   :  { %v897_v57 = vadd.f32 %v896_v55, %v843_v13  ;;  %v936_v58 = vadd.f32 %v935_v50, %v921_v52  ;;  %v928_v13 = vmul.f32 %v867_v31, %v867_v31 }
 0x14d   :  { %v937_v60 = vadd.f32 %v936_v58, %v922_v56  ;;  %v898_v61 = vadd.f32 %v897_v57, %v846_v40 }
 0x14f   :  { %v899_v63 = vadd.f32 %v898_v61, %v1603_v9  ;;  %v938_v0 = vadd.f32 %v937_v60, %v923_v59 }
 0x151   :  { %v900_v2 = vadd.f32 %v899_v63, %v1617_v25  ;;  %v939_v5 = vadd.f32 %v938_v0, %v924_v62 }
 0x153   :  { %v901_v7 = vadd.f32 %v900_v2, %v859_v36  ;;  %v940_v8 = vadd.f32 %v939_v5, %v925_v1 }
 0x155   :  { %v902_v10 = vadd.f32 %v901_v7, %v862_v46  ;;  %v941_v12 = vadd.f32 %v940_v8, %v926_v6 }
 0x157   :  { %v903_v14 = vadd.f32 %v902_v10, %v867_v31  ;;  %v942_v15 = vadd.f32 %v941_v12, %v927_v11 }
 0x159   :  { %v904_v39 = vadd.f32 %v903_v14, %v870_v4  ;;  %v943_v19 = vadd.f32 %v942_v15, %v928_v13 }
 0x15b   :  { %v905_v9 = vrot.slane %v904_v39, 4  ;;  %v944_v40 = vadd.f32 %v943_v19, %v929_v16 }
 0x15d   :  { %v906_v17 = vadd.f32 %v905_v9, %v904_v39  ;;  %v945_v26 = vrot.slane %v944_v40, 4 }
 0x15f   :  { %v907_v20 = vrot.slane %v906_v17, 2  ;;  %v946_v21 = vadd.f32 %v945_v26, %v944_v40 }
 0x161   :  { %v908_v25 = vadd.f32 %v907_v20, %v906_v17  ;;  %v947_v22 = vrot.slane %v946_v21, 2 }
 0x163   :  { %v909_v23 = vrot.slane %v908_v25, 1  ;;  %v948_v18 = vadd.f32 %v947_v22, %v946_v21 }
 0x165   :  { %v910_v27 = vadd.f32 %v909_v23, %v908_v25  ;;  %v949_v28 = vrot.slane %v948_v18, 1 }
 0x167   :  { %v911_v30 = vadd.f32 %v910_v27, %v889_v24  ;;  %v950_v31 = vadd.f32 %v949_v28, %v948_v18 }
 0x169   :  { %912 = vst [vmem:[%s1686_s3] sm:$0x1] %v911_v30  ;;  %v951_v32 = vadd.f32 %v950_v31, %v913_v29 }
 0x16b   :  { %952 = vst [vmem:[%s1687_s4] sm:$0x1] %v951_v32 }

// kernel: generator_forward.14
= control target key start
LH: loop header
LB: loop body
LE: loop exit
PB: predicated region body
PF: predicated region fallthrough
CT: control target
= control target key end

     0   :  { %s391_s0 = inlined_call_operand.vmem [shape: f32[128,128], index: 0, kind: input, shape index: {}]   ;;  %s392_s1 = inlined_call_operand.vmem [shape: f32[1,128], index: 1, kind: input, shape index: {}]   ;;  %s393_s2 = inlined_call_operand.vmem [shape: f32[1,128], index: 2, kind: input, shape index: {}]   ;;  %s394_s3 = inlined_call_operand.vmem [shape: bf16[128,128], index: 3, kind: output, shape index: {}]  }
   0x1   :  { %v14_v0 = vld [vmem:[%s391_s0] sm:$0xff]  ;;  %v15_v1 = vld [vmem:[%s391_s0 + $0x8] sm:$0xff]  ;;  %v16_v6 = vld [vmem:[%s391_s0 + $0x10] sm:$0xff] }
   0x2   :  { %v286_v2 = vld [vmem:[%s392_s1] ss:$0 sm:$0xff]  ;;  %v17_v7 = vld [vmem:[%s391_s0 + $0x18] sm:$0xff]  ;;  %v19_v11 = vld [vmem:[%s391_s0 + $0x28] sm:$0xff] }
   0x3   :  { %v37_v3 = vmul.f32 %v286_v2, %v14_v0  ;;  %v38_v4 = vmul.f32 %v286_v2, %v15_v1  ;;  %v293_v5 = vld [vmem:[%s393_s2] ss:$0 sm:$0xff]  ;;  %v39_v8 = vmul.f32 %v286_v2, %v16_v6  ;;  %v40_v9 = vmul.f32 %v286_v2, %v17_v7  ;;  %v20_v12 = vld [vmem:[%s391_s0 + $0x30] sm:$0xff]  ;;  %v21_v17 = vld [vmem:[%s391_s0 + $0x38] sm:$0xff] }
   0x4   :  { %v18_v10 = vld [vmem:[%s391_s0 + $0x20] sm:$0xff]  ;;  %v42_v16 = vmul.f32 %v286_v2, %v19_v11  ;;  %v43_v20 = vmul.f32 %v286_v2, %v20_v12  ;;  %v44_v21 = vmul.f32 %v286_v2, %v21_v17  ;;  %v23_v27 = vld [vmem:[%s391_s0 + $0x48] sm:$0xff]  ;;  %v24_v32 = vld [vmem:[%s391_s0 + $0x50] sm:$0xff] }
   0x5   :  { %v60_v13 = vadd.f32 %v293_v5, %v37_v3  ;;  %v61_v14 = vadd.f32 %v293_v5, %v38_v4  ;;  %v41_v15 = vmul.f32 %v286_v2, %v18_v10  ;;  %v62_v18 = vadd.f32 %v293_v5, %v39_v8  ;;  %v22_v22 = vld [vmem:[%s391_s0 + $0x40] sm:$0xff]  ;;  %v25_v33 = vld [vmem:[%s391_s0 + $0x58] sm:$0xff]  ;;  %v27_v39 = vld [vmem:[%s391_s0 + $0x68] sm:$0xff] }
   0x6   :  { %v63_v19 = vadd.f32 %v293_v5, %v40_v9  ;;  %v65_v26 = vadd.f32 %v293_v5, %v42_v16  ;;  %v66_v30 = vadd.f32 %v293_v5, %v43_v20  ;;  %v67_v31 = vadd.f32 %v293_v5, %v44_v21  ;;  %v26_v38 = vld [vmem:[%s391_s0 + $0x60] sm:$0xff]  ;;  %v28_v44 = vld [vmem:[%s391_s0 + $0x70] sm:$0xff]  ;;  %v29_v49 = vld [vmem:[%s391_s0 + $0x78] sm:$0xff] }
   0x7   :  { %v76_v23 = vmax.f32 %v60_v13, 0.0  ;;  %v77_v24 = vmax.f32 %v61_v14, 0.0  ;;  %v64_v25 = vadd.f32 %v293_v5, %v41_v15  ;;  %v78_v28 = vmax.f32 %v62_v18, 0.0 }
   0x8   :  { %v79_v29 = vmax.f32 %v63_v19, 0.0  ;;  %v81_v36 = vmax.f32 %v65_v26, 0.0  ;;  %v45_v37 = vmul.f32 %v286_v2, %v22_v22  ;;  %v82_v41 = vmax.f32 %v66_v30, 0.0 }
   0x9   :  { %v213_v34 = vpack.c.bf16 %v77_v24, %v76_v23  ;;  %v80_v35 = vmax.f32 %v64_v25, 0.0  ;;  %v83_v42 = vmax.f32 %v67_v31, 0.0  ;;  %v46_v43 = vmul.f32 %v286_v2, %v23_v27 }
   0xa   :  { %v218_v40 = vpack.c.bf16 %v79_v29, %v78_v28  ;;  %v68_v46 = vadd.f32 %v293_v5, %v45_v37  ;;  %v47_v47 = vmul.f32 %v286_v2, %v24_v32  ;;  %v48_v48 = vmul.f32 %v286_v2, %v25_v33 }
   0xb   :  { %214 = vst [vmem:[%s394_s3] sm:$0xff] %v213_v34   ;;  %v223_v45 = vpack.c.bf16 %v81_v36, %v80_v35  ;;  %v228_v50 = vpack.c.bf16 %v83_v42, %v82_v41  ;;  %v69_v51 = vadd.f32 %v293_v5, %v46_v43  ;;  %v49_v52 = vmul.f32 %v286_v2, %v26_v38 }
   0xc   :  { %250 = vst [vmem:[%s394_s3 + $0x8] sm:$0xff] %v218_v40   ;;  %v50_v53 = vmul.f32 %v286_v2, %v27_v39  ;;  %v84_v54 = vmax.f32 %v68_v46, 0.0  ;;  %v70_v55 = vadd.f32 %v293_v5, %v47_v47  ;;  %v71_v56 = vadd.f32 %v293_v5, %v48_v48 }
   0xd   :  { %251 = vst [vmem:[%s394_s3 + $0x10] sm:$0xff] %v223_v45   ;;  %v51_v57 = vmul.f32 %v286_v2, %v28_v44  ;;  %252 = vst [vmem:[%s394_s3 + $0x18] sm:$0xff] %v228_v50   ;;  %v85_v58 = vmax.f32 %v69_v51, 0.0  ;;  %v72_v59 = vadd.f32 %v293_v5, %v49_v52  ;;  %v52_v61 = vmul.f32 %v286_v2, %v29_v49 }
   0xe   :  { %v73_v60 = vadd.f32 %v293_v5, %v50_v53  ;;  %v86_v62 = vmax.f32 %v70_v55, 0.0  ;;  %v87_v63 = vmax.f32 %v71_v56, 0.0 }
   0xf   :  { %v74_v0 = vadd.f32 %v293_v5, %v51_v57  ;;  %v233_v1 = vpack.c.bf16 %v85_v58, %v84_v54  ;;  %v88_v3 = vmax.f32 %v72_v59, 0.0  ;;  %v75_v6 = vadd.f32 %v293_v5, %v52_v61 }
  0x10   :  { %v89_v4 = vmax.f32 %v73_v60, 0.0  ;;  %v238_v7 = vpack.c.bf16 %v87_v63, %v86_v62 }
  0x11   :  { %v90_v8 = vmax.f32 %v74_v0, 0.0  ;;  %253 = vst [vmem:[%s394_s3 + $0x20] sm:$0xff] %v233_v1   ;;  %v91_v10 = vmax.f32 %v75_v6, 0.0 }
  0x12   :  { %v243_v9 = vpack.c.bf16 %v89_v4, %v88_v3  ;;  %254 = vst [vmem:[%s394_s3 + $0x28] sm:$0xff] %v238_v7  }
  0x13   :  { %v248_v2 = vpack.c.bf16 %v91_v10, %v90_v8 }
  0x14   :  { %255 = vst [vmem:[%s394_s3 + $0x30] sm:$0xff] %v243_v9  }
  0x15   :  { %256 = vst [vmem:[%s394_s3 + $0x38] sm:$0xff] %v248_v2  }

// kernel: generator_forward.15
= control target key start
LH: loop header
LB: loop body
LE: loop exit
PB: predicated region body
PF: predicated region fallthrough
CT: control target
= control target key end

     0   :  { %v2291_v0 = vmov 0   ;;  %vm774_vm0 = vcmask 261120   ;;  %vm1449_vm1 = vcmask 523264   ;;  %vm19_vm2 = vcmask 516096   ;;  %s3367_s1 = inlined_call_operand.vmem [shape: bf16[288,64], index: 1, kind: input, shape index: {}]   ;;  %s3368_s0 = inlined_call_operand.vmem [shape: bf16[512,288], index: 0, kind: input, shape index: {}]   ;;  %s3369_s2 = inlined_call_operand.vmem [shape: f32[512,64], index: 2, kind: output, shape index: {0}]   ;;  %s3370_s3 = inlined_call_operand.vmem [shape: f32[1,64], index: 3, kind: output, shape index: {1}]   ;;  %s3371_s4 = inlined_call_operand.vmem [shape: f32[1,64], index: 4, kind: output, shape index: {2}]  }
   0x1   :  { %871 = vmatprep.subr.bf16.mxu0 %v2291_v0  ;;  %2111 = vmatprep.subr.bf16.mxu1 %v2291_v0  ;;  %v2145_v1 = vld [vmem:[%s3367_s1] sm:$0xff]   ;;  %v2146_v2 = vld [vmem:[%s3367_s1 + $0x8] sm:$0xff]   ;;  %v2147_v3 = vld [vmem:[%s3367_s1 + $0x10] sm:$0xff]  }
   0x2   :  { %872 = vmatpush1.bf16.msra.mxu0 %v2145_v1  ;;  %2127 = vmatpush1.bf16.msra.mxu1 %v2145_v1  ;;  %v2148_v4 = vld [vmem:[%s3367_s1 + $0x18] sm:$0xff]   ;;  %v2149_v5 = vld [vmem:[%s3367_s1 + $0x20] sm:$0xff]   ;;  %v2150_v7 = vld [vmem:[%s3367_s1 + $0x28] sm:$0xff]  }
   0x3   :  { %873 = vmatprep.subr.bf16.mxu0 %v2291_v0  ;;  %2112 = vmatprep.subr.bf16.mxu1 %v2291_v0  ;;  %v2163_v6 = vld [vmem:[%s3368_s0 + $0x4] ss:$12 sps:$4 sm:$0xff]   ;;  %v2152_v10 = vld [vmem:[%s3367_s1 + $0x38] sm:$0xff]   ;;  %v2154_v12 = vld [vmem:[%s3367_s1 + $0x48] sm:$0xff]  }
   0x4   :  { %v2166_v8 = vld [vmem:[%s3368_s0 + $0x244] ss:$12 sps:$4 sm:$0xff]   ;;  %903 = vmatprep.mubr.bf16.mxu0 %v2163_v6  ;;  %v2156_v14 = vld [vmem:[%s3367_s1 + $0x58] sm:$0xff]   ;;  %v2158_v16 = vld [vmem:[%s3367_s1 + $0x68] sm:$0xff]  }
   0x5   :  { %1095 = vmatprep.mubr.bf16.mxu1 %v2166_v8  ;;  %v2151_v9 = vld [vmem:[%s3367_s1 + $0x30] sm:$0xff]   ;;  %v2153_v11 = vld [vmem:[%s3367_s1 + $0x40] sm:$0xff]   ;;  %v2160_v18 = vld [vmem:[%s3367_s1 + $0x78] sm:$0xff]  }
   0x6   :  { %874 = vmatpush1.bf16.msra.mxu0 %v2146_v2  ;;  %2128 = vmatpush1.bf16.msra.mxu1 %v2146_v2  ;;  %v2155_v13 = vld [vmem:[%s3367_s1 + $0x50] sm:$0xff]   ;;  %v2157_v15 = vld [vmem:[%s3367_s1 + $0x60] sm:$0xff]   ;;  %v2167_v22 = vld [vmem:[%s3368_s0 + $0x1c] ss:$12 sps:$4 sm:$0xff]  }
   0x7   :  { %875 = vmatprep.subr.bf16.mxu0 %v2291_v0  ;;  %2113 = vmatprep.subr.bf16.mxu1 %v2291_v0  ;;  %v2159_v17 = vld [vmem:[%s3367_s1 + $0x70] sm:$0xff]   ;;  %v2185_v19 = vld [vmem:[%s3367_s1 + $0x80] sm:$0xff]   ;;  %v2169_v23 = vld [vmem:[%s3368_s0 + $0x25c] ss:$12 sps:$4 sm:$0xff]  }
   0x8   :  { %v2161_v20 = vld [vmem:[%s3368_s0] ss:$12 sps:$4 sm:$0xff]   ;;  %v2171_v25 = vld [vmem:[%s3368_s0 + $0x18] ss:$12 sps:$4 sm:$0xff]   ;;  %v2177_v29 = vld [vmem:[%s3368_s0 + $0x30] ss:$12 sps:$4 sm:$0xff]  }
   0x9   :  { %v2164_v21 = vld [vmem:[%s3368_s0 + $0x240] ss:$12 sps:$4 sm:$0xff]   ;;  %v2172_v26 = vld [vmem:[%s3368_s0 + $0x258] ss:$12 sps:$4 sm:$0xff]   ;;  %v2178_v30 = vld [vmem:[%s3368_s0 + $0x270] ss:$12 sps:$4 sm:$0xff]  }
   0xa   :  { %876 = vmatpush1.bf16.msra.mxu0 %v2147_v3  ;;  %2129 = vmatpush1.bf16.msra.mxu1 %v2147_v3  ;;  %v2210_v24 = vld [vmem:[%s3367_s1 + $0x88] sm:$0xff]   ;;  %v2173_v27 = vld [vmem:[%s3368_s0 + $0x34] ss:$12 sps:$4 sm:$0xff]   ;;  %v2186_v35 = vld [vmem:[%s3368_s0 + $0x64] ss:$12 sps:$4 sm:$0xff]  }
   0xb   :  { %877 = vmatprep.subr.bf16.mxu0 %v2291_v0  ;;  %2114 = vmatprep.subr.bf16.mxu1 %v2291_v0  ;;  %v2175_v28 = vld [vmem:[%s3368_s0 + $0x274] ss:$12 sps:$4 sm:$0xff]   ;;  %v2179_v31 = vld [vmem:[%s3368_s0 + $0x4c] ss:$12 sps:$4 sm:$0xff]   ;;  %v2188_v36 = vld [vmem:[%s3368_s0 + $0x2a4] ss:$12 sps:$4 sm:$0xff]  }
   0xc   :  { %v2181_v32 = vld [vmem:[%s3368_s0 + $0x28c] ss:$12 sps:$4 sm:$0xff]   ;;  %v2183_v33 = vld [vmem:[%s3368_s0 + $0x48] ss:$12 sps:$4 sm:$0xff]   ;;  %v2202_v45 = vld [vmem:[%s3368_s0 + $0x90] ss:$12 sps:$4 sm:$0xff]  }
   0xd   :  { %v2184_v34 = vld [vmem:[%s3368_s0 + $0x288] ss:$12 sps:$4 sm:$0xff]   ;;  %v2190_v37 = vld [vmem:[%s3368_s0 + $0x60] ss:$12 sps:$4 sm:$0xff]   ;;  %v2196_v41 = vld [vmem:[%s3368_s0 + $0x78] ss:$12 sps:$4 sm:$0xff]  }
   0xe   :  { %878 = vmatpush1.bf16.msra.mxu0 %v2148_v4  ;;  %2130 = vmatpush1.bf16.msra.mxu1 %v2148_v4  ;;  %v2191_v38 = vld [vmem:[%s3368_s0 + $0x2a0] ss:$12 sps:$4 sm:$0xff]   ;;  %v2192_v39 = vld [vmem:[%s3368_s0 + $0x7c] ss:$12 sps:$4 sm:$0xff]   ;;  %v2197_v42 = vld [vmem:[%s3368_s0 + $0x2b8] ss:$12 sps:$4 sm:$0xff]  }
   0xf   :  { %879 = vmatprep.subr.bf16.mxu0 %v2291_v0  ;;  %2115 = vmatprep.subr.bf16.mxu1 %v2291_v0  ;;  %v2194_v40 = vld [vmem:[%s3368_s0 + $0x2bc] ss:$12 sps:$4 sm:$0xff]   ;;  %v2198_v43 = vld [vmem:[%s3368_s0 + $0x94] ss:$12 sps:$4 sm:$0xff]   ;;  %v2204_v47 = vld [vmem:[%s3368_s0 + $0xac] ss:$12 sps:$4 sm:$0xff]  }
  0x10   :  { %v2200_v44 = vld [vmem:[%s3368_s0 + $0x2d4] ss:$12 sps:$4 sm:$0xff]   ;;  %v2203_v46 = vld [vmem:[%s3368_s0 + $0x2d0] ss:$12 sps:$4 sm:$0xff]   ;;  %v2206_v48 = vld [vmem:[%s3368_s0 + $0x2ec] ss:$12 sps:$4 sm:$0xff]  }
  0x11   :  { %v2208_v49 = vld [vmem:[%s3368_s0 + $0xa8] ss:$12 sps:$4 sm:$0xff]   ;;  %v2211_v51 = vld [vmem:[%s3368_s0 + $0xc4] ss:$12 sps:$4 sm:$0xff]   ;;  %v2214_v53 = vld [vmem:[%s3368_s0 + $0xc0] ss:$12 sps:$4 sm:$0xff]  }
  0x12   :  { %880 = vmatpush1.bf16.msra.mxu0 %v2149_v5  ;;  %2131 = vmatpush1.bf16.msra.mxu1 %v2149_v5  ;;  %v2209_v50 = vld [vmem:[%s3368_s0 + $0x2e8] ss:$12 sps:$4 sm:$0xff]   ;;  %v2215_v54 = vld [vmem:[%s3368_s0 + $0x20] ss:$12 sps:$4 sm:$0xff]   ;;  %v2218_v56 = vld [vmem:[%s3368_s0 + $0x38] ss:$12 sps:$4 sm:$0xff]  }
  0x13   :  { %881 = vmatprep.subr.bf16.mxu0 %v2291_v0  ;;  %2116 = vmatprep.subr.bf16.mxu1 %v2291_v0  ;;  %v2213_v52 = vld [vmem:[%s3368_s0 + $0x8] ss:$12 sps:$4 sm:$0xff]   ;;  %v2219_v57 = vld [vmem:[%s3368_s0 + $0xd8] ss:$12 sps:$4 sm:$0xff]   ;;  %v2220_v58 = vld [vmem:[%s3368_s0 + $0x50] ss:$12 sps:$4 sm:$0xff]  }
  0x14   :  { %v2216_v55 = vld [vmem:[%s3368_s0 + $0xdc] ss:$12 sps:$4 sm:$0xff]   ;;  %v2221_v59 = vld [vmem:[%s3368_s0 + $0xf4] ss:$12 sps:$4 sm:$0xff]   ;;  %v2226_v63 = vld [vmem:[%s3368_s0 + $0x10c] ss:$12 sps:$4 sm:$0xff]  }
  0x15   :  { %v2223_v60 = vld [vmem:[%s3368_s0 + $0x68] ss:$12 sps:$4 sm:$0xff]   ;;  %v2224_v61 = vld [vmem:[%s3368_s0 + $0xf0] ss:$12 sps:$4 sm:$0xff]   ;;  %v2225_v62 = vld [vmem:[%s3368_s0 + $0x80] ss:$12 sps:$4 sm:$0xff]  }
  0x16   :  { %882 = vmatpush1.bf16.msra.mxu0 %v2150_v7  ;;  %2132 = vmatpush1.bf16.msra.mxu1 %v2150_v7  ;;  %v2229_v1 = vld [vmem:[%s3368_s0 + $0x108] ss:$12 sps:$4 sm:$0xff]   ;;  %v2230_v2 = vld [vmem:[%s3368_s0 + $0xb0] ss:$12 sps:$4 sm:$0xff]   ;;  %v2234_v5 = vld [vmem:[%s3368_s0 + $0x120] ss:$12 sps:$4 sm:$0xff]  }
  0x17   :  { %883 = vmatprep.subr.bf16.mxu0 %v2291_v0  ;;  %2117 = vmatprep.subr.bf16.mxu1 %v2291_v0  ;;  %v2231_v3 = vld [vmem:[%s3368_s0 + $0x124] ss:$12 sps:$4 sm:$0xff]   ;;  %v2233_v4 = vld [vmem:[%s3368_s0 + $0xc8] ss:$12 sps:$4 sm:$0xff]   ;;  %v2235_v6 = vld [vmem:[%s3368_s0 + $0xe0] ss:$12 sps:$4 sm:$0xff]  }
  0x18   :  { %v2236_v7 = vld [vmem:[%s3368_s0 + $0x13c] ss:$12 sps:$4 sm:$0xff]   ;;  %v2238_v8 = vld [vmem:[%s3368_s0 + $0xf8] ss:$12 sps:$4 sm:$0xff]  }
  0x1a   :  { %884 = vmatpush1.bf16.msra.mxu0 %v2151_v9  ;;  %2133 = vmatpush1.bf16.msra.mxu1 %v2151_v9  ;;  %v2239_v9 = vld [vmem:[%s3368_s0 + $0x138] ss:$12 sps:$4 sm:$0xff]  }
  0x1b   :  { %885 = vmatprep.subr.bf16.mxu0 %v2291_v0  ;;  %2118 = vmatprep.subr.bf16.mxu1 %v2291_v0 }
  0x1e   :  { %886 = vmatpush1.bf16.msra.mxu0 %v2152_v10  ;;  %2134 = vmatpush1.bf16.msra.mxu1 %v2152_v10  ;;  %v2240_v10 = vld [vmem:[%s3368_s0 + $0x110] ss:$12 sps:$4 sm:$0xff]  }
  0x1f   :  { %887 = vmatprep.subr.bf16.mxu0 %v2291_v0  ;;  %2119 = vmatprep.subr.bf16.mxu1 %v2291_v0 }
  0x22   :  { %888 = vmatpush1.bf16.msra.mxu0 %v2153_v11  ;;  %2135 = vmatpush1.bf16.msra.mxu1 %v2153_v11  ;;  %v2241_v11 = vld [vmem:[%s3368_s0 + $0x154] ss:$12 sps:$4 sm:$0xff]  }
  0x23   :  { %889 = vmatprep.subr.bf16.mxu0 %v2291_v0  ;;  %2120 = vmatprep.subr.bf16.mxu1 %v2291_v0 }
  0x26   :  { %890 = vmatpush1.bf16.msra.mxu0 %v2154_v12  ;;  %2136 = vmatpush1.bf16.msra.mxu1 %v2154_v12  ;;  %v2243_v12 = vld [vmem:[%s3368_s0 + $0x128] ss:$12 sps:$4 sm:$0xff]  }
  0x27   :  { %891 = vmatprep.subr.bf16.mxu0 %v2291_v0  ;;  %2121 = vmatprep.subr.bf16.mxu1 %v2291_v0 }
  0x2a   :  { %892 = vmatpush1.bf16.msra.mxu0 %v2155_v13  ;;  %2137 = vmatpush1.bf16.msra.mxu1 %v2155_v13  ;;  %v2244_v13 = vld [vmem:[%s3368_s0 + $0x150] ss:$12 sps:$4 sm:$0xff]  }
  0x2b   :  { %893 = vmatprep.subr.bf16.mxu0 %v2291_v0  ;;  %2122 = vmatprep.subr.bf16.mxu1 %v2291_v0 }
  0x2e   :  { %894 = vmatpush1.bf16.msra.mxu0 %v2156_v14  ;;  %2138 = vmatpush1.bf16.msra.mxu1 %v2156_v14  ;;  %v2245_v14 = vld [vmem:[%s3368_s0 + $0x140] ss:$12 sps:$4 sm:$0xff]  }
  0x2f   :  { %895 = vmatprep.subr.bf16.mxu0 %v2291_v0  ;;  %2123 = vmatprep.subr.bf16.mxu1 %v2291_v0 }
  0x32   :  { %896 = vmatpush1.bf16.msra.mxu0 %v2157_v15  ;;  %2139 = vmatpush1.bf16.msra.mxu1 %v2157_v15  ;;  %v2246_v15 = vld [vmem:[%s3368_s0 + $0x16c] ss:$12 sps:$4 sm:$0xff]  }
  0x33   :  { %897 = vmatprep.subr.bf16.mxu0 %v2291_v0  ;;  %2124 = vmatprep.subr.bf16.mxu1 %v2291_v0 }
  0x36   :  { %898 = vmatpush1.bf16.msra.mxu0 %v2158_v16  ;;  %2140 = vmatpush1.bf16.msra.mxu1 %v2158_v16  ;;  %v2248_v16 = vld [vmem:[%s3368_s0 + $0x158] ss:$12 sps:$4 sm:$0xff]  }
  0x37   :  { %899 = vmatprep.subr.bf16.mxu0 %v2291_v0  ;;  %2125 = vmatprep.subr.bf16.mxu1 %v2291_v0 }
  0x3a   :  { %900 = vmatpush1.bf16.msra.mxu0 %v2159_v17  ;;  %2141 = vmatpush1.bf16.msra.mxu1 %v2159_v17  ;;  %v2249_v17 = vld [vmem:[%s3368_s0 + $0x168] ss:$12 sps:$4 sm:$0xff]  }
  0x3b   :  { %901 = vmatprep.subr.bf16.mxu0 %v2291_v0  ;;  %2126 = vmatprep.subr.bf16.mxu1 %v2291_v0  ;;  %v2228_v0 = vld [vmem:[%s3368_s0 + $0x98] ss:$12 sps:$4 sm:$0xff]  }
  0x3e   :  { %902 = vmatpush1.bf16.msra.mxu0 %v2160_v18  ;;  %2142 = vmatpush1.bf16.msra.mxu1 %v2160_v18  ;;  %v2250_v18 = vld [vmem:[%s3368_s0 + $0x170] ss:$12 sps:$4 sm:$0xff]  }
  0x3f   :  { %2043 = vmatprep.subr.bf16.mxu1 %v2185_v19 }
  0x41   :  { %904 = vmatmul.mubr.bf16.vlgmr.msra.gmra.mrb[0].mxu0 %v2161_v20  ;;  %1096 = vmatmul.mubr.bf16.vlgmr.msra.gmra.mrb[0].mxu1 %v2164_v21  ;;  %v2253_v20 = vld [vmem:[%s3368_s0 + $0x188] ss:$12 sps:$4 sm:$0xff]   ;;  %v2254_v21 = vld [vmem:[%s3368_s0 + $0x180] ss:$12 sps:$4 sm:$0xff]  }
  0x42   :  { %911 = vmatprep.mubr.bf16.mxu0 %v2167_v22  ;;  %1103 = vmatprep.mubr.bf16.mxu1 %v2169_v23  ;;  %v2255_v22 = vld [vmem:[%s3368_s0 + $0x1a0] ss:$12 sps:$4 sm:$0xff]   ;;  %v2256_v23 = vld [vmem:[%s3368_s0 + $0x19c] ss:$12 sps:$4 sm:$0xff]  }
  0x43   :  { %2044 = vmatpush3.bf16.msra.mxu1 %v2185_v19  ;;  %v2251_v19 = vld [vmem:[%s3368_s0 + $0x184] ss:$12 sps:$4 sm:$0xff]  }
  0x44   :  { %2045 = vmatprep.subr.bf16.mxu1 %v2210_v24 }
  0x47   :  { %2046 = vmatpush3.bf16.msra.mxu1 %v2210_v24  ;;  %v2258_v24 = vld [vmem:[%s3368_s0 + $0x1b8] ss:$12 sps:$4 sm:$0xff]  }
  0x49   :  { %912 = vmatmul.mubr.bf16.gmra.mrb[4].mxu0 %v2171_v25  ;;  %1104 = vmatmul.mubr.bf16.gmra.mrb[4].mxu1 %v2172_v26  ;;  %v2259_v25 = vld [vmem:[%s3368_s0 + $0x198] ss:$12 sps:$4 sm:$0xff]   ;;  %v2260_v26 = vld [vmem:[%s3368_s0 + $0x1d0] ss:$12 sps:$4 sm:$0xff]  }
  0x4a   :  { %919 = vmatprep.mubr.bf16.mxu0 %v2173_v27  ;;  %1111 = vmatprep.mubr.bf16.mxu1 %v2175_v28  ;;  %v2261_v27 = vld [vmem:[%s3368_s0 + $0x1b4] ss:$12 sps:$4 sm:$0xff]  }
  0x4b   :  { %v2263_v28 = vld [vmem:[%s3368_s0 + $0x1e8] ss:$12 sps:$4 sm:$0xff]  }
  0x51   :  { %920 = vmatmul.mubr.bf16.gmra.mrb[8].mxu0 %v2177_v29  ;;  %1112 = vmatmul.mubr.bf16.gmra.mrb[8].mxu1 %v2178_v30  ;;  %v2264_v29 = vld [vmem:[%s3368_s0 + $0x1b0] ss:$12 sps:$4 sm:$0xff]   ;;  %v2265_v30 = vld [vmem:[%s3368_s0 + $0x200] ss:$12 sps:$4 sm:$0xff]  }
  0x52   :  { %927 = vmatprep.mubr.bf16.mxu0 %v2179_v31  ;;  %1119 = vmatprep.mubr.bf16.mxu1 %v2181_v32  ;;  %v2266_v31 = vld [vmem:[%s3368_s0 + $0x1cc] ss:$12 sps:$4 sm:$0xff]  }
  0x53   :  { %v2268_v32 = vld [vmem:[%s3368_s0 + $0x218] ss:$12 sps:$4 sm:$0xff]  }
  0x59   :  { %928 = vmatmul.mubr.bf16.gmra.mrb[12].mxu0 %v2183_v33  ;;  %1120 = vmatmul.mubr.bf16.gmra.mrb[12].mxu1 %v2184_v34  ;;  %v2269_v33 = vld [vmem:[%s3368_s0 + $0x1c8] ss:$12 sps:$4 sm:$0xff]   ;;  %v2270_v34 = vld [vmem:[%s3368_s0 + $0x230] ss:$12 sps:$4 sm:$0xff]  }
  0x5a   :  { %935 = vmatprep.mubr.bf16.mxu0 %v2186_v35  ;;  %1127 = vmatprep.mubr.bf16.mxu1 %v2188_v36  ;;  %v2271_v35 = vld [vmem:[%s3368_s0 + $0x1e4] ss:$12 sps:$4 sm:$0xff]   ;;  %v2273_v36 = vld [vmem:[%s3368_s0 + $0x248] ss:$12 sps:$4 sm:$0xff]  }
  0x61   :  { %936 = vmatmul.mubr.bf16.gmra.mrb[16].mxu0 %v2190_v37  ;;  %1128 = vmatmul.mubr.bf16.gmra.mrb[16].mxu1 %v2191_v38  ;;  %v2274_v37 = vld [vmem:[%s3368_s0 + $0x1e0] ss:$12 sps:$4 sm:$0xff]  }
  0x62   :  { %943 = vmatprep.mubr.bf16.mxu0 %v2192_v39  ;;  %1135 = vmatprep.mubr.bf16.mxu1 %v2194_v40  ;;  %v2275_v38 = vld [vmem:[%s3368_s0 + $0x260] ss:$12 sps:$4 sm:$0xff]   ;;  %v2276_v39 = vld [vmem:[%s3368_s0 + $0x1fc] ss:$12 sps:$4 sm:$0xff]   ;;  %v2278_v40 = vld [vmem:[%s3368_s0 + $0x278] ss:$12 sps:$4 sm:$0xff]  }
  0x69   :  { %944 = vmatmul.mubr.bf16.gmra.mrb[20].mxu0 %v2196_v41  ;;  %1136 = vmatmul.mubr.bf16.gmra.mrb[20].mxu1 %v2197_v42  ;;  %v2279_v41 = vld [vmem:[%s3368_s0 + $0x1f8] ss:$12 sps:$4 sm:$0xff]   ;;  %v2280_v42 = vld [vmem:[%s3368_s0 + $0x290] ss:$12 sps:$4 sm:$0xff]  }
  0x6a   :  { %951 = vmatprep.mubr.bf16.mxu0 %v2198_v43  ;;  %1143 = vmatprep.mubr.bf16.mxu1 %v2200_v44  ;;  %v2281_v43 = vld [vmem:[%s3368_s0 + $0x214] ss:$12 sps:$4 sm:$0xff]  }
  0x6b   :  { %v2283_v44 = vld [vmem:[%s3368_s0 + $0x2a8] ss:$12 sps:$4 sm:$0xff]  }
  0x71   :  { %952 = vmatmul.mubr.bf16.gmra.mrb[24].mxu0 %v2202_v45  ;;  %1144 = vmatmul.mubr.bf16.gmra.mrb[24].mxu1 %v2203_v46  ;;  %v2284_v45 = vld [vmem:[%s3368_s0 + $0x210] ss:$12 sps:$4 sm:$0xff]   ;;  %v2285_v46 = vld [vmem:[%s3368_s0 + $0x2c0] ss:$12 sps:$4 sm:$0xff]  }
  0x72   :  { %959 = vmatprep.mubr.bf16.mxu0 %v2204_v47  ;;  %1151 = vmatprep.mubr.bf16.mxu1 %v2206_v48  ;;  %v2286_v47 = vld [vmem:[%s3368_s0 + $0x22c] ss:$12 sps:$4 sm:$0xff]  }
  0x73   :  { %v2288_v48 = vld [vmem:[%s3368_s0 + $0x2d8] ss:$12 sps:$4 sm:$0xff]  }
  0x79   :  { %960 = vmatmul.mubr.bf16.gmra.mrb[28].mxu0 %v2208_v49  ;;  %1152 = vmatmul.mubr.bf16.gmra.mrb[28].mxu1 %v2209_v50  ;;  %v2289_v49 = vld [vmem:[%s3368_s0 + $0x228] ss:$12 sps:$4 sm:$0xff]   ;;  %v2290_v50 = vld [vmem:[%s3368_s0 + $0x2f0] ss:$12 sps:$4 sm:$0xff]  }
  0x7a   :  { %967 = vmatprep.mubr.bf16.mxu0 %v2211_v51  ;;  %2047 = vmatprep.mubr.msk.bf16.mxu1 %vm774_vm0, %v2213_v52 }
  0x81   :  { %968 = vmatmul.mubr.bf16.gmra.mrb[32].mxu0 %v2214_v53  ;;  %2048 = vmatmul.mubr.msk.bf16.vlgmr.msra.gmra.mrb[32].mxu1 %vm774_vm0, %v2215_v54 }
  0x82   :  { %975 = vmatprep.mubr.bf16.mxu0 %v2216_v55  ;;  %2051 = vmatprep.mubr.msk.bf16.mxu1 %vm774_vm0, %v2218_v56 }
  0x89   :  { %976 = vmatmul.mubr.bf16.gmra.mrb[36].mxu0 %v2219_v57  ;;  %2052 = vmatmul.mubr.msk.bf16.gmra.mrb[36].mxu1 %vm774_vm0, %v2220_v58 }
  0x8a   :  { %983 = vmatprep.mubr.bf16.mxu0 %v2221_v59  ;;  %2055 = vmatprep.mubr.msk.bf16.mxu1 %vm774_vm0, %v2223_v60 }
  0x91   :  { %984 = vmatmul.mubr.bf16.gmra.mrb[40].mxu0 %v2224_v61  ;;  %2056 = vmatmul.mubr.msk.bf16.gmra.mrb[40].mxu1 %vm774_vm0, %v2225_v62 }
  0x92   :  { %991 = vmatprep.mubr.bf16.mxu0 %v2226_v63  ;;  %2059 = vmatprep.mubr.msk.bf16.mxu1 %vm774_vm0, %v2228_v0 }
  0x99   :  { %992 = vmatmul.mubr.bf16.gmra.mrb[44].mxu0 %v2229_v1  ;;  %2060 = vmatmul.mubr.msk.bf16.gmra.mrb[44].mxu1 %vm774_vm0, %v2230_v2 }
  0x9a   :  { %999 = vmatprep.mubr.bf16.mxu0 %v2231_v3  ;;  %2063 = vmatprep.mubr.msk.bf16.mxu1 %vm774_vm0, %v2233_v4 }
  0xa1   :  { %1000 = vmatmul.mubr.bf16.gmra.mrb[48].mxu0 %v2234_v5  ;;  %2064 = vmatmul.mubr.msk.bf16.gmra.mrb[48].mxu1 %vm774_vm0, %v2235_v6 }
  0xa2   :  { %1007 = vmatprep.mubr.bf16.mxu0 %v2236_v7  ;;  %2067 = vmatprep.mubr.msk.bf16.mxu1 %vm774_vm0, %v2238_v8 }
  0xa9   :  { %1008 = vmatmul.mubr.bf16.gmra.mrb[52].mxu0 %v2239_v9  ;;  %2068 = vmatmul.mubr.msk.bf16.gmra.mrb[52].mxu1 %vm774_vm0, %v2240_v10 }
  0xaa   :  { %1015 = vmatprep.mubr.bf16.mxu0 %v2241_v11  ;;  %2071 = vmatprep.mubr.msk.bf16.mxu1 %vm774_vm0, %v2243_v12 }
  0xb1   :  { %1016 = vmatmul.mubr.bf16.gmra.mrb[56].mxu0 %v2244_v13  ;;  %2072 = vmatmul.mubr.msk.bf16.gmra.mrb[56].mxu1 %vm774_vm0, %v2245_v14 }
  0xb2   :  { %1023 = vmatprep.mubr.bf16.mxu0 %v2246_v15  ;;  %2075 = vmatprep.mubr.msk.bf16.mxu1 %vm774_vm0, %v2248_v16 }
  0xb9   :  { %1024 = vmatmul.mubr.bf16.gmra.mrb[60].mxu0 %v2249_v17  ;;  %2076 = vmatmul.mubr.msk.bf16.gmra.mrb[60].mxu1 %vm774_vm0, %v2250_v18 }
  0xba   :  { %1031 = vmatprep.mubr.bf16.mxu0 %v2251_v19  ;;  %2079 = vmatprep.mubr.msk.bf16.mxu1 %vm774_vm0, %v2253_v20 }
  0xc1   :  { %1032 = vmatmul.mubr.bf16.gmra.mrb[64].mxu0 %v2254_v21  ;;  %2080 = vmatmul.mubr.msk.bf16.gmra.mrb[64].mxu1 %vm774_vm0, %v2255_v22 }
  0xc2   :  { %1039 = vmatprep.mubr.bf16.mxu0 %v2256_v23  ;;  %2083 = vmatprep.mubr.msk.bf16.mxu1 %vm774_vm0, %v2258_v24 }
  0xc9   :  { %1040 = vmatmul.mubr.bf16.gmra.mrb[68].mxu0 %v2259_v25  ;;  %2084 = vmatmul.mubr.msk.bf16.gmra.mrb[68].mxu1 %vm774_vm0, %v2260_v26 }
  0xca   :  { %1047 = vmatprep.mubr.bf16.mxu0 %v2261_v27  ;;  %2087 = vmatprep.mubr.msk.bf16.mxu1 %vm774_vm0, %v2263_v28 }
  0xd1   :  { %1048 = vmatmul.mubr.bf16.gmra.mrb[72].mxu0 %v2264_v29  ;;  %2088 = vmatmul.mubr.msk.bf16.gmra.mrb[72].mxu1 %vm774_vm0, %v2265_v30 }
  0xd2   :  { %1055 = vmatprep.mubr.bf16.mxu0 %v2266_v31  ;;  %2091 = vmatprep.mubr.msk.bf16.mxu1 %vm774_vm0, %v2268_v32 }
  0xd9   :  { %1056 = vmatmul.mubr.bf16.gmra.mrb[76].mxu0 %v2269_v33  ;;  %2092 = vmatmul.mubr.msk.bf16.gmra.mrb[76].mxu1 %vm774_vm0, %v2270_v34 }
  0xda   :  { %1063 = vmatprep.mubr.bf16.mxu0 %v2271_v35  ;;  %2095 = vmatprep.mubr.msk.bf16.mxu1 %vm774_vm0, %v2273_v36 }
  0xe1   :  { %1064 = vmatmul.mubr.bf16.gmra.mrb[80].mxu0 %v2274_v37  ;;  %2096 = vmatmul.mubr.msk.bf16.gmra.mrb[80].mxu1 %vm774_vm0, %v2275_v38 }
  0xe2   :  { %1071 = vmatprep.mubr.bf16.mxu0 %v2276_v39  ;;  %2099 = vmatprep.mubr.msk.bf16.mxu1 %vm774_vm0, %v2278_v40 }
  0xe9   :  { %1072 = vmatmul.mubr.bf16.gmra.mrb[84].mxu0 %v2279_v41  ;;  %2100 = vmatmul.mubr.msk.bf16.gmra.mrb[84].mxu1 %vm774_vm0, %v2280_v42 }
  0xea   :  { %1079 = vmatprep.mubr.bf16.mxu0 %v2281_v43  ;;  %2103 = vmatprep.mubr.msk.bf16.mxu1 %vm774_vm0, %v2283_v44 }
  0xf1   :  { %1080 = vmatmul.mubr.bf16.gmra.mrb[88].mxu0 %v2284_v45  ;;  %2104 = vmatmul.mubr.msk.bf16.gmra.mrb[88].mxu1 %vm774_vm0, %v2285_v46 }
  0xf2   :  { %1087 = vmatprep.mubr.bf16.mxu0 %v2286_v47  ;;  %2107 = vmatprep.mubr.msk.bf16.mxu1 %vm774_vm0, %v2288_v48 }
  0xf9   :  { %1088 = vmatmul.mubr.bf16.gmra.mrb[92].mxu0 %v2289_v49  ;;  %2108 = vmatmul.mubr.msk.bf16.gmra.mrb[92].mxu1 %vm774_vm0, %v2290_v50 }
 0x114   :  { %v2724_v51 = vpop.f32.mrb[0].mxu0  ;;  %v2726_v52 = vpop.f32.mrb[0].mxu1 }
 0x115   :  { %v907_v53 = vpop.f32.mrb[1].mxu0  ;;  %v1099_v54 = vpop.f32.mrb[1].mxu1 }
 0x116   :  { %v2728_v55 = vpop.f32.mrb[2].mxu0  ;;  %v2730_v56 = vpop.f32.mrb[2].mxu1 }
 0x117   :  { %v910_v57 = vpop.f32.mrb[3].mxu0  ;;  %v1102_v58 = vpop.f32.mrb[3].mxu1 }
 0x11c   :  { %v913_v59 = vpop.f32.mrb[4].mxu0  ;;  %v2732_v60 = vpop.f32.mrb[4].mxu1 }
 0x11d   :  { %v915_v61 = vpop.f32.mrb[5].mxu0  ;;  %v1107_v62 = vpop.f32.mrb[5].mxu1 }
 0x11e   :  { %v2734_v63 = vpop.f32.mrb[6].mxu0  ;;  %v2736_v0 = vpop.f32.mrb[6].mxu1 }
 0x11f   :  { %v918_v1 = vpop.f32.mrb[7].mxu0  ;;  %v1110_v2 = vpop.f32.mrb[7].mxu1 }
 0x124   :  { %v2738_v3 = vpop.f32.mrb[8].mxu0  ;;  %v2740_v4 = vpop.f32.mrb[8].mxu1 }
 0x125   :  { %v923_v5 = vpop.f32.mrb[9].mxu0  ;;  %v1115_v6 = vpop.f32.mrb[9].mxu1 }
 0x126   :  { %v2742_v7 = vpop.f32.mrb[10].mxu0  ;;  %v2744_v8 = vpop.f32.mrb[10].mxu1 }
 0x127   :  { %v926_v9 = vpop.f32.mrb[11].mxu0  ;;  %v1118_v10 = vpop.f32.mrb[11].mxu1 }
 0x12c   :  { %v2746_v11 = vpop.f32.mrb[12].mxu0  ;;  %v2748_v12 = vpop.f32.mrb[12].mxu1 }
 0x12d   :  { %v931_v13 = vpop.f32.mrb[13].mxu0  ;;  %v1123_v14 = vpop.f32.mrb[13].mxu1 }
 0x12e   :  { %v2750_v15 = vpop.f32.mrb[14].mxu0  ;;  %v2752_v16 = vpop.f32.mrb[14].mxu1 }
 0x12f   :  { %v934_v17 = vpop.f32.mrb[15].mxu0  ;;  %v1126_v18 = vpop.f32.mrb[15].mxu1 }
 0x134   :  { %v2754_v19 = vpop.f32.mrb[16].mxu0  ;;  %v2756_v20 = vpop.f32.mrb[16].mxu1 }
 0x135   :  { %v939_v21 = vpop.f32.mrb[17].mxu0  ;;  %v1131_v22 = vpop.f32.mrb[17].mxu1 }
 0x136   :  { %v2758_v23 = vpop.f32.mrb[18].mxu0  ;;  %v2760_v24 = vpop.f32.mrb[18].mxu1 }
 0x137   :  { %v942_v25 = vpop.f32.mrb[19].mxu0  ;;  %v1134_v26 = vpop.f32.mrb[19].mxu1 }
 0x13c   :  { %v2762_v27 = vpop.f32.mrb[20].mxu0  ;;  %v2764_v28 = vpop.f32.mrb[20].mxu1 }
 0x13d   :  { %v947_v29 = vpop.f32.mrb[21].mxu0  ;;  %v1139_v30 = vpop.f32.mrb[21].mxu1 }
 0x13e   :  { %v2766_v31 = vpop.f32.mrb[22].mxu0  ;;  %v2768_v32 = vpop.f32.mrb[22].mxu1 }
 0x13f   :  { %v950_v33 = vpop.f32.mrb[23].mxu0  ;;  %v1142_v34 = vpop.f32.mrb[23].mxu1 }
 0x144   :  { %v2770_v35 = vpop.f32.mrb[24].mxu0  ;;  %v2772_v36 = vpop.f32.mrb[24].mxu1 }
 0x145   :  { %v955_v37 = vpop.f32.mrb[25].mxu0  ;;  %v1147_v38 = vpop.f32.mrb[25].mxu1 }
 0x146   :  { %v2774_v39 = vpop.f32.mrb[26].mxu0  ;;  %v2776_v40 = vpop.f32.mrb[26].mxu1 }
 0x147   :  { %v958_v41 = vpop.f32.mrb[27].mxu0  ;;  %v1150_v42 = vpop.f32.mrb[27].mxu1 }
 0x14c   :  { %v2778_v43 = vpop.f32.mrb[28].mxu0  ;;  %v2780_v44 = vpop.f32.mrb[28].mxu1 }
 0x14d   :  { %v963_v45 = vpop.f32.mrb[29].mxu0  ;;  %v1155_v46 = vpop.f32.mrb[29].mxu1 }
 0x14e   :  { %v2782_v47 = vpop.f32.mrb[30].mxu0  ;;  %v2784_v48 = vpop.f32.mrb[30].mxu1 }
 0x14f   :  { %v966_v49 = vpop.f32.mrb[31].mxu0  ;;  %v1158_v50 = vpop.f32.mrb[31].mxu1 }
 0x154   :  { %v2786_v53 = vpop.f32.mrb[32].mxu0  ;;  %v2049_v54 = vpop.f32.mrb[32].mxu1 }
 0x155   :  { %v1203_v57 = vadd.f32 %v2049_v54, %v913_v59  ;;  %v971_v58 = vpop.f32.mrb[33].mxu0  ;;  %v1194_v61 = vpop.f32.mrb[33].mxu1 }
 0x156   :  { %v1195_v62 = vadd.f32 %v1194_v61, %v2724_v51  ;;  %v2789_v1 = vpop.f32.mrb[34].mxu0  ;;  %v2050_v2 = vpop.f32.mrb[34].mxu1 }
 0x157   :  { %1452 = vst.msk [vmem:[%s3369_s2 + $0x10] sm:$0xff] %vm1449_vm1, %v1203_v57  ;;  %v1206_v5 = vadd.f32 %v2050_v2, %v2734_v63  ;;  %v974_v6 = vpop.f32.mrb[35].mxu0  ;;  %v1197_v9 = vpop.f32.mrb[35].mxu1  ;;  %v1654_v10 = vmul.f32 %v1203_v57, %v1203_v57 }
 0x158   :  { %1450 = vst.msk [vmem:[%s3369_s2] sm:$0xff] %vm1449_vm1, %v1195_v62  ;;  %v1652_v59 = vmul.f32 %v1195_v62, %v1195_v62  ;;  %v1198_v51 = vadd.f32 %v1197_v9, %v2728_v55  ;;  %v1515_v13 = vsel %vm1449_vm1, %v1195_v62, 0.0  ;;  %v1518_v55 = vsel %vm1449_vm1, %v1203_v57, 0.0 }
 0x159   :  { %1453 = vst.msk [vmem:[%s3369_s2 + $0x18] sm:$0xff] %vm1449_vm1, %v1206_v5  ;;  %v1655_v17 = vmul.f32 %v1206_v5, %v1206_v5  ;;  %v1719_v38 = vsel %vm1449_vm1, %v1654_v10, 0.0  ;;  %v1520_v41 = vsel %vm1449_vm1, %v1206_v5, 0.0 }
 0x15a   :  { %1451 = vst.msk [vmem:[%s3369_s2 + $0x8] sm:$0xff] %vm1449_vm1, %v1198_v51  ;;  %v1516_v63 = vsel %vm1449_vm1, %v1198_v51, 0.0  ;;  %v1653_v14 = vmul.f32 %v1198_v51, %v1198_v51  ;;  %v1716_v21 = vsel %vm1449_vm1, %v1652_v59, 0.0 }
 0x15b   :  { %v1517_v18 = vadd.f32 %v1516_v63, %v1515_v13  ;;  %v1721_v49 = vsel %vm1449_vm1, %v1655_v17, 0.0 }
 0x15c   :  { %v1717_v22 = vsel %vm1449_vm1, %v1653_v14, 0.0  ;;  %v2814_v25 = vpop.f32.mrb[36].mxu0  ;;  %v2053_v26 = vpop.f32.mrb[36].mxu1  ;;  %v2292_v14 = vmov 0.0  }
 0x15d   :  { %v1519_v29 = vadd.f32 %v1518_v55, %v1517_v18  ;;  %v1718_v30 = vadd.f32 %v1717_v22, %v1716_v21  ;;  %v1219_v33 = vadd.f32 %v2053_v26, %v2746_v11  ;;  %v979_v34 = vpop.f32.mrb[37].mxu0  ;;  %v1210_v37 = vpop.f32.mrb[37].mxu1  ;;  %20 = vst.msk [vmem:[%s3370_s3] sm:$0x1] %vm19_vm2, %v2292_v14  ;;  %21 = vst.msk [vmem:[%s3371_s4] sm:$0x1] %vm19_vm2, %v2292_v14 }
 0x15e   :  { %v1211_v42 = vadd.f32 %v1210_v37, %v2738_v3  ;;  %v2820_v45 = vpop.f32.mrb[38].mxu0  ;;  %v2054_v46 = vpop.f32.mrb[38].mxu1 }
 0x15f   :  { %v1720_v50 = vadd.f32 %v1719_v38, %v1718_v30  ;;  %1456 = vst.msk [vmem:[%s3369_s2 + $0x30] sm:$0xff] %vm1449_vm1, %v1219_v33  ;;  %v1521_v11 = vadd.f32 %v1520_v41, %v1519_v29  ;;  %v982_v54 = vpop.f32.mrb[39].mxu0  ;;  %v1213_v57 = vpop.f32.mrb[39].mxu1  ;;  %v1222_v61 = vadd.f32 %v2054_v46, %v2750_v15  ;;  %v1658_v6 = vmul.f32 %v1219_v33, %v1219_v33 }
 0x160   :  { %1454 = vst.msk [vmem:[%s3369_s2 + $0x20] sm:$0xff] %vm1449_vm1, %v1211_v42  ;;  %v1522_v3 = vsel %vm1449_vm1, %v1211_v42, 0.0  ;;  %v1656_v58 = vmul.f32 %v1211_v42, %v1211_v42  ;;  %v1214_v62 = vadd.f32 %v1213_v57, %v2742_v7  ;;  %v1526_v10 = vsel %vm1449_vm1, %v1219_v33, 0.0 }
 0x161   :  { %v1523_v2 = vadd.f32 %v1522_v3, %v1521_v11  ;;  %v1722_v5 = vadd.f32 %v1721_v49, %v1720_v50  ;;  %1457 = vst.msk [vmem:[%s3369_s2 + $0x38] sm:$0xff] %vm1449_vm1, %v1222_v61  ;;  %v1659_v17 = vmul.f32 %v1222_v61, %v1222_v61  ;;  %v1528_v29 = vsel %vm1449_vm1, %v1222_v61, 0.0 }
 0x162   :  { %v1723_v9 = vsel %vm1449_vm1, %v1656_v58, 0.0  ;;  %1455 = vst.msk [vmem:[%s3369_s2 + $0x28] sm:$0xff] %vm1449_vm1, %v1214_v62  ;;  %v1524_v15 = vsel %vm1449_vm1, %v1214_v62, 0.0  ;;  %v1657_v51 = vmul.f32 %v1214_v62, %v1214_v62  ;;  %v1727_v38 = vsel %vm1449_vm1, %v1658_v6, 0.0 }
 0x163   :  { %v1724_v59 = vadd.f32 %v1723_v9, %v1722_v5  ;;  %v1525_v7 = vadd.f32 %v1524_v15, %v1523_v2  ;;  %v1729_v54 = vsel %vm1449_vm1, %v1659_v17, 0.0 }
 0x164   :  { %v2845_v13 = vpop.f32.mrb[40].mxu0  ;;  %v2057_v63 = vpop.f32.mrb[40].mxu1  ;;  %v1725_v55 = vsel %vm1449_vm1, %v1657_v51, 0.0 }
 0x165   :  { %v1527_v18 = vadd.f32 %v1526_v10, %v1525_v7  ;;  %v1235_v21 = vadd.f32 %v2057_v63, %v2762_v27  ;;  %v987_v22 = vpop.f32.mrb[41].mxu0  ;;  %v1226_v26 = vpop.f32.mrb[41].mxu1  ;;  %v1726_v30 = vadd.f32 %v1725_v55, %v1724_v59 }
 0x166   :  { %v1227_v33 = vadd.f32 %v1226_v26, %v2754_v19  ;;  %v2859_v34 = vpop.f32.mrb[42].mxu0  ;;  %v2058_v37 = vpop.f32.mrb[42].mxu1 }
 0x167   :  { %1460 = vst.msk [vmem:[%s3369_s2 + $0x50] sm:$0xff] %vm1449_vm1, %v1235_v21  ;;  %v1529_v41 = vadd.f32 %v1528_v29, %v1527_v18  ;;  %v1238_v27 = vadd.f32 %v2058_v37, %v2766_v31  ;;  %v990_v42 = vpop.f32.mrb[43].mxu0  ;;  %v1229_v46 = vpop.f32.mrb[43].mxu1  ;;  %v1728_v49 = vadd.f32 %v1727_v38, %v1726_v30  ;;  %v1534_v2 = vsel %vm1449_vm1, %v1235_v21, 0.0 }
 0x168   :  { %1458 = vst.msk [vmem:[%s3369_s2 + $0x40] sm:$0xff] %vm1449_vm1, %v1227_v33  ;;  %v1530_v19 = vsel %vm1449_vm1, %v1227_v33, 0.0  ;;  %v1660_v50 = vmul.f32 %v1227_v33, %v1227_v33  ;;  %v1230_v11 = vadd.f32 %v1229_v46, %v2758_v23  ;;  %v1662_v23 = vmul.f32 %v1235_v21, %v1235_v21 }
 0x169   :  { %v1531_v57 = vadd.f32 %v1530_v19, %v1529_v41  ;;  %1461 = vst.msk [vmem:[%s3369_s2 + $0x58] sm:$0xff] %vm1449_vm1, %v1238_v27  ;;  %v1730_v31 = vadd.f32 %v1729_v54, %v1728_v49  ;;  %v1663_v59 = vmul.f32 %v1238_v27, %v1238_v27  ;;  %v1536_v14 = vsel %vm1449_vm1, %v1238_v27, 0.0 }
 0x16a   :  { %v1731_v3 = vsel %vm1449_vm1, %v1660_v50, 0.0  ;;  %1459 = vst.msk [vmem:[%s3369_s2 + $0x48] sm:$0xff] %vm1449_vm1, %v1230_v11  ;;  %v1532_v58 = vsel %vm1449_vm1, %v1230_v11, 0.0  ;;  %v1661_v61 = vmul.f32 %v1230_v11, %v1230_v11  ;;  %v1735_v22 = vsel %vm1449_vm1, %v1662_v23, 0.0 }
 0x16b   :  { %v1533_v62 = vadd.f32 %v1532_v58, %v1531_v57  ;;  %v1732_v5 = vadd.f32 %v1731_v3, %v1730_v31  ;;  %v1737_v41 = vsel %vm1449_vm1, %v1663_v59, 0.0 }
 0x16c   :  { %v1733_v6 = vsel %vm1449_vm1, %v1661_v61, 0.0  ;;  %v2886_v9 = vpop.f32.mrb[44].mxu0  ;;  %v2061_v15 = vpop.f32.mrb[44].mxu1 }
 0x16d   :  { %v1535_v7 = vadd.f32 %v1534_v2, %v1533_v62  ;;  %v1251_v51 = vadd.f32 %v2061_v15, %v2778_v43  ;;  %v995_v10 = vpop.f32.mrb[45].mxu0  ;;  %v1242_v63 = vpop.f32.mrb[45].mxu1  ;;  %v1734_v17 = vadd.f32 %v1733_v6, %v1732_v5 }
 0x16e   :  { %v1243_v18 = vadd.f32 %v1242_v63, %v2770_v35  ;;  %v2891_v55 = vpop.f32.mrb[46].mxu0  ;;  %v2062_v21 = vpop.f32.mrb[46].mxu1 }
 0x16f   :  { %1464 = vst.msk [vmem:[%s3369_s2 + $0x70] sm:$0xff] %vm1449_vm1, %v1251_v51  ;;  %v1537_v26 = vadd.f32 %v1536_v14, %v1535_v7  ;;  %v1254_v43 = vadd.f32 %v2062_v21, %v2782_v47  ;;  %v998_v29 = vpop.f32.mrb[47].mxu0  ;;  %v1245_v30 = vpop.f32.mrb[47].mxu1  ;;  %v1736_v33 = vadd.f32 %v1735_v22, %v1734_v17  ;;  %v1542_v50 = vsel %vm1449_vm1, %v1251_v51, 0.0 }
 0x170   :  { %1462 = vst.msk [vmem:[%s3369_s2 + $0x60] sm:$0xff] %vm1449_vm1, %v1243_v18  ;;  %v1538_v35 = vsel %vm1449_vm1, %v1243_v18, 0.0  ;;  %v1664_v37 = vmul.f32 %v1243_v18, %v1243_v18  ;;  %v1246_v38 = vadd.f32 %v1245_v30, %v2774_v39  ;;  %v1666_v39 = vmul.f32 %v1251_v51, %v1251_v51 }
 0x171   :  { %v1539_v27 = vadd.f32 %v1538_v35, %v1537_v26  ;;  %1465 = vst.msk [vmem:[%s3369_s2 + $0x78] sm:$0xff] %vm1449_vm1, %v1254_v43  ;;  %v1738_v47 = vadd.f32 %v1737_v41, %v1736_v33  ;;  %v1667_v3 = vmul.f32 %v1254_v43, %v1254_v43  ;;  %v1544_v2 = vsel %vm1449_vm1, %v1254_v43, 0.0 }
 0x172   :  { %v1739_v42 = vsel %vm1449_vm1, %v1664_v37, 0.0  ;;  %1463 = vst.msk [vmem:[%s3369_s2 + $0x68] sm:$0xff] %vm1449_vm1, %v1246_v38  ;;  %v1540_v46 = vsel %vm1449_vm1, %v1246_v38, 0.0  ;;  %v1665_v49 = vmul.f32 %v1246_v38, %v1246_v38  ;;  %v1743_v7 = vsel %vm1449_vm1, %v1666_v39, 0.0 }
 0x173   :  { %v1541_v19 = vadd.f32 %v1540_v46, %v1539_v27  ;;  %v1740_v11 = vadd.f32 %v1739_v42, %v1738_v47  ;;  %v1745_v21 = vsel %vm1449_vm1, %v1667_v3, 0.0 }
 0x174   :  { %v1741_v54 = vsel %vm1449_vm1, %v1665_v49, 0.0  ;;  %v2918_v57 = vpop.f32.mrb[48].mxu0  ;;  %v2065_v31 = vpop.f32.mrb[48].mxu1 }
 0x175   :  { %v1543_v58 = vadd.f32 %v1542_v50, %v1541_v19  ;;  %v1267_v61 = vadd.f32 %v2065_v31, %v2814_v25  ;;  %v1003_v23 = vpop.f32.mrb[49].mxu0  ;;  %v1258_v62 = vpop.f32.mrb[49].mxu1  ;;  %v1742_v5 = vadd.f32 %v1741_v54, %v1740_v11 }
 0x176   :  { %v1259_v6 = vadd.f32 %v1258_v62, %v2786_v53  ;;  %v2923_v15 = vpop.f32.mrb[50].mxu0  ;;  %v2066_v59 = vpop.f32.mrb[50].mxu1 }
 0x177   :  { %1468 = vst.msk [vmem:[%s3369_s2 + $0x90] sm:$0xff] %vm1449_vm1, %v1267_v61  ;;  %v1545_v51 = vadd.f32 %v1544_v2, %v1543_v58  ;;  %v1270_v25 = vadd.f32 %v2066_v59, %v2820_v45  ;;  %v1006_v10 = vpop.f32.mrb[51].mxu0  ;;  %v1261_v63 = vpop.f32.mrb[51].mxu1  ;;  %v1744_v14 = vadd.f32 %v1743_v7, %v1742_v5  ;;  %v1550_v33 = vsel %vm1449_vm1, %v1267_v61, 0.0 }
 0x178   :  { %1466 = vst.msk [vmem:[%s3369_s2 + $0x80] sm:$0xff] %vm1449_vm1, %v1259_v6  ;;  %v1546_v53 = vsel %vm1449_vm1, %v1259_v6, 0.0  ;;  %v1668_v17 = vmul.f32 %v1259_v6, %v1259_v6  ;;  %v1262_v18 = vadd.f32 %v1261_v63, %v2789_v1  ;;  %v1670_v1 = vmul.f32 %v1267_v61, %v1267_v61 }
 0x179   :  { %v1547_v22 = vadd.f32 %v1546_v53, %v1545_v51  ;;  %1469 = vst.msk [vmem:[%s3369_s2 + $0x98] sm:$0xff] %vm1449_vm1, %v1270_v25  ;;  %v1746_v45 = vadd.f32 %v1745_v21, %v1744_v14  ;;  %v1671_v27 = vmul.f32 %v1270_v25, %v1270_v25  ;;  %v1552_v39 = vsel %vm1449_vm1, %v1270_v25, 0.0 }
 0x17a   :  { %v1747_v26 = vsel %vm1449_vm1, %v1668_v17, 0.0  ;;  %1467 = vst.msk [vmem:[%s3369_s2 + $0x88] sm:$0xff] %vm1449_vm1, %v1262_v18  ;;  %v1548_v43 = vsel %vm1449_vm1, %v1262_v18, 0.0  ;;  %v1669_v29 = vmul.f32 %v1262_v18, %v1262_v18  ;;  %v1751_v31 = vsel %vm1449_vm1, %v1670_v1, 0.0 }
 0x17b   :  { %v1549_v30 = vadd.f32 %v1548_v43, %v1547_v22  ;;  %v1748_v35 = vadd.f32 %v1747_v26, %v1746_v45  ;;  %v1753_v5 = vsel %vm1449_vm1, %v1671_v27, 0.0 }
 0x17c   :  { %v1749_v37 = vsel %vm1449_vm1, %v1669_v29, 0.0  ;;  %v1009_v38 = vpop.f32.mrb[52].mxu0  ;;  %v2069_v41 = vpop.f32.mrb[52].mxu1 }
 0x17d   :  { %v1551_v47 = vadd.f32 %v1550_v33, %v1549_v30  ;;  %v1283_v42 = vadd.f32 %v2069_v41, %v2886_v9  ;;  %v1011_v46 = vpop.f32.mrb[53].mxu0  ;;  %v1274_v49 = vpop.f32.mrb[53].mxu1  ;;  %v1750_v19 = vadd.f32 %v1749_v37, %v1748_v35 }
 0x17e   :  { %v1275_v50 = vadd.f32 %v1274_v49, %v2845_v13  ;;  %v1012_v11 = vpop.f32.mrb[54].mxu0  ;;  %v2070_v54 = vpop.f32.mrb[54].mxu1 }
 0x17f   :  { %1472 = vst.msk [vmem:[%s3369_s2 + $0xb0] sm:$0xff] %vm1449_vm1, %v1283_v42  ;;  %v1553_v3 = vadd.f32 %v1552_v39, %v1551_v47  ;;  %v1286_v58 = vadd.f32 %v2070_v54, %v2891_v55  ;;  %v1014_v9 = vpop.f32.mrb[55].mxu0  ;;  %v1277_v61 = vpop.f32.mrb[55].mxu1  ;;  %v1752_v23 = vadd.f32 %v1751_v31, %v1750_v19  ;;  %v1558_v10 = vsel %vm1449_vm1, %v1283_v42, 0.0 }
 0x180   :  { %1470 = vst.msk [vmem:[%s3369_s2 + $0xa0] sm:$0xff] %vm1449_vm1, %v1275_v50  ;;  %v1554_v13 = vsel %vm1449_vm1, %v1275_v50, 0.0  ;;  %v1672_v62 = vmul.f32 %v1275_v50, %v1275_v50  ;;  %v1278_v2 = vadd.f32 %v1277_v61, %v2859_v34  ;;  %v1674_v34 = vmul.f32 %v1283_v42, %v1283_v42 }
 0x181   :  { %v1555_v6 = vadd.f32 %v1554_v13, %v1553_v3  ;;  %1473 = vst.msk [vmem:[%s3369_s2 + $0xb8] sm:$0xff] %vm1449_vm1, %v1286_v58  ;;  %v1754_v55 = vadd.f32 %v1753_v5, %v1752_v23  ;;  %v1675_v18 = vmul.f32 %v1286_v58, %v1286_v58  ;;  %v1560_v43 = vsel %vm1449_vm1, %v1286_v58, 0.0 }
 0x182   :  { %v1755_v59 = vsel %vm1449_vm1, %v1672_v62, 0.0  ;;  %1471 = vst.msk [vmem:[%s3369_s2 + $0xa8] sm:$0xff] %vm1449_vm1, %v1278_v2  ;;  %v1556_v7 = vsel %vm1449_vm1, %v1278_v2, 0.0  ;;  %v1673_v51 = vmul.f32 %v1278_v2, %v1278_v2  ;;  %v1759_v35 = vsel %vm1449_vm1, %v1674_v34, 0.0 }
 0x183   :  { %v1557_v25 = vadd.f32 %v1556_v7, %v1555_v6  ;;  %v1756_v63 = vadd.f32 %v1755_v59, %v1754_v55  ;;  %v1761_v49 = vsel %vm1449_vm1, %v1675_v18, 0.0 }
 0x184   :  { %v1757_v14 = vsel %vm1449_vm1, %v1673_v51, 0.0  ;;  %v1017_v53 = vpop.f32.mrb[56].mxu0  ;;  %v2073_v17 = vpop.f32.mrb[56].mxu1 }
 0x185   :  { %v1559_v21 = vadd.f32 %v1558_v10, %v1557_v25  ;;  %v1299_v22 = vadd.f32 %v2073_v17, %v1009_v38  ;;  %v1019_v45 = vpop.f32.mrb[57].mxu0  ;;  %v1290_v26 = vpop.f32.mrb[57].mxu1  ;;  %v1758_v29 = vadd.f32 %v1757_v14, %v1756_v63 }
 0x186   :  { %v1291_v1 = vadd.f32 %v1290_v26, %v2918_v57  ;;  %v1020_v30 = vpop.f32.mrb[58].mxu0  ;;  %v2074_v33 = vpop.f32.mrb[58].mxu1 }
 0x187   :  { %1476 = vst.msk [vmem:[%s3369_s2 + $0xd0] sm:$0xff] %vm1449_vm1, %v1299_v22  ;;  %v1561_v37 = vadd.f32 %v1560_v43, %v1559_v21  ;;  %v1302_v41 = vadd.f32 %v2074_v33, %v1012_v11  ;;  %v1022_v27 = vpop.f32.mrb[59].mxu0  ;;  %v1293_v38 = vpop.f32.mrb[59].mxu1  ;;  %v1760_v47 = vadd.f32 %v1759_v35, %v1758_v29  ;;  %v1566_v3 = vsel %vm1449_vm1, %v1299_v22, 0.0 }
 0x188   :  { %1474 = vst.msk [vmem:[%s3369_s2 + $0xc0] sm:$0xff] %vm1449_vm1, %v1291_v1  ;;  %v1562_v57 = vsel %vm1449_vm1, %v1291_v1, 0.0  ;;  %v1676_v42 = vmul.f32 %v1291_v1, %v1291_v1  ;;  %v1294_v46 = vadd.f32 %v1293_v38, %v2923_v15  ;;  %v1678_v15 = vmul.f32 %v1299_v22, %v1299_v22 }
 0x189   :  { %v1563_v39 = vadd.f32 %v1562_v57, %v1561_v37  ;;  %1477 = vst.msk [vmem:[%s3369_s2 + $0xd8] sm:$0xff] %vm1449_vm1, %v1302_v41  ;;  %v1762_v19 = vadd.f32 %v1761_v49, %v1760_v47  ;;  %v1679_v13 = vmul.f32 %v1302_v41, %v1302_v41  ;;  %v1568_v55 = vsel %vm1449_vm1, %v1302_v41, 0.0 }
 0x18a   :  { %v1763_v50 = vsel %vm1449_vm1, %v1676_v42, 0.0  ;;  %1475 = vst.msk [vmem:[%s3369_s2 + $0xc8] sm:$0xff] %vm1449_vm1, %v1294_v46  ;;  %v1564_v11 = vsel %vm1449_vm1, %v1294_v46, 0.0  ;;  %v1677_v54 = vmul.f32 %v1294_v46, %v1294_v46  ;;  %v1767_v25 = vsel %vm1449_vm1, %v1678_v15, 0.0 }
 0x18b   :  { %v1565_v31 = vadd.f32 %v1564_v11, %v1563_v39  ;;  %v1764_v58 = vadd.f32 %v1763_v50, %v1762_v19  ;;  %v1769_v45 = vsel %vm1449_vm1, %v1679_v13, 0.0 }
 0x18c   :  { %v1765_v9 = vsel %vm1449_vm1, %v1677_v54, 0.0  ;;  %v1025_v61 = vpop.f32.mrb[60].mxu0  ;;  %v2077_v23 = vpop.f32.mrb[60].mxu1 }
 0x18d   :  { %v1567_v62 = vadd.f32 %v1566_v3, %v1565_v31  ;;  %v1315_v2 = vadd.f32 %v2077_v23, %v1025_v61  ;;  %v1027_v5 = vpop.f32.mrb[61].mxu0  ;;  %v1306_v6 = vpop.f32.mrb[61].mxu1  ;;  %v1766_v59 = vadd.f32 %v1765_v9, %v1764_v58 }
 0x18e   :  { %v1307_v7 = vadd.f32 %v1306_v6, %v1017_v53  ;;  %v1028_v51 = vpop.f32.mrb[62].mxu0  ;;  %v2078_v34 = vpop.f32.mrb[62].mxu1 }
 0x18f   :  { %1480 = vst.msk [vmem:[%s3369_s2 + $0xf0] sm:$0xff] %vm1449_vm1, %v1315_v2  ;;  %v1569_v10 = vadd.f32 %v1568_v55, %v1567_v62  ;;  %v1318_v63 = vadd.f32 %v2078_v34, %v1028_v51  ;;  %v1030_v14 = vpop.f32.mrb[63].mxu0  ;;  %v1309_v17 = vpop.f32.mrb[63].mxu1  ;;  %v1768_v18 = vadd.f32 %v1767_v25, %v1766_v59  ;;  %v1574_v37 = vsel %vm1449_vm1, %v1315_v2, 0.0 }
 0x190   :  { %1478 = vst.msk [vmem:[%s3369_s2 + $0xe0] sm:$0xff] %vm1449_vm1, %v1307_v7  ;;  %v1570_v53 = vsel %vm1449_vm1, %v1307_v7, 0.0  ;;  %v1680_v21 = vmul.f32 %v1307_v7, %v1307_v7  ;;  %v1310_v22 = vadd.f32 %v1309_v17, %v1020_v30  ;;  %v1682_v30 = vmul.f32 %v1315_v2, %v1315_v2 }
 0x191   :  { %v1571_v26 = vadd.f32 %v1570_v53, %v1569_v10  ;;  %1481 = vst.msk [vmem:[%s3369_s2 + $0xf8] sm:$0xff] %vm1449_vm1, %v1318_v63  ;;  %v1770_v43 = vadd.f32 %v1769_v45, %v1768_v18  ;;  %v1683_v57 = vmul.f32 %v1318_v63, %v1318_v63  ;;  %v1576_v39 = vsel %vm1449_vm1, %v1318_v63, 0.0 }
 0x192   :  { %v1771_v29 = vsel %vm1449_vm1, %v1680_v21, 0.0  ;;  %1479 = vst.msk [vmem:[%s3369_s2 + $0xe8] sm:$0xff] %vm1449_vm1, %v1310_v22  ;;  %v1572_v1 = vsel %vm1449_vm1, %v1310_v22, 0.0  ;;  %v1681_v33 = vmul.f32 %v1310_v22, %v1310_v22  ;;  %v1775_v15 = vsel %vm1449_vm1, %v1682_v30, 0.0 }
 0x193   :  { %v1573_v35 = vadd.f32 %v1572_v1, %v1571_v26  ;;  %v1772_v41 = vadd.f32 %v1771_v29, %v1770_v43  ;;  %v1777_v62 = vsel %vm1449_vm1, %v1683_v57, 0.0 }
 0x194   :  { %v1773_v27 = vsel %vm1449_vm1, %v1681_v33, 0.0  ;;  %v1033_v38 = vpop.f32.mrb[64].mxu0  ;;  %v2081_v47 = vpop.f32.mrb[64].mxu1 }
 0x195   :  { %v1575_v42 = vadd.f32 %v1574_v37, %v1573_v35  ;;  %v1035_v46 = vpop.f32.mrb[65].mxu0  ;;  %v1322_v49 = vpop.f32.mrb[65].mxu1  ;;  %v1774_v19 = vadd.f32 %v1773_v27, %v1772_v41 }
 0x196   :  { %v1323_v50 = vadd.f32 %v1322_v49, %v1033_v38  ;;  %v1036_v11 = vpop.f32.mrb[66].mxu0  ;;  %v2082_v54 = vpop.f32.mrb[66].mxu1 }
 0x197   :  { %v1577_v31 = vadd.f32 %v1576_v39, %v1575_v42  ;;  %v1038_v3 = vpop.f32.mrb[67].mxu0  ;;  %v1325_v58 = vpop.f32.mrb[67].mxu1  ;;  %v1776_v9 = vadd.f32 %v1775_v15, %v1774_v19 }
 0x198   :  { %1482 = vst.msk [vmem:[%s3369_s2 + $0x100] sm:$0xff] %vm1449_vm1, %v1323_v50  ;;  %v1578_v61 = vsel %vm1449_vm1, %v1323_v50, 0.0  ;;  %v1684_v23 = vmul.f32 %v1323_v50, %v1323_v50  ;;  %v1326_v13 = vadd.f32 %v1325_v58, %v1036_v11 }
 0x199   :  { %v1579_v2 = vadd.f32 %v1578_v61, %v1577_v31  ;;  %v1778_v5 = vadd.f32 %v1777_v62, %v1776_v9 }
 0x19a   :  { %v1779_v6 = vsel %vm1449_vm1, %v1684_v23, 0.0  ;;  %1483 = vst.msk [vmem:[%s3369_s2 + $0x108] sm:$0xff] %vm1449_vm1, %v1326_v13  ;;  %v1580_v55 = vsel %vm1449_vm1, %v1326_v13, 0.0  ;;  %v1685_v59 = vmul.f32 %v1326_v13, %v1326_v13 }
 0x19b   :  { %v1581_v7 = vadd.f32 %v1580_v55, %v1579_v2  ;;  %v1780_v51 = vadd.f32 %v1779_v6, %v1778_v5 }
 0x19c   :  { %v1781_v34 = vsel %vm1449_vm1, %v1685_v59, 0.0  ;;  %v1041_v25 = vpop.f32.mrb[68].mxu0  ;;  %v2085_v10 = vpop.f32.mrb[68].mxu1 }
 0x19d   :  { %v1331_v63 = vadd.f32 %v2081_v47, %v1041_v25  ;;  %v1043_v14 = vpop.f32.mrb[69].mxu0  ;;  %v1338_v17 = vpop.f32.mrb[69].mxu1  ;;  %v1782_v18 = vadd.f32 %v1781_v34, %v1780_v51 }
 0x19e   :  { %v1044_v53 = vpop.f32.mrb[70].mxu0  ;;  %v2086_v21 = vpop.f32.mrb[70].mxu1 }
 0x19f   :  { %1484 = vst.msk [vmem:[%s3369_s2 + $0x110] sm:$0xff] %vm1449_vm1, %v1331_v63  ;;  %v1582_v22 = vsel %vm1449_vm1, %v1331_v63, 0.0  ;;  %v1686_v45 = vmul.f32 %v1331_v63, %v1331_v63  ;;  %v1334_v26 = vadd.f32 %v2082_v54, %v1044_v53  ;;  %v1046_v43 = vpop.f32.mrb[71].mxu0  ;;  %v1341_v29 = vpop.f32.mrb[71].mxu1 }
 0x1a0   :  { %v1583_v1 = vadd.f32 %v1582_v22, %v1581_v7 }
 0x1a1   :  { %v1783_v33 = vsel %vm1449_vm1, %v1686_v45, 0.0  ;;  %1485 = vst.msk [vmem:[%s3369_s2 + $0x118] sm:$0xff] %vm1449_vm1, %v1334_v26  ;;  %v1584_v30 = vsel %vm1449_vm1, %v1334_v26, 0.0  ;;  %v1687_v35 = vmul.f32 %v1334_v26, %v1334_v26 }
 0x1a2   :  { %v1784_v37 = vadd.f32 %v1783_v33, %v1782_v18  ;;  %v1585_v41 = vadd.f32 %v1584_v30, %v1583_v1 }
 0x1a3   :  { %v1785_v27 = vsel %vm1449_vm1, %v1687_v35, 0.0 }
 0x1a4   :  { %v1786_v38 = vadd.f32 %v1785_v27, %v1784_v37  ;;  %v1049_v47 = vpop.f32.mrb[72].mxu0  ;;  %v3055_v57 = vpop.f32.mrb[72].mxu1 }
 0x1a5   :  { %v1339_v42 = vadd.f32 %v1338_v17, %v1049_v47  ;;  %v1051_v46 = vpop.f32.mrb[73].mxu0  ;;  %v1354_v49 = vpop.f32.mrb[73].mxu1 }
 0x1a6   :  { %v1052_v39 = vpop.f32.mrb[74].mxu0  ;;  %v3057_v19 = vpop.f32.mrb[74].mxu1 }
 0x1a7   :  { %1486 = vst.msk [vmem:[%s3369_s2 + $0x120] sm:$0xff] %vm1449_vm1, %v1339_v42  ;;  %v1586_v50 = vsel %vm1449_vm1, %v1339_v42, 0.0  ;;  %v1688_v11 = vmul.f32 %v1339_v42, %v1339_v42  ;;  %v1342_v54 = vadd.f32 %v1341_v29, %v1052_v39  ;;  %v1054_v15 = vpop.f32.mrb[75].mxu0  ;;  %v1357_v31 = vpop.f32.mrb[75].mxu1 }
 0x1a8   :  { %v1587_v3 = vadd.f32 %v1586_v50, %v1585_v41 }
 0x1a9   :  { %v1787_v58 = vsel %vm1449_vm1, %v1688_v11, 0.0  ;;  %1487 = vst.msk [vmem:[%s3369_s2 + $0x128] sm:$0xff] %vm1449_vm1, %v1342_v54  ;;  %v1588_v9 = vsel %vm1449_vm1, %v1342_v54, 0.0  ;;  %v1689_v61 = vmul.f32 %v1342_v54, %v1342_v54 }
 0x1aa   :  { %v1788_v23 = vadd.f32 %v1787_v58, %v1786_v38  ;;  %v1589_v13 = vadd.f32 %v1588_v9, %v1587_v3 }
 0x1ab   :  { %v1789_v62 = vsel %vm1449_vm1, %v1689_v61, 0.0 }
 0x1ac   :  { %v1790_v2 = vadd.f32 %v1789_v62, %v1788_v23  ;;  %v1057_v5 = vpop.f32.mrb[76].mxu0  ;;  %v3071_v6 = vpop.f32.mrb[76].mxu1 }
 0x1ad   :  { %v1347_v55 = vadd.f32 %v2085_v10, %v1057_v5  ;;  %v1059_v59 = vpop.f32.mrb[77].mxu0  ;;  %v3073_v7 = vpop.f32.mrb[77].mxu1 }
 0x1ae   :  { %v1060_v51 = vpop.f32.mrb[78].mxu0  ;;  %v3075_v34 = vpop.f32.mrb[78].mxu1 }
 0x1af   :  { %1488 = vst.msk [vmem:[%s3369_s2 + $0x130] sm:$0xff] %vm1449_vm1, %v1347_v55  ;;  %v1590_v25 = vsel %vm1449_vm1, %v1347_v55, 0.0  ;;  %v1690_v63 = vmul.f32 %v1347_v55, %v1347_v55  ;;  %v1350_v14 = vadd.f32 %v2086_v21, %v1060_v51  ;;  %v1062_v17 = vpop.f32.mrb[79].mxu0  ;;  %v3082_v18 = vpop.f32.mrb[79].mxu1 }
 0x1b0   :  { %v1591_v53 = vadd.f32 %v1590_v25, %v1589_v13 }
 0x1b1   :  { %v1791_v10 = vsel %vm1449_vm1, %v1690_v63, 0.0  ;;  %1489 = vst.msk [vmem:[%s3369_s2 + $0x138] sm:$0xff] %vm1449_vm1, %v1350_v14  ;;  %v1592_v22 = vsel %vm1449_vm1, %v1350_v14, 0.0  ;;  %v1691_v45 = vmul.f32 %v1350_v14, %v1350_v14 }
 0x1b2   :  { %v1792_v26 = vadd.f32 %v1791_v10, %v1790_v2  ;;  %v1593_v43 = vadd.f32 %v1592_v22, %v1591_v53 }
 0x1b3   :  { %v1793_v29 = vsel %vm1449_vm1, %v1691_v45, 0.0 }
 0x1b4   :  { %v1794_v1 = vadd.f32 %v1793_v29, %v1792_v26  ;;  %v1065_v21 = vpop.f32.mrb[80].mxu0  ;;  %v2097_v33 = vpop.f32.mrb[80].mxu1 }
 0x1b5   :  { %v1355_v30 = vadd.f32 %v1354_v49, %v1065_v21  ;;  %v3092_v35 = vadd.f32 %v2097_v33, %v2732_v60  ;;  %v1067_v37 = vpop.f32.mrb[81].mxu0  ;;  %v1386_v41 = vpop.f32.mrb[81].mxu1 }
 0x1b6   :  { %v3095_v27 = vadd.f32 %v1386_v41, %v2726_v52  ;;  %v1068_v38 = vpop.f32.mrb[82].mxu0  ;;  %v2098_v47 = vpop.f32.mrb[82].mxu1 }
 0x1b7   :  { %1490 = vst.msk [vmem:[%s3369_s2 + $0x140] sm:$0xff] %vm1449_vm1, %v1355_v30  ;;  %v1594_v42 = vsel %vm1449_vm1, %v1355_v30, 0.0  ;;  %v1692_v46 = vmul.f32 %v1355_v30, %v1355_v30  ;;  %1500 = vst.msk [vmem:[%s3369_s2 + $0x190] sm:$0xff] %vm1449_vm1, %v3092_v35  ;;  %v1070_v60 = vpop.f32.mrb[83].mxu0  ;;  %v1389_v49 = vpop.f32.mrb[83].mxu1  ;;  %v1358_v39 = vadd.f32 %v1357_v31, %v1068_v38  ;;  %v3114_v11 = vadd.f32 %v2098_v47, %v2736_v0 }
 0x1b8   :  { %v1595_v52 = vadd.f32 %v1594_v42, %v1593_v43  ;;  %1498 = vst.msk [vmem:[%s3369_s2 + $0x180] sm:$0xff] %vm1449_vm1, %v3095_v27  ;;  %v3117_v54 = vadd.f32 %v1389_v49, %v2730_v56 }
 0x1b9   :  { %v1795_v50 = vsel %vm1449_vm1, %v1692_v46, 0.0  ;;  %1491 = vst.msk [vmem:[%s3369_s2 + $0x148] sm:$0xff] %vm1449_vm1, %v1358_v39  ;;  %v1596_v3 = vsel %vm1449_vm1, %v1358_v39, 0.0  ;;  %v1693_v58 = vmul.f32 %v1358_v39, %v1358_v39  ;;  %1501 = vst.msk [vmem:[%s3369_s2 + $0x198] sm:$0xff] %vm1449_vm1, %v3114_v11 }
 0x1ba   :  { %v1796_v15 = vadd.f32 %v1795_v50, %v1794_v1  ;;  %v1597_v9 = vadd.f32 %v1596_v3, %v1595_v52  ;;  %1499 = vst.msk [vmem:[%s3369_s2 + $0x188] sm:$0xff] %vm1449_vm1, %v3117_v54 }
 0x1bb   :  { %v1797_v56 = vsel %vm1449_vm1, %v1693_v58, 0.0 }
 0x1bc   :  { %v1073_v0 = vpop.f32.mrb[84].mxu0  ;;  %v2101_v31 = vpop.f32.mrb[84].mxu1  ;;  %v1798_v61 = vadd.f32 %v1797_v56, %v1796_v15 }
 0x1bd   :  { %v1363_v23 = vadd.f32 %v3055_v57, %v1073_v0  ;;  %v3137_v13 = vadd.f32 %v2101_v31, %v2748_v12  ;;  %v1075_v62 = vpop.f32.mrb[85].mxu0  ;;  %v1402_v2 = vpop.f32.mrb[85].mxu1 }
 0x1be   :  { %v3140_v5 = vadd.f32 %v1402_v2, %v2740_v4  ;;  %v1076_v55 = vpop.f32.mrb[86].mxu0  ;;  %v2102_v59 = vpop.f32.mrb[86].mxu1 }
 0x1bf   :  { %1492 = vst.msk [vmem:[%s3369_s2 + $0x150] sm:$0xff] %vm1449_vm1, %v1363_v23  ;;  %v1598_v51 = vsel %vm1449_vm1, %v1363_v23, 0.0  ;;  %v1694_v25 = vmul.f32 %v1363_v23, %v1363_v23  ;;  %1504 = vst.msk [vmem:[%s3369_s2 + $0x1b0] sm:$0xff] %vm1449_vm1, %v3137_v13  ;;  %v1078_v12 = vpop.f32.mrb[87].mxu0  ;;  %v1405_v57 = vpop.f32.mrb[87].mxu1  ;;  %v1366_v63 = vadd.f32 %v3057_v19, %v1076_v55  ;;  %v3160_v17 = vadd.f32 %v2102_v59, %v2752_v16 }
 0x1c0   :  { %v1599_v4 = vadd.f32 %v1598_v51, %v1597_v9  ;;  %1502 = vst.msk [vmem:[%s3369_s2 + $0x1a0] sm:$0xff] %vm1449_vm1, %v3140_v5  ;;  %v3163_v53 = vadd.f32 %v1405_v57, %v2744_v8  ;;  %v1700_v12 = vmul.f32 %v3095_v27, %v3095_v27 }
 0x1c1   :  { %v1799_v14 = vsel %vm1449_vm1, %v1694_v25, 0.0  ;;  %1493 = vst.msk [vmem:[%s3369_s2 + $0x158] sm:$0xff] %vm1449_vm1, %v1366_v63  ;;  %v1600_v22 = vsel %vm1449_vm1, %v1366_v63, 0.0  ;;  %v1695_v45 = vmul.f32 %v1366_v63, %v1366_v63  ;;  %1505 = vst.msk [vmem:[%s3369_s2 + $0x1b8] sm:$0xff] %vm1449_vm1, %v3160_v17 }
 0x1c2   :  { %v1800_v10 = vadd.f32 %v1799_v14, %v1798_v61  ;;  %v1601_v26 = vadd.f32 %v1600_v22, %v1599_v4  ;;  %1503 = vst.msk [vmem:[%s3369_s2 + $0x1a8] sm:$0xff] %vm1449_vm1, %v3163_v53 }
 0x1c3   :  { %v1801_v8 = vsel %vm1449_vm1, %v1695_v45, 0.0  ;;  %v1702_v45 = vmul.f32 %v3092_v35, %v3092_v35 }
 0x1c4   :  { %v1081_v16 = vpop.f32.mrb[88].mxu0  ;;  %v2105_v19 = vpop.f32.mrb[88].mxu1  ;;  %v1802_v43 = vadd.f32 %v1801_v8, %v1800_v10  ;;  %v1612_v8 = vsel %vm1449_vm1, %v3117_v54, 0.0 }
 0x1c5   :  { %v1371_v29 = vadd.f32 %v3073_v7, %v1081_v16  ;;  %v3183_v1 = vadd.f32 %v2105_v19, %v2764_v28  ;;  %v1083_v21 = vpop.f32.mrb[89].mxu0  ;;  %v1418_v33 = vpop.f32.mrb[89].mxu1 }
 0x1c6   :  { %v3186_v30 = vadd.f32 %v1418_v33, %v2756_v20  ;;  %v1084_v37 = vpop.f32.mrb[90].mxu0  ;;  %v2106_v41 = vpop.f32.mrb[90].mxu1 }
 0x1c7   :  { %1494 = vst.msk [vmem:[%s3369_s2 + $0x160] sm:$0xff] %vm1449_vm1, %v1371_v29  ;;  %v1602_v38 = vsel %vm1449_vm1, %v1371_v29, 0.0  ;;  %v1696_v47 = vmul.f32 %v1371_v29, %v1371_v29  ;;  %1508 = vst.msk [vmem:[%s3369_s2 + $0x1d0] sm:$0xff] %vm1449_vm1, %v3183_v1  ;;  %v1086_v28 = vpop.f32.mrb[91].mxu0  ;;  %v1421_v7 = vpop.f32.mrb[91].mxu1  ;;  %v1374_v42 = vadd.f32 %v3082_v18, %v1084_v37  ;;  %v3206_v60 = vadd.f32 %v2106_v41, %v2768_v32 }
 0x1c8   :  { %v1603_v20 = vadd.f32 %v1602_v38, %v1601_v26  ;;  %1506 = vst.msk [vmem:[%s3369_s2 + $0x1c0] sm:$0xff] %vm1449_vm1, %v3186_v30  ;;  %v3209_v49 = vadd.f32 %v1421_v7, %v2760_v24  ;;  %v1811_v26 = vsel %vm1449_vm1, %v1700_v12, 0.0  ;;  %v1815_v37 = vsel %vm1449_vm1, %v1702_v45, 0.0 }
 0x1c9   :  { %v1803_v46 = vsel %vm1449_vm1, %v1696_v47, 0.0  ;;  %1495 = vst.msk [vmem:[%s3369_s2 + $0x168] sm:$0xff] %vm1449_vm1, %v1374_v42  ;;  %v1604_v39 = vsel %vm1449_vm1, %v1374_v42, 0.0  ;;  %v1697_v50 = vmul.f32 %v1374_v42, %v1374_v42  ;;  %1509 = vst.msk [vmem:[%s3369_s2 + $0x1d8] sm:$0xff] %vm1449_vm1, %v3206_v60  ;;  %v1616_v41 = vsel %vm1449_vm1, %v3114_v11, 0.0 }
 0x1ca   :  { %v1804_v52 = vadd.f32 %v1803_v46, %v1802_v43  ;;  %v1605_v15 = vadd.f32 %v1604_v39, %v1603_v20  ;;  %1507 = vst.msk [vmem:[%s3369_s2 + $0x1c8] sm:$0xff] %vm1449_vm1, %v3209_v49  ;;  %v1703_v43 = vmul.f32 %v3114_v11, %v3114_v11  ;;  %v1705_v7 = vmul.f32 %v3163_v53, %v3163_v53 }
 0x1cb   :  { %v1805_v24 = vsel %vm1449_vm1, %v1697_v50, 0.0  ;;  %v1706_v46 = vmul.f32 %v3137_v13, %v3137_v13 }
 0x1cc   :  { %v1089_v32 = vpop.f32.mrb[92].mxu0  ;;  %v2109_v18 = vpop.f32.mrb[92].mxu1  ;;  %v1806_v3 = vadd.f32 %v1805_v24, %v1804_v52  ;;  %v1817_v28 = vsel %vm1449_vm1, %v1703_v43, 0.0  ;;  %v1620_v52 = vsel %vm1449_vm1, %v3163_v53, 0.0  ;;  %v1821_v24 = vsel %vm1449_vm1, %v1705_v7, 0.0 }
 0x1cd   :  { %v1379_v58 = vadd.f32 %v3071_v6, %v1089_v32  ;;  %v3229_v9 = vadd.f32 %v2109_v18, %v2780_v44  ;;  %v1091_v56 = vpop.f32.mrb[93].mxu0  ;;  %v1434_v0 = vpop.f32.mrb[93].mxu1  ;;  %v1708_v53 = vmul.f32 %v3186_v30, %v3186_v30 }
 0x1ce   :  { %v3232_v31 = vadd.f32 %v1434_v0, %v2772_v36  ;;  %v1092_v61 = vpop.f32.mrb[94].mxu0  ;;  %v2110_v23 = vpop.f32.mrb[94].mxu1 }
 0x1cf   :  { %1496 = vst.msk [vmem:[%s3369_s2 + $0x170] sm:$0xff] %vm1449_vm1, %v1379_v58  ;;  %v1606_v62 = vsel %vm1449_vm1, %v1379_v58, 0.0  ;;  %v1698_v2 = vmul.f32 %v1379_v58, %v1379_v58  ;;  %1512 = vst.msk [vmem:[%s3369_s2 + $0x1f0] sm:$0xff] %vm1449_vm1, %v3229_v9  ;;  %v1094_v44 = vpop.f32.mrb[95].mxu0  ;;  %v1437_v6 = vpop.f32.mrb[95].mxu1  ;;  %v1382_v55 = vadd.f32 %v3075_v34, %v1092_v61  ;;  %v3252_v51 = vadd.f32 %v2110_v23, %v2784_v48 }
 0x1d0   :  { %v1607_v36 = vadd.f32 %v1606_v62, %v1605_v15  ;;  %1510 = vst.msk [vmem:[%s3369_s2 + $0x1e0] sm:$0xff] %vm1449_vm1, %v3232_v31  ;;  %v3255_v25 = vadd.f32 %v1437_v6, %v2776_v40  ;;  %v1610_v40 = vsel %vm1449_vm1, %v3095_v27, 0.0  ;;  %v1701_v48 = vmul.f32 %v3117_v54, %v3117_v54 }
 0x1d1   :  { %v1807_v59 = vsel %vm1449_vm1, %v1698_v2, 0.0  ;;  %1497 = vst.msk [vmem:[%s3369_s2 + $0x178] sm:$0xff] %vm1449_vm1, %v1382_v55  ;;  %v1608_v4 = vsel %vm1449_vm1, %v1382_v55, 0.0  ;;  %v1699_v34 = vmul.f32 %v1382_v55, %v1382_v55  ;;  %1513 = vst.msk [vmem:[%s3369_s2 + $0x1f8] sm:$0xff] %vm1449_vm1, %v3252_v51  ;;  %v1614_v27 = vsel %vm1449_vm1, %v3092_v35, 0.0 }
 0x1d2   :  { %v1808_v57 = vadd.f32 %v1807_v59, %v1806_v3  ;;  %v1609_v63 = vadd.f32 %v1608_v4, %v1607_v36  ;;  %1511 = vst.msk [vmem:[%s3369_s2 + $0x1e8] sm:$0xff] %vm1449_vm1, %v3255_v25  ;;  %v1813_v29 = vsel %vm1449_vm1, %v1701_v48, 0.0  ;;  %v1704_v54 = vmul.f32 %v3140_v5, %v3140_v5 }
 0x1d3   :  { %v1809_v14 = vsel %vm1449_vm1, %v1699_v34, 0.0  ;;  %v1618_v35 = vsel %vm1449_vm1, %v3140_v5, 0.0  ;;  %v1622_v15 = vsel %vm1449_vm1, %v3137_v13, 0.0  ;;  %v1707_v5 = vmul.f32 %v3160_v17, %v3160_v17 }
 0x1d4   :  { %v1611_v10 = vadd.f32 %v1610_v40, %v1609_v63  ;;  %v1810_v22 = vadd.f32 %v1809_v14, %v1808_v57  ;;  %v1819_v11 = vsel %vm1449_vm1, %v1704_v54, 0.0  ;;  %v1823_v3 = vsel %vm1449_vm1, %v1706_v46, 0.0 }
 0x1d5   :  { %v1624_v58 = vsel %vm1449_vm1, %v3160_v17, 0.0  ;;  %v1825_v61 = vsel %vm1449_vm1, %v1707_v5, 0.0  ;;  %v1626_v13 = vsel %vm1449_vm1, %v3186_v30, 0.0  ;;  %v1709_v23 = vmul.f32 %v3209_v49, %v3209_v49 }
 0x1d6   :  { %v1613_v16 = vadd.f32 %v1612_v8, %v1611_v10  ;;  %v1812_v19 = vadd.f32 %v1811_v26, %v1810_v22  ;;  %v1710_v44 = vmul.f32 %v3183_v1, %v3183_v1  ;;  %v1827_v17 = vsel %vm1449_vm1, %v1708_v53, 0.0 }
 0x1d7   :  { %v1628_v6 = vsel %vm1449_vm1, %v3209_v49, 0.0  ;;  %v1630_v59 = vsel %vm1449_vm1, %v3183_v1, 0.0  ;;  %v1711_v30 = vmul.f32 %v3206_v60, %v3206_v60  ;;  %v1829_v12 = vsel %vm1449_vm1, %v1709_v23, 0.0 }
 0x1d8   :  { %v1615_v21 = vadd.f32 %v1614_v27, %v1613_v16  ;;  %v1814_v33 = vadd.f32 %v1813_v29, %v1812_v19  ;;  %v1831_v34 = vsel %vm1449_vm1, %v1710_v44, 0.0  ;;  %v1632_v63 = vsel %vm1449_vm1, %v3206_v60, 0.0 }
 0x1d9   :  { %v1712_v49 = vmul.f32 %v3232_v31, %v3232_v31  ;;  %v1833_v14 = vsel %vm1449_vm1, %v1711_v30, 0.0  ;;  %v1634_v1 = vsel %vm1449_vm1, %v3232_v31, 0.0  ;;  %v1713_v10 = vmul.f32 %v3255_v25, %v3255_v25 }
 0x1da   :  { %v1617_v38 = vadd.f32 %v1616_v41, %v1615_v21  ;;  %v1816_v47 = vadd.f32 %v1815_v37, %v1814_v33  ;;  %v1714_v26 = vmul.f32 %v3229_v9, %v3229_v9  ;;  %v1636_v8 = vsel %vm1449_vm1, %v3255_v25, 0.0 }
 0x1db   :  { %v1835_v60 = vsel %vm1449_vm1, %v1712_v49, 0.0  ;;  %v1638_v27 = vsel %vm1449_vm1, %v3229_v9, 0.0  ;;  %v1715_v31 = vmul.f32 %v3252_v51, %v3252_v51  ;;  %v1837_v43 = vsel %vm1449_vm1, %v1713_v10, 0.0 }
 0x1dc   :  { %v1619_v20 = vadd.f32 %v1618_v35, %v1617_v38  ;;  %v1818_v42 = vadd.f32 %v1817_v28, %v1816_v47  ;;  %v1839_v33 = vsel %vm1449_vm1, %v1714_v26, 0.0  ;;  %v1640_v37 = vsel %vm1449_vm1, %v3252_v51, 0.0 }
 0x1dd   :  { %v1841_v25 = vsel %vm1449_vm1, %v1715_v31, 0.0 }
 0x1de   :  { %v1621_v39 = vadd.f32 %v1620_v52, %v1619_v20  ;;  %v1820_v50 = vadd.f32 %v1819_v11, %v1818_v42  ;;  %v1514_v52 = vld [vmem:[%s3370_s3] sm:$0x1] }
 0x1e0   :  { %v1822_v32 = vadd.f32 %v1821_v24, %v1820_v50  ;;  %v1623_v18 = vadd.f32 %v1622_v15, %v1621_v39  ;;  %v1651_v50 = vld [vmem:[%s3371_s4] sm:$0x1] }
 0x1e2   :  { %v1625_v56 = vadd.f32 %v1624_v58, %v1623_v18  ;;  %v1824_v0 = vadd.f32 %v1823_v3, %v1822_v32 }
 0x1e4   :  { %v1627_v62 = vadd.f32 %v1626_v13, %v1625_v56  ;;  %v1826_v2 = vadd.f32 %v1825_v61, %v1824_v0 }
 0x1e6   :  { %v1629_v36 = vadd.f32 %v1628_v6, %v1627_v62  ;;  %v1828_v55 = vadd.f32 %v1827_v17, %v1826_v2 }
 0x1e8   :  { %v1631_v57 = vadd.f32 %v1630_v59, %v1629_v36  ;;  %v1830_v4 = vadd.f32 %v1829_v12, %v1828_v55 }
 0x1ea   :  { %v1633_v40 = vadd.f32 %v1632_v63, %v1631_v57  ;;  %v1832_v48 = vadd.f32 %v1831_v34, %v1830_v4 }
 0x1ec   :  { %v1635_v22 = vadd.f32 %v1634_v1, %v1633_v40  ;;  %v1834_v45 = vadd.f32 %v1833_v14, %v1832_v48 }
 0x1ee   :  { %v1637_v16 = vadd.f32 %v1636_v8, %v1635_v22  ;;  %v1836_v19 = vadd.f32 %v1835_v60, %v1834_v45 }
 0x1f0   :  { %v1639_v29 = vadd.f32 %v1638_v27, %v1637_v16  ;;  %v1838_v21 = vadd.f32 %v1837_v43, %v1836_v19 }
 0x1f2   :  { %v1641_v41 = vadd.f32 %v1640_v37, %v1639_v29  ;;  %v1840_v54 = vadd.f32 %v1839_v33, %v1838_v21 }
 0x1f4   :  { %v1642_v38 = vrot.slane %v1641_v41, 4  ;;  %v1842_v47 = vadd.f32 %v1841_v25, %v1840_v54 }
 0x1f6   :  { %v1643_v28 = vadd.f32 %v1642_v38, %v1641_v41  ;;  %v1843_v9 = vrot.slane %v1842_v47, 4 }
 0x1f8   :  { %v1644_v35 = vrot.slane %v1643_v28, 2  ;;  %v1844_v7 = vadd.f32 %v1843_v9, %v1842_v47 }
 0x1fa   :  { %v1645_v20 = vadd.f32 %v1644_v35, %v1643_v28  ;;  %v1845_v42 = vrot.slane %v1844_v7, 2 }
 0x1fc   :  { %v1646_v46 = vrot.slane %v1645_v20, 1  ;;  %v1846_v11 = vadd.f32 %v1845_v42, %v1844_v7 }
 0x1fe   :  { %v1647_v39 = vadd.f32 %v1646_v46, %v1645_v20  ;;  %v1847_v51 = vrot.slane %v1846_v11, 1 }
 0x200   :  { %v1648_v15 = vadd.f32 %v1647_v39, %v1514_v52  ;;  %v1848_v5 = vadd.f32 %v1847_v51, %v1846_v11 }
 0x202   :  { %1650 = vst.msk [vmem:[%s3370_s3] sm:$0x1] %vm19_vm2, %v1648_v15  ;;  %v1849_v24 = vadd.f32 %v1848_v5, %v1651_v50 }
 0x204   :  { %1850 = vst.msk [vmem:[%s3371_s4] sm:$0x1] %vm19_vm2, %v1849_v24 }

// kernel: tile.83
= control target key start
LH: loop header
LB: loop body
LE: loop exit
PB: predicated region body
PF: predicated region fallthrough
CT: control target
= control target key end

     0   :  { %s22_s0 = inlined_call_operand.vmem [shape: f32[16], index: 0, kind: input, shape index: {}]   ;;  %s23_s1 = inlined_call_operand.vmem [shape: f32[4,16], index: 1, kind: output, shape index: {}]  }
   0x1   :  { %v4_v0 = vld [vmem:[%s22_s0] ss:$0 sm:$0xff] }
   0x2   :  { %5 = vst [vmem:[%s23_s1] sm:$0xf] %v4_v0 }

// kernel: tile.84
= control target key start
LH: loop header
LB: loop body
LE: loop exit
PB: predicated region body
PF: predicated region fallthrough
CT: control target
= control target key end

     0   :  { %vm7_vm0 = vcmask 130048   ;;  %s37_s8 = smov 16   ;;  %s38_s9 = smov 32   ;;  %vm13_vm1 = vcmask 523648   ;;  %vm19_vm2 = vcmask 392448   ;;  %vm25_vm3 = vcmask 261248   ;;  %s55_s0 = inlined_call_operand.vmem [shape: f32[4,16], index: 0, kind: input, shape index: {}]   ;;  %s56_s1 = inlined_call_operand.vmem [shape: f32[1,64], index: 1, kind: output, shape index: {}]  }
   0x1   :  { %v4_v0 = vld [vmem:[%s55_s0] sm:$0xf]  ;;  %s36_s0 = smov 48  }
   0x2   :  { %5 = vst [vmem:[#allocation1] sm:$0xf] %v4_v0 }
   0x9   :  { %v10_v1 = vld [vmem:[#allocation1 + $0x3] sm:$0x1]   ;;  %v22_v2 = vld [vmem:[#allocation1 + $0x1] sm:$0x1]   ;;  %v6_v3 = vld [vmem:[#allocation1] sm:$0x1]  }
   0xa   :  { %11 = vrot.lane.b32.xlu0 %v10_v1, %s36_s0  ;;  %23 = vrot.lane.b32.xlu1 %v22_v2, %s37_s8  ;;  %v16_v4 = vld [vmem:[#allocation1 + $0x2] sm:$0x1]   ;;  %8 = vst.msk [vmem:[#allocation0] sm:$0x1] %vm7_vm0, %v6_v3  }
   0xe   :  { %17 = vrot.lane.b32.xlu0 %v16_v4, %s38_s9 }
  0x7c   :  { %v12_v5 = vpop.permute.xlu0 %11   ;;  %v24_v6 = vpop.permute.xlu1 %23  }
  0x7d   :  { %14 = vst.msk [vmem:[#allocation0] sm:$0x1] %vm13_vm1, %v12_v5  }
  0x80   :  { %v18_v7 = vpop.permute.xlu0 %17  }
  0x81   :  { %20 = vst.msk [vmem:[#allocation0] sm:$0x1] %vm19_vm2, %v18_v7  }
  0x82   :  { %26 = vst.msk [vmem:[#allocation0] sm:$0x1] %vm25_vm3, %v24_v6  }
  0x89   :  { %v30_v8 = vld [vmem:[#allocation0] sm:$0x1] }
  0x8a   :  { %32 = vst [vmem:[%s56_s1] sm:$0x1] %v30_v8 }

// kernel: generator_forward.16
= control target key start
LH: loop header
LB: loop body
LE: loop exit
PB: predicated region body
PF: predicated region fallthrough
CT: control target
= control target key end

     0   :  { %vm540_vm0 = vcmask 519168   ;;  %s1345_s0 = inlined_call_operand.vmem [shape: f32[512,64], index: 0, kind: input, shape index: {}]   ;;  %s1346_s1 = inlined_call_operand.vmem [shape: f32[1,64], index: 1, kind: input, shape index: {}]   ;;  %s1347_s2 = inlined_call_operand.vmem [shape: f32[1,64], index: 2, kind: input, shape index: {}]   ;;  %s1348_s3 = inlined_call_operand.vmem [shape: bf16[512,64], index: 3, kind: output, shape index: {}]  }
   0x1   :  { %v14_v0 = vld [vmem:[%s1345_s0] sm:$0xff]  ;;  %v15_v4 = vld [vmem:[%s1345_s0 + $0x8] sm:$0xff]  ;;  %v16_v5 = vld [vmem:[%s1345_s0 + $0x10] sm:$0xff] }
   0x2   :  { %v765_v1 = vld [vmem:[%s1346_s1] ss:$0 sm:$0xff]  ;;  %v17_v6 = vld [vmem:[%s1345_s0 + $0x18] sm:$0xff]  ;;  %v19_v11 = vld [vmem:[%s1345_s0 + $0x28] sm:$0xff] }
   0x3   :  { %v770_v2 = vld [vmem:[%s1347_s2] ss:$0 sm:$0xff]  ;;  %v85_v3 = vmul.f32 %v765_v1, %v14_v0  ;;  %v86_v7 = vmul.f32 %v765_v1, %v15_v4  ;;  %v87_v8 = vmul.f32 %v765_v1, %v16_v5  ;;  %v88_v9 = vmul.f32 %v765_v1, %v17_v6  ;;  %v20_v12 = vld [vmem:[%s1345_s0 + $0x30] sm:$0xff]  ;;  %v21_v17 = vld [vmem:[%s1345_s0 + $0x38] sm:$0xff] }
   0x4   :  { %v18_v10 = vld [vmem:[%s1345_s0 + $0x20] sm:$0xff]  ;;  %v90_v15 = vmul.f32 %v765_v1, %v19_v11  ;;  %v91_v16 = vmul.f32 %v765_v1, %v20_v12  ;;  %v92_v21 = vmul.f32 %v765_v1, %v21_v17  ;;  %v23_v35 = vld [vmem:[%s1345_s0 + $0x48] sm:$0xff]  ;;  %v24_v36 = vld [vmem:[%s1345_s0 + $0x50] sm:$0xff] }
   0x5   :  { %v156_v13 = vadd.f32 %v770_v2, %v85_v3  ;;  %v89_v14 = vmul.f32 %v765_v1, %v18_v10  ;;  %v157_v18 = vadd.f32 %v770_v2, %v86_v7  ;;  %v158_v19 = vadd.f32 %v770_v2, %v87_v8  ;;  %v22_v30 = vld [vmem:[%s1345_s0 + $0x40] sm:$0xff]  ;;  %v25_v37 = vld [vmem:[%s1345_s0 + $0x58] sm:$0xff]  ;;  %v27_v43 = vld [vmem:[%s1345_s0 + $0x68] sm:$0xff] }
   0x6   :  { %v159_v20 = vadd.f32 %v770_v2, %v88_v9  ;;  %v161_v24 = vadd.f32 %v770_v2, %v90_v15  ;;  %v162_v25 = vadd.f32 %v770_v2, %v91_v16  ;;  %v163_v29 = vadd.f32 %v770_v2, %v92_v21  ;;  %v26_v42 = vld [vmem:[%s1345_s0 + $0x60] sm:$0xff]  ;;  %v28_v44 = vld [vmem:[%s1345_s0 + $0x70] sm:$0xff]  ;;  %v29_v49 = vld [vmem:[%s1345_s0 + $0x78] sm:$0xff] }
   0x7   :  { %v220_v22 = vmax.f32 %v156_v13, 0.0  ;;  %v160_v23 = vadd.f32 %v770_v2, %v89_v14  ;;  %v221_v26 = vmax.f32 %v157_v18, 0.0  ;;  %v222_v27 = vmax.f32 %v158_v19, 0.0  ;;  %v30_v8 = vld [vmem:[%s1345_s0 + $0x80] sm:$0xff]  ;;  %v31_v13 = vld [vmem:[%s1345_s0 + $0x88] sm:$0xff]  ;;  %v32_v14 = vld [vmem:[%s1345_s0 + $0x90] sm:$0xff] }
   0x8   :  { %v223_v28 = vmax.f32 %v159_v20, 0.0  ;;  %v225_v33 = vmax.f32 %v161_v24, 0.0  ;;  %v226_v34 = vmax.f32 %v162_v25, 0.0  ;;  %v227_v41 = vmax.f32 %v163_v29, 0.0  ;;  %v33_v15 = vld [vmem:[%s1345_s0 + $0x98] sm:$0xff]  ;;  %v34_v20 = vld [vmem:[%s1345_s0 + $0xa0] sm:$0xff] }
   0x9   :  { %v675_v31 = vpack.c.bf16 %v220_v22, %v220_v22  ;;  %v224_v32 = vmax.f32 %v160_v23, 0.0  ;;  %v676_v38 = vpack.c.bf16 %v221_v26, %v221_v26  ;;  %v677_v39 = vpack.c.bf16 %v222_v27, %v222_v27  ;;  %v35_v21 = vld [vmem:[%s1345_s0 + $0xa8] sm:$0xff]  ;;  %v36_v22 = vld [vmem:[%s1345_s0 + $0xb0] sm:$0xff]  ;;  %v37_v27 = vld [vmem:[%s1345_s0 + $0xb8] sm:$0xff] }
   0xa   :  { %v678_v40 = vpack.c.bf16 %v223_v28, %v223_v28  ;;  %v680_v46 = vpack.c.bf16 %v225_v33, %v225_v33  ;;  %v681_v47 = vpack.c.bf16 %v226_v34, %v226_v34  ;;  %v93_v48 = vmul.f32 %v765_v1, %v22_v30 }
   0xb   :  { %541 = vst.msk [vmem:[%s1348_s3] sm:$0xf] %vm540_vm0, %v675_v31  ;;  %v679_v45 = vpack.c.bf16 %v224_v32, %v224_v32  ;;  %542 = vst.msk [vmem:[%s1348_s3 + $0x4] sm:$0xf] %vm540_vm0, %v676_v38  ;;  %v682_v50 = vpack.c.bf16 %v227_v41, %v227_v41  ;;  %v94_v51 = vmul.f32 %v765_v1, %v23_v35 }
   0xc   :  { %543 = vst.msk [vmem:[%s1348_s3 + $0x8] sm:$0xf] %vm540_vm0, %v677_v39  ;;  %544 = vst.msk [vmem:[%s1348_s3 + $0xc] sm:$0xf] %vm540_vm0, %v678_v40  ;;  %v95_v52 = vmul.f32 %v765_v1, %v24_v36  ;;  %v96_v53 = vmul.f32 %v765_v1, %v25_v37  ;;  %v164_v54 = vadd.f32 %v770_v2, %v93_v48  ;;  %v38_v48 = vld [vmem:[%s1345_s0 + $0xc0] sm:$0xff] }
   0xd   :  { %545 = vst.msk [vmem:[%s1348_s3 + $0x10] sm:$0xf] %vm540_vm0, %v679_v45  ;;  %546 = vst.msk [vmem:[%s1348_s3 + $0x14] sm:$0xf] %vm540_vm0, %v680_v46  ;;  %v97_v55 = vmul.f32 %v765_v1, %v26_v42  ;;  %v98_v56 = vmul.f32 %v765_v1, %v27_v43  ;;  %v99_v57 = vmul.f32 %v765_v1, %v28_v44 }
   0xe   :  { %547 = vst.msk [vmem:[%s1348_s3 + $0x18] sm:$0xf] %vm540_vm0, %v681_v47  ;;  %548 = vst.msk [vmem:[%s1348_s3 + $0x1c] sm:$0xf] %vm540_vm0, %v682_v50  ;;  %v165_v58 = vadd.f32 %v770_v2, %v94_v51  ;;  %v166_v59 = vadd.f32 %v770_v2, %v95_v52  ;;  %v167_v60 = vadd.f32 %v770_v2, %v96_v53  ;;  %v228_v62 = vmax.f32 %v164_v54, 0.0  ;;  %v39_v53 = vld [vmem:[%s1345_s0 + $0xc8] sm:$0xff] }
   0xf   :  { %v100_v61 = vmul.f32 %v765_v1, %v29_v49  ;;  %v168_v63 = vadd.f32 %v770_v2, %v97_v55  ;;  %v169_v0 = vadd.f32 %v770_v2, %v98_v56  ;;  %v170_v3 = vadd.f32 %v770_v2, %v99_v57  ;;  %v40_v54 = vld [vmem:[%s1345_s0 + $0xd0] sm:$0xff]  ;;  %v41_v55 = vld [vmem:[%s1345_s0 + $0xd8] sm:$0xff] }
  0x10   :  { %v229_v4 = vmax.f32 %v165_v58, 0.0  ;;  %v230_v5 = vmax.f32 %v166_v59, 0.0  ;;  %v231_v6 = vmax.f32 %v167_v60, 0.0  ;;  %v683_v9 = vpack.c.bf16 %v228_v62, %v228_v62  ;;  %v42_v60 = vld [vmem:[%s1345_s0 + $0xe0] sm:$0xff]  ;;  %v44_v62 = vld [vmem:[%s1345_s0 + $0xf0] sm:$0xff] }
  0x11   :  { %v171_v7 = vadd.f32 %v770_v2, %v100_v61  ;;  %v232_v10 = vmax.f32 %v168_v63, 0.0  ;;  %v233_v11 = vmax.f32 %v169_v0, 0.0  ;;  %v234_v12 = vmax.f32 %v170_v3, 0.0  ;;  %v43_v61 = vld [vmem:[%s1345_s0 + $0xe8] sm:$0xff] }
  0x12   :  { %v684_v16 = vpack.c.bf16 %v229_v4, %v229_v4  ;;  %v685_v17 = vpack.c.bf16 %v230_v5, %v230_v5  ;;  %v686_v18 = vpack.c.bf16 %v231_v6, %v231_v6  ;;  %549 = vst.msk [vmem:[%s1348_s3 + $0x20] sm:$0xf] %vm540_vm0, %v683_v9  ;;  %v101_v26 = vmul.f32 %v765_v1, %v30_v8  ;;  %v45_v5 = vld [vmem:[%s1345_s0 + $0xf8] sm:$0xff] }
  0x13   :  { %v235_v19 = vmax.f32 %v171_v7, 0.0  ;;  %v687_v23 = vpack.c.bf16 %v232_v10, %v232_v10  ;;  %v688_v24 = vpack.c.bf16 %v233_v11, %v233_v11  ;;  %v689_v25 = vpack.c.bf16 %v234_v12, %v234_v12 }
  0x14   :  { %550 = vst.msk [vmem:[%s1348_s3 + $0x24] sm:$0xf] %vm540_vm0, %v684_v16  ;;  %551 = vst.msk [vmem:[%s1348_s3 + $0x28] sm:$0xf] %vm540_vm0, %v685_v17  ;;  %v102_v29 = vmul.f32 %v765_v1, %v31_v13  ;;  %v103_v30 = vmul.f32 %v765_v1, %v32_v14  ;;  %v104_v31 = vmul.f32 %v765_v1, %v33_v15 }
  0x15   :  { %552 = vst.msk [vmem:[%s1348_s3 + $0x2c] sm:$0xf] %vm540_vm0, %v686_v18  ;;  %v690_v28 = vpack.c.bf16 %v235_v19, %v235_v19  ;;  %553 = vst.msk [vmem:[%s1348_s3 + $0x30] sm:$0xf] %vm540_vm0, %v687_v23  ;;  %v172_v32 = vadd.f32 %v770_v2, %v101_v26  ;;  %v105_v33 = vmul.f32 %v765_v1, %v34_v20  ;;  %v46_v26 = vld [vmem:[%s1345_s0 + $0x100] sm:$0xff] }
  0x16   :  { %554 = vst.msk [vmem:[%s1348_s3 + $0x34] sm:$0xf] %vm540_vm0, %v688_v24  ;;  %555 = vst.msk [vmem:[%s1348_s3 + $0x38] sm:$0xf] %vm540_vm0, %v689_v25  ;;  %v106_v34 = vmul.f32 %v765_v1, %v35_v21  ;;  %v107_v35 = vmul.f32 %v765_v1, %v36_v22  ;;  %v173_v36 = vadd.f32 %v770_v2, %v102_v29 }
  0x17   :  { %556 = vst.msk [vmem:[%s1348_s3 + $0x3c] sm:$0xf] %vm540_vm0, %v690_v28  ;;  %v174_v37 = vadd.f32 %v770_v2, %v103_v30  ;;  %v175_v38 = vadd.f32 %v770_v2, %v104_v31  ;;  %v108_v39 = vmul.f32 %v765_v1, %v37_v27  ;;  %v236_v40 = vmax.f32 %v172_v32, 0.0  ;;  %v47_v31 = vld [vmem:[%s1345_s0 + $0x108] sm:$0xff]  ;;  %v48_v32 = vld [vmem:[%s1345_s0 + $0x110] sm:$0xff] }
  0x18   :  { %v176_v41 = vadd.f32 %v770_v2, %v105_v33  ;;  %v177_v42 = vadd.f32 %v770_v2, %v106_v34  ;;  %v178_v43 = vadd.f32 %v770_v2, %v107_v35  ;;  %v237_v44 = vmax.f32 %v173_v36, 0.0  ;;  %v49_v33 = vld [vmem:[%s1345_s0 + $0x118] sm:$0xff] }
  0x19   :  { %v238_v45 = vmax.f32 %v174_v37, 0.0  ;;  %v239_v46 = vmax.f32 %v175_v38, 0.0  ;;  %v179_v47 = vadd.f32 %v770_v2, %v108_v39  ;;  %v691_v49 = vpack.c.bf16 %v236_v40, %v236_v40  ;;  %v50_v38 = vld [vmem:[%s1345_s0 + $0x120] sm:$0xff]  ;;  %v51_v39 = vld [vmem:[%s1345_s0 + $0x128] sm:$0xff]  ;;  %v52_v40 = vld [vmem:[%s1345_s0 + $0x130] sm:$0xff] }
  0x1a   :  { %v240_v50 = vmax.f32 %v176_v41, 0.0  ;;  %v241_v51 = vmax.f32 %v177_v42, 0.0  ;;  %v242_v52 = vmax.f32 %v178_v43, 0.0  ;;  %v692_v56 = vpack.c.bf16 %v237_v44, %v237_v44 }
  0x1b   :  { %v693_v57 = vpack.c.bf16 %v238_v45, %v238_v45  ;;  %v694_v58 = vpack.c.bf16 %v239_v46, %v239_v46  ;;  %v243_v59 = vmax.f32 %v179_v47, 0.0  ;;  %557 = vst.msk [vmem:[%s1348_s3 + $0x40] sm:$0xf] %vm540_vm0, %v691_v49  ;;  %v109_v4 = vmul.f32 %v765_v1, %v38_v48  ;;  %v53_v45 = vld [vmem:[%s1345_s0 + $0x138] sm:$0xff] }
  0x1c   :  { %v695_v63 = vpack.c.bf16 %v240_v50, %v240_v50  ;;  %v696_v0 = vpack.c.bf16 %v241_v51, %v241_v51  ;;  %v697_v3 = vpack.c.bf16 %v242_v52, %v242_v52  ;;  %558 = vst.msk [vmem:[%s1348_s3 + $0x44] sm:$0xf] %vm540_vm0, %v692_v56  ;;  %v110_v7 = vmul.f32 %v765_v1, %v39_v53 }
  0x1d   :  { %559 = vst.msk [vmem:[%s1348_s3 + $0x48] sm:$0xf] %vm540_vm0, %v693_v57  ;;  %560 = vst.msk [vmem:[%s1348_s3 + $0x4c] sm:$0xf] %vm540_vm0, %v694_v58  ;;  %v698_v6 = vpack.c.bf16 %v243_v59, %v243_v59  ;;  %v111_v8 = vmul.f32 %v765_v1, %v40_v54  ;;  %v112_v9 = vmul.f32 %v765_v1, %v41_v55 }
  0x1e   :  { %561 = vst.msk [vmem:[%s1348_s3 + $0x50] sm:$0xf] %vm540_vm0, %v695_v63  ;;  %562 = vst.msk [vmem:[%s1348_s3 + $0x54] sm:$0xf] %vm540_vm0, %v696_v0  ;;  %v180_v10 = vadd.f32 %v770_v2, %v109_v4  ;;  %v113_v11 = vmul.f32 %v765_v1, %v42_v60  ;;  %v114_v12 = vmul.f32 %v765_v1, %v43_v61  ;;  %v54_v4 = vld [vmem:[%s1345_s0 + $0x140] sm:$0xff] }
  0x1f   :  { %563 = vst.msk [vmem:[%s1348_s3 + $0x58] sm:$0xf] %vm540_vm0, %v697_v3  ;;  %v115_v13 = vmul.f32 %v765_v1, %v44_v62  ;;  %564 = vst.msk [vmem:[%s1348_s3 + $0x5c] sm:$0xf] %vm540_vm0, %v698_v6  ;;  %v181_v14 = vadd.f32 %v770_v2, %v110_v7  ;;  %v182_v15 = vadd.f32 %v770_v2, %v111_v8 }
  0x20   :  { %v183_v16 = vadd.f32 %v770_v2, %v112_v9  ;;  %v116_v17 = vmul.f32 %v765_v1, %v45_v5  ;;  %v244_v18 = vmax.f32 %v180_v10, 0.0  ;;  %v184_v19 = vadd.f32 %v770_v2, %v113_v11  ;;  %v55_v9 = vld [vmem:[%s1345_s0 + $0x148] sm:$0xff]  ;;  %v56_v10 = vld [vmem:[%s1345_s0 + $0x150] sm:$0xff]  ;;  %v57_v11 = vld [vmem:[%s1345_s0 + $0x158] sm:$0xff] }
  0x21   :  { %v185_v20 = vadd.f32 %v770_v2, %v114_v12  ;;  %v186_v21 = vadd.f32 %v770_v2, %v115_v13  ;;  %v245_v22 = vmax.f32 %v181_v14, 0.0  ;;  %v246_v23 = vmax.f32 %v182_v15, 0.0 }
  0x22   :  { %v247_v24 = vmax.f32 %v183_v16, 0.0  ;;  %v187_v25 = vadd.f32 %v770_v2, %v116_v17  ;;  %v699_v27 = vpack.c.bf16 %v244_v18, %v244_v18  ;;  %v248_v28 = vmax.f32 %v184_v19, 0.0  ;;  %v58_v16 = vld [vmem:[%s1345_s0 + $0x160] sm:$0xff]  ;;  %v59_v17 = vld [vmem:[%s1345_s0 + $0x168] sm:$0xff]  ;;  %v60_v18 = vld [vmem:[%s1345_s0 + $0x170] sm:$0xff] }
  0x23   :  { %v249_v29 = vmax.f32 %v185_v20, 0.0  ;;  %v250_v30 = vmax.f32 %v186_v21, 0.0  ;;  %v700_v34 = vpack.c.bf16 %v245_v22, %v245_v22  ;;  %v701_v35 = vpack.c.bf16 %v246_v23, %v246_v23  ;;  %v61_v23 = vld [vmem:[%s1345_s0 + $0x178] sm:$0xff] }
  0x24   :  { %v702_v36 = vpack.c.bf16 %v247_v24, %v247_v24  ;;  %v251_v37 = vmax.f32 %v187_v25, 0.0  ;;  %565 = vst.msk [vmem:[%s1348_s3 + $0x60] sm:$0xf] %vm540_vm0, %v699_v27  ;;  %v703_v41 = vpack.c.bf16 %v248_v28, %v248_v28  ;;  %v117_v44 = vmul.f32 %v765_v1, %v46_v26 }
  0x25   :  { %v704_v42 = vpack.c.bf16 %v249_v29, %v249_v29  ;;  %v705_v43 = vpack.c.bf16 %v250_v30, %v250_v30  ;;  %566 = vst.msk [vmem:[%s1348_s3 + $0x64] sm:$0xf] %vm540_vm0, %v700_v34  ;;  %567 = vst.msk [vmem:[%s1348_s3 + $0x68] sm:$0xf] %vm540_vm0, %v701_v35  ;;  %v118_v47 = vmul.f32 %v765_v1, %v47_v31 }
  0x26   :  { %568 = vst.msk [vmem:[%s1348_s3 + $0x6c] sm:$0xf] %vm540_vm0, %v702_v36  ;;  %v706_v46 = vpack.c.bf16 %v251_v37, %v251_v37  ;;  %v119_v48 = vmul.f32 %v765_v1, %v48_v32  ;;  %v120_v49 = vmul.f32 %v765_v1, %v49_v33  ;;  %569 = vst.msk [vmem:[%s1348_s3 + $0x70] sm:$0xf] %vm540_vm0, %v703_v41 }
  0x27   :  { %570 = vst.msk [vmem:[%s1348_s3 + $0x74] sm:$0xf] %vm540_vm0, %v704_v42  ;;  %571 = vst.msk [vmem:[%s1348_s3 + $0x78] sm:$0xf] %vm540_vm0, %v705_v43  ;;  %v188_v50 = vadd.f32 %v770_v2, %v117_v44  ;;  %v121_v51 = vmul.f32 %v765_v1, %v50_v38  ;;  %v122_v52 = vmul.f32 %v765_v1, %v51_v39  ;;  %v62_v44 = vld [vmem:[%s1345_s0 + $0x180] sm:$0xff] }
  0x28   :  { %v123_v53 = vmul.f32 %v765_v1, %v52_v40  ;;  %572 = vst.msk [vmem:[%s1348_s3 + $0x7c] sm:$0xf] %vm540_vm0, %v706_v46  ;;  %v189_v54 = vadd.f32 %v770_v2, %v118_v47  ;;  %v190_v55 = vadd.f32 %v770_v2, %v119_v48  ;;  %v191_v56 = vadd.f32 %v770_v2, %v120_v49  ;;  %v63_v49 = vld [vmem:[%s1345_s0 + $0x188] sm:$0xff] }
  0x29   :  { %v124_v57 = vmul.f32 %v765_v1, %v53_v45  ;;  %v252_v58 = vmax.f32 %v188_v50, 0.0  ;;  %v192_v59 = vadd.f32 %v770_v2, %v121_v51  ;;  %v193_v60 = vadd.f32 %v770_v2, %v122_v52  ;;  %v64_v50 = vld [vmem:[%s1345_s0 + $0x190] sm:$0xff]  ;;  %v65_v51 = vld [vmem:[%s1345_s0 + $0x198] sm:$0xff] }
  0x2a   :  { %v194_v61 = vadd.f32 %v770_v2, %v123_v53  ;;  %v253_v62 = vmax.f32 %v189_v54, 0.0  ;;  %v254_v63 = vmax.f32 %v190_v55, 0.0  ;;  %v255_v0 = vmax.f32 %v191_v56, 0.0  ;;  %v66_v56 = vld [vmem:[%s1345_s0 + $0x1a0] sm:$0xff] }
  0x2b   :  { %v195_v3 = vadd.f32 %v770_v2, %v124_v57  ;;  %v707_v5 = vpack.c.bf16 %v252_v58, %v252_v58  ;;  %v256_v6 = vmax.f32 %v192_v59, 0.0  ;;  %v257_v7 = vmax.f32 %v193_v60, 0.0  ;;  %v67_v57 = vld [vmem:[%s1345_s0 + $0x1a8] sm:$0xff]  ;;  %v68_v58 = vld [vmem:[%s1345_s0 + $0x1b0] sm:$0xff] }
  0x2c   :  { %v258_v8 = vmax.f32 %v194_v61, 0.0  ;;  %v708_v12 = vpack.c.bf16 %v253_v62, %v253_v62  ;;  %v709_v13 = vpack.c.bf16 %v254_v63, %v254_v63  ;;  %v710_v14 = vpack.c.bf16 %v255_v0, %v255_v0  ;;  %v69_v63 = vld [vmem:[%s1345_s0 + $0x1b8] sm:$0xff] }
  0x2d   :  { %v259_v15 = vmax.f32 %v195_v3, 0.0  ;;  %573 = vst.msk [vmem:[%s1348_s3 + $0x80] sm:$0xf] %vm540_vm0, %v707_v5  ;;  %v711_v19 = vpack.c.bf16 %v256_v6, %v256_v6  ;;  %v712_v20 = vpack.c.bf16 %v257_v7, %v257_v7  ;;  %v125_v22 = vmul.f32 %v765_v1, %v54_v4 }
  0x2e   :  { %v713_v21 = vpack.c.bf16 %v258_v8, %v258_v8  ;;  %574 = vst.msk [vmem:[%s1348_s3 + $0x84] sm:$0xf] %vm540_vm0, %v708_v12  ;;  %575 = vst.msk [vmem:[%s1348_s3 + $0x88] sm:$0xf] %vm540_vm0, %v709_v13  ;;  %v126_v25 = vmul.f32 %v765_v1, %v55_v9  ;;  %v127_v26 = vmul.f32 %v765_v1, %v56_v10 }
  0x2f   :  { %576 = vst.msk [vmem:[%s1348_s3 + $0x8c] sm:$0xf] %vm540_vm0, %v710_v14  ;;  %v714_v24 = vpack.c.bf16 %v259_v15, %v259_v15  ;;  %v128_v27 = vmul.f32 %v765_v1, %v57_v11  ;;  %577 = vst.msk [vmem:[%s1348_s3 + $0x90] sm:$0xf] %vm540_vm0, %v711_v19  ;;  %v196_v28 = vadd.f32 %v770_v2, %v125_v22  ;;  %v70_v22 = vld [vmem:[%s1345_s0 + $0x1c0] sm:$0xff] }
  0x30   :  { %578 = vst.msk [vmem:[%s1348_s3 + $0x94] sm:$0xf] %vm540_vm0, %v712_v20  ;;  %579 = vst.msk [vmem:[%s1348_s3 + $0x98] sm:$0xf] %vm540_vm0, %v713_v21  ;;  %v129_v29 = vmul.f32 %v765_v1, %v58_v16  ;;  %v130_v30 = vmul.f32 %v765_v1, %v59_v17  ;;  %v131_v31 = vmul.f32 %v765_v1, %v60_v18 }
  0x31   :  { %580 = vst.msk [vmem:[%s1348_s3 + $0x9c] sm:$0xf] %vm540_vm0, %v714_v24  ;;  %v197_v32 = vadd.f32 %v770_v2, %v126_v25  ;;  %v198_v33 = vadd.f32 %v770_v2, %v127_v26  ;;  %v199_v34 = vadd.f32 %v770_v2, %v128_v27  ;;  %v132_v35 = vmul.f32 %v765_v1, %v61_v23  ;;  %v71_v27 = vld [vmem:[%s1345_s0 + $0x1c8] sm:$0xff] }
  0x32   :  { %v260_v36 = vmax.f32 %v196_v28, 0.0  ;;  %v200_v37 = vadd.f32 %v770_v2, %v129_v29  ;;  %v201_v38 = vadd.f32 %v770_v2, %v130_v30  ;;  %v202_v39 = vadd.f32 %v770_v2, %v131_v31  ;;  %v72_v28 = vld [vmem:[%s1345_s0 + $0x1d0] sm:$0xff]  ;;  %v73_v29 = vld [vmem:[%s1345_s0 + $0x1d8] sm:$0xff] }
  0x33   :  { %v261_v40 = vmax.f32 %v197_v32, 0.0  ;;  %v262_v41 = vmax.f32 %v198_v33, 0.0  ;;  %v263_v42 = vmax.f32 %v199_v34, 0.0  ;;  %v203_v43 = vadd.f32 %v770_v2, %v132_v35  ;;  %v74_v34 = vld [vmem:[%s1345_s0 + $0x1e0] sm:$0xff]  ;;  %v75_v35 = vld [vmem:[%s1345_s0 + $0x1e8] sm:$0xff] }
  0x34   :  { %v715_v45 = vpack.c.bf16 %v260_v36, %v260_v36  ;;  %v264_v46 = vmax.f32 %v200_v37, 0.0  ;;  %v265_v47 = vmax.f32 %v201_v38, 0.0  ;;  %v266_v48 = vmax.f32 %v202_v39, 0.0  ;;  %v76_v36 = vld [vmem:[%s1345_s0 + $0x1f0] sm:$0xff] }
  0x35   :  { %v716_v52 = vpack.c.bf16 %v261_v40, %v261_v40  ;;  %v717_v53 = vpack.c.bf16 %v262_v41, %v262_v41  ;;  %v718_v54 = vpack.c.bf16 %v263_v42, %v263_v42  ;;  %v267_v55 = vmax.f32 %v203_v43, 0.0  ;;  %v77_v41 = vld [vmem:[%s1345_s0 + $0x1f8] sm:$0xff] }
  0x36   :  { %581 = vst.msk [vmem:[%s1348_s3 + $0xa0] sm:$0xf] %vm540_vm0, %v715_v45  ;;  %v719_v59 = vpack.c.bf16 %v264_v46, %v264_v46  ;;  %v720_v60 = vpack.c.bf16 %v265_v47, %v265_v47  ;;  %v721_v61 = vpack.c.bf16 %v266_v48, %v266_v48  ;;  %v133_v62 = vmul.f32 %v765_v1, %v62_v44 }
  0x37   :  { %582 = vst.msk [vmem:[%s1348_s3 + $0xa4] sm:$0xf] %vm540_vm0, %v716_v52  ;;  %583 = vst.msk [vmem:[%s1348_s3 + $0xa8] sm:$0xf] %vm540_vm0, %v717_v53  ;;  %v722_v0 = vpack.c.bf16 %v267_v55, %v267_v55  ;;  %v134_v3 = vmul.f32 %v765_v1, %v63_v49  ;;  %v135_v4 = vmul.f32 %v765_v1, %v64_v50 }
  0x38   :  { %584 = vst.msk [vmem:[%s1348_s3 + $0xac] sm:$0xf] %vm540_vm0, %v718_v54  ;;  %v136_v5 = vmul.f32 %v765_v1, %v65_v51  ;;  %585 = vst.msk [vmem:[%s1348_s3 + $0xb0] sm:$0xf] %vm540_vm0, %v719_v59  ;;  %v204_v6 = vadd.f32 %v770_v2, %v133_v62  ;;  %v137_v7 = vmul.f32 %v765_v1, %v66_v56 }
  0x39   :  { %586 = vst.msk [vmem:[%s1348_s3 + $0xb4] sm:$0xf] %vm540_vm0, %v720_v60  ;;  %587 = vst.msk [vmem:[%s1348_s3 + $0xb8] sm:$0xf] %vm540_vm0, %v721_v61  ;;  %v138_v8 = vmul.f32 %v765_v1, %v67_v57  ;;  %v139_v9 = vmul.f32 %v765_v1, %v68_v58  ;;  %v205_v10 = vadd.f32 %v770_v2, %v134_v3 }
  0x3a   :  { %588 = vst.msk [vmem:[%s1348_s3 + $0xbc] sm:$0xf] %vm540_vm0, %v722_v0  ;;  %v206_v11 = vadd.f32 %v770_v2, %v135_v4  ;;  %v207_v12 = vadd.f32 %v770_v2, %v136_v5  ;;  %v140_v13 = vmul.f32 %v765_v1, %v69_v63  ;;  %v268_v14 = vmax.f32 %v204_v6, 0.0 }
  0x3b   :  { %v208_v15 = vadd.f32 %v770_v2, %v137_v7  ;;  %v209_v16 = vadd.f32 %v770_v2, %v138_v8  ;;  %v210_v17 = vadd.f32 %v770_v2, %v139_v9  ;;  %v269_v18 = vmax.f32 %v205_v10, 0.0 }
  0x3c   :  { %v270_v19 = vmax.f32 %v206_v11, 0.0  ;;  %v271_v20 = vmax.f32 %v207_v12, 0.0  ;;  %v211_v21 = vadd.f32 %v770_v2, %v140_v13  ;;  %v723_v23 = vpack.c.bf16 %v268_v14, %v268_v14 }
  0x3d   :  { %v272_v24 = vmax.f32 %v208_v15, 0.0  ;;  %v273_v25 = vmax.f32 %v209_v16, 0.0  ;;  %v274_v26 = vmax.f32 %v210_v17, 0.0  ;;  %v724_v30 = vpack.c.bf16 %v269_v18, %v269_v18 }
  0x3e   :  { %v725_v31 = vpack.c.bf16 %v270_v19, %v270_v19  ;;  %v726_v32 = vpack.c.bf16 %v271_v20, %v271_v20  ;;  %v275_v33 = vmax.f32 %v211_v21, 0.0  ;;  %589 = vst.msk [vmem:[%s1348_s3 + $0xc0] sm:$0xf] %vm540_vm0, %v723_v23  ;;  %v141_v40 = vmul.f32 %v765_v1, %v70_v22 }
  0x3f   :  { %v727_v37 = vpack.c.bf16 %v272_v24, %v272_v24  ;;  %v728_v38 = vpack.c.bf16 %v273_v25, %v273_v25  ;;  %v729_v39 = vpack.c.bf16 %v274_v26, %v274_v26  ;;  %590 = vst.msk [vmem:[%s1348_s3 + $0xc4] sm:$0xf] %vm540_vm0, %v724_v30  ;;  %v142_v43 = vmul.f32 %v765_v1, %v71_v27 }
  0x40   :  { %591 = vst.msk [vmem:[%s1348_s3 + $0xc8] sm:$0xf] %vm540_vm0, %v725_v31  ;;  %592 = vst.msk [vmem:[%s1348_s3 + $0xcc] sm:$0xf] %vm540_vm0, %v726_v32  ;;  %v730_v42 = vpack.c.bf16 %v275_v33, %v275_v33  ;;  %v143_v44 = vmul.f32 %v765_v1, %v72_v28  ;;  %v144_v45 = vmul.f32 %v765_v1, %v73_v29 }
  0x41   :  { %593 = vst.msk [vmem:[%s1348_s3 + $0xd0] sm:$0xf] %vm540_vm0, %v727_v37  ;;  %594 = vst.msk [vmem:[%s1348_s3 + $0xd4] sm:$0xf] %vm540_vm0, %v728_v38  ;;  %v212_v46 = vadd.f32 %v770_v2, %v141_v40  ;;  %v145_v47 = vmul.f32 %v765_v1, %v74_v34  ;;  %v146_v48 = vmul.f32 %v765_v1, %v75_v35 }
  0x42   :  { %595 = vst.msk [vmem:[%s1348_s3 + $0xd8] sm:$0xf] %vm540_vm0, %v729_v39  ;;  %v147_v49 = vmul.f32 %v765_v1, %v76_v36  ;;  %596 = vst.msk [vmem:[%s1348_s3 + $0xdc] sm:$0xf] %vm540_vm0, %v730_v42  ;;  %v213_v50 = vadd.f32 %v770_v2, %v142_v43  ;;  %v214_v51 = vadd.f32 %v770_v2, %v143_v44 }
  0x43   :  { %v215_v52 = vadd.f32 %v770_v2, %v144_v45  ;;  %v148_v53 = vmul.f32 %v765_v1, %v77_v41  ;;  %v276_v54 = vmax.f32 %v212_v46, 0.0  ;;  %v216_v55 = vadd.f32 %v770_v2, %v145_v47 }
  0x44   :  { %v217_v56 = vadd.f32 %v770_v2, %v146_v48  ;;  %v218_v57 = vadd.f32 %v770_v2, %v147_v49  ;;  %v277_v58 = vmax.f32 %v213_v50, 0.0  ;;  %v278_v59 = vmax.f32 %v214_v51, 0.0 }
  0x45   :  { %v279_v60 = vmax.f32 %v215_v52, 0.0  ;;  %v219_v61 = vadd.f32 %v770_v2, %v148_v53  ;;  %v731_v62 = vpack.c.bf16 %v276_v54, %v276_v54  ;;  %v280_v63 = vmax.f32 %v216_v55, 0.0 }
  0x46   :  { %v281_v0 = vmax.f32 %v217_v56, 0.0  ;;  %v282_v3 = vmax.f32 %v218_v57, 0.0  ;;  %v732_v4 = vpack.c.bf16 %v277_v58, %v277_v58  ;;  %v733_v5 = vpack.c.bf16 %v278_v59, %v278_v59 }
  0x47   :  { %v734_v6 = vpack.c.bf16 %v279_v60, %v279_v60  ;;  %v283_v1 = vmax.f32 %v219_v61, 0.0  ;;  %597 = vst.msk [vmem:[%s1348_s3 + $0xe0] sm:$0xf] %vm540_vm0, %v731_v62  ;;  %v735_v7 = vpack.c.bf16 %v280_v63, %v280_v63 }
  0x48   :  { %v736_v8 = vpack.c.bf16 %v281_v0, %v281_v0  ;;  %v737_v9 = vpack.c.bf16 %v282_v3, %v282_v3  ;;  %598 = vst.msk [vmem:[%s1348_s3 + $0xe4] sm:$0xf] %vm540_vm0, %v732_v4  ;;  %599 = vst.msk [vmem:[%s1348_s3 + $0xe8] sm:$0xf] %vm540_vm0, %v733_v5 }
  0x49   :  { %600 = vst.msk [vmem:[%s1348_s3 + $0xec] sm:$0xf] %vm540_vm0, %v734_v6  ;;  %v738_v2 = vpack.c.bf16 %v283_v1, %v283_v1  ;;  %601 = vst.msk [vmem:[%s1348_s3 + $0xf0] sm:$0xf] %vm540_vm0, %v735_v7 }
  0x4a   :  { %602 = vst.msk [vmem:[%s1348_s3 + $0xf4] sm:$0xf] %vm540_vm0, %v736_v8  ;;  %603 = vst.msk [vmem:[%s1348_s3 + $0xf8] sm:$0xf] %vm540_vm0, %v737_v9 }
  0x4b   :  { %604 = vst.msk [vmem:[%s1348_s3 + $0xfc] sm:$0xf] %vm540_vm0, %v738_v2 }

// kernel: generator_forward.17
= control target key start
LH: loop header
LB: loop body
LE: loop exit
PB: predicated region body
PF: predicated region fallthrough
CT: control target
= control target key end

     0   :  { %s1307_s12 = smov 0   ;;  %s1309_s13 = smov 0   ;;  %s1655_s0 = inlined_call_operand.vmem [shape: bf16[16,144], index: 0, kind: input, shape index: {}]   ;;  %s1656_s1 = inlined_call_operand.vmem [shape: bf16[144,2048], index: 1, kind: input, shape index: {}]   ;;  %s1657_s2 = inlined_call_operand.vmem [shape: f32[16,1], index: 2, kind: input, shape index: {}]   ;;  %s1658_s3 = inlined_call_operand.vmem [shape: f32[16,2048], index: 3, kind: output, shape index: {}]  }
   0x1   :  { %s1311_s14 = smov 0  }
   0x2 LB: > { %s1106_s15 = sadd.s32 4294967295, %s1284_s14   ;;  %s1324_s16 = sadd.s32 1, %s1284_s14   ;;  %s1284_s14 = sphi %s1311_s14, %s1662_s14   ;;  %s1280_s13 = sphi %s1309_s13, %s1661_s13   ;;  %s1276_s12 = sphi %s1307_s12, %s1660_s12  }
   0x3   : > { %s38_s17 = ssub.s32 %s1284_s14, %s1324_s16  ;;  %s41_s18 = sadd.s32 1, %s1280_s13 }
   0x4   : > { %p39_p0 = scmp.eq.s32.totalorder %s38_s17, 0  ;;  %p48_p1 = scmp.ne.s32.totalorder %s1280_s13, %s1276_s12 }
   0x5   : > { %p49_p2 = scmp.eq.s32.totalorder %s1284_s14, 0  ;;  %p99_p3 = scmp.eq.s32.totalorder %s1106_s15, 1 }
   0x6   : > { %s1335_s19 = scalar_select %p39_p0, %s1280_s13, %s41_s18  }
   0x7   : > { %p50_p4 = por %p49_p2, %p48_p1  ;;  %p1337_p5 = por %p99_p3, %p48_p1 }
   0x8   : > { %p1109_p6 = scmp.ge.s32.totalorder %s1284_s14, 2 }
   0xa   : > { %127 = sbr.rel (%p1109_p6) target bundleno = 58 (0x3a), region = 24 }
  0x11   : > { %130 = sbr.rel (!%p50_p4) target bundleno = 58 (0x3a), region = 28  ;;  %s132_s21 = sand.u32 (%p50_p4), 1, %s1280_s13  }
  0x12   : > { %s1197_s22 = sshll.u32 (%p50_p4), %s1284_s14, 5  ;;  %s1199_s23 = smul.u32 (%p50_p4), 576, %s132_s21 }
  0x13   : > { %s1347_s26 = scalar_lea.vmem (%p50_p4), %s1656_s1, %s1197_s22 }
  0x14   : > { %v150_v0 = vld [vmem:[%s1347_s26] sm:$0xff] (%p50_p4)  ;;  %v152_v1 = vld [vmem:[%s1347_s26 + $0x8] sm:$0xff] (%p50_p4)  ;;  %v154_v2 = vld [vmem:[%s1347_s26 + $0x10] sm:$0xff] (%p50_p4)  ;;  %s1355_s27 = scalar_lea.vmem (%p50_p4), [#allocation2], %s1199_s23 }
  0x15   : > { %v156_v3 = vld [vmem:[%s1347_s26 + $0x18] sm:$0xff] (%p50_p4)  ;;  %v158_v4 = vld [vmem:[%s1347_s26 + $0x40] sm:$0xff] (%p50_p4)  ;;  %v160_v5 = vld [vmem:[%s1347_s26 + $0x48] sm:$0xff] (%p50_p4)  ;;  %151 = vst [vmem:[%s1355_s27] sm:$0xff] (%p50_p4), %v150_v0 }
  0x16   : > { %153 = vst [vmem:[%s1355_s27 + $0x8] sm:$0xff] (%p50_p4), %v152_v1  ;;  %155 = vst [vmem:[%s1355_s27 + $0x10] sm:$0xff] (%p50_p4), %v154_v2  ;;  %v162_v6 = vld [vmem:[%s1347_s26 + $0x50] sm:$0xff] (%p50_p4)  ;;  %v164_v7 = vld [vmem:[%s1347_s26 + $0x58] sm:$0xff] (%p50_p4) }
  0x17   : > { %157 = vst [vmem:[%s1355_s27 + $0x18] sm:$0xff] (%p50_p4), %v156_v3  ;;  %159 = vst [vmem:[%s1355_s27 + $0x20] sm:$0xff] (%p50_p4), %v158_v4  ;;  %v166_v8 = vld [vmem:[%s1347_s26 + $0x80] sm:$0xff] (%p50_p4)  ;;  %v168_v9 = vld [vmem:[%s1347_s26 + $0x88] sm:$0xff] (%p50_p4) }
  0x18   : > { %161 = vst [vmem:[%s1355_s27 + $0x28] sm:$0xff] %v160_v5  ;;  %163 = vst [vmem:[%s1355_s27 + $0x30] sm:$0xff] %v162_v6  ;;  %v170_v10 = vld [vmem:[%s1347_s26 + $0x90] sm:$0xff]  ;;  %v172_v11 = vld [vmem:[%s1347_s26 + $0x98] sm:$0xff] }
  0x19   : > { %165 = vst [vmem:[%s1355_s27 + $0x38] sm:$0xff] %v164_v7  ;;  %167 = vst [vmem:[%s1355_s27 + $0x40] sm:$0xff] %v166_v8  ;;  %v174_v12 = vld [vmem:[%s1347_s26 + $0xc0] sm:$0xff]  ;;  %v176_v13 = vld [vmem:[%s1347_s26 + $0xc8] sm:$0xff] }
  0x1a   : > { %169 = vst [vmem:[%s1355_s27 + $0x48] sm:$0xff] %v168_v9  ;;  %171 = vst [vmem:[%s1355_s27 + $0x50] sm:$0xff] %v170_v10  ;;  %v178_v14 = vld [vmem:[%s1347_s26 + $0xd0] sm:$0xff]  ;;  %v180_v15 = vld [vmem:[%s1347_s26 + $0xd8] sm:$0xff] }
  0x1b   : > { %173 = vst [vmem:[%s1355_s27 + $0x58] sm:$0xff] %v172_v11  ;;  %175 = vst [vmem:[%s1355_s27 + $0x60] sm:$0xff] %v174_v12  ;;  %v182_v16 = vld [vmem:[%s1347_s26 + $0x100] sm:$0xff]  ;;  %v184_v17 = vld [vmem:[%s1347_s26 + $0x108] sm:$0xff] }
  0x1c   : > { %177 = vst [vmem:[%s1355_s27 + $0x68] sm:$0xff] %v176_v13  ;;  %179 = vst [vmem:[%s1355_s27 + $0x70] sm:$0xff] %v178_v14  ;;  %v186_v18 = vld [vmem:[%s1347_s26 + $0x110] sm:$0xff]  ;;  %v188_v19 = vld [vmem:[%s1347_s26 + $0x118] sm:$0xff] }
  0x1d   : > { %181 = vst [vmem:[%s1355_s27 + $0x78] sm:$0xff] %v180_v15  ;;  %183 = vst [vmem:[%s1355_s27 + $0x80] sm:$0xff] %v182_v16  ;;  %v190_v20 = vld [vmem:[%s1347_s26 + $0x140] sm:$0xff]  ;;  %v192_v21 = vld [vmem:[%s1347_s26 + $0x148] sm:$0xff] }
  0x1e   : > { %185 = vst [vmem:[%s1355_s27 + $0x88] sm:$0xff] %v184_v17  ;;  %187 = vst [vmem:[%s1355_s27 + $0x90] sm:$0xff] %v186_v18  ;;  %v194_v22 = vld [vmem:[%s1347_s26 + $0x150] sm:$0xff]  ;;  %v196_v23 = vld [vmem:[%s1347_s26 + $0x158] sm:$0xff] }
  0x1f   : > { %189 = vst [vmem:[%s1355_s27 + $0x98] sm:$0xff] %v188_v19  ;;  %191 = vst [vmem:[%s1355_s27 + $0xa0] sm:$0xff] %v190_v20  ;;  %v198_v24 = vld [vmem:[%s1347_s26 + $0x180] sm:$0xff]  ;;  %v200_v25 = vld [vmem:[%s1347_s26 + $0x188] sm:$0xff] }
  0x20   : > { %193 = vst [vmem:[%s1355_s27 + $0xa8] sm:$0xff] %v192_v21  ;;  %195 = vst [vmem:[%s1355_s27 + $0xb0] sm:$0xff] %v194_v22  ;;  %v202_v26 = vld [vmem:[%s1347_s26 + $0x190] sm:$0xff]  ;;  %v204_v27 = vld [vmem:[%s1347_s26 + $0x198] sm:$0xff] }
  0x21   : > { %197 = vst [vmem:[%s1355_s27 + $0xb8] sm:$0xff] %v196_v23  ;;  %199 = vst [vmem:[%s1355_s27 + $0xc0] sm:$0xff] %v198_v24  ;;  %v206_v28 = vld [vmem:[%s1347_s26 + $0x1c0] sm:$0xff]  ;;  %v208_v29 = vld [vmem:[%s1347_s26 + $0x1c8] sm:$0xff] }
  0x22   : > { %201 = vst [vmem:[%s1355_s27 + $0xc8] sm:$0xff] %v200_v25  ;;  %203 = vst [vmem:[%s1355_s27 + $0xd0] sm:$0xff] %v202_v26  ;;  %v210_v30 = vld [vmem:[%s1347_s26 + $0x1d0] sm:$0xff]  ;;  %v212_v31 = vld [vmem:[%s1347_s26 + $0x1d8] sm:$0xff] }
  0x23   : > { %205 = vst [vmem:[%s1355_s27 + $0xd8] sm:$0xff] %v204_v27  ;;  %207 = vst [vmem:[%s1355_s27 + $0xe0] sm:$0xff] %v206_v28  ;;  %v214_v32 = vld [vmem:[%s1347_s26 + $0x200] sm:$0xff]  ;;  %v216_v33 = vld [vmem:[%s1347_s26 + $0x208] sm:$0xff] }
  0x24   : > { %209 = vst [vmem:[%s1355_s27 + $0xe8] sm:$0xff] %v208_v29  ;;  %211 = vst [vmem:[%s1355_s27 + $0xf0] sm:$0xff] %v210_v30  ;;  %v218_v34 = vld [vmem:[%s1347_s26 + $0x210] sm:$0xff]  ;;  %v220_v35 = vld [vmem:[%s1347_s26 + $0x218] sm:$0xff] }
  0x25   : > { %213 = vst [vmem:[%s1355_s27 + $0xf8] sm:$0xff] %v212_v31  ;;  %215 = vst [vmem:[%s1355_s27 + $0x100] sm:$0xff] %v214_v32  ;;  %v222_v36 = vld [vmem:[%s1347_s26 + $0x240] sm:$0xff]  ;;  %v224_v37 = vld [vmem:[%s1347_s26 + $0x248] sm:$0xff] }
  0x26   : > { %217 = vst [vmem:[%s1355_s27 + $0x108] sm:$0xff] %v216_v33  ;;  %219 = vst [vmem:[%s1355_s27 + $0x110] sm:$0xff] %v218_v34  ;;  %v226_v38 = vld [vmem:[%s1347_s26 + $0x250] sm:$0xff]  ;;  %v228_v39 = vld [vmem:[%s1347_s26 + $0x258] sm:$0xff] }
  0x27   : > { %221 = vst [vmem:[%s1355_s27 + $0x118] sm:$0xff] %v220_v35  ;;  %223 = vst [vmem:[%s1355_s27 + $0x120] sm:$0xff] %v222_v36  ;;  %v230_v40 = vld [vmem:[%s1347_s26 + $0x280] sm:$0xff]  ;;  %v232_v41 = vld [vmem:[%s1347_s26 + $0x288] sm:$0xff] }
  0x28   : > { %225 = vst [vmem:[%s1355_s27 + $0x128] sm:$0xff] %v224_v37  ;;  %227 = vst [vmem:[%s1355_s27 + $0x130] sm:$0xff] %v226_v38  ;;  %v234_v42 = vld [vmem:[%s1347_s26 + $0x290] sm:$0xff]  ;;  %v236_v43 = vld [vmem:[%s1347_s26 + $0x298] sm:$0xff] }
  0x29   : > { %229 = vst [vmem:[%s1355_s27 + $0x138] sm:$0xff] %v228_v39  ;;  %231 = vst [vmem:[%s1355_s27 + $0x140] sm:$0xff] %v230_v40  ;;  %v238_v44 = vld [vmem:[%s1347_s26 + $0x2c0] sm:$0xff]  ;;  %v240_v45 = vld [vmem:[%s1347_s26 + $0x2c8] sm:$0xff] }
  0x2a   : > { %233 = vst [vmem:[%s1355_s27 + $0x148] sm:$0xff] %v232_v41  ;;  %235 = vst [vmem:[%s1355_s27 + $0x150] sm:$0xff] %v234_v42  ;;  %v242_v46 = vld [vmem:[%s1347_s26 + $0x2d0] sm:$0xff]  ;;  %v244_v47 = vld [vmem:[%s1347_s26 + $0x2d8] sm:$0xff] }
  0x2b   : > { %237 = vst [vmem:[%s1355_s27 + $0x158] sm:$0xff] %v236_v43  ;;  %239 = vst [vmem:[%s1355_s27 + $0x160] sm:$0xff] %v238_v44  ;;  %v246_v48 = vld [vmem:[%s1347_s26 + $0x300] sm:$0xff]  ;;  %v248_v49 = vld [vmem:[%s1347_s26 + $0x308] sm:$0xff] }
  0x2c   : > { %241 = vst [vmem:[%s1355_s27 + $0x168] sm:$0xff] %v240_v45  ;;  %243 = vst [vmem:[%s1355_s27 + $0x170] sm:$0xff] %v242_v46  ;;  %v250_v50 = vld [vmem:[%s1347_s26 + $0x310] sm:$0xff]  ;;  %v252_v51 = vld [vmem:[%s1347_s26 + $0x318] sm:$0xff] }
  0x2d   : > { %245 = vst [vmem:[%s1355_s27 + $0x178] sm:$0xff] %v244_v47  ;;  %247 = vst [vmem:[%s1355_s27 + $0x180] sm:$0xff] %v246_v48  ;;  %v254_v52 = vld [vmem:[%s1347_s26 + $0x340] sm:$0xff]  ;;  %v256_v53 = vld [vmem:[%s1347_s26 + $0x348] sm:$0xff] }
  0x2e   : > { %249 = vst [vmem:[%s1355_s27 + $0x188] sm:$0xff] %v248_v49  ;;  %251 = vst [vmem:[%s1355_s27 + $0x190] sm:$0xff] %v250_v50  ;;  %v258_v54 = vld [vmem:[%s1347_s26 + $0x350] sm:$0xff]  ;;  %v260_v55 = vld [vmem:[%s1347_s26 + $0x358] sm:$0xff] }
  0x2f   : > { %253 = vst [vmem:[%s1355_s27 + $0x198] sm:$0xff] %v252_v51  ;;  %255 = vst [vmem:[%s1355_s27 + $0x1a0] sm:$0xff] %v254_v52  ;;  %v262_v56 = vld [vmem:[%s1347_s26 + $0x380] sm:$0xff]  ;;  %v264_v57 = vld [vmem:[%s1347_s26 + $0x388] sm:$0xff] }
  0x30   : > { %257 = vst [vmem:[%s1355_s27 + $0x1a8] sm:$0xff] %v256_v53  ;;  %259 = vst [vmem:[%s1355_s27 + $0x1b0] sm:$0xff] %v258_v54  ;;  %v266_v58 = vld [vmem:[%s1347_s26 + $0x390] sm:$0xff]  ;;  %v268_v59 = vld [vmem:[%s1347_s26 + $0x398] sm:$0xff] }
  0x31   : > { %261 = vst [vmem:[%s1355_s27 + $0x1b8] sm:$0xff] %v260_v55  ;;  %263 = vst [vmem:[%s1355_s27 + $0x1c0] sm:$0xff] %v262_v56  ;;  %v270_v60 = vld [vmem:[%s1347_s26 + $0x3c0] sm:$0xff]  ;;  %v272_v61 = vld [vmem:[%s1347_s26 + $0x3c8] sm:$0xff] }
  0x32   : > { %265 = vst [vmem:[%s1355_s27 + $0x1c8] sm:$0xff] %v264_v57  ;;  %267 = vst [vmem:[%s1355_s27 + $0x1d0] sm:$0xff] %v266_v58  ;;  %v274_v62 = vld [vmem:[%s1347_s26 + $0x3d0] sm:$0xff]  ;;  %v276_v63 = vld [vmem:[%s1347_s26 + $0x3d8] sm:$0xff] }
  0x33   : > { %269 = vst [vmem:[%s1355_s27 + $0x1d8] sm:$0xff] %v268_v59  ;;  %271 = vst [vmem:[%s1355_s27 + $0x1e0] sm:$0xff] %v270_v60  ;;  %v278_v0 = vld [vmem:[%s1347_s26 + $0x400] sm:$0xff]  ;;  %v280_v1 = vld [vmem:[%s1347_s26 + $0x408] sm:$0xff] }
  0x34   : > { %273 = vst [vmem:[%s1355_s27 + $0x1e8] sm:$0xff] %v272_v61  ;;  %275 = vst [vmem:[%s1355_s27 + $0x1f0] sm:$0xff] %v274_v62  ;;  %v282_v2 = vld [vmem:[%s1347_s26 + $0x410] sm:$0xff]  ;;  %v284_v3 = vld [vmem:[%s1347_s26 + $0x418] sm:$0xff] }
  0x35   : > { %277 = vst [vmem:[%s1355_s27 + $0x1f8] sm:$0xff] %v276_v63  ;;  %279 = vst [vmem:[%s1355_s27 + $0x200] sm:$0xff] %v278_v0  ;;  %v286_v4 = vld [vmem:[%s1347_s26 + $0x440] sm:$0xff]  ;;  %v288_v5 = vld [vmem:[%s1347_s26 + $0x448] sm:$0xff] }
  0x36   : > { %281 = vst [vmem:[%s1355_s27 + $0x208] sm:$0xff] %v280_v1  ;;  %283 = vst [vmem:[%s1355_s27 + $0x210] sm:$0xff] %v282_v2  ;;  %v290_v6 = vld [vmem:[%s1347_s26 + $0x450] sm:$0xff]  ;;  %v292_v7 = vld [vmem:[%s1347_s26 + $0x458] sm:$0xff] }
  0x37   : > { %285 = vst [vmem:[%s1355_s27 + $0x218] sm:$0xff] %v284_v3  ;;  %287 = vst [vmem:[%s1355_s27 + $0x220] sm:$0xff] %v286_v4 }
  0x38   : > { %289 = vst [vmem:[%s1355_s27 + $0x228] sm:$0xff] %v288_v5  ;;  %291 = vst [vmem:[%s1355_s27 + $0x230] sm:$0xff] %v290_v6 }
  0x39   : > { %293 = vst [vmem:[%s1355_s27 + $0x238] sm:$0xff] %v292_v7 }
  0x3a PF: > { %p1112_p7 = scmp.ge.s32.totalorder %s1284_s14, 1  ;;  %p298_p8 = scmp.lt.s32.totalorder %s1284_s14, 3 }
  0x3c   : > { %p299_p9 = pnand %p1112_p7, %p298_p8 }
  0x3d   : > { %s305_s28 = sand.u32 (!%p299_p9), 1, %s1276_s12   ;;  %v1501_v8 = vld [vmem:[%s1655_s0 + $0x4] ss:$8 sps:$4 sm:$0xff] (!%p299_p9)   ;;  %vm785_vm0 = vcmask (!%p299_p9), 130048   ;;  %v1286_v10 = vmov (!%p299_p9), 0  }
  0x3e   : > { %302 = sbr.rel (%p299_p9) target bundleno = 383 (0x17f), region = 51  ;;  %v404_v9 = vld [vmem:[%s1657_s2] sm:$0xff] (!%p299_p9)  ;;  %1188 = vmatprep.mubr.msk.bf16.mxu0 (!%p299_p9), %vm785_vm0, %v1501_v8  ;;  %1189 = vmatprep.mubr.msk.bf16.mxu1 (!%p299_p9), %vm785_vm0, %v1501_v8  ;;  %v405_v30 = vld [vmem:[%s1657_s2 + $0x8] sm:$0xff] (!%p299_p9)  ;;  %s1113_s17 = sshll.u32 (!%p299_p9), %s305_s28, 7 }
  0x3f   : > { %s1200_s4 = smul.u32 (!%p299_p9), 576, %s305_s28  ;;  %1226 = vset.pattern.permute.xlu0 (!%p299_p9), %v1286_v10  ;;  %s1604_s18 = scalar_lea.vmem (!%p299_p9), [#allocation3], %s1113_s17 }
  0x40   : > { %408 = vperm.xlu0 (!%p299_p9), %1226, %v404_v9  }
  0x41   : > { %s1512_s7 = scalar_lea.vmem (!%p299_p9), [#allocation2], %s1200_s4 }
  0x42   : > { %v332_v11 = vld [vmem:[%s1512_s7] sm:$0xff] (!%p299_p9)  ;;  %v333_v13 = vld [vmem:[%s1512_s7 + $0x8] sm:$0xff] (!%p299_p9) }
  0x43   : > { %v336_v12 = vld [vmem:[%s1512_s7 + $0x20] sm:$0xff] (!%p299_p9)  ;;  %v337_v15 = vld [vmem:[%s1512_s7 + $0x28] sm:$0xff] (!%p299_p9) }
  0x44   : > { %v1117_v14 = vcombine.high (!%p299_p9), %v332_v11, %v336_v12  ;;  %v1116_v16 = vcombine.low (!%p299_p9), %v332_v11, %v336_v12  ;;  %v340_v17 = vld [vmem:[%s1512_s7 + $0x40] sm:$0xff] (!%p299_p9)  ;;  %v1119_v19 = vcombine.high (!%p299_p9), %v333_v13, %v337_v15  ;;  %v1118_v20 = vcombine.low (!%p299_p9), %v333_v13, %v337_v15  ;;  %v341_v22 = vld [vmem:[%s1512_s7 + $0x48] sm:$0xff] (!%p299_p9)  ;;  %413 = vperm.xlu0 (!%p299_p9), %1226, %v405_v30   ;;  %v343_v30 = vld [vmem:[%s1512_s7 + $0x58] sm:$0xff] (!%p299_p9) }
  0x45   : > { %v344_v18 = vld [vmem:[%s1512_s7 + $0x60] sm:$0xff]  ;;  %v345_v23 = vld [vmem:[%s1512_s7 + $0x68] sm:$0xff]  ;;  %s1198_s12 = sshll.u32 (%p1337_p5), %s1106_s15, 6 }
  0x46   : > { %v1125_v21 = vcombine.high %v340_v17, %v344_v18  ;;  %v348_v24 = vld [vmem:[%s1512_s7 + $0x80] sm:$0xff]  ;;  %789 = vmatprep.subr.bf16.mxu0 %v1117_v14  ;;  %v1127_v25 = vcombine.high %v341_v22, %v345_v23  ;;  %v349_v27 = vld [vmem:[%s1512_s7 + $0x88] sm:$0xff]  ;;  %832 = vmatprep.subr.bf16.mxu1 %v1119_v19  ;;  %v1124_v29 = vcombine.low %v340_v17, %v344_v18  ;;  %v334_v19 = vld [vmem:[%s1512_s7 + $0x10] sm:$0xff]  ;;  %s1002_s20 = scalar_lea.vmem (%p1337_p5), %s1658_s3, %s1198_s12 }
  0x47   : > { %v352_v26 = vld [vmem:[%s1512_s7 + $0xa0] sm:$0xff]  ;;  %v353_v28 = vld [vmem:[%s1512_s7 + $0xa8] sm:$0xff]  ;;  %790 = vmatpush1.bf16.msra.mxu0 %v1116_v16  ;;  %833 = vmatpush1.bf16.msra.mxu1 %v1118_v20  ;;  %v1126_v31 = vcombine.low %v341_v22, %v345_v23  ;;  %v338_v20 = vld [vmem:[%s1512_s7 + $0x30] sm:$0xff] }
  0x48   : > { %791 = vmatprep.subr.bf16.mxu0 %v1125_v21  ;;  %v1133_v32 = vcombine.high %v348_v24, %v352_v26  ;;  %834 = vmatprep.subr.bf16.mxu1 %v1127_v25  ;;  %v1135_v33 = vcombine.high %v349_v27, %v353_v28  ;;  %v356_v34 = vld [vmem:[%s1512_s7 + $0xc0] sm:$0xff]  ;;  %v357_v36 = vld [vmem:[%s1512_s7 + $0xc8] sm:$0xff]  ;;  %v1132_v38 = vcombine.low %v348_v24, %v352_v26  ;;  %v335_v21 = vld [vmem:[%s1512_s7 + $0x18] sm:$0xff] }
  0x49   : > { %v360_v35 = vld [vmem:[%s1512_s7 + $0xe0] sm:$0xff]  ;;  %v361_v37 = vld [vmem:[%s1512_s7 + $0xe8] sm:$0xff]  ;;  %v1134_v39 = vcombine.low %v349_v27, %v353_v28  ;;  %v339_v22 = vld [vmem:[%s1512_s7 + $0x38] sm:$0xff]  ;;  %v1121_v25 = vcombine.high %v334_v19, %v338_v20 }
  0x4a   : > { %v1141_v40 = vcombine.high %v356_v34, %v360_v35  ;;  %v1143_v41 = vcombine.high %v357_v36, %v361_v37  ;;  %v364_v42 = vld [vmem:[%s1512_s7 + $0x100] sm:$0xff]  ;;  %v365_v44 = vld [vmem:[%s1512_s7 + $0x108] sm:$0xff]  ;;  %v1140_v46 = vcombine.low %v356_v34, %v360_v35  ;;  %v1142_v47 = vcombine.low %v357_v36, %v361_v37  ;;  %v342_v27 = vld [vmem:[%s1512_s7 + $0x50] sm:$0xff] }
  0x4b   : > { %792 = vmatpush1.bf16.msra.mxu0 %v1124_v29  ;;  %835 = vmatpush1.bf16.msra.mxu1 %v1126_v31  ;;  %v368_v43 = vld [vmem:[%s1512_s7 + $0x120] sm:$0xff]  ;;  %v369_v45 = vld [vmem:[%s1512_s7 + $0x128] sm:$0xff]  ;;  %v1123_v26 = vcombine.high %v335_v21, %v339_v22  ;;  %v346_v28 = vld [vmem:[%s1512_s7 + $0x70] sm:$0xff] }
  0x4c   : > { %793 = vmatprep.subr.bf16.mxu0 %v1133_v32  ;;  %836 = vmatprep.subr.bf16.mxu1 %v1135_v33  ;;  %v1149_v48 = vcombine.high %v364_v42, %v368_v43  ;;  %v1151_v49 = vcombine.high %v365_v44, %v369_v45  ;;  %v372_v50 = vld [vmem:[%s1512_s7 + $0x140] sm:$0xff]  ;;  %v373_v52 = vld [vmem:[%s1512_s7 + $0x148] sm:$0xff]  ;;  %v1148_v54 = vcombine.low %v364_v42, %v368_v43  ;;  %v347_v31 = vld [vmem:[%s1512_s7 + $0x78] sm:$0xff] }
  0x4d   : > { %v376_v51 = vld [vmem:[%s1512_s7 + $0x160] sm:$0xff]  ;;  %v377_v53 = vld [vmem:[%s1512_s7 + $0x168] sm:$0xff]  ;;  %v1150_v55 = vcombine.low %v365_v44, %v369_v45  ;;  %v1120_v32 = vcombine.low %v334_v19, %v338_v20  ;;  %v1122_v33 = vcombine.low %v335_v21, %v339_v22  ;;  %v1129_v34 = vcombine.high %v342_v27, %v346_v28  ;;  %v350_v36 = vld [vmem:[%s1512_s7 + $0x90] sm:$0xff] }
  0x4e   : > { %v1157_v56 = vcombine.high %v372_v50, %v376_v51  ;;  %v1159_v57 = vcombine.high %v373_v52, %v377_v53  ;;  %v380_v58 = vld [vmem:[%s1512_s7 + $0x180] sm:$0xff]  ;;  %v381_v60 = vld [vmem:[%s1512_s7 + $0x188] sm:$0xff]  ;;  %v1156_v62 = vcombine.low %v372_v50, %v376_v51  ;;  %v1158_v63 = vcombine.low %v373_v52, %v377_v53  ;;  %v354_v37 = vld [vmem:[%s1512_s7 + $0xb0] sm:$0xff] }
  0x4f   : > { %794 = vmatpush1.bf16.msra.mxu0 %v1132_v38  ;;  %837 = vmatpush1.bf16.msra.mxu1 %v1134_v39  ;;  %v384_v59 = vld [vmem:[%s1512_s7 + $0x1a0] sm:$0xff]  ;;  %v385_v61 = vld [vmem:[%s1512_s7 + $0x1a8] sm:$0xff]  ;;  %v1131_v35 = vcombine.high %v343_v30, %v347_v31  ;;  %v351_v38 = vld [vmem:[%s1512_s7 + $0x98] sm:$0xff]  ;;  %v1137_v42 = vcombine.high %v350_v36, %v354_v37 }
  0x50   : > { %795 = vmatprep.subr.bf16.mxu0 %v1141_v40  ;;  %838 = vmatprep.subr.bf16.mxu1 %v1143_v41  ;;  %v1165_v0 = vcombine.high %v380_v58, %v384_v59  ;;  %v1167_v1 = vcombine.high %v381_v60, %v385_v61  ;;  %v388_v2 = vld [vmem:[%s1512_s7 + $0x1c0] sm:$0xff]  ;;  %v389_v4 = vld [vmem:[%s1512_s7 + $0x1c8] sm:$0xff]  ;;  %v1164_v6 = vcombine.low %v380_v58, %v384_v59  ;;  %v355_v39 = vld [vmem:[%s1512_s7 + $0xb8] sm:$0xff] }
  0x51   : > { %v392_v3 = vld [vmem:[%s1512_s7 + $0x1e0] sm:$0xff]  ;;  %v393_v5 = vld [vmem:[%s1512_s7 + $0x1e8] sm:$0xff]  ;;  %v1166_v7 = vcombine.low %v381_v60, %v385_v61  ;;  %v1128_v40 = vcombine.low %v342_v27, %v346_v28  ;;  %v1130_v41 = vcombine.low %v343_v30, %v347_v31  ;;  %v1139_v43 = vcombine.high %v351_v38, %v355_v39  ;;  %v358_v44 = vld [vmem:[%s1512_s7 + $0xd0] sm:$0xff] }
  0x52   : > { %v1173_v9 = vcombine.high %v388_v2, %v392_v3  ;;  %v1175_v10 = vcombine.high %v389_v4, %v393_v5  ;;  %v396_v11 = vld [vmem:[%s1512_s7 + $0x200] sm:$0xff]  ;;  %v397_v13 = vld [vmem:[%s1512_s7 + $0x208] sm:$0xff]  ;;  %v1172_v15 = vcombine.low %v388_v2, %v392_v3  ;;  %v1174_v16 = vcombine.low %v389_v4, %v393_v5  ;;  %v362_v45 = vld [vmem:[%s1512_s7 + $0xf0] sm:$0xff] }
  0x53   : > { %796 = vmatpush1.bf16.msra.mxu0 %v1140_v46  ;;  %839 = vmatpush1.bf16.msra.mxu1 %v1142_v47  ;;  %v400_v12 = vld [vmem:[%s1512_s7 + $0x220] sm:$0xff]  ;;  %v401_v14 = vld [vmem:[%s1512_s7 + $0x228] sm:$0xff]  ;;  %v359_v46 = vld [vmem:[%s1512_s7 + $0xd8] sm:$0xff]  ;;  %v1145_v50 = vcombine.high %v358_v44, %v362_v45 }
  0x54   : > { %797 = vmatprep.subr.bf16.mxu0 %v1149_v48  ;;  %840 = vmatprep.subr.bf16.mxu1 %v1151_v49  ;;  %v1181_v17 = vcombine.high %v396_v11, %v400_v12  ;;  %v1183_v18 = vcombine.high %v397_v13, %v401_v14  ;;  %v1180_v23 = vcombine.low %v396_v11, %v400_v12  ;;  %v1562_v29 = vld [vmem:[%s1655_s0] ss:$8 sps:$4 sm:$0xff]   ;;  %v363_v47 = vld [vmem:[%s1512_s7 + $0xf8] sm:$0xff]  ;;  %v366_v52 = vld [vmem:[%s1512_s7 + $0x110] sm:$0xff] }
  0x55   : > { %v1182_v24 = vcombine.low %v397_v13, %v401_v14  ;;  %v1136_v48 = vcombine.low %v350_v36, %v354_v37  ;;  %v1138_v49 = vcombine.low %v351_v38, %v355_v39  ;;  %v1147_v51 = vcombine.high %v359_v46, %v363_v47  ;;  %v370_v53 = vld [vmem:[%s1512_s7 + $0x130] sm:$0xff]  ;;  %v375_v61 = vld [vmem:[%s1512_s7 + $0x158] sm:$0xff] }
  0x56   : > { %v374_v59 = vld [vmem:[%s1512_s7 + $0x150] sm:$0xff]  ;;  %v383_v5 = vld [vmem:[%s1512_s7 + $0x198] sm:$0xff] }
  0x57   : > { %798 = vmatpush1.bf16.msra.mxu0 %v1148_v54  ;;  %841 = vmatpush1.bf16.msra.mxu1 %v1150_v55  ;;  %v367_v54 = vld [vmem:[%s1512_s7 + $0x118] sm:$0xff]  ;;  %v378_v60 = vld [vmem:[%s1512_s7 + $0x170] sm:$0xff] }
  0x58   : > { %799 = vmatprep.subr.bf16.mxu0 %v1157_v56  ;;  %842 = vmatprep.subr.bf16.mxu1 %v1159_v57  ;;  %v371_v55 = vld [vmem:[%s1512_s7 + $0x138] sm:$0xff]  ;;  %v1144_v56 = vcombine.low %v358_v44, %v362_v45  ;;  %v1153_v57 = vcombine.high %v366_v52, %v370_v53  ;;  %v382_v3 = vld [vmem:[%s1512_s7 + $0x190] sm:$0xff] }
  0x59   : > { %v1155_v58 = vcombine.high %v367_v54, %v371_v55  ;;  %v386_v4 = vld [vmem:[%s1512_s7 + $0x1b0] sm:$0xff]  ;;  %v391_v14 = vld [vmem:[%s1512_s7 + $0x1d8] sm:$0xff] }
  0x5a   : > { %v390_v12 = vld [vmem:[%s1512_s7 + $0x1d0] sm:$0xff]  ;;  %v399_v22 = vld [vmem:[%s1512_s7 + $0x218] sm:$0xff] }
  0x5b   : > { %800 = vmatpush1.bf16.msra.mxu0 %v1156_v62  ;;  %843 = vmatpush1.bf16.msra.mxu1 %v1158_v63  ;;  %v379_v62 = vld [vmem:[%s1512_s7 + $0x178] sm:$0xff]  ;;  %v1152_v63 = vcombine.low %v366_v52, %v370_v53  ;;  %v394_v13 = vld [vmem:[%s1512_s7 + $0x1f0] sm:$0xff] }
  0x5c   : > { %801 = vmatprep.subr.bf16.mxu0 %v1165_v0  ;;  %844 = vmatprep.subr.bf16.mxu1 %v1167_v1  ;;  %v1154_v0 = vcombine.low %v367_v54, %v371_v55  ;;  %v1161_v1 = vcombine.high %v374_v59, %v378_v60  ;;  %v1163_v2 = vcombine.high %v375_v61, %v379_v62  ;;  %v398_v20 = vld [vmem:[%s1512_s7 + $0x210] sm:$0xff] }
  0x5d   : > { %v402_v21 = vld [vmem:[%s1512_s7 + $0x230] sm:$0xff] }
  0x5e   : > { %v1184_v28 = vcombine.low %v398_v20, %v402_v21 }
  0x5f   : > { %802 = vmatpush1.bf16.msra.mxu0 %v1164_v6  ;;  %845 = vmatpush1.bf16.msra.mxu1 %v1166_v7  ;;  %v387_v6 = vld [vmem:[%s1512_s7 + $0x1b8] sm:$0xff]  ;;  %v1160_v7 = vcombine.low %v374_v59, %v378_v60 }
  0x60   : > { %803 = vmatprep.subr.bf16.mxu0 %v1173_v9  ;;  %846 = vmatprep.subr.bf16.mxu1 %v1175_v10  ;;  %v1162_v9 = vcombine.low %v375_v61, %v379_v62  ;;  %v1169_v10 = vcombine.high %v382_v3, %v386_v4  ;;  %v1171_v11 = vcombine.high %v383_v5, %v387_v6 }
  0x63   : > { %804 = vmatpush1.bf16.msra.mxu0 %v1172_v15  ;;  %847 = vmatpush1.bf16.msra.mxu1 %v1174_v16  ;;  %v395_v15 = vld [vmem:[%s1512_s7 + $0x1f8] sm:$0xff]  ;;  %v1168_v16 = vcombine.low %v382_v3, %v386_v4 }
  0x64   : > { %805 = vmatprep.subr.bf16.mxu0 %v1181_v17  ;;  %848 = vmatprep.subr.bf16.mxu1 %v1183_v18  ;;  %v1170_v17 = vcombine.low %v383_v5, %v387_v6  ;;  %v1177_v18 = vcombine.high %v390_v12, %v394_v13  ;;  %v1179_v19 = vcombine.high %v391_v14, %v395_v15 }
  0x67   : > { %806 = vmatpush1.bf16.msra.mxu0 %v1180_v23  ;;  %849 = vmatpush1.bf16.msra.mxu1 %v1182_v24  ;;  %v403_v23 = vld [vmem:[%s1512_s7 + $0x238] sm:$0xff]  ;;  %v1176_v24 = vcombine.low %v390_v12, %v394_v13 }
  0x68   : > { %875 = vmatprep.subr.bf16.mxu0 %v1121_v25  ;;  %918 = vmatprep.subr.bf16.mxu1 %v1123_v26  ;;  %v1178_v25 = vcombine.low %v391_v14, %v395_v15  ;;  %v1185_v26 = vcombine.high %v398_v20, %v402_v21  ;;  %v1187_v27 = vcombine.high %v399_v22, %v403_v23 }
  0x69   : > { %v1186_v30 = vcombine.low %v399_v22, %v403_v23 }
  0x6a   : > { %822 = vmatmul.mubr.bf16.vlgmr.msra.gmra.mrb[0].mxu0 %v1562_v29  ;;  %865 = vmatmul.mubr.bf16.vlgmr.msra.gmra.mrb[0].mxu1 %v1562_v29 }
  0x6b   : > { %876 = vmatpush1.bf16.msra.mxu0 %v1120_v32  ;;  %919 = vmatpush1.bf16.msra.mxu1 %v1122_v33 }
  0x6c   : > { %877 = vmatprep.subr.bf16.mxu0 %v1129_v34  ;;  %920 = vmatprep.subr.bf16.mxu1 %v1131_v35 }
  0x6d   : > { %1190 = vmatprep.mubr.msk.bf16.mxu0 %vm785_vm0, %v1501_v8  ;;  %1191 = vmatprep.mubr.msk.bf16.mxu1 %vm785_vm0, %v1501_v8  ;;  %v1146_v8 = vcombine.low %v359_v46, %v363_v47 }
  0x6f   : > { %878 = vmatpush1.bf16.msra.mxu0 %v1128_v40  ;;  %921 = vmatpush1.bf16.msra.mxu1 %v1130_v41 }
  0x70   : > { %879 = vmatprep.subr.bf16.mxu0 %v1137_v42  ;;  %922 = vmatprep.subr.bf16.mxu1 %v1139_v43 }
  0x73   : > { %880 = vmatpush1.bf16.msra.mxu0 %v1136_v48  ;;  %923 = vmatpush1.bf16.msra.mxu1 %v1138_v49 }
  0x74   : > { %881 = vmatprep.subr.bf16.mxu0 %v1145_v50  ;;  %924 = vmatprep.subr.bf16.mxu1 %v1147_v51 }
  0x77   : > { %882 = vmatpush1.bf16.msra.mxu0 %v1144_v56  ;;  %925 = vmatpush1.bf16.msra.mxu1 %v1146_v8 }
  0x78   : > { %883 = vmatprep.subr.bf16.mxu0 %v1153_v57  ;;  %926 = vmatprep.subr.bf16.mxu1 %v1155_v58 }
  0x7b   : > { %884 = vmatpush1.bf16.msra.mxu0 %v1152_v63  ;;  %927 = vmatpush1.bf16.msra.mxu1 %v1154_v0 }
  0x7c   : > { %885 = vmatprep.subr.bf16.mxu0 %v1161_v1  ;;  %928 = vmatprep.subr.bf16.mxu1 %v1163_v2 }
  0x7f   : > { %886 = vmatpush1.bf16.msra.mxu0 %v1160_v7  ;;  %929 = vmatpush1.bf16.msra.mxu1 %v1162_v9 }
  0x80   : > { %887 = vmatprep.subr.bf16.mxu0 %v1169_v10  ;;  %930 = vmatprep.subr.bf16.mxu1 %v1171_v11 }
  0x83   : > { %888 = vmatpush1.bf16.msra.mxu0 %v1168_v16  ;;  %931 = vmatpush1.bf16.msra.mxu1 %v1170_v17 }
  0x84   : > { %889 = vmatprep.subr.bf16.mxu0 %v1177_v18  ;;  %932 = vmatprep.subr.bf16.mxu1 %v1179_v19 }
  0x87   : > { %890 = vmatpush1.bf16.msra.mxu0 %v1176_v24  ;;  %933 = vmatpush1.bf16.msra.mxu1 %v1178_v25 }
  0x88   : > { %891 = vmatprep.subr.bf16.mxu0 %v1185_v26  ;;  %934 = vmatprep.subr.bf16.mxu1 %v1187_v27 }
  0x8b   : > { %892 = vmatpush1.bf16.msra.mxu0 %v1184_v28  ;;  %935 = vmatpush1.bf16.msra.mxu1 %v1186_v30 }
  0x8e   : > { %908 = vmatmul.mubr.bf16.vlgmr.msra.gmra.mrb[4].mxu0 %v1562_v29  ;;  %951 = vmatmul.mubr.bf16.vlgmr.msra.gmra.mrb[4].mxu1 %v1562_v29 }
  0xbf   : > { %v409_v31 = vpop.permute.xlu0 %408 }
  0xc3   : > { %v414_v33 = vpop.permute.xlu0 %413 }
 0x13d   : > { %v823_v32 = vpop.f32.mrb[0].mxu0  ;;  %v866_v35 = vpop.f32.mrb[0].mxu1 }
 0x13e   : > { %v824_v34 = vadd.f32 %v823_v32, %v409_v31  ;;  %v825_v36 = vpop.f32.mrb[1].mxu0  ;;  %v867_v37 = vadd.f32 %v866_v35, %v409_v31  ;;  %v868_v39 = vpop.f32.mrb[1].mxu1 }
 0x13f   : > { %v826_v38 = vadd.f32 %v825_v36, %v409_v31  ;;  %v827_v40 = vpop.f32.mrb[2].mxu0  ;;  %v869_v41 = vadd.f32 %v868_v39, %v409_v31  ;;  %v870_v43 = vpop.f32.mrb[2].mxu1 }
 0x140   : > { %1230 = vtanh.f32 %v824_v34  ;;  %v828_v42 = vadd.f32 %v827_v40, %v414_v33  ;;  %v829_v44 = vpop.f32.mrb[3].mxu0  ;;  %v871_v45 = vadd.f32 %v870_v43, %v414_v33  ;;  %v872_v46 = vpop.f32.mrb[3].mxu1 }
 0x141   : > { %1232 = vtanh.f32 %v867_v37  ;;  %v830_v29 = vadd.f32 %v829_v44, %v414_v33  ;;  %v873_v47 = vadd.f32 %v872_v46, %v414_v33 }
 0x142   : > { %1234 = vtanh.f32 %v826_v38 }
 0x143   : > { %1236 = vtanh.f32 %v869_v41 }
 0x144   : > { %1238 = vtanh.f32 %v828_v42 }
 0x145   : > { %1240 = vtanh.f32 %v871_v45 }
 0x146   : > { %1242 = vtanh.f32 %v830_v29 }
 0x147   : > { %1244 = vtanh.f32 %v873_v47 }
 0x14a   : > { %v1231_v48 = vpop.eup %1230 }
 0x14b   : > { %v1233_v49 = vpop.eup %1232  ;;  %977 = vst [vmem:[%s1604_s18] sm:$0xff] %v1231_v48 }
 0x14c   : > { %v1235_v50 = vpop.eup %1234  ;;  %979 = vst [vmem:[%s1604_s18 + $0x10] sm:$0xff] %v1233_v49 }
 0x14d   : > { %v1237_v51 = vpop.eup %1236  ;;  %978 = vst [vmem:[%s1604_s18 + $0x8] sm:$0xff] %v1235_v50 }
 0x14e   : > { %v1239_v52 = vpop.eup %1238  ;;  %980 = vst [vmem:[%s1604_s18 + $0x18] sm:$0xff] %v1237_v51 }
 0x14f   : > { %v1241_v53 = vpop.eup %1240  ;;  %985 = vst [vmem:[%s1604_s18 + $0x40] sm:$0xff] %v1239_v52 }
 0x150   : > { %v1243_v54 = vpop.eup %1242  ;;  %987 = vst [vmem:[%s1604_s18 + $0x50] sm:$0xff] %v1241_v53 }
 0x151   : > { %v1245_v55 = vpop.eup %1244  ;;  %986 = vst [vmem:[%s1604_s18 + $0x48] sm:$0xff] %v1243_v54 }
 0x152   : > { %988 = vst [vmem:[%s1604_s18 + $0x58] sm:$0xff] %v1245_v55  ;;  %v1015_v16 = vld [vmem:[%s1604_s18] sm:$0xff] (%p1337_p5) }
 0x153   : > { %v1019_v18 = vld [vmem:[%s1604_s18 + $0x10] sm:$0xff] (%p1337_p5)  ;;  %1016 = vst [vmem:[%s1002_s20] sm:$0xff] (%p1337_p5), %v1015_v16 }
 0x154   : > { %v1017_v17 = vld [vmem:[%s1604_s18 + $0x8] sm:$0xff] (%p1337_p5)  ;;  %1020 = vst [vmem:[%s1002_s20 + $0x10] sm:$0xff] (%p1337_p5), %v1019_v18 }
 0x155   : > { %v1021_v19 = vld [vmem:[%s1604_s18 + $0x18] sm:$0xff] (%p1337_p5)  ;;  %1018 = vst [vmem:[%s1002_s20 + $0x8] sm:$0xff] (%p1337_p5), %v1017_v17 }
 0x156   : > { %1022 = vst [vmem:[%s1002_s20 + $0x18] sm:$0xff] (%p1337_p5), %v1021_v19  ;;  %v1031_v24 = vld [vmem:[%s1604_s18 + $0x40] sm:$0xff] (%p1337_p5) }
 0x157   : > { %1032 = vst [vmem:[%s1002_s20 + $0x80] sm:$0xff] (%p1337_p5), %v1031_v24  ;;  %v1035_v26 = vld [vmem:[%s1604_s18 + $0x50] sm:$0xff] (%p1337_p5) }
 0x158   : > { %v1033_v25 = vld [vmem:[%s1604_s18 + $0x48] sm:$0xff] (%p1337_p5)  ;;  %1036 = vst [vmem:[%s1002_s20 + $0x90] sm:$0xff] (%p1337_p5), %v1035_v26 }
 0x159   : > { %v1037_v27 = vld [vmem:[%s1604_s18 + $0x58] sm:$0xff] (%p1337_p5)  ;;  %1034 = vst [vmem:[%s1002_s20 + $0x88] sm:$0xff] (%p1337_p5), %v1033_v25 }
 0x15a   : > { %1038 = vst [vmem:[%s1002_s20 + $0x98] sm:$0xff] (%p1337_p5), %v1037_v27 }
 0x161   : > { %v909_v56 = vpop.f32.mrb[4].mxu0  ;;  %v952_v57 = vpop.f32.mrb[4].mxu1 }
 0x162   : > { %v910_v8 = vadd.f32 %v909_v56, %v409_v31  ;;  %v911_v58 = vpop.f32.mrb[5].mxu0  ;;  %v953_v59 = vadd.f32 %v952_v57, %v409_v31  ;;  %v954_v61 = vpop.f32.mrb[5].mxu1 }
 0x163   : > { %v912_v60 = vadd.f32 %v911_v58, %v409_v31  ;;  %v913_v62 = vpop.f32.mrb[6].mxu0  ;;  %v955_v63 = vadd.f32 %v954_v61, %v409_v31  ;;  %v956_v1 = vpop.f32.mrb[6].mxu1 }
 0x164   : > { %1246 = vtanh.f32 %v910_v8  ;;  %v914_v0 = vadd.f32 %v913_v62, %v414_v33  ;;  %v915_v2 = vpop.f32.mrb[7].mxu0  ;;  %v957_v3 = vadd.f32 %v956_v1, %v414_v33  ;;  %v958_v4 = vpop.f32.mrb[7].mxu1 }
 0x165   : > { %1248 = vtanh.f32 %v953_v59  ;;  %v916_v5 = vadd.f32 %v915_v2, %v414_v33  ;;  %v959_v6 = vadd.f32 %v958_v4, %v414_v33 }
 0x166   : > { %1250 = vtanh.f32 %v912_v60 }
 0x167   : > { %1252 = vtanh.f32 %v955_v63 }
 0x168   : > { %1254 = vtanh.f32 %v914_v0 }
 0x169   : > { %1256 = vtanh.f32 %v957_v3 }
 0x16a   : > { %1258 = vtanh.f32 %v916_v5 }
 0x16b   : > { %1260 = vtanh.f32 %v959_v6 }
 0x16e   : > { %v1247_v7 = vpop.eup %1246 }
 0x16f   : > { %v1249_v9 = vpop.eup %1248  ;;  %981 = vst [vmem:[%s1604_s18 + $0x20] sm:$0xff] %v1247_v7 }
 0x170   : > { %v1251_v10 = vpop.eup %1250  ;;  %983 = vst [vmem:[%s1604_s18 + $0x30] sm:$0xff] %v1249_v9  ;;  %999 = sbr.rel (!%p1337_p5) target bundleno = 383 (0x17f), region = 59 }
 0x171   : > { %v1253_v11 = vpop.eup %1252  ;;  %982 = vst [vmem:[%s1604_s18 + $0x28] sm:$0xff] %v1251_v10 }
 0x172   : > { %v1255_v12 = vpop.eup %1254  ;;  %984 = vst [vmem:[%s1604_s18 + $0x38] sm:$0xff] %v1253_v11 }
 0x173   : > { %v1257_v13 = vpop.eup %1256  ;;  %989 = vst [vmem:[%s1604_s18 + $0x60] sm:$0xff] %v1255_v12 }
 0x174   : > { %v1259_v14 = vpop.eup %1258  ;;  %991 = vst [vmem:[%s1604_s18 + $0x70] sm:$0xff] %v1257_v13 }
 0x175   : > { %v1261_v15 = vpop.eup %1260  ;;  %990 = vst [vmem:[%s1604_s18 + $0x68] sm:$0xff] %v1259_v14 }
 0x176   : > { %992 = vst [vmem:[%s1604_s18 + $0x78] sm:$0xff] %v1261_v15  ;;  %v1023_v20 = vld [vmem:[%s1604_s18 + $0x20] sm:$0xff] (%p1337_p5) }
 0x177   : > { %1024 = vst [vmem:[%s1002_s20 + $0x20] sm:$0xff] %v1023_v20  ;;  %v1027_v22 = vld [vmem:[%s1604_s18 + $0x30] sm:$0xff] }
 0x178   : > { %v1025_v21 = vld [vmem:[%s1604_s18 + $0x28] sm:$0xff]  ;;  %1028 = vst [vmem:[%s1002_s20 + $0x30] sm:$0xff] %v1027_v22 }
 0x179   : > { %1026 = vst [vmem:[%s1002_s20 + $0x28] sm:$0xff] %v1025_v21  ;;  %v1029_v23 = vld [vmem:[%s1604_s18 + $0x38] sm:$0xff] }
 0x17a   : > { %1030 = vst [vmem:[%s1002_s20 + $0x38] sm:$0xff] %v1029_v23  ;;  %v1039_v28 = vld [vmem:[%s1604_s18 + $0x60] sm:$0xff] }
 0x17b   : > { %v1043_v31 = vld [vmem:[%s1604_s18 + $0x70] sm:$0xff]  ;;  %1040 = vst [vmem:[%s1002_s20 + $0xa0] sm:$0xff] %v1039_v28 }
 0x17c   : > { %v1041_v30 = vld [vmem:[%s1604_s18 + $0x68] sm:$0xff]  ;;  %1044 = vst [vmem:[%s1002_s20 + $0xb0] sm:$0xff] %v1043_v31 }
 0x17d   : > { %1042 = vst [vmem:[%s1002_s20 + $0xa8] sm:$0xff] %v1041_v30  ;;  %v1045_v32 = vld [vmem:[%s1604_s18 + $0x78] sm:$0xff] }
 0x17e   : > { %1046 = vst [vmem:[%s1002_s20 + $0xb8] sm:$0xff] %v1045_v32 }
 0x17f PF: > { %p10_p10 = scmp.ge.s32.totalorder %s1324_s16, 4   ;;  %s1660_s12 = smov %s1280_s13 }
 0x180   : > { %s1661_s13 = smov %s1335_s19  ;;  %s1662_s14 = smov %s1324_s16 }
 0x181   :  { %12 = sbr.rel (!%p10_p10) target bundleno = 2 (0x2), region = 113 }

</bundles_post_ra>
